<compile_context>
chip_gen: v7x
topology: tpu7x:2x2x1
jax: 0.10.0
libtpu: 0.0.40
codegen_flags: <defaults>
</compile_context>

<pallas_src>
import functools

import numpy as np

import jax
import jax.numpy as jnp
from jax import lax
from jax.experimental import pallas as pl
from jax.experimental.pallas import tpu as pltpu

_LANE = 128


def _round_up(x, m):
  return ((x + m - 1) // m) * m


def _pad_last(x, multiple=_LANE):
  """Zero-pad the last dim of a weight/bias to a lane multiple."""
  c = x.shape[-1]
  t = _round_up(c, multiple)
  if t == c:
    return x
  pad = [(0, 0)] * (x.ndim - 1) + [(0, t - c)]
  return jnp.pad(x, pad)


def _token_model_kernel(
    hidden_ref, is_sub_ref, labels_ref,
    w1_ref, b1_ref, w2_ref, b2_ref,
    w3_ref, b3_ref, w4_ref, b4_ref,
    token_out_ref, word_out_ref, seq_out_ref,
    *, soft_attention_beta):
  blk_b, Sp, H = hidden_ref.shape
  h = hidden_ref[...]                      # (blk_b, Sp, H) bf16 — no f32 slab copy
  labels = labels_ref[...]                 # (blk_b, Sp) f32
  is_sub_f = is_sub_ref[...]               # (blk_b, Sp) f32 in {0,1}
  is_sub = is_sub_f > 0.5

  # ---- token attention head (eval-mode dropout = identity):
  #      Linear(H, 100->128 pad) -> Tanh -> Linear(100->128 pad, 1) -> Sigmoid
  #      bf16 operands into the MXU, f32 accumulation and elementwise math.
  hf = h.reshape(blk_b * Sp, H)
  z1 = jnp.dot(hf, w1_ref[...], preferred_element_type=jnp.float32) + b1_ref[...]
  a1 = jnp.tanh(z1)                                           # (blk_b*Sp, 128) f32
  tok_pre = jnp.sum(a1 * w2_ref[...], axis=1, keepdims=True) + b2_ref[...]
  tok = jax.nn.sigmoid(tok_pre).reshape(blk_b, Sp)            # token_attention_output

  # ---- subword merge (subword_method == 'max'):
  # Backward segmented cumulative max (Hillis-Steele doubling) along the lane
  # axis: O(Sp log Sp), no (S,S) intermediates.  flag = 1 at the last token of
  # each word segment; identity fill 0.0 is valid since sigmoid outputs are > 0.
  pos = lax.broadcasted_iota(jnp.int32, (blk_b, Sp), 1)

  def shift_left(x, d, fill):
    # y[t] = x[t + d] for t + d < Sp, else `fill` (identity element).
    rolled = pltpu.roll(x, Sp - d, 1)               # == jnp.roll(x, -d, axis=1)
    return jnp.where(pos < Sp - d, rolled, fill)

  next_is_sub = shift_left(is_sub_f, 1, 0.0)
  flag = 1.0 - next_is_sub
  val = tok
  d = 1
  while d < Sp:
    v_nbr = shift_left(val, d, 0.0)
    f_nbr = shift_left(flag, d, 0.0)
    val = jnp.where(flag > 0.5, val, jnp.maximum(val, v_nbr))
    flag = jnp.maximum(flag, f_nbr)
    d *= 2
  word = jnp.where(is_sub, tok, val)                # word_attention_output

  # ---- label masks (labels are exact small integers stored in f32; exact
  #      equality is intentional and matches the PyTorch module).
  token_mask = jnp.where((labels == 0.0) | (labels == 1.0), 1.0, 0.0)
  masked_token = word * token_mask                  # masked_token_attention_output
  word_mask = jnp.where(
      (labels == 0.0) | (labels == 1.0) | (labels == -2.0), 1.0, 0.0)
  masked_word = word * word_mask                    # masked_word_attention_output

  # ---- soft-attention normalisation (mask_subwords=False -> use masked_word).
  # Statically skip the pow for beta == 1; exact reciprocal (blk_b values only).
  if soft_attention_beta == 1:
    p = masked_word
  elif isinstance(soft_attention_beta, int):
    p = lax.integer_pow(masked_word, soft_attention_beta)
  else:
    p = masked_word ** soft_attention_beta
  denom = jnp.sum(p, axis=1, keepdims=True) + 1e-10
  norm = p * (1.0 / denom)                          # (blk_b, Sp)

  # ---- attention pooling on the MXU: batched (1,Sp)x(Sp,H) mat-vec, bf16
  #      operands with f32 accumulation (no full-slab VPU temporary).
  pooled = jnp.einsum(
      'bqs,bsh->bqh', norm.astype(jnp.bfloat16)[:, None, :], h,
      preferred_element_type=jnp.float32).reshape(blk_b, H)

  # ---- sentence head: Linear(H, 300->384 pad) -> Tanh -> Linear -> Sigmoid
  s1 = jnp.tanh(
      jnp.dot(pooled.astype(jnp.bfloat16), w3_ref[...],
              preferred_element_type=jnp.float32) + b3_ref[...])
  seq = jax.nn.sigmoid(
      jnp.sum(s1 * w4_ref[...], axis=1, keepdims=True) + b4_ref[...])  # (blk_b, 1)

  token_out_ref[...] = masked_token
  word_out_ref[...] = masked_word
  # lane-dense store for the (logically 1-wide) sequence logit
  seq_out_ref[...] = jnp.broadcast_to(seq, seq_out_ref.shape)


def token_model_forward(params, input_ids, attention_mask=None,
                        offset_mapping=None, labels=None, *,
                        soft_attention_beta=1, sentence_loss_weight=1.0,
                        token_loss_weight=1.0, regularizer_loss_weight=0.01,
                        block_b=None):
  # TODO(synk): the pretrained BERT encoder (self.seq2seq_model) has no clean
  # Pallas equivalent without its checkpoint; a deterministic embedding lookup
  # stands in for last_hidden_state (attention_mask unused, like the stand-in).
  del attention_mask
  B, S = input_ids.shape
  H = params["embedding"].shape[1]

  labels_f = labels.astype(jnp.float32)
  # 'bert-base' rule: a token is a subword continuation iff offset start != 0.
  is_sub_f = (offset_mapping[:, :, 0] != 0).astype(jnp.float32)

  # Pad the *tiny* inputs (ids / labels / is_sub) so the embedding lookup emits
  # the lane-aligned bf16 hidden slab directly (no extra (B,S,H) pad copy in
  # HBM).  Padded tokens/rows are fully masked (labels=-100, is_sub=0).
  Bp = _round_up(B, 8)
  Sp = _round_up(S, _LANE)
  pad_b, pad_s = Bp - B, Sp - S
  if pad_b or pad_s:
    input_ids_p = jnp.pad(input_ids, ((0, pad_b), (0, pad_s)))
    labels_p = jnp.pad(labels_f, ((0, pad_b), (0, pad_s)), constant_values=-100.0)
    is_sub_p = jnp.pad(is_sub_f, ((0, pad_b), (0, pad_s)))
  else:
    input_ids_p, labels_p, is_sub_p = input_ids, labels_f, is_sub_f

  hidden_p = params["embedding"][input_ids_p].astype(jnp.bfloat16)   # (Bp, Sp, H)

  # Zero-pad head widths to lane multiples (100 -> 128, 300 -> 384).  Padded
  # weight columns AND padded bias entries are zero, so tanh(0)=0 and the
  # zero-padded second-layer weights keep all reductions exact.  The big
  # first-layer weights travel as bf16 (MXU operands), everything else f32.
  w1 = _pad_last(params["w1"]).astype(jnp.bfloat16)
  b1 = _pad_last(params["b1"])
  w2 = _pad_last(params["w2"])
  b2 = params["b2"]
  w3 = _pad_last(params["w3"]).astype(jnp.bfloat16)
  b3 = _pad_last(params["b3"])
  w4 = _pad_last(params["w4"])
  b4 = params["b4"]

  weight_bytes = int((w1.size + w3.size) * 2
                     + (b1.size + w2.size + b2.size + b3.size + w4.size + b4.size) * 4)

  def block_vmem(bb):
    hid = bb * Sp * H * 2                      # bf16 hidden block
    row = bb * Sp * 4
    a1 = bb * Sp * w1.shape[1] * 4             # f32 head activation
    seqb = bb * _LANE * 4
    # double-buffered inputs/outputs + resident weights + activation scratch
    return (2 * (hid + 2 * row) + 2 * (2 * row + seqb)
            + weight_bytes + a1 + hid + 16 * row)

  try:
    vmem_cap = int(pltpu.get_tpu_info().vmem_capacity_bytes)
  except Exception:
    vmem_cap = 64 * 1024 * 1024                # conservative (v7x per-TC VMEM)

  # Batch tiling: block_b in {8,16,24,32}, divides Bp, fits ~55% of VMEM, and
  # keeps >= 2 grid steps when Bp >= 16 (megacore sharding + DMA/compute overlap).
  if block_b is None:
    budget = int(0.55 * vmem_cap)
    block_b = 8
    for cand in range(16, min(Bp, 32) + 1, 8):
      if Bp % cand:
        continue
      if Bp >= 16 and Bp // cand < 2:
        continue
      if block_vmem(cand) <= budget:
        block_b = cand
  nb = Bp // block_b

  est = block_vmem(block_b)
  vmem_limit = int(min(max(int(1.5 * est), 32 * 1024 * 1024),
                       int(0.75 * vmem_cap)))

  kernel = functools.partial(
      _token_model_kernel, soft_attention_beta=soft_attention_beta)

  bmap2 = lambda i: (i, 0)
  bmap3 = lambda i: (i, 0, 0)
  wmap2 = lambda i: (0, 0)          # weights resident across the batch grid
  # (optional further save: pipeline_mode=pl.Buffered(1) on the constant-index
  #  weight specs to drop their second pipeline buffer)

  in_specs = [
      pl.BlockSpec((block_b, Sp, H), bmap3),
      pl.BlockSpec((block_b, Sp), bmap2),
      pl.BlockSpec((block_b, Sp), bmap2),
      pl.BlockSpec(w1.shape, wmap2), pl.BlockSpec(b1.shape, wmap2),
      pl.BlockSpec(w2.shape, wmap2), pl.BlockSpec(b2.shape, wmap2),
      pl.BlockSpec(w3.shape, wmap2), pl.BlockSpec(b3.shape, wmap2),
      pl.BlockSpec(w4.shape, wmap2), pl.BlockSpec(b4.shape, wmap2),
  ]
  out_specs = (
      pl.BlockSpec((block_b, Sp), bmap2),
      pl.BlockSpec((block_b, Sp), bmap2),
      pl.BlockSpec((block_b, _LANE), bmap2),
  )
  out_shape = (
      jax.ShapeDtypeStruct((Bp, Sp), jnp.float32),     # masked token logits
      jax.ShapeDtypeStruct((Bp, Sp), jnp.float32),     # masked word logits
      jax.ShapeDtypeStruct((Bp, _LANE), jnp.float32),  # seq logits (lane-padded)
  )

  n_head = w1.shape[1]
  n_sent = w3.shape[1]
  cost = pl.CostEstimate(
      flops=int(2 * Bp * Sp * H * n_head + 2 * Bp * Sp * n_head
                + 2 * Bp * Sp * H + 2 * Bp * H * n_sent + 2 * Bp * n_sent),
      transcendentals=int(Bp * Sp * (n_head + 1) + Bp * (n_sent + 1)),
      bytes_accessed=int(2 * Bp * Sp * H + 4 * (4 * Bp * Sp + Bp * _LANE)
                         + weight_bytes),
  )

  masked_token_p, masked_word_p, seq_p = pl.pallas_call(
      kernel,
      out_shape=out_shape,
      grid=(nb,),
      in_specs=in_specs,
      out_specs=out_specs,
      compiler_params=pltpu.CompilerParams(
          dimension_semantics=("parallel",),
          vmem_limit_bytes=vmem_limit),
      cost_estimate=cost,
  )(hidden_p, is_sub_p, labels_p, w1, b1, w2, b2, w3, b3, w4, b4)

  masked_token = masked_token_p[:B, :S]
  masked_word = masked_word_p[:B, :S]
  seq_logits = seq_p[:B, :1]

  # ---- losses in plain JAX (defaults: all supervision on, no normalisation).
  sentence_labels = jnp.max(labels_f, axis=1, keepdims=True)         # (B, 1)
  sentence_loss = jnp.mean((seq_logits - sentence_labels) ** 2)
  zero_labels = jnp.where(labels_f == 1.0, labels_f, 0.0)
  token_loss = jnp.mean((masked_token - zero_labels) ** 2)
  word_ones = jnp.where(masked_word == 0.0, 1.0, masked_word)
  reg_a = jnp.sum(jnp.min(word_ones, axis=1, keepdims=True) ** 2)
  reg_b = jnp.sum((jnp.max(masked_word, axis=1, keepdims=True) - sentence_labels) ** 2)
  total = (sentence_loss * sentence_loss_weight
           + token_loss * token_loss_weight
           + (reg_a + reg_b) * regularizer_loss_weight)

  return {
      "loss": total,
      "sentence_loss": sentence_loss,
      "token_loss": token_loss,
      "regularizer_loss_a": reg_a,
      "regularizer_loss_b": reg_b,
      "token_embeddings": hidden_p[:B, :S],
      "token_logits": masked_token,
      "sequence_logits": seq_logits,
  }


def _xavier_uniform(key, fan_in, fan_out):
  bound = (6.0 / (fan_in + fan_out)) ** 0.5
  return jax.random.uniform(key, (fan_in, fan_out), jnp.float32, -bound, bound)


def init_params(key, vocab_size, hidden):
  ks = jax.random.split(key, 5)
  return {
      "embedding": jax.random.normal(ks[0], (vocab_size, hidden), jnp.float32) * 0.02,
      # token_attention: Linear(hidden, 100), Linear(100, 1); biases filled 0.01
      "w1": _xavier_uniform(ks[1], hidden, 100),
      "b1": jnp.full((1, 100), 0.01, jnp.float32),
      "w2": _xavier_uniform(ks[2], 100, 1).reshape(1, 100),
      "b2": jnp.full((1, 1), 0.01, jnp.float32),
      # sentence_classification: Linear(hidden, 300), Linear(300, 1)
      "w3": _xavier_uniform(ks[3], hidden, 300),
      "b3": jnp.full((1, 300), 0.01, jnp.float32),
      "w4": _xavier_uniform(ks[4], 300, 1).reshape(1, 300),
      "b4": jnp.full((1, 1), 0.01, jnp.float32),
  }


def _bf16_round(x):
  return np.asarray(
      jnp.asarray(np.asarray(x, np.float32)).astype(jnp.bfloat16).astype(jnp.float32))


def _reference_forward(params, input_ids, offset_mapping, labels, *,
                       soft_attention_beta=1, sentence_loss_weight=1.0,
                       token_loss_weight=1.0, regularizer_loss_weight=0.01):
  """Pure numpy reference mirroring the PyTorch module (eval mode).

  Uses bf16-rounded hidden / w1 / w3 (the kernel's HBM-stream precision) with
  all downstream math in f32, matching the kernel's numerics.
  """
  emb = _bf16_round(params["embedding"])
  hidden = emb[np.asarray(input_ids)].astype(np.float32)
  B, S, H = hidden.shape
  w1, b1 = _bf16_round(params["w1"]), np.asarray(params["b1"])
  w2, b2 = np.asarray(params["w2"]), np.asarray(params["b2"])
  w3, b3 = _bf16_round(params["w3"]), np.asarray(params["b3"])
  w4, b4 = np.asarray(params["w4"]), np.asarray(params["b4"])
  sigmoid = lambda x: 1.0 / (1.0 + np.exp(-x))
  a1 = np.tanh(hidden.reshape(B * S, H) @ w1 + b1)
  tok = sigmoid((a1 * w2).sum(1, keepdims=True) + b2).reshape(B, S)
  is_sub = np.asarray(offset_mapping)[:, :, 0] != 0
  word = tok.copy()
  for b in range(B):
    j = 0
    while j < S:
      if not is_sub[b, j]:
        k = j + 1
        while k < S and is_sub[b, k]:
          k += 1
        if k > j + 1:
          word[b, j] = tok[b, j:k].max()
        j = k
      else:
        j += 1
  lab = np.asarray(labels, np.float32)
  tmask = ((lab == 0) | (lab == 1)).astype(np.float32)
  wmask = ((lab == 0) | (lab == 1) | (lab == -2)).astype(np.float32)
  masked_token = word * tmask
  masked_word = word * wmask
  p = masked_word ** soft_attention_beta
  norm = p / (p.sum(1, keepdims=True) + 1e-10)
  pooled = (hidden * norm[:, :, None]).sum(1)
  s1 = np.tanh(pooled @ w3 + b3)
  seq = sigmoid((s1 * w4).sum(1, keepdims=True) + b4)
  sent_lab = lab.max(1, keepdims=True)
  sentence_loss = np.mean((seq - sent_lab) ** 2)
  zero_lab = np.where(lab == 1, lab, 0.0)
  token_loss = np.mean((masked_token - zero_lab) ** 2)
  ones = np.where(masked_word == 0, 1.0, masked_word)
  reg_a = np.sum(ones.min(1, keepdims=True) ** 2)
  reg_b = np.sum((masked_word.max(1, keepdims=True) - sent_lab) ** 2)
  total = (sentence_loss * sentence_loss_weight + token_loss * token_loss_weight
           + (reg_a + reg_b) * regularizer_loss_weight)
  return {"loss": total, "token_logits": masked_token, "sequence_logits": seq}


if __name__ == "__main__":
  B, S, H, V = 2, 8, 32, 50
  key = jax.random.PRNGKey(0)
  pkey, ikey = jax.random.split(key)
  params = init_params(pkey, V, H)

  input_ids = jax.random.randint(ikey, (B, S), 0, V)
  attention_mask = jnp.ones((B, S), jnp.int32)

  # offset_mapping (B, S, 2): nonzero start offset marks a subword continuation.
  offset_mapping = jnp.zeros((B, S, 2), jnp.int32)
  offset_mapping = offset_mapping.at[0, 2, 0].set(3)   # subword of token (0,1)
  offset_mapping = offset_mapping.at[0, 3, 0].set(5)   # subword of token (0,1)
  offset_mapping = offset_mapping.at[1, 3, 0].set(2)   # subword of token (1,2)

  # labels: 1/0 = supervised token labels, -2 = subword, -100 = padding/special
  labels = jnp.array(
      [[0., 1., -2., -2., 0., -100., -100., -100.],
       [0., 0., 1., -2., 0., 0., -100., -100.]], dtype=jnp.float32)

  forward = jax.jit(token_model_forward)
  out = forward(params, input_ids, attention_mask, offset_mapping, labels)
  jax.block_until_ready(out)

  # Lightweight sanity check against a pure numpy reference of the module.
  ref = _reference_forward(params, input_ids, offset_mapping, labels)
  ok = (np.allclose(np.asarray(out["token_logits"]), ref["token_logits"],
                    atol=5e-3, rtol=5e-3)
        and np.allclose(np.asarray(out["sequence_logits"]), ref["sequence_logits"],
                        atol=5e-3, rtol=5e-3)
        and np.allclose(float(out["loss"]), float(ref["loss"]),
                        atol=5e-3, rtol=5e-3))
  if not ok:
    print("WARNING: kernel output deviates from reference beyond tolerance")
  print("KERNEL_OK")
</pallas_src>

<mosaic_0001>
module attributes {stable_mosaic.version = 11 : i64} {
  func.func @_token_model_kernel(%arg0: i32, %arg1: memref<8x128x32xbf16, #tpu.memory_space<vmem>>, %arg2: memref<8x128xf32, #tpu.memory_space<vmem>>, %arg3: memref<8x128xf32, #tpu.memory_space<vmem>>, %arg4: memref<32x128xbf16, #tpu.memory_space<vmem>>, %arg5: memref<1x128xf32, #tpu.memory_space<vmem>>, %arg6: memref<1x128xf32, #tpu.memory_space<vmem>>, %arg7: memref<1x1xf32, #tpu.memory_space<vmem>>, %arg8: memref<32x384xbf16, #tpu.memory_space<vmem>>, %arg9: memref<1x384xf32, #tpu.memory_space<vmem>>, %arg10: memref<1x384xf32, #tpu.memory_space<vmem>>, %arg11: memref<1x1xf32, #tpu.memory_space<vmem>>, %arg12: memref<8x128xf32, #tpu.memory_space<vmem>>, %arg13: memref<8x128xf32, #tpu.memory_space<vmem>>, %arg14: memref<8x128xf32, #tpu.memory_space<vmem>>) attributes {dimension_semantics = [#tpu.dimension_semantics<parallel>], iteration_bounds = array<i64: 1>, scalar_prefetch = 0 : i64, scratch_operands = 0 : i64, tpu.core_type = #tpu.core_type<tc>, window_params = [{transform_indices = @transform_0, window_bounds = array<i64: 8, 128, 32>}, {transform_indices = @transform_1, window_bounds = array<i64: 8, 128>}, {transform_indices = @transform_2, window_bounds = array<i64: 8, 128>}, {pipeline_mode = #tpu.pipeline_mode<synchronous>, transform_indices = @transform_3, window_bounds = array<i64: 32, 128>}, {pipeline_mode = #tpu.pipeline_mode<synchronous>, transform_indices = @transform_4, window_bounds = array<i64: 1, 128>}, {pipeline_mode = #tpu.pipeline_mode<synchronous>, transform_indices = @transform_5, window_bounds = array<i64: 1, 128>}, {pipeline_mode = #tpu.pipeline_mode<synchronous>, transform_indices = @transform_6, window_bounds = array<i64: 1, 1>}, {pipeline_mode = #tpu.pipeline_mode<synchronous>, transform_indices = @transform_7, window_bounds = array<i64: 32, 384>}, {pipeline_mode = #tpu.pipeline_mode<synchronous>, transform_indices = @transform_8, window_bounds = array<i64: 1, 384>}, {pipeline_mode = #tpu.pipeline_mode<synchronous>, transform_indices = @transform_9, window_bounds = array<i64: 1, 384>}, {pipeline_mode = #tpu.pipeline_mode<synchronous>, transform_indices = @transform_10, window_bounds = array<i64: 1, 1>}, {transform_indices = @transform_11, window_bounds = array<i64: 8, 128>}, {transform_indices = @transform_12, window_bounds = array<i64: 8, 128>}, {transform_indices = @transform_13, window_bounds = array<i64: 8, 128>}]} {
    %c0 = arith.constant 0 : index
    %c0_0 = arith.constant 0 : index
    %c0_1 = arith.constant 0 : index
    %0 = vector.load %arg1[%c0, %c0_0, %c0_1] : memref<8x128x32xbf16, #tpu.memory_space<vmem>>, vector<8x128x32xbf16>
    %c0_2 = arith.constant 0 : index
    %c0_3 = arith.constant 0 : index
    %1 = vector.load %arg3[%c0_2, %c0_3] : memref<8x128xf32, #tpu.memory_space<vmem>>, vector<8x128xf32>
    %c0_4 = arith.constant 0 : index
    %c0_5 = arith.constant 0 : index
    %2 = vector.load %arg2[%c0_4, %c0_5] : memref<8x128xf32, #tpu.memory_space<vmem>>, vector<8x128xf32>
    %cst = arith.constant 5.000000e-01 : f32
    %3 = vector.broadcast %cst : f32 to vector<8x128xf32>
    %4 = arith.cmpf ogt, %2, %3 : vector<8x128xf32>
    %5 = vector.shape_cast %0 : vector<8x128x32xbf16> to vector<1024x32xbf16>
    %c0_6 = arith.constant 0 : index
    %c0_7 = arith.constant 0 : index
    %6 = vector.load %arg4[%c0_6, %c0_7] : memref<32x128xbf16, #tpu.memory_space<vmem>>, vector<32x128xbf16>
    %cst_8 = arith.constant dense<0.000000e+00> : vector<1024x128xf32>
    %7 = tpu.matmul %5, %6, %cst_8 {dimension_numbers = #tpu.dot_dimension_numbers<[1], [0], [0], [1], [0, 0, 1, 1], [], []>} : vector<1024x32xbf16>, vector<32x128xbf16>, vector<1024x128xf32> -> vector<1024x128xf32>
    %c0_9 = arith.constant 0 : index
    %c0_10 = arith.constant 0 : index
    %8 = vector.load %arg5[%c0_9, %c0_10] : memref<1x128xf32, #tpu.memory_space<vmem>>, vector<1x128xf32>
    %9 = vector.broadcast %8 : vector<1x128xf32> to vector<1024x128xf32>
    %10 = arith.addf %7, %9 : vector<1024x128xf32>
    %11 = math.tanh %10 : vector<1024x128xf32>
    %c0_11 = arith.constant 0 : index
    %c0_12 = arith.constant 0 : index
    %12 = vector.load %arg6[%c0_11, %c0_12] : memref<1x128xf32, #tpu.memory_space<vmem>>, vector<1x128xf32>
    %13 = vector.broadcast %12 : vector<1x128xf32> to vector<1024x128xf32>
    %14 = arith.mulf %11, %13 : vector<1024x128xf32>
    %cst_13 = arith.constant dense<0.000000e+00> : vector<1024xf32>
    %15 = vector.multi_reduction <add>, %14, %cst_13 [1] : vector<1024x128xf32> to vector<1024xf32>
    %16 = vector.shape_cast %15 : vector<1024xf32> to vector<1024x1xf32>
    %c0_14 = arith.constant 0 : index
    %c0_15 = arith.constant 0 : index
    %17 = vector.load %arg7[%c0_14, %c0_15] : memref<1x1xf32, #tpu.memory_space<vmem>>, vector<1x1xf32>
    %18 = vector.broadcast %17 : vector<1x1xf32> to vector<1024x1xf32>
    %19 = arith.addf %16, %18 : vector<1024x1xf32>
    %20 = arith.negf %19 : vector<1024x1xf32>
    %21 = math.exp %20 : vector<1024x1xf32>
    %cst_16 = arith.constant 1.000000e+00 : f32
    %22 = vector.broadcast %cst_16 : f32 to vector<1024x1xf32>
    %23 = arith.addf %22, %21 : vector<1024x1xf32>
    %24 = arith.divf %22, %23 : vector<1024x1xf32>
    %25 = vector.shape_cast %24 : vector<1024x1xf32> to vector<8x128xf32>
    %26 = tpu.iota {dimensions = array<i32: 1>} : vector<8x128xi32>
    %c127_i32 = arith.constant 127 : i32
    %27 = tpu.dynamic_rotate %2 by %c127_i32 dim 1 : vector<8x128xf32>, i32 -> vector<8x128xf32>
    %c127_i32_17 = arith.constant 127 : i32
    %28 = vector.broadcast %c127_i32_17 : i32 to vector<8x128xi32>
    %29 = arith.cmpi slt, %26, %28 : vector<8x128xi32>
    %cst_18 = arith.constant 0.000000e+00 : f32
    %30 = vector.broadcast %cst_18 : f32 to vector<8x128xf32>
    %31 = arith.select %29, %27, %30 : vector<8x128xi1>, vector<8x128xf32>
    %cst_19 = arith.constant 1.000000e+00 : f32
    %32 = vector.broadcast %cst_19 : f32 to vector<8x128xf32>
    %33 = arith.subf %32, %31 : vector<8x128xf32>
    %c127_i32_20 = arith.constant 127 : i32
    %34 = tpu.dynamic_rotate %25 by %c127_i32_20 dim 1 : vector<8x128xf32>, i32 -> vector<8x128xf32>
    %c127_i32_21 = arith.constant 127 : i32
    %35 = vector.broadcast %c127_i32_21 : i32 to vector<8x128xi32>
    %36 = arith.cmpi slt, %26, %35 : vector<8x128xi32>
    %cst_22 = arith.constant 0.000000e+00 : f32
    %37 = vector.broadcast %cst_22 : f32 to vector<8x128xf32>
    %38 = arith.select %36, %34, %37 : vector<8x128xi1>, vector<8x128xf32>
    %c127_i32_23 = arith.constant 127 : i32
    %39 = tpu.dynamic_rotate %33 by %c127_i32_23 dim 1 : vector<8x128xf32>, i32 -> vector<8x128xf32>
    %c127_i32_24 = arith.constant 127 : i32
    %40 = vector.broadcast %c127_i32_24 : i32 to vector<8x128xi32>
    %41 = arith.cmpi slt, %26, %40 : vector<8x128xi32>
    %cst_25 = arith.constant 0.000000e+00 : f32
    %42 = vector.broadcast %cst_25 : f32 to vector<8x128xf32>
    %43 = arith.select %41, %39, %42 : vector<8x128xi1>, vector<8x128xf32>
    %cst_26 = arith.constant 5.000000e-01 : f32
    %44 = vector.broadcast %cst_26 : f32 to vector<8x128xf32>
    %45 = arith.cmpf ogt, %33, %44 : vector<8x128xf32>
    %46 = arith.maximumf %25, %38 : vector<8x128xf32>
    %47 = arith.select %45, %25, %46 : vector<8x128xi1>, vector<8x128xf32>
    %48 = arith.maximumf %33, %43 : vector<8x128xf32>
    %c126_i32 = arith.constant 126 : i32
    %49 = tpu.dynamic_rotate %47 by %c126_i32 dim 1 : vector<8x128xf32>, i32 -> vector<8x128xf32>
    %c126_i32_27 = arith.constant 126 : i32
    %50 = vector.broadcast %c126_i32_27 : i32 to vector<8x128xi32>
    %51 = arith.cmpi slt, %26, %50 : vector<8x128xi32>
    %cst_28 = arith.constant 0.000000e+00 : f32
    %52 = vector.broadcast %cst_28 : f32 to vector<8x128xf32>
    %53 = arith.select %51, %49, %52 : vector<8x128xi1>, vector<8x128xf32>
    %c126_i32_29 = arith.constant 126 : i32
    %54 = tpu.dynamic_rotate %48 by %c126_i32_29 dim 1 : vector<8x128xf32>, i32 -> vector<8x128xf32>
    %c126_i32_30 = arith.constant 126 : i32
    %55 = vector.broadcast %c126_i32_30 : i32 to vector<8x128xi32>
    %56 = arith.cmpi slt, %26, %55 : vector<8x128xi32>
    %cst_31 = arith.constant 0.000000e+00 : f32
    %57 = vector.broadcast %cst_31 : f32 to vector<8x128xf32>
    %58 = arith.select %56, %54, %57 : vector<8x128xi1>, vector<8x128xf32>
    %cst_32 = arith.constant 5.000000e-01 : f32
    %59 = vector.broadcast %cst_32 : f32 to vector<8x128xf32>
    %60 = arith.cmpf ogt, %48, %59 : vector<8x128xf32>
    %61 = arith.maximumf %47, %53 : vector<8x128xf32>
    %62 = arith.select %60, %47, %61 : vector<8x128xi1>, vector<8x128xf32>
    %63 = arith.maximumf %48, %58 : vector<8x128xf32>
    %c124_i32 = arith.constant 124 : i32
    %64 = tpu.dynamic_rotate %62 by %c124_i32 dim 1 : vector<8x128xf32>, i32 -> vector<8x128xf32>
    %c124_i32_33 = arith.constant 124 : i32
    %65 = vector.broadcast %c124_i32_33 : i32 to vector<8x128xi32>
    %66 = arith.cmpi slt, %26, %65 : vector<8x128xi32>
    %cst_34 = arith.constant 0.000000e+00 : f32
    %67 = vector.broadcast %cst_34 : f32 to vector<8x128xf32>
    %68 = arith.select %66, %64, %67 : vector<8x128xi1>, vector<8x128xf32>
    %c124_i32_35 = arith.constant 124 : i32
    %69 = tpu.dynamic_rotate %63 by %c124_i32_35 dim 1 : vector<8x128xf32>, i32 -> vector<8x128xf32>
    %c124_i32_36 = arith.constant 124 : i32
    %70 = vector.broadcast %c124_i32_36 : i32 to vector<8x128xi32>
    %71 = arith.cmpi slt, %26, %70 : vector<8x128xi32>
    %cst_37 = arith.constant 0.000000e+00 : f32
    %72 = vector.broadcast %cst_37 : f32 to vector<8x128xf32>
    %73 = arith.select %71, %69, %72 : vector<8x128xi1>, vector<8x128xf32>
    %cst_38 = arith.constant 5.000000e-01 : f32
    %74 = vector.broadcast %cst_38 : f32 to vector<8x128xf32>
    %75 = arith.cmpf ogt, %63, %74 : vector<8x128xf32>
    %76 = arith.maximumf %62, %68 : vector<8x128xf32>
    %77 = arith.select %75, %62, %76 : vector<8x128xi1>, vector<8x128xf32>
    %78 = arith.maximumf %63, %73 : vector<8x128xf32>
    %c120_i32 = arith.constant 120 : i32
    %79 = tpu.dynamic_rotate %77 by %c120_i32 dim 1 : vector<8x128xf32>, i32 -> vector<8x128xf32>
    %c120_i32_39 = arith.constant 120 : i32
    %80 = vector.broadcast %c120_i32_39 : i32 to vector<8x128xi32>
    %81 = arith.cmpi slt, %26, %80 : vector<8x128xi32>
    %cst_40 = arith.constant 0.000000e+00 : f32
    %82 = vector.broadcast %cst_40 : f32 to vector<8x128xf32>
    %83 = arith.select %81, %79, %82 : vector<8x128xi1>, vector<8x128xf32>
    %c120_i32_41 = arith.constant 120 : i32
    %84 = tpu.dynamic_rotate %78 by %c120_i32_41 dim 1 : vector<8x128xf32>, i32 -> vector<8x128xf32>
    %c120_i32_42 = arith.constant 120 : i32
    %85 = vector.broadcast %c120_i32_42 : i32 to vector<8x128xi32>
    %86 = arith.cmpi slt, %26, %85 : vector<8x128xi32>
    %cst_43 = arith.constant 0.000000e+00 : f32
    %87 = vector.broadcast %cst_43 : f32 to vector<8x128xf32>
    %88 = arith.select %86, %84, %87 : vector<8x128xi1>, vector<8x128xf32>
    %cst_44 = arith.constant 5.000000e-01 : f32
    %89 = vector.broadcast %cst_44 : f32 to vector<8x128xf32>
    %90 = arith.cmpf ogt, %78, %89 : vector<8x128xf32>
    %91 = arith.maximumf %77, %83 : vector<8x128xf32>
    %92 = arith.select %90, %77, %91 : vector<8x128xi1>, vector<8x128xf32>
    %93 = arith.maximumf %78, %88 : vector<8x128xf32>
    %c112_i32 = arith.constant 112 : i32
    %94 = tpu.dynamic_rotate %92 by %c112_i32 dim 1 : vector<8x128xf32>, i32 -> vector<8x128xf32>
    %c112_i32_45 = arith.constant 112 : i32
    %95 = vector.broadcast %c112_i32_45 : i32 to vector<8x128xi32>
    %96 = arith.cmpi slt, %26, %95 : vector<8x128xi32>
    %cst_46 = arith.constant 0.000000e+00 : f32
    %97 = vector.broadcast %cst_46 : f32 to vector<8x128xf32>
    %98 = arith.select %96, %94, %97 : vector<8x128xi1>, vector<8x128xf32>
    %c112_i32_47 = arith.constant 112 : i32
    %99 = tpu.dynamic_rotate %93 by %c112_i32_47 dim 1 : vector<8x128xf32>, i32 -> vector<8x128xf32>
    %c112_i32_48 = arith.constant 112 : i32
    %100 = vector.broadcast %c112_i32_48 : i32 to vector<8x128xi32>
    %101 = arith.cmpi slt, %26, %100 : vector<8x128xi32>
    %cst_49 = arith.constant 0.000000e+00 : f32
    %102 = vector.broadcast %cst_49 : f32 to vector<8x128xf32>
    %103 = arith.select %101, %99, %102 : vector<8x128xi1>, vector<8x128xf32>
    %cst_50 = arith.constant 5.000000e-01 : f32
    %104 = vector.broadcast %cst_50 : f32 to vector<8x128xf32>
    %105 = arith.cmpf ogt, %93, %104 : vector<8x128xf32>
    %106 = arith.maximumf %92, %98 : vector<8x128xf32>
    %107 = arith.select %105, %92, %106 : vector<8x128xi1>, vector<8x128xf32>
    %108 = arith.maximumf %93, %103 : vector<8x128xf32>
    %c96_i32 = arith.constant 96 : i32
    %109 = tpu.dynamic_rotate %107 by %c96_i32 dim 1 : vector<8x128xf32>, i32 -> vector<8x128xf32>
    %c96_i32_51 = arith.constant 96 : i32
    %110 = vector.broadcast %c96_i32_51 : i32 to vector<8x128xi32>
    %111 = arith.cmpi slt, %26, %110 : vector<8x128xi32>
    %cst_52 = arith.constant 0.000000e+00 : f32
    %112 = vector.broadcast %cst_52 : f32 to vector<8x128xf32>
    %113 = arith.select %111, %109, %112 : vector<8x128xi1>, vector<8x128xf32>
    %c96_i32_53 = arith.constant 96 : i32
    %114 = tpu.dynamic_rotate %108 by %c96_i32_53 dim 1 : vector<8x128xf32>, i32 -> vector<8x128xf32>
    %c96_i32_54 = arith.constant 96 : i32
    %115 = vector.broadcast %c96_i32_54 : i32 to vector<8x128xi32>
    %116 = arith.cmpi slt, %26, %115 : vector<8x128xi32>
    %cst_55 = arith.constant 0.000000e+00 : f32
    %117 = vector.broadcast %cst_55 : f32 to vector<8x128xf32>
    %118 = arith.select %116, %114, %117 : vector<8x128xi1>, vector<8x128xf32>
    %cst_56 = arith.constant 5.000000e-01 : f32
    %119 = vector.broadcast %cst_56 : f32 to vector<8x128xf32>
    %120 = arith.cmpf ogt, %108, %119 : vector<8x128xf32>
    %121 = arith.maximumf %107, %113 : vector<8x128xf32>
    %122 = arith.select %120, %107, %121 : vector<8x128xi1>, vector<8x128xf32>
    %123 = arith.maximumf %108, %118 : vector<8x128xf32>
    %c64_i32 = arith.constant 64 : i32
    %124 = tpu.dynamic_rotate %122 by %c64_i32 dim 1 : vector<8x128xf32>, i32 -> vector<8x128xf32>
    %c64_i32_57 = arith.constant 64 : i32
    %125 = vector.broadcast %c64_i32_57 : i32 to vector<8x128xi32>
    %126 = arith.cmpi slt, %26, %125 : vector<8x128xi32>
    %cst_58 = arith.constant 0.000000e+00 : f32
    %127 = vector.broadcast %cst_58 : f32 to vector<8x128xf32>
    %128 = arith.select %126, %124, %127 : vector<8x128xi1>, vector<8x128xf32>
    %cst_59 = arith.constant 5.000000e-01 : f32
    %129 = vector.broadcast %cst_59 : f32 to vector<8x128xf32>
    %130 = arith.cmpf ogt, %123, %129 : vector<8x128xf32>
    %131 = arith.maximumf %122, %128 : vector<8x128xf32>
    %132 = arith.select %130, %122, %131 : vector<8x128xi1>, vector<8x128xf32>
    %133 = arith.select %4, %25, %132 : vector<8x128xi1>, vector<8x128xf32>
    %cst_60 = arith.constant 0.000000e+00 : f32
    %134 = vector.broadcast %cst_60 : f32 to vector<8x128xf32>
    %135 = arith.cmpf oeq, %1, %134 : vector<8x128xf32>
    %cst_61 = arith.constant 1.000000e+00 : f32
    %136 = vector.broadcast %cst_61 : f32 to vector<8x128xf32>
    %137 = arith.cmpf oeq, %1, %136 : vector<8x128xf32>
    %138 = arith.ori %135, %137 : vector<8x128xi1>
    %cst_62 = arith.constant 1.000000e+00 : f32
    %cst_63 = arith.constant 0.000000e+00 : f32
    %139 = vector.broadcast %cst_62 : f32 to vector<8x128xf32>
    %140 = vector.broadcast %cst_63 : f32 to vector<8x128xf32>
    %141 = arith.select %138, %139, %140 : vector<8x128xi1>, vector<8x128xf32>
    %142 = arith.mulf %133, %141 : vector<8x128xf32>
    %cst_64 = arith.constant 0.000000e+00 : f32
    %143 = vector.broadcast %cst_64 : f32 to vector<8x128xf32>
    %144 = arith.cmpf oeq, %1, %143 : vector<8x128xf32>
    %cst_65 = arith.constant 1.000000e+00 : f32
    %145 = vector.broadcast %cst_65 : f32 to vector<8x128xf32>
    %146 = arith.cmpf oeq, %1, %145 : vector<8x128xf32>
    %147 = arith.ori %144, %146 : vector<8x128xi1>
    %cst_66 = arith.constant -2.000000e+00 : f32
    %148 = vector.broadcast %cst_66 : f32 to vector<8x128xf32>
    %149 = arith.cmpf oeq, %1, %148 : vector<8x128xf32>
    %150 = arith.ori %147, %149 : vector<8x128xi1>
    %cst_67 = arith.constant 1.000000e+00 : f32
    %cst_68 = arith.constant 0.000000e+00 : f32
    %151 = vector.broadcast %cst_67 : f32 to vector<8x128xf32>
    %152 = vector.broadcast %cst_68 : f32 to vector<8x128xf32>
    %153 = arith.select %150, %151, %152 : vector<8x128xi1>, vector<8x128xf32>
    %154 = arith.mulf %133, %153 : vector<8x128xf32>
    %cst_69 = arith.constant dense<0.000000e+00> : vector<8xf32>
    %155 = vector.multi_reduction <add>, %154, %cst_69 [1] : vector<8x128xf32> to vector<8xf32>
    %156 = vector.shape_cast %155 : vector<8xf32> to vector<8x1xf32>
    %cst_70 = arith.constant 1.000000e-10 : f32
    %157 = vector.broadcast %cst_70 : f32 to vector<8x1xf32>
    %158 = arith.addf %156, %157 : vector<8x1xf32>
    %cst_71 = arith.constant 1.000000e+00 : f32
    %159 = vector.broadcast %cst_71 : f32 to vector<8x1xf32>
    %160 = arith.divf %159, %158 : vector<8x1xf32>
    %161 = vector.broadcast %160 : vector<8x1xf32> to vector<8x128xf32>
    %162 = arith.mulf %154, %161 : vector<8x128xf32>
    %163 = arith.truncf %162 : vector<8x128xf32> to vector<8x128xbf16>
    %164 = vector.shape_cast %163 : vector<8x128xbf16> to vector<8x1x128xbf16>
    "tpu.trace_start"() <{level = 10 : i32, message = "bqs,bsh->bqh"}> : () -> ()
    %cst_72 = arith.constant dense<0.000000e+00> : vector<8x1x32xf32>
    %165 = tpu.matmul %164, %0, %cst_72 {dimension_numbers = #tpu.dot_dimension_numbers<[2], [1], [1], [2], [0, 0, 0, 1, 1, 2], [0], [0]>} : vector<8x1x128xbf16>, vector<8x128x32xbf16>, vector<8x1x32xf32> -> vector<8x1x32xf32>
    "tpu.trace_stop"() : () -> ()
    %166 = vector.shape_cast %165 : vector<8x1x32xf32> to vector<8x32xf32>
    %167 = arith.truncf %166 : vector<8x32xf32> to vector<8x32xbf16>
    %c0_73 = arith.constant 0 : index
    %c0_74 = arith.constant 0 : index
    %168 = vector.load %arg8[%c0_73, %c0_74] : memref<32x384xbf16, #tpu.memory_space<vmem>>, vector<32x384xbf16>
    %cst_75 = arith.constant dense<0.000000e+00> : vector<8x384xf32>
    %169 = tpu.matmul %167, %168, %cst_75 {dimension_numbers = #tpu.dot_dimension_numbers<[1], [0], [0], [1], [0, 0, 1, 1], [], []>} : vector<8x32xbf16>, vector<32x384xbf16>, vector<8x384xf32> -> vector<8x384xf32>
    %c0_76 = arith.constant 0 : index
    %c0_77 = arith.constant 0 : index
    %170 = vector.load %arg9[%c0_76, %c0_77] : memref<1x384xf32, #tpu.memory_space<vmem>>, vector<1x384xf32>
    %171 = vector.broadcast %170 : vector<1x384xf32> to vector<8x384xf32>
    %172 = arith.addf %169, %171 : vector<8x384xf32>
    %173 = math.tanh %172 : vector<8x384xf32>
    %c0_78 = arith.constant 0 : index
    %c0_79 = arith.constant 0 : index
    %174 = vector.load %arg10[%c0_78, %c0_79] : memref<1x384xf32, #tpu.memory_space<vmem>>, vector<1x384xf32>
    %175 = vector.broadcast %174 : vector<1x384xf32> to vector<8x384xf32>
    %176 = arith.mulf %173, %175 : vector<8x384xf32>
    %cst_80 = arith.constant dense<0.000000e+00> : vector<8xf32>
    %177 = vector.multi_reduction <add>, %176, %cst_80 [1] : vector<8x384xf32> to vector<8xf32>
    %178 = vector.shape_cast %177 : vector<8xf32> to vector<8x1xf32>
    %c0_81 = arith.constant 0 : index
    %c0_82 = arith.constant 0 : index
    %179 = vector.load %arg11[%c0_81, %c0_82] : memref<1x1xf32, #tpu.memory_space<vmem>>, vector<1x1xf32>
    %180 = vector.broadcast %179 : vector<1x1xf32> to vector<8x1xf32>
    %181 = arith.addf %178, %180 : vector<8x1xf32>
    %182 = arith.negf %181 : vector<8x1xf32>
    %183 = math.exp %182 : vector<8x1xf32>
    %cst_83 = arith.constant 1.000000e+00 : f32
    %184 = vector.broadcast %cst_83 : f32 to vector<8x1xf32>
    %185 = arith.addf %184, %183 : vector<8x1xf32>
    %186 = arith.divf %184, %185 : vector<8x1xf32>
    %c0_84 = arith.constant 0 : index
    %c0_85 = arith.constant 0 : index
    %187 = vector.load %arg12[%c0_84, %c0_85] : memref<8x128xf32, #tpu.memory_space<vmem>>, vector<8x128xf32>
    tpu.vector_store %arg12[%c0_84, %c0_85], %142 {strides = array<i32>} : memref<8x128xf32, #tpu.memory_space<vmem>>, vector<8x128xf32>,
    %c0_86 = arith.constant 0 : index
    %c0_87 = arith.constant 0 : index
    %188 = vector.load %arg13[%c0_86, %c0_87] : memref<8x128xf32, #tpu.memory_space<vmem>>, vector<8x128xf32>
    tpu.vector_store %arg13[%c0_86, %c0_87], %154 {strides = array<i32>} : memref<8x128xf32, #tpu.memory_space<vmem>>, vector<8x128xf32>,
    %189 = vector.shape_cast %186 : vector<8x1xf32> to vector<8x1xf32>
    %190 = vector.broadcast %189 : vector<8x1xf32> to vector<8x128xf32>
    %c0_88 = arith.constant 0 : index
    %c0_89 = arith.constant 0 : index
    %191 = vector.load %arg14[%c0_88, %c0_89] : memref<8x128xf32, #tpu.memory_space<vmem>>, vector<8x128xf32>
    tpu.vector_store %arg14[%c0_88, %c0_89], %190 {strides = array<i32>} : memref<8x128xf32, #tpu.memory_space<vmem>>, vector<8x128xf32>,
    return
  }
  func.func @transform_0(%arg0: i32) -> (i32, i32, i32) {
    %c0_i32 = arith.constant 0 : i32
    %c0_i32_0 = arith.constant 0 : i32
    %c0_i32_1 = arith.constant 0 : i32
    return %arg0, %c0_i32, %c0_i32_0 : i32, i32, i32
  }
  func.func @transform_1(%arg0: i32) -> (i32, i32) {
    %c0_i32 = arith.constant 0 : i32
    %c0_i32_0 = arith.constant 0 : i32
    return %arg0, %c0_i32 : i32, i32
  }
  func.func @transform_2(%arg0: i32) -> (i32, i32) {
    %c0_i32 = arith.constant 0 : i32
    %c0_i32_0 = arith.constant 0 : i32
    return %arg0, %c0_i32 : i32, i32
  }
  func.func @transform_3(%arg0: i32) -> (i32, i32) {
    %c0_i32 = arith.constant 0 : i32
    %c0_i32_0 = arith.constant 0 : i32
    %c0_i32_1 = arith.constant 0 : i32
    return %c0_i32, %c0_i32_0 : i32, i32
  }
  func.func @transform_4(%arg0: i32) -> (i32, i32) {
    %c0_i32 = arith.constant 0 : i32
    %c0_i32_0 = arith.constant 0 : i32
    %c0_i32_1 = arith.constant 0 : i32
    return %c0_i32, %c0_i32_0 : i32, i32
  }
  func.func @transform_5(%arg0: i32) -> (i32, i32) {
    %c0_i32 = arith.constant 0 : i32
    %c0_i32_0 = arith.constant 0 : i32
    %c0_i32_1 = arith.constant 0 : i32
    return %c0_i32, %c0_i32_0 : i32, i32
  }
  func.func @transform_6(%arg0: i32) -> (i32, i32) {
    %c0_i32 = arith.constant 0 : i32
    %c0_i32_0 = arith.constant 0 : i32
    %c0_i32_1 = arith.constant 0 : i32
    return %c0_i32, %c0_i32_0 : i32, i32
  }
  func.func @transform_7(%arg0: i32) -> (i32, i32) {
    %c0_i32 = arith.constant 0 : i32
    %c0_i32_0 = arith.constant 0 : i32
    %c0_i32_1 = arith.constant 0 : i32
    return %c0_i32, %c0_i32_0 : i32, i32
  }
  func.func @transform_8(%arg0: i32) -> (i32, i32) {
    %c0_i32 = arith.constant 0 : i32
    %c0_i32_0 = arith.constant 0 : i32
    %c0_i32_1 = arith.constant 0 : i32
    return %c0_i32, %c0_i32_0 : i32, i32
  }
  func.func @transform_9(%arg0: i32) -> (i32, i32) {
    %c0_i32 = arith.constant 0 : i32
    %c0_i32_0 = arith.constant 0 : i32
    %c0_i32_1 = arith.constant 0 : i32
    return %c0_i32, %c0_i32_0 : i32, i32
  }
  func.func @transform_10(%arg0: i32) -> (i32, i32) {
    %c0_i32 = arith.constant 0 : i32
    %c0_i32_0 = arith.constant 0 : i32
    %c0_i32_1 = arith.constant 0 : i32
    return %c0_i32, %c0_i32_0 : i32, i32
  }
  func.func @transform_11(%arg0: i32) -> (i32, i32) {
    %c0_i32 = arith.constant 0 : i32
    %c0_i32_0 = arith.constant 0 : i32
    return %arg0, %c0_i32 : i32, i32
  }
  func.func @transform_12(%arg0: i32) -> (i32, i32) {
    %c0_i32 = arith.constant 0 : i32
    %c0_i32_0 = arith.constant 0 : i32
    return %arg0, %c0_i32 : i32, i32
  }
  func.func @transform_13(%arg0: i32) -> (i32, i32) {
    %c0_i32 = arith.constant 0 : i32
    %c0_i32_0 = arith.constant 0 : i32
    return %arg0, %c0_i32 : i32, i32
  }
}

</mosaic_0001>

<bundles_post_ra>
// kernel: token_model_forward.1
= control target key start
LH: loop header
LB: loop body
LE: loop exit
PB: predicated region body
PF: predicated region fallthrough
CT: control target
= control target key end

     0   :  { %vm12268_vm0 = vcmask 261120   ;;  %vm3208_vm1 = vcmask 130112   ;;  %vm3215_vm2 = vcmask 195712   ;;  %vm3222_vm3 = vcmask 261312   ;;  %s8271_s26 = smov 124   ;;  %s8272_s27 = smov 120   ;;  %s12115_s3 = inlined_call_operand.vmem [shape: bf16[32,128], index: 3, kind: input, shape index: {}]   ;;  %s12116_s0 = inlined_call_operand.vmem [shape: bf16[8,128,32], index: 0, kind: input, shape index: {}]   ;;  %s12117_s4 = inlined_call_operand.vmem [shape: f32[1,128], index: 4, kind: input, shape index: {}]   ;;  %s12118_s5 = inlined_call_operand.vmem [shape: f32[1,128], index: 5, kind: input, shape index: {}]   ;;  %s12119_s6 = inlined_call_operand.<no memory space> [shape: f32[1,1], index: 6, kind: input, shape index: {}]   ;;  %s12120_s1 = inlined_call_operand.vmem [shape: f32[8,128], index: 1, kind: input, shape index: {}]   ;;  %s12121_s2 = inlined_call_operand.vmem [shape: f32[8,128], index: 2, kind: input, shape index: {}]   ;;  %s12122_s11 = inlined_call_operand.vmem [shape: f32[8,128], index: 11, kind: output, shape index: {0}]   ;;  %s12123_s12 = inlined_call_operand.vmem [shape: f32[8,128], index: 12, kind: output, shape index: {1}]   ;;  %s12124_s7 = inlined_call_operand.vmem [shape: bf16[32,384], index: 7, kind: input, shape index: {}]   ;;  %s12125_s10 = inlined_call_operand.<no memory space> [shape: f32[1,1], index: 10, kind: input, shape index: {}]   ;;  %s12126_s8 = inlined_call_operand.vmem [shape: f32[1,384], index: 8, kind: input, shape index: {}]   ;;  %s12127_s9 = inlined_call_operand.vmem [shape: f32[1,384], index: 9, kind: input, shape index: {}]   ;;  %s12128_s13 = inlined_call_operand.vmem [shape: f32[8,128], index: 13, kind: output, shape index: {2}]  }
   0x1   :  { %v7344_v0 = vld [vmem:[%s12115_s3] sm:$0xff]   ;;  %v7345_v1 = vld [vmem:[%s12115_s3 + $0x8] sm:$0xff]   ;;  %v7348_v4 = vld [vmem:[%s12116_s0 + $0x10] sm:$0xff]   ;;  %vm3229_vm4 = vcmask 326912   ;;  %vm3236_vm5 = vcmask 392512   ;;  %vm3243_vm6 = vcmask 458112  }
   0x2   :  { %7031 = vmatprep.subr.bf16.mxu0 %v7344_v0  ;;  %v7346_v2 = vld [vmem:[%s12116_s0] sm:$0xff]   ;;  %v7347_v3 = vld [vmem:[%s12116_s0 + $0x8] sm:$0xff]   ;;  %v7349_v5 = vld [vmem:[%s12116_s0 + $0x18] sm:$0xff]   ;;  %vm12273_vm7 = vcmask 523712   ;;  %vm12272_vm8 = vcmask 589312   ;;  %vm12271_vm9 = vcmask 654912  }
   0x3   :  { %7032 = vmatpush3.bf16.msra.mxu0 %v7344_v0  ;;  %7035 = vmatprep.mubr.msk.bf16.mxu0 %vm12268_vm0, %v7346_v2  ;;  %v7350_v6 = vld [vmem:[%s12116_s0 + $0x20] sm:$0xff]   ;;  %v7351_v7 = vld [vmem:[%s12116_s0 + $0x28] sm:$0xff]   ;;  %v7352_v8 = vld [vmem:[%s12116_s0 + $0x30] sm:$0xff]   ;;  %vm12270_vm10 = vcmask 720512   ;;  %vm3278_vm11 = vcmask 786112   ;;  %vm3285_vm12 = vcmask 851712  }
   0x4   :  { %7033 = vmatprep.subr.bf16.mxu0 %v7345_v1  ;;  %v7353_v9 = vld [vmem:[%s12116_s0 + $0x38] sm:$0xff]   ;;  %v7354_v10 = vld [vmem:[%s12116_s0 + $0x40] sm:$0xff]   ;;  %v7355_v11 = vld [vmem:[%s12116_s0 + $0x48] sm:$0xff]   ;;  %vm3292_vm13 = vcmask 917312   ;;  %vm3299_vm14 = vcmask 982912   ;;  %vm3306_vm15 = vcmask 1048512  }
   0x5   :  { %v7356_v12 = vld [vmem:[%s12116_s0 + $0x50] sm:$0xff]   ;;  %v7357_v13 = vld [vmem:[%s12116_s0 + $0x58] sm:$0xff]   ;;  %v7358_v14 = vld [vmem:[%s12116_s0 + $0x60] sm:$0xff]   ;;  %s8273_s28 = smov 112   ;;  %s8274_s29 = smov 96  }
   0x6   :  { %v7359_v15 = vld [vmem:[%s12116_s0 + $0x68] sm:$0xff]   ;;  %v7360_v16 = vld [vmem:[%s12116_s0 + $0x70] sm:$0xff]   ;;  %v7361_v17 = vld [vmem:[%s12116_s0 + $0x78] sm:$0xff]   ;;  %s8276_s16 = smov 64  }
   0x7   :  { %7034 = vmatpush3.bf16.msra.mxu0 %v7345_v1  ;;  %v7362_v18 = vld [vmem:[%s12116_s0 + $0x80] sm:$0xff]   ;;  %v7363_v19 = vld [vmem:[%s12116_s0 + $0x88] sm:$0xff]   ;;  %v7364_v20 = vld [vmem:[%s12116_s0 + $0x90] sm:$0xff]  }
   0x8   :  { %v7365_v21 = vld [vmem:[%s12116_s0 + $0x98] sm:$0xff]   ;;  %v7366_v22 = vld [vmem:[%s12116_s0 + $0xa0] sm:$0xff]   ;;  %v7367_v23 = vld [vmem:[%s12116_s0 + $0xa8] sm:$0xff]  }
   0x9   :  { %v7368_v24 = vld [vmem:[%s12116_s0 + $0xb0] sm:$0xff]   ;;  %v7369_v25 = vld [vmem:[%s12116_s0 + $0xb8] sm:$0xff]   ;;  %v7370_v26 = vld [vmem:[%s12116_s0 + $0xc0] sm:$0xff]  }
   0xa   :  { %7036 = vmatmul.mubr.msk.bf16.vlgmr.msra.gmra.mrb[0].mxu0 %vm12268_vm0, %v7347_v3  ;;  %v7371_v27 = vld [vmem:[%s12116_s0 + $0xc8] sm:$0xff]   ;;  %v7372_v28 = vld [vmem:[%s12116_s0 + $0xd0] sm:$0xff]   ;;  %v7373_v29 = vld [vmem:[%s12116_s0 + $0xd8] sm:$0xff]  }
   0xb   :  { %7039 = vmatprep.mubr.msk.bf16.mxu0 %vm12268_vm0, %v7348_v4  ;;  %v7374_v30 = vld [vmem:[%s12116_s0 + $0xe0] sm:$0xff]   ;;  %v7375_v31 = vld [vmem:[%s12116_s0 + $0xe8] sm:$0xff]   ;;  %v7376_v32 = vld [vmem:[%s12116_s0 + $0xf0] sm:$0xff]  }
   0xc   :  { %v7377_v33 = vld [vmem:[%s12116_s0 + $0xf8] sm:$0xff]   ;;  %v7378_v34 = vld [vmem:[%s12116_s0 + $0x100] sm:$0xff]   ;;  %v7379_v35 = vld [vmem:[%s12116_s0 + $0x108] sm:$0xff]  }
   0xd   :  { %v7380_v36 = vld [vmem:[%s12116_s0 + $0x110] sm:$0xff]   ;;  %v7381_v37 = vld [vmem:[%s12116_s0 + $0x118] sm:$0xff]   ;;  %v7382_v38 = vld [vmem:[%s12116_s0 + $0x120] sm:$0xff]  }
   0xe   :  { %v7383_v39 = vld [vmem:[%s12116_s0 + $0x128] sm:$0xff]   ;;  %v7384_v40 = vld [vmem:[%s12116_s0 + $0x130] sm:$0xff]   ;;  %v7385_v41 = vld [vmem:[%s12116_s0 + $0x138] sm:$0xff]  }
   0xf   :  { %v7386_v42 = vld [vmem:[%s12116_s0 + $0x140] sm:$0xff]   ;;  %v7387_v43 = vld [vmem:[%s12116_s0 + $0x148] sm:$0xff]   ;;  %v7388_v44 = vld [vmem:[%s12116_s0 + $0x150] sm:$0xff]  }
  0x10   :  { %v7389_v45 = vld [vmem:[%s12116_s0 + $0x158] sm:$0xff]   ;;  %v7390_v46 = vld [vmem:[%s12116_s0 + $0x160] sm:$0xff]   ;;  %v7391_v47 = vld [vmem:[%s12116_s0 + $0x168] sm:$0xff]  }
  0x11   :  { %v7392_v48 = vld [vmem:[%s12116_s0 + $0x170] sm:$0xff]   ;;  %v7393_v49 = vld [vmem:[%s12116_s0 + $0x178] sm:$0xff]   ;;  %v7394_v50 = vld [vmem:[%s12116_s0 + $0x180] sm:$0xff]  }
  0x12   :  { %7040 = vmatmul.mubr.msk.bf16.gmra.mrb[4].mxu0 %vm12268_vm0, %v7349_v5  ;;  %v7395_v51 = vld [vmem:[%s12116_s0 + $0x188] sm:$0xff]   ;;  %v7396_v52 = vld [vmem:[%s12116_s0 + $0x190] sm:$0xff]   ;;  %v7397_v53 = vld [vmem:[%s12116_s0 + $0x198] sm:$0xff]  }
  0x13   :  { %7043 = vmatprep.mubr.msk.bf16.mxu0 %vm12268_vm0, %v7350_v6  ;;  %v8566_v54 = vld [vmem:[%s12117_s4] ss:$0 sm:$0xff] }
  0x14   :  { %v8576_v4 = vld [vmem:[%s12118_s5] ss:$0 sm:$0xff] }
  0x1a   :  { %7044 = vmatmul.mubr.msk.bf16.gmra.mrb[8].mxu0 %vm12268_vm0, %v7351_v7 }
  0x1b   :  { %7047 = vmatprep.mubr.msk.bf16.mxu0 %vm12268_vm0, %v7352_v8 }
  0x22   :  { %7048 = vmatmul.mubr.msk.bf16.gmra.mrb[12].mxu0 %vm12268_vm0, %v7353_v9 }
  0x23   :  { %7051 = vmatprep.mubr.msk.bf16.mxu0 %vm12268_vm0, %v7354_v10 }
  0x2a   :  { %7052 = vmatmul.mubr.msk.bf16.gmra.mrb[16].mxu0 %vm12268_vm0, %v7355_v11 }
  0x2b   :  { %7055 = vmatprep.mubr.msk.bf16.mxu0 %vm12268_vm0, %v7356_v12 }
  0x32   :  { %7056 = vmatmul.mubr.msk.bf16.gmra.mrb[20].mxu0 %vm12268_vm0, %v7357_v13 }
  0x33   :  { %7059 = vmatprep.mubr.msk.bf16.mxu0 %vm12268_vm0, %v7358_v14 }
  0x3a   :  { %7060 = vmatmul.mubr.msk.bf16.gmra.mrb[24].mxu0 %vm12268_vm0, %v7359_v15 }
  0x3b   :  { %7063 = vmatprep.mubr.msk.bf16.mxu0 %vm12268_vm0, %v7360_v16 }
  0x42   :  { %7064 = vmatmul.mubr.msk.bf16.gmra.mrb[28].mxu0 %vm12268_vm0, %v7361_v17 }
  0x43   :  { %7067 = vmatprep.mubr.msk.bf16.mxu0 %vm12268_vm0, %v7362_v18 }
  0x4a   :  { %7068 = vmatmul.mubr.msk.bf16.gmra.mrb[32].mxu0 %vm12268_vm0, %v7363_v19  ;;  %v19_v19 = vstv %s12119_s6 }
  0x4b   :  { %7071 = vmatprep.mubr.msk.bf16.mxu0 %vm12268_vm0, %v7364_v20  ;;  %20 = vst [vmem:[#allocation2] sm:$0x1] %v19_v19 }
  0x52   :  { %7072 = vmatmul.mubr.msk.bf16.gmra.mrb[36].mxu0 %vm12268_vm0, %v7365_v21 }
  0x53   :  { %7075 = vmatprep.mubr.msk.bf16.mxu0 %vm12268_vm0, %v7366_v22 }
  0x5a   :  { %7076 = vmatmul.mubr.msk.bf16.gmra.mrb[40].mxu0 %vm12268_vm0, %v7367_v23 }
  0x5b   :  { %7079 = vmatprep.mubr.msk.bf16.mxu0 %vm12268_vm0, %v7368_v24 }
  0x62   :  { %7080 = vmatmul.mubr.msk.bf16.gmra.mrb[44].mxu0 %vm12268_vm0, %v7369_v25 }
  0x63   :  { %7083 = vmatprep.mubr.msk.bf16.mxu0 %vm12268_vm0, %v7370_v26 }
  0x6a   :  { %7084 = vmatmul.mubr.msk.bf16.gmra.mrb[48].mxu0 %vm12268_vm0, %v7371_v27 }
  0x6b   :  { %7087 = vmatprep.mubr.msk.bf16.mxu0 %vm12268_vm0, %v7372_v28 }
  0x72   :  { %7088 = vmatmul.mubr.msk.bf16.gmra.mrb[52].mxu0 %vm12268_vm0, %v7373_v29 }
  0x73   :  { %7091 = vmatprep.mubr.msk.bf16.mxu0 %vm12268_vm0, %v7374_v30 }
  0x7a   :  { %7092 = vmatmul.mubr.msk.bf16.gmra.mrb[56].mxu0 %vm12268_vm0, %v7375_v31 }
  0x7b   :  { %7095 = vmatprep.mubr.msk.bf16.mxu0 %vm12268_vm0, %v7376_v32 }
  0x82   :  { %7096 = vmatmul.mubr.msk.bf16.gmra.mrb[60].mxu0 %vm12268_vm0, %v7377_v33 }
  0x83   :  { %7099 = vmatprep.mubr.msk.bf16.mxu0 %vm12268_vm0, %v7378_v34 }
  0x8a   :  { %7100 = vmatmul.mubr.msk.bf16.gmra.mrb[64].mxu0 %vm12268_vm0, %v7379_v35 }
  0x8b   :  { %7103 = vmatprep.mubr.msk.bf16.mxu0 %vm12268_vm0, %v7380_v36 }
  0x92   :  { %7104 = vmatmul.mubr.msk.bf16.gmra.mrb[68].mxu0 %vm12268_vm0, %v7381_v37 }
  0x93   :  { %7107 = vmatprep.mubr.msk.bf16.mxu0 %vm12268_vm0, %v7382_v38 }
  0x9a   :  { %7108 = vmatmul.mubr.msk.bf16.gmra.mrb[72].mxu0 %vm12268_vm0, %v7383_v39 }
  0x9b   :  { %7111 = vmatprep.mubr.msk.bf16.mxu0 %vm12268_vm0, %v7384_v40 }
  0xa2   :  { %7112 = vmatmul.mubr.msk.bf16.gmra.mrb[76].mxu0 %vm12268_vm0, %v7385_v41 }
  0xa3   :  { %7115 = vmatprep.mubr.msk.bf16.mxu0 %vm12268_vm0, %v7386_v42 }
  0xaa   :  { %7116 = vmatmul.mubr.msk.bf16.gmra.mrb[80].mxu0 %vm12268_vm0, %v7387_v43 }
  0xab   :  { %7119 = vmatprep.mubr.msk.bf16.mxu0 %vm12268_vm0, %v7388_v44 }
  0xb2   :  { %7120 = vmatmul.mubr.msk.bf16.gmra.mrb[84].mxu0 %vm12268_vm0, %v7389_v45 }
  0xb3   :  { %7123 = vmatprep.mubr.msk.bf16.mxu0 %vm12268_vm0, %v7390_v46 }
  0xba   :  { %7124 = vmatmul.mubr.msk.bf16.gmra.mrb[88].mxu0 %vm12268_vm0, %v7391_v47 }
  0xbb   :  { %7127 = vmatprep.mubr.msk.bf16.mxu0 %vm12268_vm0, %v7392_v48 }
  0xc2   :  { %7128 = vmatmul.mubr.msk.bf16.gmra.mrb[92].mxu0 %vm12268_vm0, %v7393_v49 }
  0xc3   :  { %7131 = vmatprep.mubr.msk.bf16.mxu0 %vm12268_vm0, %v7394_v50 }
  0xca   :  { %7132 = vmatmul.mubr.msk.bf16.gmra.mrb[96].mxu0 %vm12268_vm0, %v7395_v51 }
  0xcb   :  { %7135 = vmatprep.mubr.msk.bf16.mxu0 %vm12268_vm0, %v7396_v52 }
  0xd2   :  { %7136 = vmatmul.mubr.msk.bf16.gmra.mrb[100].mxu0 %vm12268_vm0, %v7397_v53 }
  0xdd   :  { %v7037_v55 = vpop.f32.mrb[0].mxu0 }
  0xde   :  { %v756_v56 = vadd.f32 %v7037_v55, %v8566_v54  ;;  %v747_v57 = vpop.f32.mrb[1].mxu0 }
  0xdf   :  { %v748_v58 = vadd.f32 %v8566_v54, %v747_v57  ;;  %v7038_v59 = vpop.f32.mrb[2].mxu0 }
  0xe0   :  { %7418 = vtanh.f32 %v756_v56  ;;  %v750_v60 = vpop.f32.mrb[3].mxu0  ;;  %v759_v61 = vadd.f32 %v7038_v59, %v8566_v54 }
  0xe1   :  { %7420 = vtanh.f32 %v748_v58  ;;  %v751_v63 = vadd.f32 %v8566_v54, %v750_v60 }
  0xe2   :  { %7422 = vtanh.f32 %v759_v61 }
  0xe5   :  { %v7041_v62 = vpop.f32.mrb[4].mxu0 }
  0xe6   :  { %v763_v0 = vpop.f32.mrb[5].mxu0  ;;  %v772_v7 = vadd.f32 %v7041_v62, %v8566_v54 }
  0xe7   :  { %v764_v1 = vadd.f32 %v8566_v54, %v763_v0  ;;  %v7042_v2 = vpop.f32.mrb[6].mxu0 }
  0xe8   :  { %v766_v3 = vpop.f32.mrb[7].mxu0  ;;  %v775_v11 = vadd.f32 %v7042_v2, %v8566_v54 }
  0xe9   :  { %7424 = vtanh.f32 %v764_v1  ;;  %v767_v5 = vadd.f32 %v8566_v54, %v766_v3  ;;  %v7398_v1 = vld [vmem:[%s12116_s0 + $0x1a0] sm:$0xff]  }
  0xea   :  { %v7419_v6 = vpop.eup %7418  ;;  %7426 = vtanh.f32 %v751_v63  ;;  %7139 = vmatprep.mubr.msk.bf16.mxu0 %vm12268_vm0, %v7398_v1 }
  0xeb   :  { %7428 = vtanh.f32 %v767_v5  ;;  %v1395_v8 = vmul.f32 %v7419_v6, %v8576_v4  ;;  %v7421_v9 = vpop.eup %7420  ;;  %v7399_v5 = vld [vmem:[%s12116_s0 + $0x1a8] sm:$0xff]  }
  0xec   :  { %7430 = vtanh.f32 %v772_v7  ;;  %v1393_v16 = vmul.f32 %v7421_v9, %v8576_v4  ;;  %v7423_v17 = vpop.eup %7422  ;;  %7140 = vmatmul.mubr.msk.bf16.gmra.mrb[104].mxu0 %vm12268_vm0, %v7399_v5 }
  0xed   :  { %1525 = vadd.xlane.f32.xlu0 %v1395_v8  ;;  %v7045_v10 = vpop.f32.mrb[8].mxu0  ;;  %v1396_v22 = vmul.f32 %v7423_v17, %v8576_v4 }
  0xee   :  { %v788_v12 = vadd.f32 %v7045_v10, %v8566_v54  ;;  %v779_v13 = vpop.f32.mrb[9].mxu0 }
  0xef   :  { %v780_v14 = vadd.f32 %v8566_v54, %v779_v13  ;;  %v7046_v15 = vpop.f32.mrb[10].mxu0 }
  0xf0   :  { %7432 = vtanh.f32 %v788_v12  ;;  %v782_v18 = vpop.f32.mrb[11].mxu0  ;;  %v791_v21 = vadd.f32 %v7046_v15, %v8566_v54 }
  0xf1   :  { %1521 = vadd.xlane.f32.xlu0 %v1393_v16  ;;  %7434 = vtanh.f32 %v775_v11  ;;  %v783_v28 = vadd.f32 %v8566_v54, %v782_v18 }
  0xf2   :  { %7436 = vtanh.f32 %v780_v14 }
  0xf3   :  { %v7425_v20 = vpop.eup %7424  ;;  %7438 = vtanh.f32 %v791_v21 }
  0xf4   :  { %v7427_v23 = vpop.eup %7426  ;;  %v1397_v24 = vmul.f32 %v7425_v20, %v8576_v4  ;;  %7440 = vtanh.f32 %v783_v28 }
  0xf5   :  { %v7429_v25 = vpop.eup %7428  ;;  %1527 = vadd.xlane.f32.xlu0 %v1396_v22  ;;  %v7049_v26 = vpop.f32.mrb[12].mxu0  ;;  %v1394_v29 = vmul.f32 %v7427_v23, %v8576_v4 }
  0xf6   :  { %1529 = vadd.xlane.f32.xlu1 %v1397_v24  ;;  %v795_v27 = vpop.f32.mrb[13].mxu0  ;;  %v7431_v31 = vpop.eup %7430  ;;  %v1398_v32 = vmul.f32 %v7429_v25, %v8576_v4  ;;  %v804_v35 = vadd.f32 %v7049_v26, %v8566_v54 }
  0xf7   :  { %v7050_v30 = vpop.f32.mrb[14].mxu0  ;;  %v1399_v36 = vmul.f32 %v7431_v31, %v8576_v4  ;;  %v796_v42 = vadd.f32 %v8566_v54, %v795_v27 }
  0xf8   :  { %v798_v33 = vpop.f32.mrb[15].mxu0  ;;  %7442 = vtanh.f32 %v804_v35  ;;  %v807_v48 = vadd.f32 %v7050_v30, %v8566_v54 }
  0xf9   :  { %1523 = vadd.xlane.f32.xlu0 %v1394_v29  ;;  %7444 = vtanh.f32 %v796_v42  ;;  %v799_v52 = vadd.f32 %v8566_v54, %v798_v33 }
  0xfa   :  { %v7433_v34 = vpop.eup %7432  ;;  %1531 = vadd.xlane.f32.xlu1 %v1398_v32  ;;  %7446 = vtanh.f32 %v807_v48 }
  0xfb   :  { %v1403_v37 = vmul.f32 %v7433_v34, %v8576_v4  ;;  %v7435_v38 = vpop.eup %7434 }
  0xfc   :  { %v7437_v39 = vpop.eup %7436  ;;  %v1400_v43 = vmul.f32 %v7435_v38, %v8576_v4 }
  0xfd   :  { %1533 = vadd.xlane.f32.xlu0 %v1399_v36  ;;  %v7053_v40 = vpop.f32.mrb[16].mxu0  ;;  %v1401_v45 = vmul.f32 %v7437_v39, %v8576_v4  ;;  %v7439_v47 = vpop.eup %7438 }
  0xfe   :  { %1541 = vadd.xlane.f32.xlu1 %v1403_v37  ;;  %v811_v41 = vpop.f32.mrb[17].mxu0  ;;  %v1404_v49 = vmul.f32 %v7439_v47, %v8576_v4  ;;  %v7441_v50 = vpop.eup %7440  ;;  %v820_v61 = vadd.f32 %v7053_v40, %v8566_v54 }
  0xff   :  { %v7054_v44 = vpop.f32.mrb[18].mxu0  ;;  %v1402_v58 = vmul.f32 %v7441_v50, %v8576_v4  ;;  %v812_v6 = vadd.f32 %v8566_v54, %v811_v41 }
 0x100   :  { %v814_v46 = vpop.f32.mrb[19].mxu0  ;;  %v823_v12 = vadd.f32 %v7054_v44, %v8566_v54 }
 0x101   :  { %1535 = vadd.xlane.f32.xlu0 %v1400_v43  ;;  %v815_v20 = vadd.f32 %v8566_v54, %v814_v46 }
 0x102   :  { %1537 = vadd.xlane.f32.xlu1 %v1401_v45  ;;  %v7443_v59 = vpop.eup %7442 }
 0x103   :  { %v1407_v62 = vmul.f32 %v7443_v59, %v8576_v4  ;;  %v7445_v63 = vpop.eup %7444 }
 0x104   :  { %v1405_v9 = vmul.f32 %v7445_v63, %v8576_v4  ;;  %v7447_v11 = vpop.eup %7446 }
 0x105   :  { %v7057_v51 = vpop.f32.mrb[20].mxu0  ;;  %v1408_v16 = vmul.f32 %v7447_v11, %v8576_v4 }
 0x106   :  { %v827_v53 = vpop.f32.mrb[21].mxu0  ;;  %1543 = vadd.xlane.f32.xlu1 %v1404_v49  ;;  %v836_v29 = vadd.f32 %v7057_v51, %v8566_v54 }
 0x107   :  { %v828_v55 = vadd.f32 %v8566_v54, %v827_v53  ;;  %v8604_v56 = vpop.f32.mrb[22].mxu0 }
 0x108   :  { %v830_v57 = vpop.f32.mrb[23].mxu0  ;;  %v839_v36 = vadd.f32 %v8604_v56, %v8566_v54 }
 0x109   :  { %7448 = vtanh.f32 %v828_v55  ;;  %v831_v60 = vadd.f32 %v8566_v54, %v830_v57 }
 0x10a   :  { %7450 = vtanh.f32 %v799_v52  ;;  %1539 = vadd.xlane.f32.xlu1 %v1402_v58 }
 0x10b   :  { %7452 = vtanh.f32 %v831_v60 }
 0x10c   :  { %7454 = vtanh.f32 %v820_v61 }
 0x10d   :  { %v7061_v0 = vpop.f32.mrb[24].mxu0 }
 0x10e   :  { %v852_v2 = vadd.f32 %v7061_v0, %v8566_v54  ;;  %1549 = vadd.xlane.f32.xlu1 %v1407_v62  ;;  %v843_v3 = vpop.f32.mrb[25].mxu0 }
 0x10f   :  { %v844_v7 = vadd.f32 %v8566_v54, %v843_v3  ;;  %v7062_v8 = vpop.f32.mrb[26].mxu0 }
 0x110   :  { %7456 = vtanh.f32 %v852_v2  ;;  %v846_v10 = vpop.f32.mrb[27].mxu0  ;;  %v855_v14 = vadd.f32 %v7062_v8, %v8566_v54 }
 0x111   :  { %7458 = vtanh.f32 %v844_v7  ;;  %v847_v23 = vadd.f32 %v8566_v54, %v846_v10 }
 0x112   :  { %1545 = vadd.xlane.f32.xlu1 %v1405_v9  ;;  %7460 = vtanh.f32 %v812_v6 }
 0x113   :  { %v7449_v13 = vpop.eup %7448  ;;  %7462 = vtanh.f32 %v823_v12 }
 0x114   :  { %v7451_v15 = vpop.eup %7450  ;;  %v1413_v17 = vmul.f32 %v7449_v13, %v8576_v4  ;;  %7464 = vtanh.f32 %v855_v14 }
 0x115   :  { %v7453_v18 = vpop.eup %7452  ;;  %v7065_v19 = vpop.f32.mrb[28].mxu0  ;;  %v1406_v25 = vmul.f32 %v7451_v15, %v8576_v4  ;;  %7466 = vtanh.f32 %v815_v20 }
 0x116   :  { %1551 = vadd.xlane.f32.xlu1 %v1408_v16  ;;  %1561 = vadd.xlane.f32.xlu0 %v1413_v17  ;;  %v859_v21 = vpop.f32.mrb[29].mxu0  ;;  %v1414_v22 = vmul.f32 %v7453_v18, %v8576_v4  ;;  %v7455_v27 = vpop.eup %7454  ;;  %7468 = vtanh.f32 %v847_v23  ;;  %v868_v31 = vadd.f32 %v7065_v19, %v8566_v54 }
 0x117   :  { %v7066_v24 = vpop.f32.mrb[30].mxu0  ;;  %v1411_v33 = vmul.f32 %v7455_v27, %v8576_v4  ;;  %7470 = vtanh.f32 %v836_v29  ;;  %v860_v39 = vadd.f32 %v8566_v54, %v859_v21 }
 0x118   :  { %v862_v26 = vpop.f32.mrb[31].mxu0  ;;  %7472 = vtanh.f32 %v868_v31  ;;  %v871_v45 = vadd.f32 %v7066_v24, %v8566_v54 }
 0x119   :  { %7474 = vtanh.f32 %v839_v36  ;;  %v863_v52 = vadd.f32 %v8566_v54, %v862_v26 }
 0x11a   :  { %v7457_v28 = vpop.eup %7456  ;;  %1547 = vadd.xlane.f32.xlu1 %v1406_v25  ;;  %1563 = vadd.xlane.f32.xlu0 %v1414_v22  ;;  %7476 = vtanh.f32 %v860_v39 }
 0x11b   :  { %v7459_v30 = vpop.eup %7458  ;;  %v1419_v32 = vmul.f32 %v7457_v28, %v8576_v4  ;;  %7478 = vtanh.f32 %v871_v45 }
 0x11c   :  { %v7461_v34 = vpop.eup %7460  ;;  %v1417_v38 = vmul.f32 %v7459_v30, %v8576_v4 }
 0x11d   :  { %v7069_v35 = vpop.f32.mrb[32].mxu0  ;;  %v7463_v41 = vpop.eup %7462  ;;  %v1409_v42 = vmul.f32 %v7461_v34, %v8576_v4 }
 0x11e   :  { %1557 = vadd.xlane.f32.xlu1 %v1411_v33  ;;  %1573 = vadd.xlane.f32.xlu0 %v1419_v32  ;;  %v875_v37 = vpop.f32.mrb[33].mxu0  ;;  %v7465_v44 = vpop.eup %7464  ;;  %v1412_v48 = vmul.f32 %v7463_v41, %v8576_v4  ;;  %v884_v63 = vadd.f32 %v7069_v35, %v8566_v54  ;;  %v8268_v33 = vmov 0  }
 0x11f   :  { %v7070_v40 = vpop.f32.mrb[34].mxu0  ;;  %v7467_v47 = vpop.eup %7466  ;;  %v1420_v49 = vmul.f32 %v7465_v44, %v8576_v4  ;;  %v876_v6 = vadd.f32 %v8566_v54, %v875_v37  ;;  %7343 = vset.pattern.permute.xlu0 %v8268_v33  ;;  %7342 = vset.pattern.permute.xlu1 %v8268_v33 }
 0x120   :  { %v878_v43 = vpop.f32.mrb[35].mxu0  ;;  %v887_v46 = vadd.f32 %v7070_v40, %v8566_v54  ;;  %v7469_v50 = vpop.eup %7468  ;;  %v1410_v58 = vmul.f32 %v7467_v47, %v8576_v4 }
 0x121   :  { %v879_v55 = vadd.f32 %v8566_v54, %v878_v43  ;;  %v7471_v57 = vpop.eup %7470  ;;  %v1418_v59 = vmul.f32 %v7469_v50, %v8576_v4 }
 0x122   :  { %1553 = vadd.xlane.f32.xlu1 %v1409_v42  ;;  %1569 = vadd.xlane.f32.xlu0 %v1417_v38  ;;  %7480 = vtanh.f32 %v887_v46  ;;  %v7473_v61 = vpop.eup %7472  ;;  %v1415_v1 = vmul.f32 %v7471_v57, %v8576_v4 }
 0x123   :  { %7482 = vtanh.f32 %v863_v52  ;;  %v7475_v0 = vpop.eup %7474  ;;  %v1423_v2 = vmul.f32 %v7473_v61, %v8576_v4 }
 0x124   :  { %7484 = vtanh.f32 %v879_v55  ;;  %v7477_v3 = vpop.eup %7476  ;;  %v1416_v11 = vmul.f32 %v7475_v0, %v8576_v4 }
 0x125   :  { %v7073_v51 = vpop.f32.mrb[36].mxu0  ;;  %v7479_v10 = vpop.eup %7478  ;;  %v1421_v12 = vmul.f32 %v7477_v3, %v8576_v4 }
 0x126   :  { %1559 = vadd.xlane.f32.xlu1 %v1412_v48  ;;  %1575 = vadd.xlane.f32.xlu0 %v1420_v49  ;;  %v891_v53 = vpop.f32.mrb[37].mxu0  ;;  %v900_v16 = vadd.f32 %v7073_v51, %v8566_v54  ;;  %v1424_v19 = vmul.f32 %v7479_v10, %v8576_v4 }
 0x127   :  { %v7074_v56 = vpop.f32.mrb[38].mxu0  ;;  %v892_v62 = vadd.f32 %v8566_v54, %v891_v53 }
 0x128   :  { %v894_v60 = vpop.f32.mrb[39].mxu0  ;;  %v903_v8 = vadd.f32 %v7074_v56, %v8566_v54 }
 0x129   :  { %7486 = vtanh.f32 %v892_v62  ;;  %v895_v22 = vadd.f32 %v8566_v54, %v894_v60 }
 0x12a   :  { %1555 = vadd.xlane.f32.xlu1 %v1410_v58  ;;  %1571 = vadd.xlane.f32.xlu0 %v1418_v59  ;;  %7488 = vtanh.f32 %v884_v63 }
 0x12b   :  { %7490 = vtanh.f32 %v876_v6 }
 0x12c   :  { %v7481_v14 = vpop.eup %7480  ;;  %7492 = vtanh.f32 %v903_v8 }
 0x12d   :  { %v7077_v5 = vpop.f32.mrb[40].mxu0  ;;  %v7483_v17 = vpop.eup %7482  ;;  %v1428_v18 = vmul.f32 %v7481_v14, %v8576_v4 }
 0x12e   :  { %1565 = vadd.xlane.f32.xlu1 %v1415_v1  ;;  %1581 = vadd.xlane.f32.xlu0 %v1423_v2  ;;  %v907_v7 = vpop.f32.mrb[41].mxu0  ;;  %v916_v15 = vadd.f32 %v7077_v5, %v8566_v54  ;;  %v7485_v20 = vpop.eup %7484  ;;  %v1422_v28 = vmul.f32 %v7483_v17, %v8576_v4 }
 0x12f   :  { %v7078_v9 = vpop.f32.mrb[42].mxu0  ;;  %v908_v25 = vadd.f32 %v8566_v54, %v907_v7  ;;  %v1426_v27 = vmul.f32 %v7485_v20, %v8576_v4 }
 0x130   :  { %v910_v13 = vpop.f32.mrb[43].mxu0  ;;  %7494 = vtanh.f32 %v916_v15  ;;  %v919_v32 = vadd.f32 %v7078_v9, %v8566_v54  ;;  %v7400_v15 = vld [vmem:[%s12116_s0 + $0x1b0] sm:$0xff]  }
 0x131   :  { %7496 = vtanh.f32 %v900_v16  ;;  %v911_v41 = vadd.f32 %v8566_v54, %v910_v13  ;;  %7143 = vmatprep.mubr.msk.bf16.mxu0 %vm12268_vm0, %v7400_v15 }
 0x132   :  { %1567 = vadd.xlane.f32.xlu1 %v1416_v11  ;;  %1577 = vadd.xlane.f32.xlu0 %v1421_v12  ;;  %7498 = vtanh.f32 %v895_v22 }
 0x133   :  { %v7487_v24 = vpop.eup %7486  ;;  %7500 = vtanh.f32 %v908_v25 }
 0x134   :  { %v7489_v30 = vpop.eup %7488  ;;  %v1429_v31 = vmul.f32 %v7487_v24, %v8576_v4  ;;  %7502 = vtanh.f32 %v919_v32 }
 0x135   :  { %v7081_v21 = vpop.f32.mrb[44].mxu0  ;;  %v7491_v34 = vpop.eup %7490  ;;  %v1427_v35 = vmul.f32 %v7489_v30, %v8576_v4 }
 0x136   :  { %1591 = vadd.xlane.f32.xlu1 %v1428_v18  ;;  %1583 = vadd.xlane.f32.xlu0 %v1424_v19  ;;  %v923_v23 = vpop.f32.mrb[45].mxu0  ;;  %v7493_v36 = vpop.eup %7492  ;;  %v1425_v45 = vmul.f32 %v7491_v34, %v8576_v4  ;;  %v932_v50 = vadd.f32 %v7081_v21, %v8566_v54  ;;  %v7401_v18 = vld [vmem:[%s12116_s0 + $0x1b8] sm:$0xff]  }
 0x137   :  { %v7082_v26 = vpop.f32.mrb[46].mxu0  ;;  %v1432_v44 = vmul.f32 %v7493_v36, %v8576_v4  ;;  %v924_v58 = vadd.f32 %v8566_v54, %v923_v23  ;;  %7144 = vmatmul.mubr.msk.bf16.gmra.mrb[108].mxu0 %vm12268_vm0, %v7401_v18  ;;  %v7402_v36 = vld [vmem:[%s12116_s0 + $0x1c0] sm:$0xff]  }
 0x138   :  { %v8663_v29 = vpop.f32.mrb[47].mxu0  ;;  %v935_v2 = vadd.f32 %v7082_v26, %v8566_v54  ;;  %7147 = vmatprep.mubr.msk.bf16.mxu0 %vm12268_vm0, %v7402_v36 }
 0x139   :  { %v927_v13 = vadd.f32 %v8566_v54, %v8663_v29 }
 0x13a   :  { %1587 = vadd.xlane.f32.xlu1 %v1426_v27  ;;  %1579 = vadd.xlane.f32.xlu0 %v1422_v28  ;;  %v7495_v40 = vpop.eup %7494 }
 0x13b   :  { %v7497_v47 = vpop.eup %7496  ;;  %v1435_v49 = vmul.f32 %v7495_v40, %v8576_v4 }
 0x13c   :  { %v7499_v51 = vpop.eup %7498  ;;  %v1431_v52 = vmul.f32 %v7497_v47, %v8576_v4 }
 0x13d   :  { %v7085_v37 = vpop.f32.mrb[48].mxu0  ;;  %v7501_v53 = vpop.eup %7500  ;;  %v1430_v61 = vmul.f32 %v7499_v51, %v8576_v4 }
 0x13e   :  { %v948_v38 = vadd.f32 %v7085_v37, %v8566_v54  ;;  %1593 = vadd.xlane.f32.xlu1 %v1429_v31  ;;  %1589 = vadd.xlane.f32.xlu0 %v1427_v35  ;;  %v8671_v39 = vpop.f32.mrb[49].mxu0  ;;  %v1433_v60 = vmul.f32 %v7501_v53, %v8576_v4  ;;  %v7503_v63 = vpop.eup %7502 }
 0x13f   :  { %v7086_v42 = vpop.f32.mrb[50].mxu0  ;;  %v1436_v6 = vmul.f32 %v7503_v63, %v8576_v4  ;;  %v940_v23 = vadd.f32 %v8566_v54, %v8671_v39 }
 0x140   :  { %7504 = vtanh.f32 %v948_v38  ;;  %v951_v43 = vadd.f32 %v7086_v42, %v8566_v54  ;;  %v942_v46 = vpop.f32.mrb[51].mxu0  ;;  %v7403_v38 = vld [vmem:[%s12116_s0 + $0x1c8] sm:$0xff]  }
 0x141   :  { %v943_v48 = vadd.f32 %v8566_v54, %v942_v46  ;;  %7148 = vmatmul.mubr.msk.bf16.gmra.mrb[112].mxu0 %vm12268_vm0, %v7403_v38 }
 0x142   :  { %7506 = vtanh.f32 %v951_v43  ;;  %1599 = vadd.xlane.f32.xlu1 %v1432_v44  ;;  %1585 = vadd.xlane.f32.xlu0 %v1425_v45 }
 0x143   :  { %7508 = vtanh.f32 %v911_v41 }
 0x144   :  { %7510 = vtanh.f32 %v943_v48 }
 0x145   :  { %v7089_v55 = vpop.f32.mrb[52].mxu0  ;;  %7512 = vtanh.f32 %v932_v50 }
 0x146   :  { %1605 = vadd.xlane.f32.xlu1 %v1435_v49  ;;  %1597 = vadd.xlane.f32.xlu0 %v1431_v52  ;;  %v964_v56 = vadd.f32 %v7089_v55, %v8566_v54  ;;  %v955_v57 = vpop.f32.mrb[53].mxu0 }
 0x147   :  { %v7090_v59 = vpop.f32.mrb[54].mxu0  ;;  %v956_v27 = vadd.f32 %v8566_v54, %v955_v57 }
 0x148   :  { %v958_v62 = vpop.f32.mrb[55].mxu0  ;;  %7514 = vtanh.f32 %v964_v56  ;;  %v967_v0 = vadd.f32 %v7090_v59, %v8566_v54 }
 0x149   :  { %7516 = vtanh.f32 %v924_v58  ;;  %v959_v39 = vadd.f32 %v8566_v54, %v958_v62 }
 0x14a   :  { %v7505_v1 = vpop.eup %7504  ;;  %1601 = vadd.xlane.f32.xlu1 %v1433_v60  ;;  %1595 = vadd.xlane.f32.xlu0 %v1430_v61  ;;  %7518 = vtanh.f32 %v967_v0  ;;  %v7404_v61 = vld [vmem:[%s12116_s0 + $0x1d0] sm:$0xff]   ;;  %v7405_v0 = vld [vmem:[%s12116_s0 + $0x1d8] sm:$0xff]  }
 0x14b   :  { %v1443_v3 = vmul.f32 %v7505_v1, %v8576_v4  ;;  %7520 = vtanh.f32 %v935_v2  ;;  %7151 = vmatprep.mubr.msk.bf16.mxu0 %vm12268_vm0, %v7404_v61 }
 0x14c   :  { %v7507_v5 = vpop.eup %7506  ;;  %7152 = vmatmul.mubr.msk.bf16.gmra.mrb[116].mxu0 %vm12268_vm0, %v7405_v0 }
 0x14d   :  { %v7509_v7 = vpop.eup %7508  ;;  %v7093_v8 = vpop.f32.mrb[56].mxu0  ;;  %v1444_v10 = vmul.f32 %v7507_v5, %v8576_v4 }
 0x14e   :  { %1607 = vadd.xlane.f32.xlu1 %v1436_v6  ;;  %1621 = vadd.xlane.f32.xlu0 %v1443_v3  ;;  %v980_v9 = vadd.f32 %v7093_v8, %v8566_v54  ;;  %v971_v11 = vpop.f32.mrb[57].mxu0  ;;  %v7511_v12 = vpop.eup %7510  ;;  %v1434_v16 = vmul.f32 %v7509_v7, %v8576_v4 }
 0x14f   :  { %v7094_v14 = vpop.f32.mrb[58].mxu0  ;;  %v7513_v19 = vpop.eup %7512  ;;  %v972_v20 = vadd.f32 %v8566_v54, %v971_v11  ;;  %v1442_v21 = vmul.f32 %v7511_v12, %v8576_v4 }
 0x150   :  { %v974_v17 = vpop.f32.mrb[59].mxu0  ;;  %7522 = vtanh.f32 %v980_v9  ;;  %v1439_v24 = vmul.f32 %v7513_v19, %v8576_v4  ;;  %v983_v31 = vadd.f32 %v7094_v14, %v8566_v54 }
 0x151   :  { %7524 = vtanh.f32 %v927_v13  ;;  %v975_v42 = vadd.f32 %v8566_v54, %v974_v17 }
 0x152   :  { %1603 = vadd.xlane.f32.xlu1 %v1434_v16  ;;  %1623 = vadd.xlane.f32.xlu0 %v1444_v10  ;;  %v7515_v22 = vpop.eup %7514  ;;  %7526 = vtanh.f32 %v972_v20 }
 0x153   :  { %v7517_v25 = vpop.eup %7516  ;;  %v1447_v28 = vmul.f32 %v7515_v22, %v8576_v4  ;;  %7528 = vtanh.f32 %v940_v23 }
 0x154   :  { %v7519_v30 = vpop.eup %7518  ;;  %v1437_v34 = vmul.f32 %v7517_v25, %v8576_v4  ;;  %7530 = vtanh.f32 %v956_v27 }
 0x155   :  { %v7097_v26 = vpop.f32.mrb[60].mxu0  ;;  %v7521_v37 = vpop.eup %7520  ;;  %v1448_v40 = vmul.f32 %v7519_v30, %v8576_v4  ;;  %7532 = vtanh.f32 %v983_v31 }
 0x156   :  { %1613 = vadd.xlane.f32.xlu1 %v1439_v24  ;;  %1619 = vadd.xlane.f32.xlu0 %v1442_v21  ;;  %v987_v29 = vpop.f32.mrb[61].mxu0  ;;  %v1440_v43 = vmul.f32 %v7521_v37, %v8576_v4  ;;  %7534 = vtanh.f32 %v959_v39  ;;  %v996_v46 = vadd.f32 %v7097_v26, %v8566_v54 }
 0x157   :  { %v7098_v32 = vpop.f32.mrb[62].mxu0  ;;  %7536 = vtanh.f32 %v975_v42  ;;  %v988_v58 = vadd.f32 %v8566_v54, %v987_v29 }
 0x158   :  { %v990_v35 = vpop.f32.mrb[63].mxu0  ;;  %v999_v50 = vadd.f32 %v7098_v32, %v8566_v54  ;;  %7538 = vtanh.f32 %v996_v46 }
 0x159   :  { %v991_v1 = vadd.f32 %v8566_v54, %v990_v35 }
 0x15a   :  { %1609 = vadd.xlane.f32.xlu1 %v1437_v34  ;;  %1629 = vadd.xlane.f32.xlu0 %v1447_v28  ;;  %v7523_v41 = vpop.eup %7522  ;;  %7540 = vtanh.f32 %v999_v50 }
 0x15b   :  { %v7525_v44 = vpop.eup %7524  ;;  %v1451_v47 = vmul.f32 %v7523_v41, %v8576_v4 }
 0x15c   :  { %v7527_v49 = vpop.eup %7526  ;;  %v1438_v52 = vmul.f32 %v7525_v44, %v8576_v4 }
 0x15d   :  { %v7101_v45 = vpop.f32.mrb[64].mxu0  ;;  %v7529_v55 = vpop.eup %7528  ;;  %v1449_v57 = vmul.f32 %v7527_v49, %v8576_v4 }
 0x15e   :  { %1615 = vadd.xlane.f32.xlu1 %v1440_v43  ;;  %1631 = vadd.xlane.f32.xlu0 %v1448_v40  ;;  %v1003_v48 = vpop.f32.mrb[65].mxu0  ;;  %v1012_v56 = vadd.f32 %v7101_v45, %v8566_v54  ;;  %v7531_v59 = vpop.eup %7530  ;;  %v1441_v60 = vmul.f32 %v7529_v55, %v8576_v4 }
 0x15f   :  { %v7102_v51 = vpop.f32.mrb[66].mxu0  ;;  %v7533_v62 = vpop.eup %7532  ;;  %v1004_v3 = vadd.f32 %v8566_v54, %v1003_v48  ;;  %v1445_v7 = vmul.f32 %v7531_v59, %v8576_v4 }
 0x160   :  { %v1006_v53 = vpop.f32.mrb[67].mxu0  ;;  %7542 = vtanh.f32 %v1012_v56  ;;  %v7535_v6 = vpop.eup %7534  ;;  %v1452_v8 = vmul.f32 %v7533_v62, %v8576_v4  ;;  %v1015_v12 = vadd.f32 %v7102_v51, %v8566_v54 }
 0x161   :  { %7544 = vtanh.f32 %v988_v58  ;;  %v7537_v10 = vpop.eup %7536  ;;  %v1446_v14 = vmul.f32 %v7535_v6, %v8576_v4  ;;  %v1007_v18 = vadd.f32 %v8566_v54, %v1006_v53 }
 0x162   :  { %1611 = vadd.xlane.f32.xlu1 %v1438_v52  ;;  %1637 = vadd.xlane.f32.xlu0 %v1451_v47  ;;  %7546 = vtanh.f32 %v991_v1  ;;  %v7539_v13 = vpop.eup %7538  ;;  %v1450_v15 = vmul.f32 %v7537_v10, %v8576_v4 }
 0x163   :  { %7548 = vtanh.f32 %v1004_v3  ;;  %v1455_v24 = vmul.f32 %v7539_v13, %v8576_v4 }
 0x164   :  { %v7541_v16 = vpop.eup %7540 }
 0x165   :  { %v7105_v63 = vpop.f32.mrb[68].mxu0  ;;  %v1456_v23 = vmul.f32 %v7541_v16, %v8576_v4 }
 0x166   :  { %1617 = vadd.xlane.f32.xlu1 %v1441_v60  ;;  %1633 = vadd.xlane.f32.xlu0 %v1449_v57  ;;  %v1019_v2 = vpop.f32.mrb[69].mxu0  ;;  %v1028_v11 = vadd.f32 %v7105_v63, %v8566_v54 }
 0x167   :  { %v7106_v5 = vpop.f32.mrb[70].mxu0  ;;  %v1020_v27 = vadd.f32 %v8566_v54, %v1019_v2 }
 0x168   :  { %v1022_v9 = vpop.f32.mrb[71].mxu0  ;;  %7550 = vtanh.f32 %v1028_v11  ;;  %v1031_v21 = vadd.f32 %v7106_v5, %v8566_v54 }
 0x169   :  { %7552 = vtanh.f32 %v1015_v12  ;;  %v1023_v29 = vadd.f32 %v8566_v54, %v1022_v9 }
 0x16a   :  { %1625 = vadd.xlane.f32.xlu1 %v1445_v7  ;;  %1639 = vadd.xlane.f32.xlu0 %v1452_v8  ;;  %v7543_v20 = vpop.eup %7542  ;;  %7554 = vtanh.f32 %v1007_v18 }
 0x16b   :  { %v7545_v26 = vpop.eup %7544  ;;  %v1459_v28 = vmul.f32 %v7543_v20, %v8576_v4  ;;  %7556 = vtanh.f32 %v1031_v21 }
 0x16c   :  { %v7547_v30 = vpop.eup %7546  ;;  %v1453_v32 = vmul.f32 %v7545_v26, %v8576_v4  ;;  %7558 = vtanh.f32 %v1020_v27 }
 0x16d   :  { %v7109_v17 = vpop.f32.mrb[72].mxu0  ;;  %v7549_v34 = vpop.eup %7548  ;;  %7560 = vtanh.f32 %v1023_v29  ;;  %v1454_v41 = vmul.f32 %v7547_v30, %v8576_v4 }
 0x16e   :  { %1627 = vadd.xlane.f32.xlu1 %v1446_v14  ;;  %1635 = vadd.xlane.f32.xlu0 %v1450_v15  ;;  %v1035_v19 = vpop.f32.mrb[73].mxu0  ;;  %v1044_v31 = vadd.f32 %v7109_v17, %v8566_v54  ;;  %v1457_v40 = vmul.f32 %v7549_v34, %v8576_v4  ;;  %v8800_v34 = vld [vmem:[#allocation2] ss:$0 sm:$0xff] }
 0x16f   :  { %v7110_v22 = vpop.f32.mrb[74].mxu0  ;;  %v1036_v46 = vadd.f32 %v8566_v54, %v1035_v19 }
 0x170   :  { %v1038_v25 = vpop.f32.mrb[75].mxu0  ;;  %7562 = vtanh.f32 %v1044_v31  ;;  %v1047_v52 = vadd.f32 %v7110_v22, %v8566_v54 }
 0x171   :  { %v1039_v63 = vadd.f32 %v8566_v54, %v1038_v25 }
 0x172   :  { %1647 = vadd.xlane.f32.xlu1 %v1456_v23  ;;  %1645 = vadd.xlane.f32.xlu0 %v1455_v24  ;;  %v7551_v38 = vpop.eup %7550  ;;  %v8788_v23 = vld [vmem:[%s12117_s4] ss:$0 sm:$0xff] }
 0x173   :  { %v7553_v43 = vpop.eup %7552  ;;  %v1463_v45 = vmul.f32 %v7551_v38, %v8576_v4 }
 0x174   :  { %v7555_v47 = vpop.eup %7554  ;;  %v1460_v48 = vmul.f32 %v7553_v43, %v8576_v4 }
 0x175   :  { %v7113_v35 = vpop.f32.mrb[76].mxu0  ;;  %v7557_v49 = vpop.eup %7556  ;;  %v1458_v58 = vmul.f32 %v7555_v47, %v8576_v4 }
 0x176   :  { %1653 = vadd.xlane.f32.xlu1 %v1459_v28  ;;  %1641 = vadd.xlane.f32.xlu0 %v1453_v32  ;;  %v1060_v36 = vadd.f32 %v7113_v35, %v8566_v54  ;;  %v1051_v37 = vpop.f32.mrb[77].mxu0  ;;  %v7559_v56 = vpop.eup %7558  ;;  %v1464_v57 = vmul.f32 %v7557_v49, %v8576_v4 }
 0x177   :  { %v7114_v39 = vpop.f32.mrb[78].mxu0  ;;  %v7561_v60 = vpop.eup %7560  ;;  %v1461_v1 = vmul.f32 %v7559_v56, %v8576_v4  ;;  %v1052_v10 = vadd.f32 %v8566_v54, %v1051_v37 }
 0x178   :  { %v1054_v42 = vpop.f32.mrb[79].mxu0  ;;  %7564 = vtanh.f32 %v1060_v36  ;;  %v1063_v44 = vadd.f32 %v7114_v39, %v8566_v54  ;;  %v1462_v0 = vmul.f32 %v7561_v60, %v8576_v4 }
 0x179   :  { %v1055_v18 = vadd.f32 %v8566_v54, %v1054_v42 }
 0x17a   :  { %1649 = vadd.xlane.f32.xlu1 %v1457_v40  ;;  %1643 = vadd.xlane.f32.xlu0 %v1454_v41  ;;  %7566 = vtanh.f32 %v1063_v44  ;;  %v7563_v61 = vpop.eup %7562  ;;  %v1526_v3 = vpop.xlane.xlu0 %1525 }
 0x17b   :  { %7568 = vtanh.f32 %v1036_v46  ;;  %v1467_v7 = vmul.f32 %v7563_v61, %v8576_v4  ;;  %v1786_v44 = vadd.f32 %v8800_v34, %v1526_v3 }
 0x17d   :  { %v7117_v50 = vpop.f32.mrb[80].mxu0 }
 0x17e   :  { %1661 = vadd.xlane.f32.xlu1 %v1463_v45  ;;  %1655 = vadd.xlane.f32.xlu0 %v1460_v48  ;;  %v1067_v51 = vpop.f32.mrb[81].mxu0  ;;  %v1522_v19 = vpop.xlane.xlu0 %1521 }
 0x17f   :  { %v1068_v53 = vadd.f32 %v8566_v54, %v1067_v51  ;;  %v8765_v55 = vpop.f32.mrb[82].mxu0  ;;  %v1784_v37 = vadd.f32 %v8800_v34, %v1522_v19 }
 0x180   :  { %v8769_v59 = vpop.f32.mrb[83].mxu0  ;;  %v1079_v35 = vadd.f32 %v8788_v23, %v8765_v55  ;;  %v6750_v55 = vmul.f32 -1.442695, %v1786_v44 }
 0x181   :  { %7570 = vtanh.f32 %v1068_v53  ;;  %v1071_v45 = vadd.f32 %v8788_v23, %v8769_v59  ;;  %v6748_v48 = vmul.f32 -1.442695, %v1784_v37 }
 0x182   :  { %1663 = vadd.xlane.f32.xlu1 %v1464_v57  ;;  %1651 = vadd.xlane.f32.xlu0 %v1458_v58  ;;  %v7565_v62 = vpop.eup %7564  ;;  %7572 = vtanh.f32 %v1047_v52  ;;  %v1528_v31 = vpop.xlane.xlu0 %1527 }
 0x183   :  { %v1471_v8 = vmul.f32 %v7565_v62, %v8576_v4  ;;  %7574 = vtanh.f32 %v1039_v63  ;;  %v1787_v56 = vadd.f32 %v8800_v34, %v1528_v31 }
 0x184   :  { %v7567_v9 = vpop.eup %7566 }
 0x185   :  { %v7121_v2 = vpop.f32.mrb[84].mxu0  ;;  %v7569_v14 = vpop.eup %7568  ;;  %v1472_v16 = vmul.f32 %v7567_v9, %v8576_v4 }
 0x186   :  { %v1092_v5 = vadd.f32 %v7121_v2, %v8566_v54  ;;  %1659 = vadd.xlane.f32.xlu1 %v1462_v0  ;;  %1657 = vadd.xlane.f32.xlu0 %v1461_v1  ;;  %v1083_v6 = vpop.f32.mrb[85].mxu0  ;;  %v1465_v20 = vmul.f32 %v7569_v14, %v8576_v4  ;;  %v1524_v49 = vpop.xlane.xlu0 %1523  ;;  %v6751_v0 = vmul.f32 -1.442695, %v1787_v56 }
 0x187   :  { %v1084_v11 = vadd.f32 %v8566_v54, %v1083_v6  ;;  %v7122_v12 = vpop.f32.mrb[86].mxu0  ;;  %v1785_v1 = vadd.f32 %v8800_v34, %v1524_v49 }
 0x188   :  { %v1086_v13 = vpop.f32.mrb[87].mxu0  ;;  %7576 = vtanh.f32 %v1092_v5  ;;  %v1095_v15 = vadd.f32 %v7122_v12, %v8566_v54  ;;  %v1076_v54 = vadd.f32 %v8788_v23, %v7117_v50 }
 0x189   :  { %7578 = vtanh.f32 %v1084_v11  ;;  %v1087_v24 = vadd.f32 %v8788_v23, %v1086_v13 }
 0x18a   :  { %1669 = vadd.xlane.f32.xlu1 %v1467_v7  ;;  %1677 = vadd.xlane.f32.xlu0 %v1471_v8  ;;  %7580 = vtanh.f32 %v1052_v10  ;;  %v1534_v61 = vpop.xlane.xlu0 %1533  ;;  %v6749_v7 = vmul.f32 -1.442695, %v1785_v1 }
 0x18b   :  { %v7571_v17 = vpop.eup %7570  ;;  %7582 = vtanh.f32 %v1095_v15  ;;  %v1790_v8 = vadd.f32 %v8800_v34, %v1534_v61 }
 0x18c   :  { %v7573_v21 = vpop.eup %7572  ;;  %v1473_v25 = vmul.f32 %v7571_v17, %v8576_v4  ;;  %7584 = vtanh.f32 %v1055_v18 }
 0x18d   :  { %v8783_v22 = vpop.f32.mrb[88].mxu0  ;;  %v1468_v28 = vmul.f32 %v7573_v21, %v8576_v4  ;;  %v7575_v30 = vpop.eup %7574  ;;  %7586 = vtanh.f32 %v1087_v24  ;;  %v8808_v4 = vld [vmem:[%s12118_s5] ss:$0 sm:$0xff]  ;;  %v6754_v15 = vmul.f32 -1.442695, %v1790_v8 }
 0x18e   :  { %1665 = vadd.xlane.f32.xlu1 %v1465_v20  ;;  %1679 = vadd.xlane.f32.xlu0 %v1472_v16  ;;  %v8792_v26 = vpop.f32.mrb[89].mxu0  ;;  %7588 = vtanh.f32 %v1076_v54  ;;  %v1466_v38 = vmul.f32 %v8808_v4, %v7575_v30  ;;  %v1536_v9 = vpop.xlane.xlu0 %1535  ;;  %v7407_v30 = vld [vmem:[%s12116_s0 + $0x1e8] sm:$0xff]   ;;  %v1108_v49 = vadd.f32 %v8788_v23, %v8783_v22 }
 0x18f   :  { %v8795_v27 = vpop.f32.mrb[90].mxu0  ;;  %7590 = vtanh.f32 %v1079_v35  ;;  %v1791_v16 = vadd.f32 %v8800_v34, %v1536_v9 }
 0x190   :  { %v8798_v29 = vpop.f32.mrb[91].mxu0  ;;  %7592 = vtanh.f32 %v1071_v45  ;;  %v1111_v56 = vadd.f32 %v8788_v23, %v8795_v27 }
 0x191   :  { %7594 = vpow2.f32 %v6748_v48  ;;  %v6755_v24 = vmul.f32 -1.442695, %v1791_v16 }
 0x192   :  { %1671 = vadd.xlane.f32.xlu1 %v1468_v28  ;;  %1681 = vadd.xlane.f32.xlu0 %v1473_v25  ;;  %v7577_v32 = vpop.eup %7576  ;;  %7596 = vpow2.f32 %v6750_v55  ;;  %v7406_v28 = vld [vmem:[%s12116_s0 + $0x1e0] sm:$0xff]  }
 0x193   :  { %v7579_v36 = vpop.eup %7578  ;;  %v1479_v39 = vmul.f32 %v8808_v4, %v7577_v32  ;;  %7598 = vpow2.f32 %v6751_v0  ;;  %7155 = vmatprep.mubr.msk.bf16.mxu0 %vm12268_vm0, %v7406_v28 }
 0x194   :  { %v7581_v40 = vpop.eup %7580  ;;  %v1477_v42 = vmul.f32 %v8808_v4, %v7579_v36  ;;  %7600 = vpow2.f32 %v6749_v7  ;;  %7156 = vmatmul.mubr.msk.bf16.gmra.mrb[120].mxu0 %vm12268_vm0, %v7407_v30 }
 0x195   :  { %v8812_v41 = vpop.f32.mrb[92].mxu0  ;;  %v7583_v47 = vpop.eup %7582  ;;  %v1469_v50 = vmul.f32 %v8808_v4, %v7581_v40  ;;  %7602 = vpow2.f32 %v6754_v15  ;;  %v7408_v15 = vld [vmem:[%s12116_s0 + $0x1f0] sm:$0xff]  }
 0x196   :  { %1667 = vadd.xlane.f32.xlu1 %v1466_v38  ;;  %1693 = vadd.xlane.f32.xlu0 %v1479_v39  ;;  %v8815_v43 = vpop.f32.mrb[93].mxu0  ;;  %v7585_v52 = vpop.eup %7584  ;;  %v1480_v53 = vmul.f32 %v8808_v4, %v7583_v47  ;;  %v1124_v8 = vadd.f32 %v8788_v23, %v8812_v41 }
 0x197   :  { %v8820_v46 = vpop.f32.mrb[94].mxu0  ;;  %v7587_v57 = vpop.eup %7586  ;;  %v1470_v58 = vmul.f32 %v8808_v4, %v7585_v52  ;;  %v1100_v52 = vadd.f32 %v8788_v23, %v8792_v26  ;;  %7159 = vmatprep.mubr.msk.bf16.mxu0 %vm12268_vm0, %v7408_v15 }
 0x198   :  { %v8823_v51 = vpop.f32.mrb[95].mxu0  ;;  %v7589_v59 = vpop.eup %7588  ;;  %v1478_v62 = vmul.f32 %v8808_v4, %v7587_v57  ;;  %v1103_v57 = vadd.f32 %v8788_v23, %v8798_v29 }
 0x199   :  { %v1475_v3 = vmul.f32 %v8808_v4, %v7589_v59  ;;  %v7591_v6 = vpop.eup %7590 }
 0x19a   :  { %1673 = vadd.xlane.f32.xlu1 %v1469_v50  ;;  %1689 = vadd.xlane.f32.xlu0 %v1477_v42  ;;  %v1476_v10 = vmul.f32 %v8808_v4, %v7591_v6  ;;  %v7593_v11 = vpop.eup %7592  ;;  %v1530_v42 = vpop.xlane.xlu1 %1529 }
 0x19b   :  { %v7595_v13 = vpop.eup %7594  ;;  %v1474_v17 = vmul.f32 %v8808_v4, %v7593_v11 }
 0x19c   :  { %v7597_v19 = vpop.eup %7596  ;;  %v2296_v20 = vadd.f32 1.0, %v7595_v13  ;;  %v1119_v13 = vadd.f32 %v8788_v23, %v8823_v51 }
 0x19d   :  { %v8828_v60 = vpop.f32.mrb[96].mxu0  ;;  %v2298_v25 = vadd.f32 1.0, %v7597_v19  ;;  %v7599_v54 = vpop.eup %7598 }
 0x19e   :  { %1675 = vadd.xlane.f32.xlu1 %v1470_v58  ;;  %1695 = vadd.xlane.f32.xlu0 %v1480_v53  ;;  %v8831_v63 = vpop.f32.mrb[97].mxu0  ;;  %7604 = vrcp.f32 %v2296_v20  ;;  %v2299_v31 = vadd.f32 1.0, %v7599_v54  ;;  %v7601_v32 = vpop.eup %7600 }
 0x19f   :  { %v8834_v2 = vpop.f32.mrb[98].mxu0  ;;  %7606 = vpow2.f32 %v6755_v24  ;;  %v2297_v35 = vadd.f32 1.0, %v7601_v32  ;;  %v7603_v36 = vpop.eup %7602 }
 0x1a0   :  { %v8837_v5 = vpop.f32.mrb[99].mxu0  ;;  %7608 = vrcp.f32 %v2298_v25  ;;  %v2302_v38 = vadd.f32 1.0, %v7603_v36  ;;  %v1532_v48 = vpop.xlane.xlu1 %1531  ;;  %v1143_v51 = vadd.f32 %v8788_v23, %v8834_v2  ;;  %v7409_v2 = vld [vmem:[%s12116_s0 + $0x1f8] sm:$0xff]  }
 0x1a1   :  { %7610 = vrcp.f32 %v2299_v31  ;;  %v1135_v28 = vadd.f32 %v8788_v23, %v8837_v5  ;;  %7160 = vmatmul.mubr.msk.bf16.gmra.mrb[124].mxu0 %vm12268_vm0, %v7409_v2  ;;  %vm12269_vm0 = vcmask 1041409  }
 0x1a2   :  { %1685 = vadd.xlane.f32.xlu1 %v1475_v3  ;;  %1691 = vadd.xlane.f32.xlu0 %v1478_v62  ;;  %7612 = vrcp.f32 %v2297_v35  ;;  %v1788_v62 = vadd.f32 %v8800_v34, %v1530_v42  ;;  %v1789_v3 = vadd.f32 %v8800_v34, %v1532_v48 }
 0x1a3   :  { %7614 = vrcp.f32 %v2302_v38  ;;  %6505 = vmatprep.mubr.bf16.mxu0 %v8268_v33 }
 0x1a4   :  { %v8878_v53 = vpop.xlane.xlu1 %1541  ;;  %v6752_v1 = vmul.f32 -1.442695, %v1788_v62  ;;  %v6753_v9 = vmul.f32 -1.442695, %v1789_v3 }
 0x1a5   :  { %v8841_v12 = vpop.f32.mrb[100].mxu0 }
 0x1a6   :  { %1687 = vadd.xlane.f32.xlu1 %v1476_v10  ;;  %v8843_v14 = vpop.f32.mrb[101].mxu0 }
 0x1a7   :  { %v8847_v18 = vpop.f32.mrb[102].mxu0 }
 0x1a8   :  { %v8849_v21 = vpop.f32.mrb[103].mxu0  ;;  %v8859_v37 = vpop.eup %7604 }
 0x1a9   :  { %12330 = vst [vmem:[#allocation4_spill] sm:$0xff] %v8859_v37  ;;  %v7607_v39 = vpop.eup %7606  ;;  %v8885_v22 = vpop.xlane.xlu1 %1537 }
 0x1aa   :  { %1683 = vadd.xlane.f32.xlu1 %v1474_v17  ;;  %v8862_v40 = vpop.eup %7608  ;;  %v2303_v44 = vadd.f32 1.0, %v7607_v39  ;;  %v1156_v39 = vadd.f32 %v8788_v23, %v8841_v12  ;;  %v1159_v12 = vadd.f32 %v8788_v23, %v8847_v18  ;;  %v1116_v18 = vadd.f32 %v8788_v23, %v8815_v43 }
 0x1ab   :  { %12331 = vst [vmem:[#allocation5_spill] sm:$0xff] %v8862_v40  ;;  %v8865_v45 = vpop.eup %7610 }
 0x1ac   :  { %12332 = vst [vmem:[#allocation6_spill] sm:$0xff] %v8865_v45  ;;  %7616 = vrcp.f32 %v2303_v44  ;;  %v8868_v47 = vpop.eup %7612  ;;  %v1148_v44 = vadd.f32 %v8788_v23, %v8843_v14 }
 0x1ad   :  { %12333 = vst [vmem:[#allocation7_spill] sm:$0xff] %v8868_v47  ;;  %v8873_v50 = vpop.eup %7614  ;;  %7618 = vtanh.f32 %v1108_v49  ;;  %v8890_v61 = vpop.xlane.xlu1 %1543 }
 0x1ae   :  { %12334 = vst [vmem:[#allocation8_spill] sm:$0xff] %v8873_v50  ;;  %7620 = vtanh.f32 %v1100_v52  ;;  %v1795_v15 = vadd.f32 %v8800_v34, %v8890_v61 }
 0x1af   :  { %7622 = vtanh.f32 %v1111_v56 }
 0x1b0   :  { %7624 = vtanh.f32 %v1103_v57 }
 0x1b1   :  { %v8895_v6 = vpop.xlane.xlu1 %1539  ;;  %7626 = vpow2.f32 %v6752_v1 }
 0x1b2   :  { %7628 = vtanh.f32 %v1124_v8  ;;  %v1794_v8 = vadd.f32 %v8800_v34, %v8878_v53  ;;  %v1793_v53 = vadd.f32 %v8800_v34, %v8895_v6 }
 0x1b3   :  { %7630 = vpow2.f32 %v6753_v9 }
 0x1b4   :  { %7632 = vtanh.f32 %v1119_v13  ;;  %v6758_v9 = vmul.f32 -1.442695, %v1794_v8 }
 0x1b5   :  { %v8901_v11 = vpop.xlane.xlu1 %1549  ;;  %7634 = vtanh.f32 %v1143_v51 }
 0x1b6   :  { %v8880_v55 = vpop.eup %7616 }
 0x1b7   :  { %12335 = vst [vmem:[#allocation9_spill] sm:$0xff] %v8880_v55  ;;  %v7619_v58 = vpop.eup %7618 }
 0x1b8   :  { %2816 = vperm.xlu0 %7343, %v8859_v37   ;;  %v1483_v26 = vmul.f32 %v8808_v4, %v7619_v58  ;;  %v7621_v59 = vpop.eup %7620 }
 0x1b9   :  { %v1481_v27 = vmul.f32 %v8808_v4, %v7621_v59  ;;  %v7623_v0 = vpop.eup %7622  ;;  %v8913_v17 = vpop.xlane.xlu1 %1545 }
 0x1ba   :  { %v1484_v29 = vmul.f32 %v8808_v4, %v7623_v0  ;;  %v7625_v7 = vpop.eup %7624 }
 0x1bb   :  { %2822 = vperm.xlu1 %7342, %v8862_v40   ;;  %v1482_v10 = vmul.f32 %v8808_v4, %v7625_v7  ;;  %v7627_v20 = vpop.eup %7626 }
 0x1bc   :  { %v7629_v24 = vpop.eup %7628  ;;  %v2300_v25 = vadd.f32 1.0, %v7627_v20 }
 0x1bd   :  { %v7631_v54 = vpop.eup %7630  ;;  %v8921_v30 = vpop.xlane.xlu1 %1551  ;;  %v1487_v31 = vmul.f32 %v8808_v4, %v7629_v24  ;;  %v6759_v24 = vmul.f32 -1.442695, %v1795_v15 }
 0x1be   :  { %v7633_v32 = vpop.eup %7632  ;;  %7636 = vrcp.f32 %v2300_v25  ;;  %v2301_v35 = vadd.f32 1.0, %v7631_v54 }
 0x1bf   :  { %2825 = vperm.xlu1 %7342, %v8865_v45   ;;  %v8909_v41 = vpop.f32.mrb[104].mxu0  ;;  %7638 = vtanh.f32 %v1135_v28  ;;  %v1486_v36 = vmul.f32 %v8808_v4, %v7633_v32  ;;  %v7635_v42 = vpop.eup %7634 }
 0x1c0   :  { %v8911_v16 = vpop.f32.mrb[105].mxu0  ;;  %7640 = vrcp.f32 %v2301_v35  ;;  %v1492_v48 = vmul.f32 %v8808_v4, %v7635_v42 }
 0x1c1   :  { %v8915_v19 = vpop.f32.mrb[106].mxu0  ;;  %v8931_v5 = vpop.xlane.xlu1 %1547  ;;  %7642 = vtanh.f32 %v1156_v39 }
 0x1c2   :  { %v8928_v38 = vpop.f32.mrb[107].mxu0  ;;  %7644 = vtanh.f32 %v1148_v44 }
 0x1c3   :  { %2819 = vperm.xlu1 %7342, %v8868_v47   ;;  %7646 = vtanh.f32 %v1159_v12 }
 0x1c5   :  { %v1558_v52 = vpop.xlane.xlu1 %1557 }
 0x1c6   :  { %v1802_v33 = vadd.f32 %v8800_v34, %v1558_v52 }
 0x1c7   :  { %2834 = vperm.xlu1 %7342, %v8873_v50  }
 0x1c8   :  { %v8939_v49 = vpop.eup %7636  ;;  %v6766_v14 = vmul.f32 -1.442695, %v1802_v33 }
 0x1c9   :  { %12336 = vst [vmem:[#allocation10_spill] sm:$0xff] %v8939_v49  ;;  %v7639_v56 = vpop.eup %7638  ;;  %v1554_v61 = vpop.xlane.xlu1 %1553 }
 0x1ca   :  { %v1490_v57 = vmul.f32 %v8808_v4, %v7639_v56  ;;  %v8946_v58 = vpop.eup %7640  ;;  %7648 = vpow2.f32 %v6766_v14  ;;  %v1800_v44 = vadd.f32 %v8800_v34, %v1554_v61 }
 0x1cb   :  { %2837 = vperm.xlu1 %7342, %v8880_v55   ;;  %12337 = vst [vmem:[#allocation11_spill] sm:$0xff] %v8946_v58  ;;  %7650 = vtanh.f32 %v1116_v18 }
 0x1cd   :  { %v8969_v35 = vpop.xlane.xlu1 %1559 }
 0x1d1   :  { %v1556_v56 = vpop.xlane.xlu1 %1555 }
 0x1d2   :  { %v1801_v14 = vadd.f32 %v8800_v34, %v1556_v56 }
 0x1d5   :  { %v1566_v56 = vpop.xlane.xlu1 %1565 }
 0x1d7   :  { %1701 = vadd.xlane.f32.xlu0 %v1483_v26  ;;  %v7643_v26 = vpop.eup %7642 }
 0x1d8   :  { %v1495_v59 = vmul.f32 %v8808_v4, %v7643_v26  ;;  %v7645_v62 = vpop.eup %7644 }
 0x1d9   :  { %v7647_v0 = vpop.eup %7646 }
 0x1da   :  { %v1496_v1 = vmul.f32 %v8808_v4, %v7647_v0  ;;  %v7649_v3 = vpop.eup %7648 }
 0x1db   :  { %1697 = vadd.xlane.f32.xlu0 %v1481_v27  ;;  %v1493_v27 = vmul.f32 %v8808_v4, %v7645_v62  ;;  %v2314_v7 = vadd.f32 1.0, %v7649_v3  ;;  %v7651_v43 = vpop.eup %7650 }
 0x1dc   :  { %v1485_v20 = vmul.f32 %v8808_v4, %v7651_v43 }
 0x1df   :  { %1703 = vadd.xlane.f32.xlu0 %v1484_v29  ;;  %v1127_v29 = vadd.f32 %v8788_v23, %v8820_v46 }
 0x1e1   :  { %7652 = vtanh.f32 %v1127_v29 }
 0x1e2   :  { %7654 = vrcp.f32 %v2314_v7 }
 0x1e3   :  { %1699 = vadd.xlane.f32.xlu0 %v1482_v10  ;;  %v1792_v10 = vadd.f32 %v8800_v34, %v8885_v22  ;;  %7656 = vpow2.f32 %v6758_v9  ;;  %v6757_v22 = vmul.f32 -1.442695, %v1793_v53  ;;  %v1132_v53 = vadd.f32 %v8788_v23, %v8831_v63 }
 0x1e4   :  { %v1799_v63 = vadd.f32 %v8800_v34, %v8921_v30  ;;  %v1803_v30 = vadd.f32 %v8800_v34, %v8969_v35 }
 0x1e5   :  { %v6756_v13 = vmul.f32 -1.442695, %v1792_v10 }
 0x1e7   :  { %7658 = vpow2.f32 %v6756_v13 }
 0x1e8   :  { %7660 = vpow2.f32 %v6759_v24  ;;  %v1140_v24 = vadd.f32 %v8788_v23, %v8828_v60  ;;  %v1796_v60 = vadd.f32 %v8800_v34, %v8913_v17 }
 0x1e9   :  { %7662 = vpow2.f32 %v6757_v22 }
 0x1eb   :  { %v7653_v46 = vpop.eup %7652 }
 0x1ec   :  { %v8963_v51 = vpop.eup %7654  ;;  %v1488_v25 = vmul.f32 %v8808_v4, %v7653_v46 }
 0x1ed   :  { %12338 = vst [vmem:[#allocation12_spill] sm:$0xff] %v8963_v51  ;;  %v7657_v54 = vpop.eup %7656 }
 0x1ee   :  { %v2306_v28 = vadd.f32 1.0, %v7657_v54  ;;  %v1798_v54 = vadd.f32 %v8800_v34, %v8901_v11  ;;  %v1797_v11 = vadd.f32 %v8800_v34, %v8931_v5  ;;  %v1806_v5 = vadd.f32 %v8800_v34, %v1566_v56 }
 0x1ef   :  { %1709 = vadd.xlane.f32.xlu1 %v1487_v31 }
 0x1f0   :  { %7664 = vrcp.f32 %v2306_v28  ;;  %v6762_v61 = vmul.f32 -1.442695, %v1798_v54  ;;  %v6761_v17 = vmul.f32 -1.442695, %v1797_v11 }
 0x1f1   :  { %v7659_v31 = vpop.eup %7658 }
 0x1f2   :  { %v2304_v32 = vadd.f32 1.0, %v7659_v31  ;;  %v7661_v2 = vpop.eup %7660  ;;  %v6760_v31 = vmul.f32 -1.442695, %v1796_v60 }
 0x1f3   :  { %1707 = vadd.xlane.f32.xlu1 %v1486_v36  ;;  %v2307_v39 = vadd.f32 1.0, %v7661_v2  ;;  %v7663_v42 = vpop.eup %7662 }
 0x1f4   :  { %7666 = vrcp.f32 %v2304_v32  ;;  %v2305_v12 = vadd.f32 1.0, %v7663_v42  ;;  %v1562_v32 = vpop.xlane.xlu0 %1561  ;;  %v6763_v42 = vmul.f32 -1.442695, %v1799_v63 }
 0x1f5   :  { %7668 = vrcp.f32 %v2307_v39 }
 0x1f7   :  { %1719 = vadd.xlane.f32.xlu1 %v1492_v48  ;;  %v1151_v48 = vadd.f32 %v8788_v23, %v8849_v21  ;;  %v6765_v21 = vmul.f32 -1.442695, %v1801_v14  ;;  %v6767_v14 = vmul.f32 -1.442695, %v1803_v30 }
 0x1f9   :  { %2828 = vperm.xlu0 %7343, %v8939_v49   ;;  %7670 = vtanh.f32 %v1151_v48  ;;  %v1564_v48 = vpop.xlane.xlu0 %1563 }
 0x1fa   :  { %v8983_v26 = vpop.eup %7664  ;;  %7672 = vrcp.f32 %v2305_v12  ;;  %v1172_v12 = vadd.f32 %v8788_v23, %v8909_v41  ;;  %v1805_v11 = vadd.f32 %v8800_v34, %v1564_v48 }
 0x1fb   :  { %1715 = vadd.xlane.f32.xlu1 %v1490_v57  ;;  %v6764_v57 = vmul.f32 -1.442695, %v1800_v44  ;;  %12339 = vst [vmem:[#allocation13_spill] sm:$0xff] %v8983_v26 }
 0x1fc   :  { %v6769_v56 = vmul.f32 -1.442695, %v1805_v11 }
 0x1fd   :  { %2831 = vperm.xlu0 %7343, %v8946_v58   ;;  %7674 = vpow2.f32 %v6764_v57 }
 0x1fe   :  { %v8988_v62 = vpop.eup %7666  ;;  %7676 = vpow2.f32 %v6765_v21 }
 0x1ff   :  { %1725 = vadd.xlane.f32.xlu1 %v1495_v59  ;;  %12340 = vst [vmem:[#allocation14_spill] sm:$0xff] %v8988_v62  ;;  %v8995_v18 = vpop.eup %7668 }
 0x200   :  { %12341 = vst [vmem:[#allocation15_spill] sm:$0xff] %v8995_v18 }
 0x203   :  { %1721 = vadd.xlane.f32.xlu1 %v1493_v27 }
 0x207   :  { %1727 = vadd.xlane.f32.xlu1 %v1496_v1  ;;  %v7671_v1 = vpop.eup %7670 }
 0x208   :  { %v9004_v8 = vpop.eup %7672  ;;  %v1494_v9 = vmul.f32 %v8808_v4, %v7671_v1  ;;  %v1568_v1 = vpop.xlane.xlu1 %1567 }
 0x209   :  { %12342 = vst [vmem:[#allocation16_spill] sm:$0xff] %v9004_v8  ;;  %v7675_v43 = vpop.eup %7674  ;;  %v1807_v35 = vadd.f32 %v8800_v34, %v1568_v1 }
 0x20a   :  { %v8971_v36 = vpop.f32.mrb[108].mxu0  ;;  %v2312_v13 = vadd.f32 1.0, %v7675_v43  ;;  %v1164_v43 = vadd.f32 %v8788_v23, %v8911_v16  ;;  %v1804_v16 = vadd.f32 %v8800_v34, %v1562_v32 }
 0x20b   :  { %v8973_v6 = vpop.f32.mrb[109].mxu0 }
 0x20c   :  { %v8978_v52 = vpop.f32.mrb[110].mxu0  ;;  %7678 = vrcp.f32 %v2312_v13  ;;  %v9039_v13 = vpop.xlane.xlu0 %1573 }
 0x20d   :  { %v8980_v33 = vpop.f32.mrb[111].mxu0 }
 0x214   :  { %v8986_v59 = vpop.f32.mrb[112].mxu0 }
 0x215   :  { %v8990_v27 = vpop.f32.mrb[113].mxu0 }
 0x216   :  { %v8993_v0 = vpop.f32.mrb[114].mxu0 }
 0x217   :  { %v8998_v3 = vpop.f32.mrb[115].mxu0 }
 0x218   :  { %2870 = vperm.xlu1 %7342, %v8963_v51  }
 0x21c   :  { %1705 = vadd.xlane.f32.xlu0 %v1485_v20  ;;  %v7677_v20 = vpop.eup %7676 }
 0x21d   :  { %v2313_v46 = vadd.f32 1.0, %v7677_v20  ;;  %v6770_v20 = vmul.f32 -1.442695, %v1806_v5 }
 0x21f   :  { %v9000_v29 = vpop.f32.mrb[116].mxu0  ;;  %7680 = vrcp.f32 %v2313_v46 }
 0x220   :  { %1711 = vadd.xlane.f32.xlu0 %v1488_v25  ;;  %v9002_v7 = vpop.f32.mrb[117].mxu0  ;;  %7682 = vtanh.f32 %v1140_v24  ;;  %v9016_v25 = vpop.eup %7678  ;;  %v1175_v24 = vadd.f32 %v8788_v23, %v8915_v19 }
 0x221   :  { %v9007_v10 = vpop.f32.mrb[118].mxu0  ;;  %12343 = vst [vmem:[#allocation17_spill] sm:$0xff] %v9016_v25  ;;  %7684 = vtanh.f32 %v1132_v53  ;;  %v6771_v53 = vmul.f32 -1.442695, %v1807_v35 }
 0x222   :  { %v9010_v15 = vpop.f32.mrb[119].mxu0  ;;  %7686 = vpow2.f32 %v6762_v61 }
 0x223   :  { %7688 = vpow2.f32 %v6760_v31  ;;  %v1167_v31 = vadd.f32 %v8788_v23, %v8928_v38 }
 0x224   :  { %7690 = vpow2.f32 %v6763_v42 }
 0x225   :  { %7692 = vpow2.f32 %v6761_v17 }
 0x226   :  { %7694 = vtanh.f32 %v1172_v12 }
 0x227   :  { %7696 = vpow2.f32 %v6767_v14 }
 0x229   :  { %v9019_v22 = vpop.eup %7680 }
 0x22a   :  { %12344 = vst [vmem:[#allocation18_spill] sm:$0xff] %v9019_v22  ;;  %v7683_v28 = vpop.eup %7682 }
 0x22b   :  { %v1491_v2 = vmul.f32 %v8808_v4, %v7683_v28  ;;  %v7685_v39 = vpop.eup %7684  ;;  %v9045_v28 = vpop.xlane.xlu0 %1569 }
 0x22c   :  { %v1489_v44 = vmul.f32 %v8808_v4, %v7685_v39  ;;  %v7687_v57 = vpop.eup %7686  ;;  %v6768_v39 = vmul.f32 -1.442695, %v1804_v16 }
 0x22d   :  { %v2310_v21 = vadd.f32 1.0, %v7687_v57 }
 0x22f   :  { %7698 = vrcp.f32 %v2310_v21  ;;  %v9053_v32 = vpop.xlane.xlu0 %1575 }
 0x230   :  { %7700 = vtanh.f32 %v1164_v43 }
 0x231   :  { %7702 = vpow2.f32 %v6770_v20 }
 0x233   :  { %v9060_v5 = vpop.xlane.xlu0 %1571 }
 0x236   :  { %2846 = vperm.xlu0 %7343, %v8983_v26  }
 0x23a   :  { %2840 = vperm.xlu0 %7343, %v8988_v62   ;;  %v9238_v62 = vld [vmem:[#allocation2] ss:$0 sm:$0xff] }
 0x23c   :  { %1723 = vadd.xlane.f32.xlu1 %v1494_v9  ;;  %v7689_v9 = vpop.eup %7688 }
 0x23d   :  { %v2308_v41 = vadd.f32 1.0, %v7689_v9  ;;  %v7691_v46 = vpop.eup %7690 }
 0x23e   :  { %2849 = vperm.xlu0 %7343, %v8995_v18   ;;  %v7693_v54 = vpop.eup %7692  ;;  %v2311_v61 = vadd.f32 1.0, %v7691_v46 }
 0x23f   :  { %7704 = vrcp.f32 %v2308_v41  ;;  %v7695_v60 = vpop.eup %7694  ;;  %v2309_v63 = vadd.f32 1.0, %v7693_v54 }
 0x240   :  { %7706 = vtanh.f32 %v1175_v24  ;;  %v7697_v19 = vpop.eup %7696 }
 0x241   :  { %7708 = vpow2.f32 %v6771_v53  ;;  %v9051_v42 = vpop.eup %7698  ;;  %v2315_v17 = vadd.f32 1.0, %v7697_v19 }
 0x242   :  { %2843 = vperm.xlu0 %7343, %v9004_v8   ;;  %7710 = vrcp.f32 %v2311_v61  ;;  %12345 = vst [vmem:[#allocation19_spill] sm:$0xff] %v9051_v42  ;;  %v9077_v61 = vpop.xlane.xlu0 %1581 }
 0x243   :  { %7712 = vtanh.f32 %v1167_v31  ;;  %v1814_v55 = vadd.f32 %v9238_v62, %v9077_v61 }
 0x244   :  { %7714 = vrcp.f32 %v2309_v63 }
 0x245   :  { %7716 = vpow2.f32 %v6768_v39  ;;  %v6778_v58 = vmul.f32 -1.442695, %v1814_v55 }
 0x246   :  { %7718 = vrcp.f32 %v2315_v17 }
 0x247   :  { %7720 = vpow2.f32 %v6769_v56 }
 0x24d   :  { %2864 = vperm.xlu1 %7342, %v9016_v25  }
 0x251   :  { %2867 = vperm.xlu1 %7342, %v9019_v22  }
 0x261   :  { %1717 = vadd.xlane.f32.xlu0 %v1491_v2  ;;  %v1499_v2 = vmul.f32 %v8808_v4, %v7695_v60  ;;  %v9080_v60 = vpop.xlane.xlu1 %1591 }
 0x265   :  { %1713 = vadd.xlane.f32.xlu0 %v1489_v44  ;;  %v7701_v44 = vpop.eup %7700  ;;  %v9089_v11 = vpop.xlane.xlu1 %1587 }
 0x266   :  { %v7703_v38 = vpop.eup %7702  ;;  %v1497_v12 = vmul.f32 %v8808_v4, %v7701_v44 }
 0x267   :  { %v9056_v30 = vpop.eup %7704  ;;  %v2318_v48 = vadd.f32 1.0, %v7703_v38  ;;  %v9066_v43 = vpop.f32.mrb[120].mxu0 }
 0x268   :  { %12346 = vst [vmem:[#allocation20_spill] sm:$0xff] %v9056_v30  ;;  %v7707_v57 = vpop.eup %7706  ;;  %v9068_v35 = vpop.f32.mrb[121].mxu0 }
 0x269   :  { %v7709_v14 = vpop.eup %7708  ;;  %v1500_v1 = vmul.f32 %v8808_v4, %v7707_v57  ;;  %7722 = vrcp.f32 %v2318_v48  ;;  %v9070_v41 = vpop.f32.mrb[122].mxu0 }
 0x26a   :  { %v9062_v21 = vpop.eup %7710  ;;  %v2319_v20 = vadd.f32 1.0, %v7709_v14  ;;  %v9075_v53 = vpop.f32.mrb[123].mxu0  ;;  %v1180_v14 = vadd.f32 %v8788_v23, %v8973_v6  ;;  %v1207_v6 = vadd.f32 %v8788_v23, %v8993_v0  ;;  %v1220_v0 = vadd.f32 %v8788_v23, %v9000_v29 }
 0x26b   :  { %12347 = vst [vmem:[#allocation21_spill] sm:$0xff] %v9062_v21  ;;  %v7713_v9 = vpop.eup %7712  ;;  %v9097_v38 = vpop.xlane.xlu1 %1593  ;;  %v1808_v29 = vadd.f32 %v8800_v34, %v9045_v28 }
 0x26c   :  { %v9072_v46 = vpop.eup %7714  ;;  %v1498_v24 = vmul.f32 %v8808_v4, %v7713_v9  ;;  %7724 = vrcp.f32 %v2319_v20  ;;  %v1183_v20 = vadd.f32 %v8788_v23, %v8980_v33  ;;  %v1199_v33 = vadd.f32 %v8788_v23, %v8998_v3 }
 0x26d   :  { %12348 = vst [vmem:[#allocation22_spill] sm:$0xff] %v9072_v46  ;;  %v7717_v54 = vpop.eup %7716 }
 0x26e   :  { %v9082_v16 = vpop.eup %7718  ;;  %v2316_v31 = vadd.f32 1.0, %v7717_v54 }
 0x26f   :  { %12349 = vst [vmem:[#allocation23_spill] sm:$0xff] %v9082_v16  ;;  %v7721_v63 = vpop.eup %7720  ;;  %v9104_v57 = vpop.xlane.xlu1 %1599 }
 0x270   :  { %7726 = vrcp.f32 %v2316_v31  ;;  %v2317_v39 = vadd.f32 1.0, %v7721_v63 }
 0x272   :  { %7728 = vrcp.f32 %v2317_v39 }
 0x273   :  { %v9087_v19 = vpop.eup %7722  ;;  %v9113_v9 = vpop.xlane.xlu1 %1605  ;;  %7730 = vtanh.f32 %v1180_v14  ;;  %v1188_v14 = vadd.f32 %v8788_v23, %v8971_v36  ;;  %v1191_v36 = vadd.f32 %v8788_v23, %v8978_v52 }
 0x274   :  { %12350 = vst [vmem:[#allocation24_spill] sm:$0xff] %v9087_v19  ;;  %7732 = vtanh.f32 %v1183_v20  ;;  %v1826_v22 = vadd.f32 %v9238_v62, %v9113_v9 }
 0x275   :  { %1733 = vadd.xlane.f32.xlu1 %v1499_v2  ;;  %v9085_v2 = vpop.xlane.xlu0 %1577 }
 0x276   :  { %v9092_v44 = vpop.eup %7724 }
 0x277   :  { %12351 = vst [vmem:[#allocation25_spill] sm:$0xff] %v9092_v44  ;;  %v9121_v31 = vpop.xlane.xlu1 %1601 }
 0x279   :  { %1729 = vadd.xlane.f32.xlu1 %v1497_v12  ;;  %v9094_v17 = vpop.xlane.xlu0 %1583 }
 0x27a   :  { %v9099_v56 = vpop.eup %7726 }
 0x27b   :  { %2858 = vperm.xlu0 %7343, %v9051_v42   ;;  %12352 = vst [vmem:[#allocation26_spill] sm:$0xff] %v9099_v56 }
 0x27c   :  { %v9106_v48 = vpop.eup %7728 }
 0x27d   :  { %1735 = vadd.xlane.f32.xlu1 %v1500_v1  ;;  %v9102_v12 = vpop.xlane.xlu0 %1579  ;;  %12353 = vst [vmem:[#allocation27_spill] sm:$0xff] %v9106_v48  ;;  %v7731_v63 = vpop.eup %7730 }
 0x27e   :  { %v7733_v20 = vpop.eup %7732 }
 0x27f   :  { %2852 = vperm.xlu0 %7343, %v9056_v30  }
 0x281   :  { %1731 = vadd.xlane.f32.xlu1 %v1498_v24  ;;  %v9111_v1 = vpop.xlane.xlu0 %1589  ;;  %v1204_v24 = vadd.f32 %v8788_v23, %v8986_v59  ;;  %v1501_v59 = vmul.f32 %v8808_v4, %v7731_v63  ;;  %v1212_v63 = vadd.f32 %v8788_v23, %v9002_v7  ;;  %v6772_v7 = vmul.f32 -1.442695, %v1808_v29 }
 0x283   :  { %2861 = vperm.xlu0 %7343, %v9062_v21   ;;  %7734 = vtanh.f32 %v1204_v24  ;;  %v9129_v21 = vpop.xlane.xlu1 %1607  ;;  %v1810_v24 = vadd.f32 %v8800_v34, %v9039_v13 }
 0x284   :  { %7736 = vtanh.f32 %v1207_v6  ;;  %v1502_v6 = vmul.f32 %v8808_v4, %v7733_v20  ;;  %v1223_v20 = vadd.f32 %v8788_v23, %v9007_v10  ;;  %v1809_v10 = vadd.f32 %v8800_v34, %v9060_v5 }
 0x285   :  { %v9119_v54 = vpop.xlane.xlu0 %1585  ;;  %7738 = vtanh.f32 %v1188_v14  ;;  %v6774_v14 = vmul.f32 -1.442695, %v1810_v24  ;;  %v1811_v24 = vadd.f32 %v8800_v34, %v9053_v32 }
 0x286   :  { %7740 = vtanh.f32 %v1199_v33 }
 0x287   :  { %2855 = vperm.xlu0 %7343, %v9072_v46   ;;  %v9143_v46 = vpop.xlane.xlu1 %1603  ;;  %7742 = vtanh.f32 %v1220_v0 }
 0x288   :  { %7744 = vtanh.f32 %v1191_v36 }
 0x289   :  { %v9125_v39 = vpop.xlane.xlu0 %1597  ;;  %7746 = vtanh.f32 %v1212_v63  ;;  %v6775_v63 = vmul.f32 -1.442695, %v1811_v24 }
 0x28a   :  { %7748 = vpow2.f32 %v6774_v14 }
 0x28b   :  { %2873 = vperm.xlu0 %7343, %v9082_v16   ;;  %7750 = vtanh.f32 %v1223_v20  ;;  %v6773_v20 = vmul.f32 -1.442695, %v1809_v10 }
 0x28c   :  { %7752 = vpow2.f32 %v6772_v7  ;;  %v1819_v7 = vadd.f32 %v8800_v34, %v9080_v60 }
 0x28d   :  { %v9138_v42 = vpop.xlane.xlu0 %1595  ;;  %v7735_v3 = vpop.eup %7734 }
 0x28e   :  { %v1507_v13 = vmul.f32 %v8808_v4, %v7735_v3  ;;  %v7737_v33 = vpop.eup %7736  ;;  %v1215_v3 = vadd.f32 %v8788_v23, %v9010_v15  ;;  %v1821_v9 = vadd.f32 %v9238_v62, %v9138_v42 }
 0x28f   :  { %2882 = vperm.xlu0 %7343, %v9087_v19   ;;  %v7739_v0 = vpop.eup %7738  ;;  %v1508_v28 = vmul.f32 %v8808_v4, %v7737_v33 }
 0x290   :  { %v7741_v36 = vpop.eup %7740  ;;  %7754 = vtanh.f32 %v1215_v3 }
 0x291   :  { %v9150_v52 = vpop.xlane.xlu0 %1621  ;;  %v1506_v32 = vmul.f32 %v8808_v4, %v7741_v36  ;;  %v7743_v29 = vpop.eup %7742  ;;  %7756 = vpow2.f32 %v6775_v63 }
 0x292   :  { %2876 = vperm.xlu1 %7342, %v9099_v56   ;;  %v7745_v33 = vpop.eup %7744  ;;  %v1511_v23 = vmul.f32 %v8808_v4, %v7743_v29  ;;  %7758 = vpow2.f32 %v6773_v20 }
 0x293   :  { %2885 = vperm.xlu0 %7343, %v9092_v44   ;;  %v7747_v15 = vpop.eup %7746 }
 0x294   :  { %v7749_v5 = vpop.eup %7748 }
 0x295   :  { %v9164_v14 = vpop.xlane.xlu0 %1623  ;;  %v7751_v3 = vpop.eup %7750  ;;  %v2322_v63 = vadd.f32 1.0, %v7749_v5 }
 0x296   :  { %2879 = vperm.xlu1 %7342, %v9106_v48   ;;  %v7753_v10 = vpop.eup %7752  ;;  %v1512_v34 = vmul.f32 %v8808_v4, %v7751_v3 }
 0x297   :  { %7760 = vrcp.f32 %v2322_v63 }
 0x299   :  { %v9173_v24 = vpop.xlane.xlu0 %1619 }
 0x29a   :  { %v7755_v60 = vpop.eup %7754 }
 0x29b   :  { %v7757_v18 = vpop.eup %7756  ;;  %v1510_v20 = vmul.f32 %v8808_v4, %v7755_v60 }
 0x29c   :  { %v7759_v5 = vpop.eup %7758 }
 0x29d   :  { %v9180_v29 = vpop.xlane.xlu0 %1629  ;;  %v2321_v63 = vadd.f32 1.0, %v7759_v5 }
 0x2b2   :  { %1737 = vadd.xlane.f32.xlu0 %v1501_v59  ;;  %v9152_v59 = vpop.xlane.xlu1 %1613 }
 0x2b6   :  { %1739 = vadd.xlane.f32.xlu0 %v1502_v6  ;;  %v1503_v6 = vmul.f32 %v8808_v4, %v7739_v0  ;;  %v1504_v0 = vmul.f32 %v8808_v4, %v7745_v33  ;;  %v2320_v33 = vadd.f32 1.0, %v7753_v10  ;;  %v9196_v10 = vpop.eup %7760 }
 0x2b7   :  { %12354 = vst [vmem:[#allocation28_spill] sm:$0xff] %v9196_v10 }
 0x2ba   :  { %1749 = vadd.xlane.f32.xlu0 %v1507_v13  ;;  %v9167_v13 = vpop.xlane.xlu1 %1609  ;;  %1741 = vadd.xlane.f32.xlu1 %v1503_v6  ;;  %v1509_v6 = vmul.f32 %v8808_v4, %v7747_v15  ;;  %v2323_v15 = vadd.f32 1.0, %v7757_v18 }
 0x2be   :  { %1751 = vadd.xlane.f32.xlu0 %v1508_v28  ;;  %v9175_v28 = vpop.f32.mrb[124].mxu0  ;;  %v9177_v36 = vpop.xlane.xlu1 %1615  ;;  %1743 = vadd.xlane.f32.xlu1 %v1504_v0 }
 0x2c2   :  { %1747 = vadd.xlane.f32.xlu0 %v1506_v32  ;;  %v6783_v32 = vmul.f32 -1.442695, %v1819_v7  ;;  %v9183_v30 = vpop.xlane.xlu1 %1611  ;;  %v9190_v7 = vpop.xlane.xlu0 %1631 }
 0x2c4   :  { %7762 = vpow2.f32 %v6783_v32 }
 0x2c5   :  { %7764 = vrcp.f32 %v2320_v33 }
 0x2c6   :  { %1757 = vadd.xlane.f32.xlu0 %v1511_v23  ;;  %v9186_v23 = vpop.f32.mrb[125].mxu0  ;;  %v9194_v3 = vpop.xlane.xlu1 %1617  ;;  %7766 = vrcp.f32 %v2323_v15 }
 0x2c7   :  { %v9188_v0 = vpop.f32.mrb[126].mxu0  ;;  %v9198_v4 = vpop.xlane.xlu0 %1637  ;;  %7768 = vrcp.f32 %v2321_v63 }
 0x2ca   :  { %1753 = vadd.xlane.f32.xlu0 %v1509_v6  ;;  %v9192_v6 = vpop.f32.mrb[127].mxu0  ;;  %v9201_v18 = vpop.xlane.xlu1 %1625 }
 0x2cb   :  { %v9206_v33 = vpop.xlane.xlu0 %1633 }
 0x2ce   :  { %1759 = vadd.xlane.f32.xlu0 %v1512_v34  ;;  %v7763_v32 = vpop.eup %7762  ;;  %v9210_v15 = vpop.xlane.xlu1 %1627 }
 0x2cf   :  { %2894 = vperm.xlu1 %7342, %v9196_v10   ;;  %v9203_v34 = vpop.eup %7764  ;;  %v2331_v60 = vadd.f32 1.0, %v7763_v32  ;;  %v9215_v10 = vpop.xlane.xlu0 %1639 }
 0x2d0   :  { %12355 = vst [vmem:[#allocation29_spill] sm:$0xff] %v9203_v34 }
 0x2d1   :  { %7770 = vrcp.f32 %v2331_v60 }
 0x2d2   :  { %1755 = vadd.xlane.f32.xlu0 %v1510_v20  ;;  %v9208_v20 = vpop.eup %7766  ;;  %v9218_v63 = vpop.xlane.xlu1 %1647 }
 0x2d3   :  { %2888 = vperm.xlu1 %7342, %v9203_v34   ;;  %12356 = vst [vmem:[#allocation30_spill] sm:$0xff] %v9208_v20  ;;  %v9213_v5 = vpop.eup %7768  ;;  %v9222_v26 = vpop.xlane.xlu0 %1635 }
 0x2d4   :  { %12357 = vst [vmem:[#allocation31_spill] sm:$0xff] %v9213_v5 }
 0x2d6   :  { %v9225_v8 = vpop.xlane.xlu1 %1653 }
 0x2d7   :  { %2897 = vperm.xlu1 %7342, %v9208_v20   ;;  %v9227_v60 = vpop.xlane.xlu0 %1645  ;;  %v9234_v20 = vld [vmem:[%s12117_s4] ss:$0 sm:$0xff] }
 0x2d8   :  { %v1196_v44 = vadd.f32 %v9234_v20, %v8990_v27  ;;  %v1228_v48 = vadd.f32 %v9234_v20, %v9068_v35  ;;  %v1231_v61 = vadd.f32 %v9234_v20, %v9075_v53  ;;  %v1813_v35 = vadd.f32 %v9238_v62, %v9102_v12 }
 0x2d9   :  { %v1820_v53 = vadd.f32 %v9238_v62, %v9097_v38  ;;  %v1823_v38 = vadd.f32 %v9238_v62, %v9104_v57  ;;  %v1817_v57 = vadd.f32 %v9238_v62, %v9089_v11 }
 0x2da   :  { %v9229_v34 = vpop.xlane.xlu1 %1649 }
 0x2db   :  { %2891 = vperm.xlu1 %7342, %v9213_v5   ;;  %v9220_v32 = vpop.eup %7770  ;;  %v1236_v5 = vadd.f32 %v9234_v20, %v9066_v43  ;;  %v9244_v50 = vpop.xlane.xlu0 %1641  ;;  %v1812_v43 = vadd.f32 %v9238_v62, %v9085_v2  ;;  %v6784_v45 = vmul.f32 -1.442695, %v1820_v53  ;;  %v6787_v53 = vmul.f32 -1.442695, %v1823_v38 }
 0x2dc   :  { %12358 = vst [vmem:[#allocation32_spill] sm:$0xff] %v9220_v32 }
 0x2dd   :  { %7772 = vtanh.f32 %v1236_v5  ;;  %v6776_v27 = vmul.f32 -1.442695, %v1812_v43  ;;  %v6777_v43 = vmul.f32 -1.442695, %v1813_v35  ;;  %v1816_v35 = vadd.f32 %v9238_v62, %v9119_v54 }
 0x2de   :  { %v9246_v19 = vpop.xlane.xlu1 %1661  ;;  %7774 = vtanh.f32 %v1196_v44 }
 0x2df   :  { %v9252_v56 = vpop.xlane.xlu0 %1643  ;;  %7776 = vtanh.f32 %v1228_v48 }
 0x2e0   :  { %7778 = vpow2.f32 %v6778_v58 }
 0x2e1   :  { %7780 = vtanh.f32 %v1231_v61 }
 0x2e2   :  { %v9258_v5 = vpop.xlane.xlu1 %1663  ;;  %7782 = vpow2.f32 %v6776_v27 }
 0x2e3   :  { %v9262_v44 = vpop.xlane.xlu0 %1655 }
 0x2e6   :  { %v9266_v58 = vpop.xlane.xlu1 %1659 }
 0x2e7   :  { %v7773_v2 = vpop.eup %7772 }
 0x2e8   :  { %2921 = vperm.xlu0 %7343, %v9220_v32   ;;  %v1815_v32 = vadd.f32 %v9238_v62, %v9094_v17  ;;  %v7775_v48 = vpop.eup %7774  ;;  %v1818_v17 = vadd.f32 %v9238_v62, %v9111_v1 }
 0x2e9   :  { %v7777_v61 = vpop.eup %7776 }
 0x2ea   :  { %v6779_v55 = vmul.f32 -1.442695, %v1815_v32  ;;  %v9273_v32 = vld [vmem:[%s12118_s5] ss:$0 sm:$0xff]  ;;  %v7779_v49 = vpop.eup %7778  ;;  %v6782_v1 = vmul.f32 -1.442695, %v1818_v17  ;;  %v9283_v16 = vpop.xlane.xlu1 %1669 }
 0x2eb   :  { %v1515_v12 = vmul.f32 %v9273_v32, %v7773_v2  ;;  %v1505_v27 = vmul.f32 %v9273_v32, %v7775_v48  ;;  %v1513_v2 = vmul.f32 %v9273_v32, %v7777_v61  ;;  %v7781_v40 = vpop.eup %7780  ;;  %v2326_v48 = vadd.f32 1.0, %v7779_v49  ;;  %s8269_s5 = smov 127  }
 0x2ec   :  { %7784 = vpow2.f32 %v6779_v55  ;;  %v9279_v55 = vpop.xlane.xlu0 %1651  ;;  %v7783_v51 = vpop.eup %7782  ;;  %v6781_v49 = vmul.f32 -1.442695, %v1817_v57 }
 0x2ed   :  { %7786 = vpow2.f32 %v6777_v43  ;;  %v1514_v43 = vmul.f32 %v9273_v32, %v7781_v40  ;;  %v2324_v54 = vadd.f32 1.0, %v7783_v51 }
 0x2ee   :  { %7788 = vpow2.f32 %v6784_v45  ;;  %v9291_v61 = vpop.xlane.xlu1 %1665 }
 0x2ef   :  { %7790 = vpow2.f32 %v6782_v1 }
 0x2f0   :  { %7792 = vrcp.f32 %v2326_v48  ;;  %v9289_v17 = vpop.xlane.xlu0 %1657 }
 0x2f1   :  { %7794 = vpow2.f32 %v6787_v53 }
 0x2f4   :  { %v9293_v11 = vpop.xlane.xlu0 %1677 }
 0x2ff   :  { %1745 = vadd.xlane.f32.xlu1 %v1505_v27  ;;  %v6780_v27 = vmul.f32 -1.442695, %v1816_v35  ;;  %v9295_v35 = vpop.xlane.xlu1 %1671 }
 0x301   :  { %7796 = vpow2.f32 %v6780_v27  ;;  %v9300_v27 = vpop.xlane.xlu0 %1679 }
 0x302   :  { %7798 = vrcp.f32 %v2324_v54 }
 0x303   :  { %7800 = vpow2.f32 %v6781_v49  ;;  %v9302_v54 = vpop.xlane.xlu1 %1667 }
 0x307   :  { %1765 = vadd.xlane.f32.xlu0 %v1515_v12  ;;  %v7785_v12 = vpop.eup %7784 }
 0x308   :  { %v2327_v45 = vadd.f32 1.0, %v7785_v12  ;;  %v7787_v38 = vpop.eup %7786 }
 0x309   :  { %v7789_v1 = vpop.eup %7788  ;;  %v2325_v40 = vadd.f32 1.0, %v7787_v38 }
 0x30a   :  { %7802 = vrcp.f32 %v2327_v45  ;;  %v7791_v51 = vpop.eup %7790  ;;  %v2332_v48 = vadd.f32 1.0, %v7789_v1 }
 0x30b   :  { %1761 = vadd.xlane.f32.xlu0 %v1513_v2  ;;  %v9297_v2 = vpop.eup %7792  ;;  %7804 = vrcp.f32 %v2325_v40  ;;  %v2330_v57 = vadd.f32 1.0, %v7791_v51  ;;  %v9311_v40 = vpop.xlane.xlu1 %1673 }
 0x30c   :  { %12359 = vst [vmem:[#allocation33_spill] sm:$0xff] %v9297_v2  ;;  %v7795_v53 = vpop.eup %7794  ;;  %7806 = vrcp.f32 %v2332_v48 }
 0x30d   :  { %v2335_v49 = vadd.f32 1.0, %v7795_v53  ;;  %7808 = vrcp.f32 %v2330_v57 }
 0x30f   :  { %1763 = vadd.xlane.f32.xlu0 %v1514_v43  ;;  %v7797_v43 = vpop.eup %7796  ;;  %7810 = vrcp.f32 %v2335_v49  ;;  %v9321_v57 = vpop.xlane.xlu1 %1675 }
 0x310   :  { %2906 = vperm.xlu1 %7342, %v9297_v2   ;;  %v9304_v12 = vpop.eup %7798  ;;  %v2328_v45 = vadd.f32 1.0, %v7797_v43  ;;  %v9309_v2 = vpop.xlane.xlu0 %1681 }
 0x311   :  { %12360 = vst [vmem:[#allocation34_spill] sm:$0xff] %v9304_v12  ;;  %v7801_v38 = vpop.eup %7800 }
 0x312   :  { %v2329_v51 = vadd.f32 1.0, %v7801_v38  ;;  %7812 = vrcp.f32 %v2328_v45 }
 0x314   :  { %2900 = vperm.xlu1 %7342, %v9304_v12   ;;  %v9307_v1 = vpop.eup %7802  ;;  %7814 = vrcp.f32 %v2329_v51  ;;  %v9319_v53 = vpop.xlane.xlu0 %1693 }
 0x315   :  { %12361 = vst [vmem:[#allocation35_spill] sm:$0xff] %v9307_v1  ;;  %v9314_v25 = vpop.eup %7804 }
 0x316   :  { %12362 = vst [vmem:[#allocation36_spill] sm:$0xff] %v9314_v25  ;;  %v9317_v48 = vpop.eup %7806 }
 0x317   :  { %12363 = vst [vmem:[#allocation37_spill] sm:$0xff] %v9317_v48  ;;  %v9324_v43 = vpop.eup %7808 }
 0x318   :  { %2909 = vperm.xlu1 %7342, %v9307_v1   ;;  %12364 = vst [vmem:[#allocation38_spill] sm:$0xff] %v9324_v43  ;;  %v9332_v38 = vpop.xlane.xlu0 %1689  ;;  %v9334_v1 = vpop.xlane.xlu1 %1685 }
 0x319   :  { %v9327_v49 = vpop.eup %7810 }
 0x31a   :  { %12365 = vst [vmem:[#allocation39_spill] sm:$0xff] %v9327_v49 }
 0x31c   :  { %2903 = vperm.xlu1 %7342, %v9314_v25   ;;  %v9330_v45 = vpop.eup %7812  ;;  %v9340_v25 = vpop.xlane.xlu0 %1695 }
 0x31d   :  { %12366 = vst [vmem:[#allocation40_spill] sm:$0xff] %v9330_v45  ;;  %12368 = vst [vmem:[#allocation42_spill] sm:$0xff] %v9340_v25  ;;  %v9342_v12 = vpop.xlane.xlu1 %1687 }
 0x31e   :  { %v9337_v51 = vpop.eup %7814  ;;  %12369 = vst [vmem:[#allocation43_spill] sm:$0xff] %v9342_v12  ;;  %v1822_v12 = vadd.f32 %v9238_v62, %v9125_v39 }
 0x31f   :  { %12367 = vst [vmem:[#allocation41_spill] sm:$0xff] %v9337_v51 }
 0x320   :  { %2918 = vperm.xlu1 %7342, %v9324_v43  }
 0x321   :  { %v9348_v43 = vpop.xlane.xlu1 %1683 }
 0x322   :  { %12371 = vst [vmem:[#allocation45_spill] sm:$0xff] %v9348_v43 }
 0x324   :  { %2912 = vperm.xlu1 %7342, %v9330_v45  }
 0x325   :  { %2924 = vperm.xlu0 %7343, %v9317_v48   ;;  %v1252_v48 = vadd.f32 %v9234_v20, %v9175_v28  ;;  %v9354_v37 = vpop.permute.xlu1 %2822  ;;  %v1239_v28 = vadd.f32 %v9234_v20, %v9070_v41 }
 0x326   :  { %12373 = vst [vmem:[#allocation47_spill] sm:$0xff] %v9354_v37  ;;  %v6785_v37 = vmul.f32 -1.442695, %v1821_v9 }
 0x327   :  { %7816 = vtanh.f32 %v1252_v48  ;;  %v6786_v48 = vmul.f32 -1.442695, %v1822_v12 }
 0x328   :  { %2915 = vperm.xlu1 %7342, %v9337_v51   ;;  %v6790_v51 = vmul.f32 -1.442695, %v1826_v22 }
 0x329   :  { %2933 = vperm.xlu0 %7343, %v9327_v49   ;;  %v9346_v49 = vpop.xlane.xlu0 %1691  ;;  %v9362_v43 = vpop.permute.xlu1 %2825 }
 0x32a   :  { %12370 = vst [vmem:[#allocation44_spill] sm:$0xff] %v9346_v49  ;;  %7818 = vpow2.f32 %v6790_v51  ;;  %12375 = vst [vmem:[#allocation49_spill] sm:$0xff] %v9362_v43 }
 0x32b   :  { %7820 = vtanh.f32 %v1239_v28 }
 0x32c   :  { %7822 = vpow2.f32 %v6786_v48 }
 0x32d   :  { %v9352_v45 = vpop.permute.xlu0 %2816  ;;  %v9369_v39 = vpop.permute.xlu1 %2819  ;;  %7824 = vpow2.f32 %v6785_v37 }
 0x32e   :  { %12372 = vst [vmem:[#allocation46_spill] sm:$0xff] %v9352_v45  ;;  %12376 = vst [vmem:[#allocation50_spill] sm:$0xff] %v9369_v39 }
 0x331   :  { %v9356_v47 = vpop.xlane.xlu0 %1701  ;;  %v7817_v49 = vpop.eup %7816 }
 0x332   :  { %12374 = vst [vmem:[#allocation48_spill] sm:$0xff] %v9356_v47  ;;  %v1519_v22 = vmul.f32 %v9273_v32, %v7817_v49  ;;  %v9373_v12 = vpop.permute.xlu1 %2834 }
 0x333   :  { %12377 = vst [vmem:[#allocation51_spill] sm:$0xff] %v9373_v12 }
 0x334   :  { %v7819_v41 = vpop.eup %7818 }
 0x335   :  { %v9366_v45 = vpop.xlane.xlu0 %1697  ;;  %v7821_v51 = vpop.eup %7820  ;;  %v2338_v43 = vadd.f32 1.0, %v7819_v41 }
 0x336   :  { %v1516_v42 = vmul.f32 %v9273_v32, %v7821_v51  ;;  %v7823_v28 = vpop.eup %7822  ;;  %v9380_v9 = vpop.permute.xlu1 %2837 }
 0x337   :  { %7826 = vrcp.f32 %v2338_v43  ;;  %v2334_v48 = vadd.f32 1.0, %v7823_v28  ;;  %12380 = vst [vmem:[#allocation54_spill] sm:$0xff] %v9380_v9 }
 0x339   :  { %v9371_v47 = vpop.xlane.xlu0 %1703  ;;  %7828 = vrcp.f32 %v2334_v48 }
 0x33a   :  { %v9382_v37 = vpop.xlane.xlu1 %1709 }
 0x33d   :  { %v9375_v25 = vpop.xlane.xlu0 %1699 }
 0x33e   :  { %12378 = vst [vmem:[#allocation52_spill] sm:$0xff] %v9375_v25  ;;  %v9391_v43 = vpop.xlane.xlu1 %1707 }
 0x341   :  { %v9378_v49 = vpop.permute.xlu0 %2828 }
 0x342   :  { %12379 = vst [vmem:[#allocation53_spill] sm:$0xff] %v9378_v49  ;;  %v9398_v28 = vpop.xlane.xlu1 %1719 }
 0x345   :  { %v9384_v41 = vpop.permute.xlu0 %2831 }
 0x346   :  { %12381 = vst [vmem:[#allocation55_spill] sm:$0xff] %v9384_v41  ;;  %v1824_v41 = vadd.f32 %v9238_v62, %v9121_v31  ;;  %v1244_v31 = vadd.f32 %v9234_v20, %v9186_v23 }
 0x348   :  { %1773 = vadd.xlane.f32.xlu0 %v1519_v22  ;;  %v7825_v22 = vpop.eup %7824  ;;  %v6788_v49 = vmul.f32 -1.442695, %v1824_v41 }
 0x349   :  { %v2333_v39 = vadd.f32 1.0, %v7825_v22  ;;  %v9386_v12 = vpop.eup %7826  ;;  %v9388_v25 = vpop.xlane.xlu0 %1705 }
 0x34a   :  { %12382 = vst [vmem:[#allocation56_spill] sm:$0xff] %v9386_v12  ;;  %12383 = vst [vmem:[#allocation57_spill] sm:$0xff] %v9388_v25  ;;  %v9393_v51 = vpop.eup %7828 }
 0x34b   :  { %7830 = vrcp.f32 %v2333_v39  ;;  %12384 = vst [vmem:[#allocation58_spill] sm:$0xff] %v9393_v51  ;;  %v1247_v39 = vadd.f32 %v9234_v20, %v9192_v6  ;;  %v1825_v6 = vadd.f32 %v9238_v62, %v9143_v46  ;;  %v1835_v46 = vadd.f32 %v9238_v62, %v9164_v14 }
 0x34c   :  { %1767 = vadd.xlane.f32.xlu1 %v1516_v42  ;;  %v1831_v14 = vadd.f32 %v9238_v62, %v9177_v36 }
 0x34d   :  { %v9395_v42 = vpop.xlane.xlu0 %1711  ;;  %7832 = vtanh.f32 %v1247_v39  ;;  %v1834_v39 = vadd.f32 %v9238_v62, %v9150_v52  ;;  %v1255_v52 = vadd.f32 %v9234_v20, %v9188_v0 }
 0x34e   :  { %12385 = vst [vmem:[#allocation59_spill] sm:$0xff] %v9395_v42  ;;  %v1827_v42 = vadd.f32 %v9238_v62, %v9129_v21  ;;  %7834 = vpow2.f32 %v6788_v49  ;;  %v6789_v21 = vmul.f32 -1.442695, %v1825_v6  ;;  %v1830_v49 = vadd.f32 %v9238_v62, %v9152_v59 }
 0x34f   :  { %v1828_v59 = vadd.f32 %v9238_v62, %v9167_v13  ;;  %v6799_v6 = vmul.f32 -1.442695, %v1835_v46  ;;  %v6795_v13 = vmul.f32 -1.442695, %v1831_v14 }
 0x351   :  { %v9402_v22 = vpop.permute.xlu0 %2846 }
 0x352   :  { %12387 = vst [vmem:[#allocation61_spill] sm:$0xff] %v9402_v22 }
 0x355   :  { %v9400_v48 = vpop.eup %7830  ;;  %v9409_v9 = vpop.permute.xlu0 %2840 }
 0x356   :  { %12386 = vst [vmem:[#allocation60_spill] sm:$0xff] %v9400_v48  ;;  %12388 = vst [vmem:[#allocation62_spill] sm:$0xff] %v9409_v9 }
 0x357   :  { %v7833_v9 = vpop.eup %7832 }
 0x359   :  { %v9417_v22 = vpop.permute.xlu0 %2849 }
 0x35a   :  { %12389 = vst [vmem:[#allocation63_spill] sm:$0xff] %v9417_v22  ;;  %v6798_v22 = vmul.f32 -1.442695, %v1834_v39  ;;  %v6792_v39 = vmul.f32 -1.442695, %v1828_v59 }
 0x35d   :  { %2930 = vperm.xlu1 %7342, %v9393_v51   ;;  %v9427_v41 = vpop.permute.xlu0 %2843 }
 0x35e   :  { %2942 = vperm.xlu0 %7343, %v9386_v12   ;;  %v9407_v12 = vpop.xlane.xlu1 %1715  ;;  %12391 = vst [vmem:[#allocation65_spill] sm:$0xff] %v9427_v41 }
 0x361   :  { %2927 = vperm.xlu1 %7342, %v9400_v48   ;;  %v6791_v48 = vmul.f32 -1.442695, %v1827_v42  ;;  %v1518_v42 = vmul.f32 %v9273_v32, %v7833_v9  ;;  %v9438_v23 = vpop.xlane.xlu0 %1717  ;;  %v7835_v9 = vpop.eup %7834 }
 0x362   :  { %v9413_v51 = vpop.xlane.xlu1 %1725  ;;  %v2336_v0 = vadd.f32 1.0, %v7835_v9  ;;  %v1838_v9 = vadd.f32 %v9238_v62, %v9180_v29 }
 0x363   :  { %7836 = vpow2.f32 %v6791_v48  ;;  %v6794_v48 = vmul.f32 -1.442695, %v1830_v49  ;;  %v1829_v49 = vadd.f32 %v9238_v62, %v9183_v30  ;;  %v1832_v30 = vadd.f32 %v9238_v62, %v9194_v3 }
 0x364   :  { %7838 = vtanh.f32 %v1244_v31  ;;  %v1836_v3 = vadd.f32 %v9238_v62, %v9201_v18 }
 0x365   :  { %7840 = vpow2.f32 %v6789_v21  ;;  %v9446_v20 = vpop.xlane.xlu0 %1713  ;;  %v1833_v21 = vadd.f32 %v9238_v62, %v9173_v24 }
 0x366   :  { %v9421_v25 = vpop.xlane.xlu1 %1721  ;;  %7842 = vpow2.f32 %v6798_v22 }
 0x367   :  { %12390 = vst [vmem:[#allocation64_spill] sm:$0xff] %v9421_v25  ;;  %7844 = vtanh.f32 %v1255_v52  ;;  %v6797_v59 = vmul.f32 -1.442695, %v1833_v21  ;;  %v1839_v21 = vadd.f32 %v9238_v62, %v9190_v7  ;;  %v1842_v7 = vadd.f32 %v9238_v62, %v9198_v4 }
 0x368   :  { %7846 = vpow2.f32 %v6794_v48 }
 0x369   :  { %7848 = vpow2.f32 %v6799_v6  ;;  %v9454_v52 = vpop.permute.xlu0 %2858 }
 0x36a   :  { %v9434_v25 = vpop.xlane.xlu1 %1727  ;;  %7850 = vpow2.f32 %v6792_v39  ;;  %12393 = vst [vmem:[#allocation67_spill] sm:$0xff] %v9454_v52  ;;  %v6793_v39 = vmul.f32 -1.442695, %v1829_v49 }
 0x36b   :  { %7852 = vrcp.f32 %v2336_v0 }
 0x36c   :  { %7854 = vpow2.f32 %v6795_v13 }
 0x36d   :  { %v9465_v13 = vpop.permute.xlu0 %2852 }
 0x36e   :  { %v9444_v31 = vpop.permute.xlu1 %2870 }
 0x36f   :  { %12392 = vst [vmem:[#allocation66_spill] sm:$0xff] %v9444_v31  ;;  %v6796_v31 = vmul.f32 -1.442695, %v1832_v30  ;;  %v6806_v30 = vmul.f32 -1.442695, %v1842_v7 }
 0x371   :  { %v9481_v4 = vpop.permute.xlu0 %2861 }
 0x372   :  { %v9452_v36 = vpop.xlane.xlu1 %1723 }
 0x376   :  { %v9463_v52 = vpop.permute.xlu1 %2864 }
 0x37a   :  { %v9476_v18 = vpop.permute.xlu1 %2867 }
 0x37d   :  { %1771 = vadd.xlane.f32.xlu0 %v1518_v42  ;;  %v7837_v42 = vpop.eup %7836 }
 0x37e   :  { %v7839_v22 = vpop.eup %7838  ;;  %v2339_v46 = vadd.f32 1.0, %v7837_v42  ;;  %v6802_v42 = vmul.f32 -1.442695, %v1838_v9 }
 0x37f   :  { %v7841_v48 = vpop.eup %7840  ;;  %v1517_v24 = vmul.f32 %v9273_v32, %v7839_v22 }
 0x380   :  { %v7843_v6 = vpop.eup %7842  ;;  %7856 = vrcp.f32 %v2339_v46  ;;  %v2337_v41 = vadd.f32 1.0, %v7841_v48 }
 0x381   :  { %v7845_v14 = vpop.eup %7844  ;;  %7858 = vpow2.f32 %v6797_v59  ;;  %v2346_v29 = vadd.f32 1.0, %v7843_v6  ;;  %v6803_v59 = vmul.f32 -1.442695, %v1839_v21  ;;  %v1843_v21 = vadd.f32 %v9238_v62, %v9215_v10 }
 0x382   :  { %v7847_v0 = vpop.eup %7846  ;;  %v1520_v22 = vmul.f32 %v9273_v32, %v7845_v14  ;;  %7860 = vpow2.f32 %v6793_v39  ;;  %v1837_v14 = vadd.f32 %v9238_v62, %v9210_v15  ;;  %v1840_v39 = vadd.f32 %v9238_v62, %v9206_v33 }
 0x383   :  { %v7849_v49 = vpop.eup %7848  ;;  %7862 = vrcp.f32 %v2337_v41  ;;  %v2342_v46 = vadd.f32 1.0, %v7847_v0  ;;  %v6807_v7 = vmul.f32 -1.442695, %v1843_v21 }
 0x384   :  { %v7851_v48 = vpop.eup %7850  ;;  %7864 = vpow2.f32 %v6802_v42  ;;  %v2347_v6 = vadd.f32 1.0, %v7849_v49  ;;  %v6804_v33 = vmul.f32 -1.442695, %v1840_v39 }
 0x385   :  { %1769 = vadd.xlane.f32.xlu1 %v1517_v24  ;;  %v9472_v9 = vpop.eup %7852  ;;  %7866 = vrcp.f32 %v2346_v29  ;;  %v6800_v24 = vmul.f32 -1.442695, %v1836_v3  ;;  %v2340_v41 = vadd.f32 1.0, %v7851_v48  ;;  %v6801_v29 = vmul.f32 -1.442695, %v1837_v14 }
 0x386   :  { %12394 = vst [vmem:[#allocation68_spill] sm:$0xff] %v9472_v9  ;;  %v7855_v32 = vpop.eup %7854  ;;  %7868 = vpow2.f32 %v6796_v31  ;;  %v1847_v31 = vadd.f32 %v9238_v62, %v9218_v63  ;;  %v1850_v63 = vadd.f32 %v9238_v62, %v9225_v8 }
 0x387   :  { %7870 = vrcp.f32 %v2342_v46  ;;  %v2343_v15 = vadd.f32 1.0, %v7855_v32 }
 0x388   :  { %7872 = vpow2.f32 %v6803_v59  ;;  %v6811_v3 = vmul.f32 -1.442695, %v1847_v31  ;;  %v9496_v59 = vpop.permute.xlu0 %2855  ;;  %v6814_v8 = vmul.f32 -1.442695, %v1850_v63 }
 0x389   :  { %1775 = vadd.xlane.f32.xlu1 %v1520_v22  ;;  %7874 = vrcp.f32 %v2347_v6  ;;  %v9489_v22 = vpop.xlane.xlu1 %1733  ;;  %v1841_v6 = vadd.f32 %v9238_v62, %v9222_v26 }
 0x38a   :  { %v9485_v0 = vpop.eup %7856  ;;  %7876 = vpow2.f32 %v6800_v24 }
 0x38b   :  { %12395 = vst [vmem:[#allocation69_spill] sm:$0xff] %v9485_v0  ;;  %v7859_v42 = vpop.eup %7858  ;;  %7878 = vrcp.f32 %v2340_v41  ;;  %v1848_v41 = vadd.f32 %v9238_v62, %v9229_v34  ;;  %v6805_v26 = vmul.f32 -1.442695, %v1841_v6 }
 0x38c   :  { %v7861_v49 = vpop.eup %7860  ;;  %7880 = vpow2.f32 %v6806_v30  ;;  %v2345_v48 = vadd.f32 1.0, %v7859_v42  ;;  %v1846_v42 = vadd.f32 %v9238_v62, %v9227_v60 }
 0x38d   :  { %v9494_v46 = vpop.eup %7862  ;;  %7882 = vrcp.f32 %v2343_v15  ;;  %v2341_v24 = vadd.f32 1.0, %v7861_v49  ;;  %v9505_v39 = vpop.xlane.xlu1 %1729  ;;  %v1844_v49 = vadd.f32 %v9238_v62, %v9244_v50 }
 0x38e   :  { %12396 = vst [vmem:[#allocation70_spill] sm:$0xff] %v9494_v46  ;;  %v7865_v10 = vpop.eup %7864  ;;  %7884 = vpow2.f32 %v6801_v29 }
 0x38f   :  { %v9501_v32 = vpop.eup %7866  ;;  %7886 = vpow2.f32 %v6804_v33  ;;  %v2350_v31 = vadd.f32 1.0, %v7865_v10  ;;  %v9514_v33 = vpop.permute.xlu0 %2873  ;;  %v6810_v10 = vmul.f32 -1.442695, %v1846_v42  ;;  %v1855_v42 = vadd.f32 %v9238_v62, %v9258_v5 }
 0x390   :  { %12397 = vst [vmem:[#allocation71_spill] sm:$0xff] %v9501_v32  ;;  %v7869_v14 = vpop.eup %7868  ;;  %7888 = vpow2.f32 %v6811_v3  ;;  %v6812_v3 = vmul.f32 -1.442695, %v1848_v41 }
 0x391   :  { %v9507_v30 = vpop.eup %7870  ;;  %7890 = vrcp.f32 %v2345_v48  ;;  %v2344_v29 = vadd.f32 1.0, %v7869_v14  ;;  %v9523_v6 = vpop.xlane.xlu1 %1735 }
 0x392   :  { %12398 = vst [vmem:[#allocation72_spill] sm:$0xff] %v9507_v30  ;;  %v7873_v15 = vpop.eup %7872  ;;  %7892 = vpow2.f32 %v6807_v7  ;;  %v1854_v7 = vadd.f32 %v9238_v62, %v9246_v19 }
 0x393   :  { %2936 = vperm.xlu0 %7343, %v9472_v9   ;;  %v9512_v21 = vpop.eup %7874  ;;  %7894 = vrcp.f32 %v2341_v24  ;;  %v2351_v60 = vadd.f32 1.0, %v7873_v15  ;;  %v9529_v15 = vpop.permute.xlu0 %2882  ;;  %v12423_v9 = vld [vmem:[#allocation45_spill] sm:$0xff] }
 0x394   :  { %12399 = vst [vmem:[#allocation73_spill] sm:$0xff] %v9512_v21  ;;  %v7877_v34 = vpop.eup %7876  ;;  %7896 = vpow2.f32 %v6814_v8  ;;  %v6808_v8 = vmul.f32 -1.442695, %v1844_v49  ;;  %v6818_v19 = vmul.f32 -1.442695, %v1854_v7  ;;  %v1845_v49 = vadd.f32 %v9238_v62, %v9252_v56 }
 0x395   :  { %v9519_v63 = vpop.eup %7878  ;;  %7898 = vrcp.f32 %v2350_v31  ;;  %v2348_v50 = vadd.f32 1.0, %v7877_v34 }
 0x396   :  { %12400 = vst [vmem:[#allocation74_spill] sm:$0xff] %v9519_v63  ;;  %v7881_v48 = vpop.eup %7880  ;;  %7900 = vpow2.f32 %v6805_v26 }
 0x397   :  { %2945 = vperm.xlu0 %7343, %v9485_v0   ;;  %v9526_v24 = vpop.eup %7882  ;;  %7902 = vrcp.f32 %v2344_v29  ;;  %v2354_v31 = vadd.f32 1.0, %v7881_v48  ;;  %v9538_v48 = vpop.xlane.xlu1 %1731  ;;  %v1852_v0 = vadd.f32 %v9238_v62, %v9289_v17  ;;  %v1859_v17 = vadd.f32 %v9238_v62, %v9295_v35 }
 0x398   :  { %12401 = vst [vmem:[#allocation75_spill] sm:$0xff] %v9526_v24  ;;  %v7885_v14 = vpop.eup %7884  ;;  %7904 = vpow2.f32 %v6812_v3 }
 0x399   :  { %v7887_v41 = vpop.eup %7886  ;;  %7906 = vrcp.f32 %v2351_v60  ;;  %v2349_v34 = vadd.f32 1.0, %v7885_v14  ;;  %v6809_v14 = vmul.f32 -1.442695, %v1845_v49 }
 0x39a   :  { %2966 = vperm.xlu1 %7342, %v9501_v32   ;;  %v7889_v26 = vpop.eup %7888  ;;  %7908 = vpow2.f32 %v6810_v10  ;;  %v2352_v60 = vadd.f32 1.0, %v7887_v41  ;;  %v9550_v41 = vpop.permute.xlu0 %2885 }
 0x39b   :  { %2939 = vperm.xlu0 %7343, %v9494_v46   ;;  %v9534_v29 = vpop.eup %7890  ;;  %7910 = vrcp.f32 %v2348_v50  ;;  %v2359_v5 = vadd.f32 1.0, %v7889_v26  ;;  %v1853_v50 = vadd.f32 %v9238_v62, %v9266_v58  ;;  %v9557_v49 = vpop.permute.xlu1 %2876  ;;  %v6823_v46 = vmul.f32 -1.442695, %v1859_v17 }
 0x39c   :  { %12402 = vst [vmem:[#allocation76_spill] sm:$0xff] %v9534_v29  ;;  %v7893_v3 = vpop.eup %7892  ;;  %7912 = vpow2.f32 %v6808_v8  ;;  %v1851_v8 = vadd.f32 %v9238_v62, %v9262_v44  ;;  %v1864_v17 = vadd.f32 %v9238_v62, %v9309_v2 }
 0x39d   :  { %v9541_v10 = vpop.eup %7894  ;;  %7914 = vrcp.f32 %v2354_v31  ;;  %v2355_v31 = vadd.f32 1.0, %v7893_v3 }
 0x39e   :  { %2969 = vperm.xlu1 %7342, %v9512_v21   ;;  %12403 = vst [vmem:[#allocation77_spill] sm:$0xff] %v9541_v10  ;;  %v7897_v7 = vpop.eup %7896  ;;  %7916 = vpow2.f32 %v6818_v19  ;;  %v6815_v3 = vmul.f32 -1.442695, %v1851_v8 }
 0x39f   :  { %2954 = vperm.xlu0 %7343, %v9507_v30   ;;  %v9546_v56 = vpop.eup %7898  ;;  %7918 = vrcp.f32 %v2349_v34  ;;  %v2362_v58 = vadd.f32 1.0, %v7897_v7  ;;  %v1858_v34 = vadd.f32 %v9238_v62, %v9283_v16 }
 0x3a0   :  { %12404 = vst [vmem:[#allocation78_spill] sm:$0xff] %v9546_v56  ;;  %v7901_v30 = vpop.eup %7900  ;;  %7920 = vrcp.f32 %v2352_v60  ;;  %v1849_v60 = vadd.f32 %v9238_v62, %v9279_v55 }
 0x3a1   :  { %v9553_v26 = vpop.eup %7902  ;;  %7922 = vrcp.f32 %v2359_v5 }
 0x3a2   :  { %2963 = vperm.xlu1 %7342, %v9534_v29   ;;  %12405 = vst [vmem:[#allocation79_spill] sm:$0xff] %v9553_v26  ;;  %v7905_v19 = vpop.eup %7904  ;;  %v6813_v8 = vmul.f32 -1.442695, %v1849_v60 }
 0x3a3   :  { %2948 = vperm.xlu0 %7343, %v9519_v63   ;;  %v9560_v44 = vpop.eup %7906  ;;  %v2360_v16 = vadd.f32 1.0, %v7905_v19  ;;  %v6822_v63 = vmul.f32 -1.442695, %v1858_v34 }
 0x3a4   :  { %12406 = vst [vmem:[#allocation80_spill] sm:$0xff] %v9560_v44  ;;  %v7909_v5 = vpop.eup %7908 }
 0x3a5   :  { %v9567_v7 = vpop.eup %7910 }
 0x3a6   :  { %2978 = vperm.xlu1 %7342, %v9546_v56   ;;  %12407 = vst [vmem:[#allocation81_spill] sm:$0xff] %v9567_v7 }
 0x3a7   :  { %2957 = vperm.xlu0 %7343, %v9526_v24   ;;  %v6819_v24 = vmul.f32 -1.442695, %v1855_v42  ;;  %v6817_v42 = vmul.f32 -1.442695, %v1853_v50  ;;  %v7913_v50 = vpop.eup %7912 }
 0x3a8   :  { %v9572_v55 = vpop.eup %7914 }
 0x3a9   :  { %7924 = vpow2.f32 %v6819_v24  ;;  %v2353_v24 = vadd.f32 1.0, %v7901_v30  ;;  %12408 = vst [vmem:[#allocation82_spill] sm:$0xff] %v9572_v55  ;;  %v2358_v30 = vadd.f32 1.0, %v7909_v5 }
 0x3aa   :  { %7926 = vpow2.f32 %v6809_v14  ;;  %2981 = vperm.xlu1 %7342, %v9560_v44   ;;  %v1856_v14 = vadd.f32 %v9238_v62, %v9291_v61  ;;  %v1862_v61 = vadd.f32 %v9238_v62, %v9293_v11  ;;  %v12419_v44 = vld [vmem:[#allocation42_spill] sm:$0xff] }
 0x3ab   :  { %2951 = vperm.xlu0 %7343, %v9541_v10   ;;  %v9564_v10 = vpop.xlane.xlu0 %1737  ;;  %7928 = vrcp.f32 %v2355_v31  ;;  %v7917_v31 = vpop.eup %7916 }
 0x3ac   :  { %7930 = vrcp.f32 %v2362_v58  ;;  %v9576_v58 = vpop.permute.xlu1 %2879  ;;  %v9579_v19 = vpop.eup %7918  ;;  %v6820_v60 = vmul.f32 -1.442695, %v1856_v14  ;;  %v1863_v14 = vadd.f32 %v9238_v62, %v9300_v27 }
 0x3ad   :  { %7932 = vpow2.f32 %v6817_v42  ;;  %12409 = vst [vmem:[#allocation83_spill] sm:$0xff] %v9579_v19  ;;  %v2356_v42 = vadd.f32 1.0, %v7913_v50 }
 0x3ae   :  { %7934 = vpow2.f32 %v6815_v3  ;;  %2990 = vperm.xlu1 %7342, %v9572_v55   ;;  %v9585_v3 = vpop.eup %7920 }
 0x3af   :  { %2960 = vperm.xlu0 %7343, %v9553_v26   ;;  %7936 = vrcp.f32 %v2353_v24  ;;  %v9583_v34 = vpop.xlane.xlu0 %1739  ;;  %12410 = vst [vmem:[#allocation84_spill] sm:$0xff] %v9585_v3  ;;  %v9590_v5 = vpop.eup %7922  ;;  %v2366_v24 = vadd.f32 1.0, %v7917_v31 }
 0x3b0   :  { %7938 = vrcp.f32 %v2360_v16  ;;  %12411 = vst [vmem:[#allocation85_spill] sm:$0xff] %v9590_v5  ;;  %v6816_v16 = vmul.f32 -1.442695, %v1852_v0  ;;  %v9592_v55 = vpop.xlane.xlu1 %1741 }
 0x3b1   :  { %7940 = vpow2.f32 %v6822_v63  ;;  %v6826_v63 = vmul.f32 -1.442695, %v1862_v61 }
 0x3b2   :  { %7942 = vpow2.f32 %v6813_v8  ;;  %2984 = vperm.xlu1 %7342, %v9585_v3   ;;  %v1857_v8 = vadd.f32 %v9238_v62, %v9302_v54 }
 0x3b3   :  { %2972 = vperm.xlu0 %7343, %v9567_v7   ;;  %v7925_v50 = vpop.eup %7924  ;;  %7944 = vrcp.f32 %v2358_v30  ;;  %v9604_v30 = vpop.xlane.xlu0 %1749  ;;  %v12441_v7 = vld [vmem:[#allocation57_spill] sm:$0xff] }
 0x3b4   :  { %v7927_v11 = vpop.eup %7926  ;;  %7946 = vrcp.f32 %v2356_v42  ;;  %v2367_v31 = vadd.f32 1.0, %v7925_v50  ;;  %v9613_v50 = vpop.xlane.xlu1 %1743 }
 0x3b5   :  { %v9597_v35 = vpop.eup %7928  ;;  %7948 = vpow2.f32 %v6820_v60  ;;  %v2357_v61 = vadd.f32 1.0, %v7927_v11  ;;  %v6827_v60 = vmul.f32 -1.442695, %v1863_v14 }
 0x3b6   :  { %12412 = vst [vmem:[#allocation86_spill] sm:$0xff] %v9597_v35  ;;  %v9602_v0 = vpop.eup %7930  ;;  %7950 = vrcp.f32 %v2366_v24  ;;  %2993 = vperm.xlu1 %7342, %v9597_v35   ;;  %v1860_v24 = vadd.f32 %v9238_v62, %v9311_v40 }
 0x3b7   :  { %2975 = vperm.xlu0 %7343, %v9579_v19   ;;  %12413 = vst [vmem:[#allocation87_spill] sm:$0xff] %v9602_v0  ;;  %v7933_v42 = vpop.eup %7932  ;;  %7952 = vpow2.f32 %v6816_v16  ;;  %v9621_v40 = vpop.xlane.xlu0 %1751  ;;  %v12429_v19 = vld [vmem:[#allocation48_spill] sm:$0xff] }
 0x3b8   :  { %v7935_v27 = vpop.eup %7934  ;;  %7954 = vpow2.f32 %v6826_v63  ;;  %v2365_v11 = vadd.f32 1.0, %v7933_v42  ;;  %v6824_v3 = vmul.f32 -1.442695, %v1860_v24 }
 0x3b9   :  { %v9609_v54 = vpop.eup %7936  ;;  %7956 = vpow2.f32 %v6823_v46  ;;  %v2363_v14 = vadd.f32 1.0, %v7935_v27  ;;  %v6828_v46 = vmul.f32 -1.442695, %v1864_v17  ;;  %v9632_v17 = vpop.permute.xlu1 %2894 }
 0x3ba   :  { %12414 = vst [vmem:[#allocation88_spill] sm:$0xff] %v9609_v54  ;;  %v9616_v16 = vpop.eup %7938  ;;  %7958 = vrcp.f32 %v2367_v31  ;;  %2987 = vperm.xlu1 %7342, %v9609_v54   ;;  %v1861_v31 = vadd.f32 %v9238_v62, %v9321_v57 }
 0x3bb   :  { %3005 = vperm.xlu0 %7343, %v9590_v5   ;;  %v6821_v5 = vmul.f32 -1.442695, %v1857_v8  ;;  %12415 = vst [vmem:[#allocation89_spill] sm:$0xff] %v9616_v16  ;;  %v7941_v63 = vpop.eup %7940  ;;  %7960 = vrcp.f32 %v2357_v61  ;;  %v1870_v8 = vadd.f32 %v9238_v62, %v9319_v53  ;;  %v1868_v53 = vadd.f32 %v9238_v62, %v9332_v38  ;;  %v9640_v38 = vpop.xlane.xlu0 %1747 }
 0x3bc   :  { %v7943_v2 = vpop.eup %7942  ;;  %7962 = vpow2.f32 %v6827_v60  ;;  %v2370_v61 = vadd.f32 1.0, %v7941_v63  ;;  %v6825_v54 = vmul.f32 -1.442695, %v1861_v31 }
 0x3bd   :  { %v9623_v35 = vpop.eup %7944  ;;  %7964 = vpow2.f32 %v6821_v5  ;;  %v2361_v60 = vadd.f32 1.0, %v7943_v2  ;;  %v6834_v57 = vmul.f32 -1.442695, %v1870_v8 }
 0x3be   :  { %12416 = vst [vmem:[#allocation90_spill] sm:$0xff] %v9623_v35  ;;  %v9628_v42 = vpop.eup %7946  ;;  %7966 = vrcp.f32 %v2365_v11  ;;  %3002 = vperm.xlu1 %7342, %v9623_v35   ;;  %v1866_v11 = vadd.f32 %v9238_v62, %v9334_v1  ;;  %v6832_v35 = vmul.f32 -1.442695, %v1868_v53 }
 0x3bf   :  { %3014 = vperm.xlu0 %7343, %v9602_v0   ;;  %12417 = vst [vmem:[#allocation91_spill] sm:$0xff] %v9628_v42  ;;  %v7949_v27 = vpop.eup %7948  ;;  %7968 = vrcp.f32 %v2363_v14 }
 0x3c0   :  { %v9635_v5 = vpop.eup %7950  ;;  %7970 = vpow2.f32 %v6828_v46  ;;  %v2368_v14 = vadd.f32 1.0, %v7949_v27  ;;  %v1871_v46 = vadd.f32 %v9238_v62, %v12419_v44  ;;  %v6830_v31 = vmul.f32 -1.442695, %v1866_v11  ;;  %v9659_v11 = vpop.xlane.xlu0 %1757 }
 0x3c1   :  { %12418 = vst [vmem:[#allocation92_spill] sm:$0xff] %v9635_v5  ;;  %v7953_v24 = vpop.eup %7952  ;;  %7972 = vpow2.f32 %v6824_v3 }
 0x3c2   :  { %v7955_v63 = vpop.eup %7954  ;;  %7974 = vrcp.f32 %v2370_v61  ;;  %2996 = vperm.xlu1 %7342, %v9628_v42   ;;  %v2364_v8 = vadd.f32 1.0, %v7953_v24  ;;  %v12422_v61 = vld [vmem:[#allocation43_spill] sm:$0xff]  ;;  %v6835_v42 = vmul.f32 -1.442695, %v1871_v46 }
 0x3c3   :  { %3008 = vperm.xlu0 %7343, %v9616_v16   ;;  %v7957_v2 = vpop.eup %7956  ;;  %7976 = vrcp.f32 %v2361_v60  ;;  %v1867_v27 = vadd.f32 %v9238_v62, %v12422_v61  ;;  %v2374_v24 = vadd.f32 1.0, %v7955_v63 }
 0x3c4   :  { %v9645_v3 = vpop.eup %7958  ;;  %7978 = vpow2.f32 %v6834_v57  ;;  %v2371_v44 = vadd.f32 1.0, %v7957_v2  ;;  %v1865_v57 = vadd.f32 %v9238_v62, %v12423_v9  ;;  %v9664_v62 = vld [vmem:[#allocation2] ss:$0 sm:$0xff]  ;;  %v12426_v9 = vld [vmem:[#allocation44_spill] sm:$0xff] }
 0x3c5   :  { %12420 = vst [vmem:[#allocation42_spill] sm:$0xff] %v9645_v3  ;;  %v9647_v1 = vpop.eup %7960  ;;  %7980 = vpow2.f32 %v6825_v54  ;;  %v1869_v46 = vadd.f32 %v9664_v62, %v12426_v9  ;;  %v9678_v9 = vpop.xlane.xlu0 %1753 }
 0x3c6   :  { %12421 = vst [vmem:[#allocation93_spill] sm:$0xff] %v9647_v1  ;;  %v7963_v60 = vpop.eup %7962  ;;  %7982 = vrcp.f32 %v2368_v14  ;;  %2999 = vperm.xlu1 %7342, %v9647_v1  }
 0x3c7   :  { %3026 = vperm.xlu0 %7343, %v9635_v5   ;;  %v9651_v5 = vpop.permute.xlu1 %2888  ;;  %v7965_v53 = vpop.eup %7964  ;;  %7984 = vpow2.f32 %v6832_v35 }
 0x3c8   :  { %v9657_v54 = vpop.eup %7966  ;;  %7986 = vrcp.f32 %v2364_v8  ;;  %v2369_v35 = vadd.f32 1.0, %v7965_v53  ;;  %v6829_v8 = vmul.f32 -1.442695, %v1865_v57 }
 0x3c9   :  { %12424 = vst [vmem:[#allocation43_spill] sm:$0xff] %v9657_v54  ;;  %v9661_v61 = vpop.eup %7968  ;;  %7988 = vpow2.f32 %v6830_v31  ;;  %v2375_v31 = vadd.f32 1.0, %v7963_v60  ;;  %v1874_v60 = vadd.f32 %v9664_v62, %v12429_v19 }
 0x3ca   :  { %12425 = vst [vmem:[#allocation45_spill] sm:$0xff] %v9661_v61  ;;  %v7971_v14 = vpop.eup %7970  ;;  %7990 = vrcp.f32 %v2371_v44  ;;  %3017 = vperm.xlu1 %7342, %v9661_v61  }
 0x3cb   :  { %3029 = vperm.xlu0 %7343, %v9645_v3   ;;  %v6831_v3 = vmul.f32 -1.442695, %v1867_v27  ;;  %v7973_v2 = vpop.eup %7972  ;;  %7992 = vpow2.f32 %v6835_v42  ;;  %v9668_v63 = vpop.permute.xlu1 %2897  ;;  %v1878_v27 = vadd.f32 %v9664_v62, %v9382_v37  ;;  %v2376_v42 = vadd.f32 1.0, %v7971_v14 }
 0x3cc   :  { %v9671_v1 = vpop.eup %7974  ;;  %7994 = vrcp.f32 %v2374_v24  ;;  %v2372_v57 = vadd.f32 1.0, %v7973_v2 }
 0x3cd   :  { %12427 = vst [vmem:[#allocation44_spill] sm:$0xff] %v9671_v1  ;;  %v9675_v44 = vpop.eup %7976  ;;  %7996 = vpow2.f32 %v6831_v3  ;;  %v6842_v24 = vmul.f32 -1.442695, %v1878_v27 }
 0x3ce   :  { %12428 = vst [vmem:[#allocation94_spill] sm:$0xff] %v9675_v44  ;;  %v7979_v53 = vpop.eup %7978  ;;  %7998 = vrcp.f32 %v2369_v35  ;;  %3011 = vperm.xlu1 %7342, %v9675_v44   ;;  %v1877_v35 = vadd.f32 %v9664_v62, %v9391_v43  ;;  %v9697_v43 = vpop.xlane.xlu0 %1759 }
 0x3cf   :  { %3023 = vperm.xlu0 %7343, %v9657_v54   ;;  %v7981_v56 = vpop.eup %7980  ;;  %v6833_v54 = vmul.f32 -1.442695, %v1869_v46  ;;  %8000 = vpow2.f32 %v6829_v8  ;;  %v2382_v14 = vadd.f32 1.0, %v7979_v53  ;;  %v9687_v2 = vpop.permute.xlu1 %2891 }
 0x3d0   :  { %v9683_v37 = vpop.eup %7982  ;;  %8002 = vrcp.f32 %v2375_v31  ;;  %v2373_v19 = vadd.f32 1.0, %v7981_v56  ;;  %v1872_v31 = vadd.f32 %v9664_v62, %v9366_v45  ;;  %v1883_v56 = vadd.f32 %v9664_v62, %v9398_v28 }
 0x3d1   :  { %12430 = vst [vmem:[#allocation48_spill] sm:$0xff] %v9683_v37  ;;  %v7985_v3 = vpop.eup %7984  ;;  %8004 = vrcp.f32 %v2376_v42 }
 0x3d2   :  { %v9690_v46 = vpop.eup %7986  ;;  %8006 = vrcp.f32 %v2372_v57  ;;  %v2380_v42 = vadd.f32 1.0, %v7985_v3  ;;  %v6836_v3 = vmul.f32 -1.442695, %v1872_v31  ;;  %v9718_v31 = vpop.xlane.xlu0 %1755 }
 0x3d3   :  { %3038 = vperm.xlu0 %7343, %v9671_v1   ;;  %12431 = vst [vmem:[#allocation95_spill] sm:$0xff] %v9690_v46  ;;  %v7989_v8 = vpop.eup %7988  ;;  %8008 = vpow2.f32 %v6833_v54  ;;  %v6838_v1 = vmul.f32 -1.442695, %v1874_v60  ;;  %3020 = vperm.xlu1 %7342, %v9690_v46   ;;  %v9701_v57 = vpop.xlane.xlu1 %1745  ;;  %v6847_v46 = vmul.f32 -1.442695, %v1883_v56 }
 0x3d4   :  { %v9695_v27 = vpop.eup %7990  ;;  %8010 = vpow2.f32 %v6842_v24  ;;  %v2378_v45 = vadd.f32 1.0, %v7989_v8  ;;  %v1875_v24 = vadd.f32 %v9664_v62, %v9371_v47  ;;  %v12436_v8 = vld [vmem:[#allocation52_spill] sm:$0xff] }
 0x3d5   :  { %12432 = vst [vmem:[#allocation96_spill] sm:$0xff] %v9695_v27  ;;  %v7993_v53 = vpop.eup %7992  ;;  %8012 = vrcp.f32 %v2382_v14  ;;  %v1873_v47 = vadd.f32 %v9664_v62, %v12436_v8 }
 0x3d6   :  { %v9704_v54 = vpop.eup %7994  ;;  %8014 = vrcp.f32 %v2373_v19  ;;  %v2383_v28 = vadd.f32 1.0, %v7993_v53 }
 0x3d7   :  { %3032 = vperm.xlu0 %7343, %v9683_v37   ;;  %v6841_v37 = vmul.f32 -1.442695, %v1877_v35  ;;  %12433 = vst [vmem:[#allocation97_spill] sm:$0xff] %v9704_v54  ;;  %v7997_v60 = vpop.eup %7996  ;;  %8016 = vpow2.f32 %v6838_v1  ;;  %3050 = vperm.xlu1 %7342, %v9704_v54   ;;  %v9724_v53 = vpop.permute.xlu1 %2906 }
 0x3d8   :  { %v9709_v14 = vpop.eup %7998  ;;  %8018 = vrcp.f32 %v2380_v42  ;;  %v2379_v1 = vadd.f32 1.0, %v7997_v60  ;;  %v6839_v42 = vmul.f32 -1.442695, %v1875_v24  ;;  %v12439_v24 = vld [vmem:[#allocation64_spill] sm:$0xff] }
 0x3d9   :  { %12434 = vst [vmem:[#allocation98_spill] sm:$0xff] %v9709_v14  ;;  %v8001_v35 = vpop.eup %8000  ;;  %8020 = vpow2.f32 %v6841_v37  ;;  %v1886_v37 = vadd.f32 %v9664_v62, %v9413_v51  ;;  %v9732_v51 = vpop.permute.xlu0 %2921 }
 0x3da   :  { %v9714_v19 = vpop.eup %8002  ;;  %8022 = vrcp.f32 %v2378_v45  ;;  %v2377_v56 = vadd.f32 1.0, %v8001_v35 }
 0x3db   :  { %3041 = vperm.xlu0 %7343, %v9695_v27   ;;  %v1881_v27 = vadd.f32 %v9664_v62, %v9407_v12  ;;  %12435 = vst [vmem:[#allocation99_spill] sm:$0xff] %v9714_v19  ;;  %v9720_v54 = vpop.eup %8004  ;;  %8024 = vpow2.f32 %v6836_v3  ;;  %3053 = vperm.xlu1 %7342, %v9714_v19   ;;  %v6837_v3 = vmul.f32 -1.442695, %v1873_v47  ;;  %v6850_v19 = vmul.f32 -1.442695, %v1886_v37 }
 0x3dc   :  { %12437 = vst [vmem:[#allocation52_spill] sm:$0xff] %v9720_v54  ;;  %v9727_v12 = vpop.eup %8006  ;;  %8026 = vrcp.f32 %v2383_v28  ;;  %v1876_v28 = vadd.f32 %v9664_v62, %v12441_v7  ;;  %v1887_v47 = vadd.f32 %v9664_v62, %v9434_v25 }
 0x3dd   :  { %12438 = vst [vmem:[#allocation100_spill] sm:$0xff] %v9727_v12  ;;  %v8009_v45 = vpop.eup %8008  ;;  %8028 = vpow2.f32 %v6847_v46  ;;  %v6845_v60 = vmul.f32 -1.442695, %v1881_v27  ;;  %v9748_v37 = vpop.xlane.xlu0 %1765 }
 0x3de   :  { %v8011_v8 = vpop.eup %8010  ;;  %8030 = vrcp.f32 %v2379_v1  ;;  %v2381_v27 = vadd.f32 1.0, %v8009_v45  ;;  %v6840_v45 = vmul.f32 -1.442695, %v1876_v28 }
 0x3df   :  { %3035 = vperm.xlu0 %7343, %v9709_v14   ;;  %v1884_v14 = vadd.f32 %v9664_v62, %v12439_v24  ;;  %v9734_v61 = vpop.eup %8012  ;;  %8032 = vpow2.f32 %v6839_v42  ;;  %3056 = vperm.xlu1 %7342, %v9720_v54   ;;  %v2390_v1 = vadd.f32 1.0, %v8011_v8  ;;  %v9743_v24 = vpop.permute.xlu1 %2900 }
 0x3e0   :  { %12440 = vst [vmem:[#allocation64_spill] sm:$0xff] %v9734_v61  ;;  %v9739_v46 = vpop.eup %8014  ;;  %8034 = vrcp.f32 %v2377_v56  ;;  %v12444_v56 = vld [vmem:[#allocation59_spill] sm:$0xff] }
 0x3e1   :  { %12442 = vst [vmem:[#allocation57_spill] sm:$0xff] %v9739_v46  ;;  %v8017_v35 = vpop.eup %8016  ;;  %8036 = vpow2.f32 %v6845_v60  ;;  %v6848_v7 = vmul.f32 -1.442695, %v1884_v14  ;;  %v1879_v8 = vadd.f32 %v9664_v62, %v12444_v56  ;;  %v1885_v14 = vadd.f32 %v9664_v62, %v9452_v36 }
 0x3e2   :  { %v9746_v42 = vpop.eup %8018  ;;  %8038 = vpow2.f32 %v6837_v3  ;;  %v2386_v25 = vadd.f32 1.0, %v8017_v35 }
 0x3e3   :  { %3044 = vperm.xlu0 %7343, %v9727_v12   ;;  %12443 = vst [vmem:[#allocation101_spill] sm:$0xff] %v9746_v42  ;;  %v8021_v12 = vpop.eup %8020  ;;  %8040 = vpow2.f32 %v6850_v19  ;;  %3074 = vperm.xlu1 %7342, %v9734_v61   ;;  %v6843_v56 = vmul.f32 -1.442695, %v1879_v8  ;;  %v1882_v61 = vadd.f32 %v9664_v62, %v9438_v23 }
 0x3e4   :  { %v9753_v60 = vpop.eup %8022  ;;  %8042 = vrcp.f32 %v2381_v27  ;;  %v2389_v19 = vadd.f32 1.0, %v8021_v12  ;;  %v9762_v27 = vpop.permute.xlu1 %2909  ;;  %v6849_v12 = vmul.f32 -1.442695, %v1885_v14 }
 0x3e5   :  { %12445 = vst [vmem:[#allocation59_spill] sm:$0xff] %v9753_v60  ;;  %v8025_v54 = vpop.eup %8024  ;;  %8044 = vrcp.f32 %v2390_v1  ;;  %v9767_v1 = vpop.xlane.xlu0 %1761 }
 0x3e6   :  { %v9758_v3 = vpop.eup %8026  ;;  %8046 = vpow2.f32 %v6848_v7  ;;  %v2384_v36 = vadd.f32 1.0, %v8025_v54  ;;  %v1880_v7 = vadd.f32 %v9664_v62, %v9446_v20  ;;  %v1890_v20 = vadd.f32 %v9664_v62, %v9489_v22 }
 0x3e7   :  { %3047 = vperm.xlu0 %7343, %v9739_v46   ;;  %v6851_v46 = vmul.f32 -1.442695, %v1887_v47  ;;  %12446 = vst [vmem:[#allocation102_spill] sm:$0xff] %v9758_v3  ;;  %v8029_v28 = vpop.eup %8028  ;;  %8048 = vpow2.f32 %v6840_v45  ;;  %3068 = vperm.xlu1 %7342, %v9746_v42   ;;  %v6846_v42 = vmul.f32 -1.442695, %v1882_v61  ;;  %v1892_v61 = vadd.f32 %v9664_v62, %v9564_v10 }
 0x3e8   :  { %v9765_v35 = vpop.eup %8030  ;;  %8050 = vrcp.f32 %v2386_v25  ;;  %v2395_v23 = vadd.f32 1.0, %v8029_v28  ;;  %v9777_v14 = vpop.permute.xlu1 %2903 }
 0x3e9   :  { %12447 = vst [vmem:[#allocation103_spill] sm:$0xff] %v9765_v35  ;;  %v8033_v47 = vpop.eup %8032  ;;  %8052 = vpow2.f32 %v6851_v46  ;;  %v6844_v46 = vmul.f32 -1.442695, %v1880_v7 }
 0x3ea   :  { %v9772_v45 = vpop.eup %8034  ;;  %8054 = vrcp.f32 %v2389_v19  ;;  %v2387_v25 = vadd.f32 1.0, %v8033_v47 }
 0x3eb   :  { %3062 = vperm.xlu0 %7343, %v9753_v60   ;;  %12448 = vst [vmem:[#allocation104_spill] sm:$0xff] %v9772_v45  ;;  %v8037_v8 = vpop.eup %8036  ;;  %8056 = vpow2.f32 %v6843_v56  ;;  %3077 = vperm.xlu1 %7342, %v9758_v3   ;;  %v9784_v56 = vpop.xlane.xlu0 %1763  ;;  %v6854_v3 = vmul.f32 -1.442695, %v1890_v20 }
 0x3ec   :  { %v8039_v54 = vpop.eup %8038  ;;  %8058 = vrcp.f32 %v2384_v36  ;;  %v2393_v28 = vadd.f32 1.0, %v8037_v8  ;;  %v6856_v8 = vmul.f32 -1.442695, %v1892_v61  ;;  %v1891_v61 = vadd.f32 %v9664_v62, %v9523_v6 }
 0x3ed   :  { %v8041_v60 = vpop.eup %8040  ;;  %8060 = vpow2.f32 %v6849_v12  ;;  %v2385_v47 = vadd.f32 1.0, %v8039_v54  ;;  %v1893_v54 = vadd.f32 %v9664_v62, %v9583_v34 }
 0x3ee   :  { %v9780_v19 = vpop.eup %8042  ;;  %8062 = vrcp.f32 %v2395_v23  ;;  %v2398_v12 = vadd.f32 1.0, %v8041_v60  ;;  %v1888_v23 = vadd.f32 %v9664_v62, %v9505_v39  ;;  %v6855_v6 = vmul.f32 -1.442695, %v1891_v61 }
 0x3ef   :  { %3065 = vperm.xlu0 %7343, %v9765_v35   ;;  %12449 = vst [vmem:[#allocation105_spill] sm:$0xff] %v9780_v19  ;;  %v9786_v36 = vpop.eup %8044  ;;  %8064 = vpow2.f32 %v6846_v42  ;;  %3071 = vperm.xlu1 %7342, %v9780_v19   ;;  %v1894_v61 = vadd.f32 %v9664_v62, %v9592_v55 }
 0x3f0   :  { %12450 = vst [vmem:[#allocation106_spill] sm:$0xff] %v9786_v36  ;;  %v8047_v22 = vpop.eup %8046  ;;  %8066 = vrcp.f32 %v2387_v25  ;;  %v9796_v25 = vpop.permute.xlu1 %2918 }
 0x3f1   :  { %v8049_v7 = vpop.eup %8048  ;;  %8068 = vpow2.f32 %v6844_v46  ;;  %v2396_v42 = vadd.f32 1.0, %v8047_v22  ;;  %v9801_v46 = vpop.permute.xlu0 %2924 }
 0x3f2   :  { %v9792_v10 = vpop.eup %8050  ;;  %8070 = vrcp.f32 %v2393_v28  ;;  %v2388_v39 = vadd.f32 1.0, %v8049_v7  ;;  %v6852_v28 = vmul.f32 -1.442695, %v1888_v23 }
 0x3f3   :  { %3059 = vperm.xlu0 %7343, %v9772_v45   ;;  %12451 = vst [vmem:[#allocation107_spill] sm:$0xff] %v9792_v10  ;;  %v8053_v35 = vpop.eup %8052  ;;  %8072 = vrcp.f32 %v2385_v47  ;;  %3086 = vperm.xlu1 %7342, %v9792_v10  }
 0x3f4   :  { %v9799_v60 = vpop.eup %8054  ;;  %8074 = vrcp.f32 %v2398_v12  ;;  %v2399_v34 = vadd.f32 1.0, %v8053_v35  ;;  %v1898_v12 = vadd.f32 %v9664_v62, %v9604_v30  ;;  %v9815_v35 = vpop.permute.xlu1 %2912 }
 0x3f5   :  { %12452 = vst [vmem:[#allocation108_spill] sm:$0xff] %v9799_v60  ;;  %v8057_v20 = vpop.eup %8056  ;;  %8076 = vpow2.f32 %v6854_v3 }
 0x3f6   :  { %v9806_v47 = vpop.eup %8058  ;;  %8078 = vpow2.f32 %v6856_v8  ;;  %v2391_v3 = vadd.f32 1.0, %v8057_v20  ;;  %v1899_v20 = vadd.f32 %v9664_v62, %v9621_v40 }
 0x3f7   :  { %3098 = vperm.xlu0 %7343, %v9786_v36   ;;  %12453 = vst [vmem:[#allocation109_spill] sm:$0xff] %v9806_v47  ;;  %v8061_v22 = vpop.eup %8060  ;;  %8080 = vrcp.f32 %v2396_v42  ;;  %v6857_v36 = vmul.f32 -1.442695, %v1893_v54  ;;  %3080 = vperm.xlu1 %7342, %v9806_v47   ;;  %v9820_v42 = vpop.permute.xlu0 %2933 }
 0x3f8   :  { %v9811_v7 = vpop.eup %8062  ;;  %8082 = vrcp.f32 %v2388_v39  ;;  %v2397_v30 = vadd.f32 1.0, %v8061_v22  ;;  %v6862_v39 = vmul.f32 -1.442695, %v1898_v12 }
 0x3f9   :  { %12454 = vst [vmem:[#allocation110_spill] sm:$0xff] %v9811_v7  ;;  %v8065_v23 = vpop.eup %8064  ;;  %8084 = vpow2.f32 %v6852_v28 }
 0x3fa   :  { %v9818_v8 = vpop.eup %8066  ;;  %8086 = vrcp.f32 %v2399_v34 }
 0x3fb   :  { %3095 = vperm.xlu0 %7343, %v9799_v60   ;;  %v1889_v60 = vadd.f32 %v9664_v62, %v9538_v48  ;;  %12455 = vst [vmem:[#allocation111_spill] sm:$0xff] %v9818_v8  ;;  %v8069_v54 = vpop.eup %8068  ;;  %8088 = vpow2.f32 %v6857_v36  ;;  %3089 = vperm.xlu1 %7342, %v9818_v8   ;;  %v2394_v48 = vadd.f32 1.0, %v8065_v23  ;;  %v1897_v36 = vadd.f32 %v9664_v62, %v9640_v38  ;;  %v9836_v12 = vpop.xlane.xlu0 %1773 }
 0x3fc   :  { %v9825_v28 = vpop.eup %8070  ;;  %8090 = vrcp.f32 %v2391_v3  ;;  %v2392_v40 = vadd.f32 1.0, %v8069_v54  ;;  %v6863_v23 = vmul.f32 -1.442695, %v1899_v20  ;;  %v9838_v8 = vpop.permute.xlu1 %2915  ;;  %v1895_v38 = vadd.f32 %v9664_v62, %v9613_v50 }
 0x3fd   :  { %12456 = vst [vmem:[#allocation112_spill] sm:$0xff] %v9825_v28  ;;  %v9829_v10 = vpop.eup %8072  ;;  %8092 = vpow2.f32 %v6855_v6  ;;  %v6853_v34 = vmul.f32 -1.442695, %v1889_v60  ;;  %v6858_v60 = vmul.f32 -1.442695, %v1894_v61  ;;  %v1902_v54 = vadd.f32 %v9664_v62, %v9659_v11 }
 0x3fe   :  { %12457 = vst [vmem:[#allocation113_spill] sm:$0xff] %v9829_v10  ;;  %v9834_v22 = vpop.eup %8074  ;;  %8094 = vrcp.f32 %v2397_v30  ;;  %v6861_v30 = vmul.f32 -1.442695, %v1897_v36  ;;  %v6859_v61 = vmul.f32 -1.442695, %v1895_v38 }
 0x3ff   :  { %3113 = vperm.xlu0 %7343, %v9811_v7   ;;  %12458 = vst [vmem:[#allocation114_spill] sm:$0xff] %v9834_v22  ;;  %v8077_v3 = vpop.eup %8076  ;;  %8096 = vpow2.f32 %v6862_v39  ;;  %3083 = vperm.xlu1 %7342, %v9829_v10   ;;  %v6866_v11 = vmul.f32 -1.442695, %v1902_v54 }
 0x400   :  { %v8079_v55 = vpop.eup %8078  ;;  %8098 = vrcp.f32 %v2394_v48  ;;  %v2402_v20 = vadd.f32 1.0, %v8077_v3  ;;  %v1768_v48 = vpop.xlane.xlu1 %1767 }
 0x401   :  { %v9843_v6 = vpop.eup %8080  ;;  %8100 = vpow2.f32 %v6853_v34  ;;  %v2404_v47 = vadd.f32 1.0, %v8079_v55  ;;  %v9853_v34 = vpop.permute.xlu0 %2942  ;;  %v1900_v55 = vadd.f32 %v9664_v62, %v9678_v9 }
 0x402   :  { %12459 = vst [vmem:[#allocation115_spill] sm:$0xff] %v9843_v6  ;;  %v9848_v39 = vpop.eup %8082  ;;  %8102 = vrcp.f32 %v2392_v40  ;;  %12462 = vst [vmem:[#allocation118_spill] sm:$0xff] %v9853_v34 }
 0x403   :  { %3107 = vperm.xlu0 %7343, %v9825_v28   ;;  %12460 = vst [vmem:[#allocation116_spill] sm:$0xff] %v9848_v39  ;;  %v8085_v10 = vpop.eup %8084  ;;  %8104 = vpow2.f32 %v6863_v23  ;;  %3092 = vperm.xlu1 %7342, %v9848_v39   ;;  %v1907_v39 = vadd.f32 %v9664_v62, %v1768_v48 }
 0x404   :  { %v9851_v50 = vpop.eup %8086  ;;  %8106 = vpow2.f32 %v6858_v60  ;;  %v2400_v3 = vadd.f32 1.0, %v8085_v10 }
 0x405   :  { %12461 = vst [vmem:[#allocation117_spill] sm:$0xff] %v9851_v50  ;;  %v8089_v36 = vpop.eup %8088  ;;  %8108 = vpow2.f32 %v6861_v30 }
 0x406   :  { %v9858_v40 = vpop.eup %8090  ;;  %8110 = vrcp.f32 %v2402_v20  ;;  %v2405_v38 = vadd.f32 1.0, %v8089_v36  ;;  %v9868_v20 = vpop.permute.xlu1 %2930 }
 0x407   :  { %3122 = vperm.xlu0 %7343, %v9834_v22   ;;  %v1896_v22 = vadd.f32 %v9664_v62, %v9701_v57  ;;  %12463 = vst [vmem:[#allocation119_spill] sm:$0xff] %v9858_v40  ;;  %v8093_v23 = vpop.eup %8092  ;;  %8112 = vrcp.f32 %v2404_v47  ;;  %3101 = vperm.xlu1 %7342, %v9858_v40   ;;  %v6864_v40 = vmul.f32 -1.442695, %v1900_v55 }
 0x408   :  { %v9863_v60 = vpop.eup %8094  ;;  %8114 = vpow2.f32 %v6859_v61  ;;  %v2403_v9 = vadd.f32 1.0, %v8093_v23  ;;  %v1903_v61 = vadd.f32 %v9664_v62, %v9697_v43  ;;  %v1901_v43 = vadd.f32 %v9664_v62, %v9718_v31 }
 0x409   :  { %12464 = vst [vmem:[#allocation120_spill] sm:$0xff] %v9863_v60  ;;  %v8097_v57 = vpop.eup %8096  ;;  %8116 = vpow2.f32 %v6866_v11  ;;  %v6860_v54 = vmul.f32 -1.442695, %v1896_v22 }
 0x40a   :  { %v9865_v30 = vpop.xlane.xlu0 %1771  ;;  %v9871_v10 = vpop.eup %8098  ;;  %8118 = vrcp.f32 %v2400_v3  ;;  %v2410_v22 = vadd.f32 1.0, %v8097_v57  ;;  %v6867_v19 = vmul.f32 -1.442695, %v1903_v61  ;;  %v6865_v61 = vmul.f32 -1.442695, %v1901_v43 }
 0x40b   :  { %3116 = vperm.xlu0 %7343, %v9843_v6   ;;  %12465 = vst [vmem:[#allocation121_spill] sm:$0xff] %v9871_v10  ;;  %v8101_v47 = vpop.eup %8100  ;;  %3110 = vperm.xlu1 %7342, %v9871_v10   ;;  %8120 = vrcp.f32 %v2405_v38  ;;  %v9883_v6 = vpop.permute.xlu1 %2927 }
 0x40c   :  { %v9876_v36 = vpop.eup %8102  ;;  %8122 = vpow2.f32 %v6860_v54  ;;  %v2401_v23 = vadd.f32 1.0, %v8101_v47 }
 0x40d   :  { %12466 = vst [vmem:[#allocation122_spill] sm:$0xff] %v9876_v36  ;;  %v8105_v11 = vpop.eup %8104  ;;  %8124 = vrcp.f32 %v2403_v9 }
 0x40e   :  { %v8107_v3 = vpop.eup %8106  ;;  %8126 = vpow2.f32 %v6864_v40  ;;  %v2411_v57 = vadd.f32 1.0, %v8105_v11 }
 0x40f   :  { %3125 = vperm.xlu0 %7343, %v9851_v50   ;;  %v6871_v50 = vmul.f32 -1.442695, %v1907_v39  ;;  %v8109_v55 = vpop.eup %8108  ;;  %3104 = vperm.xlu1 %7342, %v9876_v36   ;;  %8128 = vrcp.f32 %v2410_v22  ;;  %v2406_v9 = vadd.f32 1.0, %v8107_v3 }
 0x410   :  { %v9886_v38 = vpop.eup %8110  ;;  %v2409_v47 = vadd.f32 1.0, %v8109_v55 }
 0x411   :  { %12467 = vst [vmem:[#allocation123_spill] sm:$0xff] %v9886_v38  ;;  %v9890_v54 = vpop.eup %8112  ;;  %8130 = vpow2.f32 %v6871_v50 }
 0x412   :  { %v9878_v48 = vpop.permute.xlu0 %2936  ;;  %12469 = vst [vmem:[#allocation125_spill] sm:$0xff] %v9890_v54  ;;  %v8115_v40 = vpop.eup %8114  ;;  %8132 = vrcp.f32 %v2401_v23 }
 0x413   :  { %3119 = vperm.xlu0 %7343, %v9863_v60   ;;  %v8117_v31 = vpop.eup %8116  ;;  %8134 = vpow2.f32 %v6867_v19  ;;  %v1906_v60 = vadd.f32 %v9664_v62, %v9748_v37  ;;  %v1770_v7 = vpop.xlane.xlu1 %1769  ;;  %3140 = vperm.xlu1 %7342, %v9890_v54   ;;  %v2407_v3 = vadd.f32 1.0, %v8115_v40  ;;  %v1904_v54 = vadd.f32 %v9664_v62, %v9767_v1 }
 0x414   :  { %v9896_v22 = vpop.eup %8118  ;;  %8136 = vrcp.f32 %v2411_v57  ;;  %v1908_v11 = vadd.f32 %v9664_v62, %v1770_v7  ;;  %v2414_v19 = vadd.f32 1.0, %v8117_v31 }
 0x415   :  { %12470 = vst [vmem:[#allocation126_spill] sm:$0xff] %v9896_v22  ;;  %8138 = vrcp.f32 %v2406_v9  ;;  %v9902_v23 = vpop.eup %8120  ;;  %v6870_v43 = vmul.f32 -1.442695, %v1906_v60 }
 0x416   :  { %v9888_v39 = vpop.permute.xlu0 %2945  ;;  %12471 = vst [vmem:[#allocation127_spill] sm:$0xff] %v9902_v23  ;;  %8140 = vrcp.f32 %v2409_v47  ;;  %v6872_v55 = vmul.f32 -1.442695, %v1908_v11  ;;  %v8123_v37 = vpop.eup %8122  ;;  %v1905_v11 = vadd.f32 %v9664_v62, %v9784_v56 }
 0x417   :  { %12468 = vst [vmem:[#allocation124_spill] sm:$0xff] %v9888_v39  ;;  %3134 = vperm.xlu0 %7343, %v9886_v38   ;;  %8142 = vpow2.f32 %v6865_v61  ;;  %v1776_v57 = vpop.xlane.xlu1 %1775  ;;  %3143 = vperm.xlu1 %7342, %v9902_v23   ;;  %v9907_v7 = vpop.eup %8124  ;;  %v2408_v60 = vadd.f32 1.0, %v8123_v37  ;;  %v6868_v61 = vmul.f32 -1.442695, %v1904_v54  ;;  %v12547_v39 = vld [vmem:[#allocation47_spill] sm:$0xff] }
 0x418   :  { %12472 = vst [vmem:[#allocation128_spill] sm:$0xff] %v9907_v7  ;;  %8144 = vpow2.f32 %v6872_v55  ;;  %v1911_v9 = vadd.f32 %v9664_v62, %v1776_v57  ;;  %v8127_v38 = vpop.eup %8126  ;;  %v6869_v56 = vmul.f32 -1.442695, %v1905_v11 }
 0x419   :  { %8146 = vrcp.f32 %v2407_v3  ;;  %v9913_v47 = vpop.eup %8128  ;;  %v2412_v3 = vadd.f32 1.0, %v8127_v38 }
 0x41a   :  { %v9899_v50 = vpop.permute.xlu0 %2939  ;;  %12474 = vst [vmem:[#allocation130_spill] sm:$0xff] %v9913_v47  ;;  %8148 = vrcp.f32 %v2414_v19  ;;  %v6875_v31 = vmul.f32 -1.442695, %v1911_v9 }
 0x41b   :  { %3128 = vperm.xlu0 %7343, %v9896_v22   ;;  %v8131_v1 = vpop.eup %8130  ;;  %8150 = vpow2.f32 %v6870_v43  ;;  %v9917_v55 = vpop.permute.xlu1 %2966  ;;  %3158 = vperm.xlu1 %7342, %v9913_v47   ;;  %v1910_v43 = vadd.f32 %v9664_v62, %v9836_v12  ;;  %v1909_v12 = vadd.f32 %v9664_v62, %v9865_v30 }
 0x41c   :  { %v9920_v57 = vpop.eup %8132  ;;  %8152 = vpow2.f32 %v6875_v31  ;;  %v2419_v54 = vadd.f32 1.0, %v8131_v1 }
 0x41d   :  { %12475 = vst [vmem:[#allocation131_spill] sm:$0xff] %v9920_v57  ;;  %8154 = vrcp.f32 %v2408_v60 }
 0x41e   :  { %v9910_v40 = vpop.permute.xlu0 %2954  ;;  %8156 = vpow2.f32 %v6868_v61  ;;  %v6874_v61 = vmul.f32 -1.442695, %v1910_v43 }
 0x41f   :  { %12473 = vst [vmem:[#allocation129_spill] sm:$0xff] %v9910_v40  ;;  %3137 = vperm.xlu0 %7343, %v9907_v7   ;;  %v8135_v7 = vpop.eup %8134  ;;  %v9931_v9 = vpop.permute.xlu1 %2969  ;;  %8158 = vrcp.f32 %v2412_v3 }
 0x420   :  { %v9925_v19 = vpop.eup %8136  ;;  %v2415_v31 = vadd.f32 1.0, %v8135_v7  ;;  %8160 = vrcp.f32 %v2419_v54 }
 0x421   :  { %12477 = vst [vmem:[#allocation133_spill] sm:$0xff] %v9925_v19  ;;  %v9927_v37 = vpop.eup %8138  ;;  %3161 = vperm.xlu1 %7342, %v9925_v19   ;;  %8162 = vpow2.f32 %v6869_v56  ;;  %v6873_v56 = vmul.f32 -1.442695, %v1909_v12 }
 0x422   :  { %v9922_v23 = vpop.permute.xlu0 %2948  ;;  %12478 = vst [vmem:[#allocation134_spill] sm:$0xff] %v9927_v37  ;;  %v9934_v38 = vpop.eup %8140  ;;  %8164 = vrcp.f32 %v2415_v31 }
 0x423   :  { %12476 = vst [vmem:[#allocation132_spill] sm:$0xff] %v9922_v23  ;;  %3131 = vperm.xlu0 %7343, %v9920_v57   ;;  %12479 = vst [vmem:[#allocation135_spill] sm:$0xff] %v9934_v38  ;;  %v8143_v22 = vpop.eup %8142  ;;  %v9943_v19 = vpop.permute.xlu1 %2963 }
 0x424   :  { %v8145_v60 = vpop.eup %8144  ;;  %v2413_v3 = vadd.f32 1.0, %v8143_v22 }
 0x425   :  { %v9939_v1 = vpop.eup %8146  ;;  %v2420_v11 = vadd.f32 1.0, %v8145_v60  ;;  %3155 = vperm.xlu1 %7342, %v9934_v38  }
 0x426   :  { %v9936_v57 = vpop.permute.xlu0 %2957  ;;  %12481 = vst [vmem:[#allocation137_spill] sm:$0xff] %v9939_v1  ;;  %v9946_v7 = vpop.eup %8148 }
 0x427   :  { %12480 = vst [vmem:[#allocation136_spill] sm:$0xff] %v9936_v57  ;;  %3146 = vperm.xlu0 %7343, %v9927_v37   ;;  %12482 = vst [vmem:[#allocation138_spill] sm:$0xff] %v9946_v7  ;;  %v8151_v37 = vpop.eup %8150  ;;  %8166 = vrcp.f32 %v2420_v11  ;;  %v9951_v62 = vpop.permute.xlu1 %2978  ;;  %v2680_v57 = vlaneseq }
 0x428   :  { %v8153_v54 = vpop.eup %8152  ;;  %8168 = vpow2.f32 %v6874_v61  ;;  %12484 = vst [vmem:[#allocation140_spill] sm:$0xff] %v9951_v62  ;;  %v2418_v60 = vadd.f32 1.0, %v8151_v37 }
 0x429   :  { %v2423_v43 = vadd.f32 1.0, %v8153_v54  ;;  %3170 = vperm.xlu1 %7342, %v9946_v7   ;;  %v9954_v30 = vpop.eup %8154  ;;  %8170 = vrcp.f32 %v2413_v3 }
 0x42a   :  { %v9948_v47 = vpop.permute.xlu0 %2951  ;;  %12485 = vst [vmem:[#allocation141_spill] sm:$0xff] %v9954_v30  ;;  %v8157_v22 = vpop.eup %8156 }
 0x42b   :  { %12483 = vst [vmem:[#allocation139_spill] sm:$0xff] %v9948_v47  ;;  %3149 = vperm.xlu0 %7343, %v9939_v1   ;;  %v9959_v38 = vpop.eup %8158  ;;  %8172 = vrcp.f32 %v2423_v43  ;;  %v9961_v61 = vpop.permute.xlu1 %2981  ;;  %v2416_v11 = vadd.f32 1.0, %v8157_v22 }
 0x42c   :  { %12486 = vst [vmem:[#allocation142_spill] sm:$0xff] %v9959_v38  ;;  %8174 = vpow2.f32 %v6873_v56  ;;  %12487 = vst [vmem:[#allocation143_spill] sm:$0xff] %v9961_v61  ;;  %v9964_v12 = vpop.eup %8160 }
 0x42d   :  { %3164 = vperm.xlu1 %7342, %v9959_v38   ;;  %12488 = vst [vmem:[#allocation144_spill] sm:$0xff] %v9964_v12  ;;  %8176 = vrcp.f32 %v2418_v60  ;;  %v8163_v37 = vpop.eup %8162 }
 0x42e   :  { %v9956_v31 = vpop.permute.xlu0 %2960  ;;  %v9969_v3 = vpop.eup %8164  ;;  %8178 = vrcp.f32 %v2416_v11  ;;  %v2417_v43 = vadd.f32 1.0, %v8163_v37 }
 0x42f   :  { %3152 = vperm.xlu0 %7343, %v9954_v30   ;;  %12490 = vst [vmem:[#allocation146_spill] sm:$0xff] %v9969_v3  ;;  %v9971_v1 = vpop.permute.xlu1 %2990 }
 0x430   :  { %12491 = vst [vmem:[#allocation147_spill] sm:$0xff] %v9971_v1  ;;  %8180 = vrcp.f32 %v2417_v43 }
 0x431   :  { %3173 = vperm.xlu1 %7342, %v9969_v3   ;;  %v9974_v56 = vpop.eup %8166 }
 0x432   :  { %v9966_v54 = vpop.permute.xlu0 %2972  ;;  %12492 = vst [vmem:[#allocation148_spill] sm:$0xff] %v9974_v56  ;;  %v8169_v38 = vpop.eup %8168 }
 0x433   :  { %12489 = vst [vmem:[#allocation145_spill] sm:$0xff] %v9966_v54  ;;  %3185 = vperm.xlu0 %7343, %v9964_v12   ;;  %v9979_v60 = vpop.eup %8170  ;;  %v9981_v22 = vpop.permute.xlu1 %2984  ;;  %v2422_v10 = vadd.f32 1.0, %v8169_v38  ;;  %v12563_v54 = vld [vmem:[#allocation65_spill] sm:$0xff] }
 0x434   :  { %12494 = vst [vmem:[#allocation150_spill] sm:$0xff] %v9979_v60  ;;  %12495 = vst [vmem:[#allocation151_spill] sm:$0xff] %v9981_v22 }
 0x435   :  { %3167 = vperm.xlu1 %7342, %v9979_v60   ;;  %v9984_v12 = vpop.eup %8172  ;;  %8182 = vrcp.f32 %v2422_v10 }
 0x436   :  { %v9976_v7 = vpop.permute.xlu0 %2975  ;;  %12496 = vst [vmem:[#allocation152_spill] sm:$0xff] %v9984_v12  ;;  %v8175_v30 = vpop.eup %8174 }
 0x437   :  { %12493 = vst [vmem:[#allocation149_spill] sm:$0xff] %v9976_v7  ;;  %3188 = vperm.xlu0 %7343, %v9974_v56   ;;  %v9989_v11 = vpop.eup %8176  ;;  %v9991_v37 = vpop.permute.xlu1 %2993  ;;  %v2421_v56 = vadd.f32 1.0, %v8175_v30 }
 0x438   :  { %12498 = vst [vmem:[#allocation154_spill] sm:$0xff] %v9989_v11  ;;  %12499 = vst [vmem:[#allocation155_spill] sm:$0xff] %v9991_v37  ;;  %v9996_v60 = vpop.eup %8178 }
 0x439   :  { %3182 = vperm.xlu1 %7342, %v9989_v11   ;;  %12501 = vst [vmem:[#allocation157_spill] sm:$0xff] %v9996_v60  ;;  %8184 = vrcp.f32 %v2421_v56 }
 0x43a   :  { %v9986_v3 = vpop.permute.xlu0 %3005  ;;  %v10003_v43 = vpop.eup %8180 }
 0x43b   :  { %12497 = vst [vmem:[#allocation153_spill] sm:$0xff] %v9986_v3  ;;  %3197 = vperm.xlu0 %7343, %v9984_v12   ;;  %v9998_v28 = vpop.permute.xlu1 %2987  ;;  %12503 = vst [vmem:[#allocation159_spill] sm:$0xff] %v10003_v43 }
 0x43c   :  { %12502 = vst [vmem:[#allocation158_spill] sm:$0xff] %v9998_v28  ;;  %v10071_v28 = vshrl.u32 %v2680_v57, 7 }
 0x43d   :  { %3176 = vperm.xlu1 %7342, %v9996_v60  }
 0x43e   :  { %v9994_v36 = vpop.permute.xlu0 %3014  ;;  %12532 = vst [vmem:[#allocation188_spill] sm:$0xff] %v10071_v28 }
 0x43f   :  { %12500 = vst [vmem:[#allocation156_spill] sm:$0xff] %v9994_v36  ;;  %v10005_v12 = vpop.permute.xlu1 %3002  ;;  %v10010_v10 = vpop.eup %8182 }
 0x440   :  { %12504 = vst [vmem:[#allocation160_spill] sm:$0xff] %v10005_v12  ;;  %12506 = vst [vmem:[#allocation162_spill] sm:$0xff] %v10010_v10 }
 0x441   :  { %3179 = vperm.xlu1 %7342, %v10003_v43  }
 0x442   :  { %v10001_v38 = vpop.permute.xlu0 %3008 }
 0x443   :  { %v10012_v30 = vpop.permute.xlu1 %2996  ;;  %v10017_v60 = vpop.eup %8184 }
 0x444   :  { %12507 = vst [vmem:[#allocation163_spill] sm:$0xff] %v10012_v30  ;;  %12509 = vst [vmem:[#allocation165_spill] sm:$0xff] %v10017_v60 }
 0x445   :  { %3194 = vperm.xlu1 %7342, %v10010_v10  }
 0x446   :  { %v10008_v11 = vpop.permute.xlu0 %3026 }
 0x447   :  { %12505 = vst [vmem:[#allocation161_spill] sm:$0xff] %v10008_v11  ;;  %v10019_v56 = vpop.permute.xlu1 %2999 }
 0x448   :  { %12510 = vst [vmem:[#allocation166_spill] sm:$0xff] %v10019_v56 }
 0x449   :  { %3191 = vperm.xlu1 %7342, %v10017_v60  }
 0x44a   :  { %v10015_v45 = vpop.permute.xlu0 %3029 }
 0x44b   :  { %12508 = vst [vmem:[#allocation164_spill] sm:$0xff] %v10015_v45  ;;  %v10024_v0 = vpop.permute.xlu1 %3017 }
 0x44c   :  { %12512 = vst [vmem:[#allocation168_spill] sm:$0xff] %v10024_v0 }
 0x44e   :  { %v10022_v21 = vpop.permute.xlu0 %3023 }
 0x44f   :  { %12511 = vst [vmem:[#allocation167_spill] sm:$0xff] %v10022_v21  ;;  %v10028_v44 = vpop.permute.xlu1 %3011 }
 0x452   :  { %v10026_v43 = vpop.permute.xlu0 %3038 }
 0x453   :  { %12513 = vst [vmem:[#allocation169_spill] sm:$0xff] %v10026_v43  ;;  %v10032_v16 = vpop.permute.xlu1 %3020 }
 0x454   :  { %12515 = vst [vmem:[#allocation171_spill] sm:$0xff] %v10032_v16 }
 0x456   :  { %v10030_v32 = vpop.permute.xlu0 %3032 }
 0x457   :  { %12514 = vst [vmem:[#allocation170_spill] sm:$0xff] %v10030_v32  ;;  %v10036_v29 = vpop.permute.xlu1 %3050 }
 0x458   :  { %12517 = vst [vmem:[#allocation173_spill] sm:$0xff] %v10036_v29 }
 0x45a   :  { %v10034_v10 = vpop.permute.xlu0 %3041 }
 0x45b   :  { %12516 = vst [vmem:[#allocation172_spill] sm:$0xff] %v10034_v10  ;;  %v10040_v12 = vpop.permute.xlu1 %3053 }
 0x45c   :  { %12519 = vst [vmem:[#allocation175_spill] sm:$0xff] %v10040_v12 }
 0x45e   :  { %v10038_v26 = vpop.permute.xlu0 %3035 }
 0x45f   :  { %12518 = vst [vmem:[#allocation174_spill] sm:$0xff] %v10038_v26  ;;  %v10044_v3 = vpop.permute.xlu1 %3056  ;;  %v10064_v26 = vand.u32 127, %v2680_v57 }
 0x461   :  { %12529 = vst [vmem:[#allocation185_spill] sm:$0xff] %v10064_v26  ;;  %v3203_v32 = vadd.s32 4294967288, %v10064_v26  ;;  %v3210_v47 = vadd.s32 4294967280, %v10064_v26  ;;  %v3217_v57 = vadd.s32 4294967272, %v10064_v26  ;;  %v3259_v16 = vadd.s32 4294967224, %v10064_v26 }
 0x462   :  { %v10042_v60 = vpop.permute.xlu0 %3044  ;;  %v3287_v36 = vadd.s32 4294967192, %v10064_v26 }
 0x463   :  { %12520 = vst [vmem:[#allocation176_spill] sm:$0xff] %v10042_v60  ;;  %v10048_v30 = vpop.permute.xlu1 %3074  ;;  %v10095_v23 = vsub.s32 %v3210_v47, %v10071_v28  ;;  %v10105_v40 = vsub.s32 %v3217_v57, %v10071_v28  ;;  %v12548_v57 = vld [vmem:[#allocation53_spill] sm:$0xff] }
 0x464   :  { %12522 = vst [vmem:[#allocation178_spill] sm:$0xff] %v10048_v30 }
 0x465   :  { %12540 = vst [vmem:[#allocation194_spill] sm:$0xff] %v10095_v23  ;;  %12544 = vst [vmem:[#allocation196_spill] sm:$0xff] %v10105_v40 }
 0x466   :  { %v10046_v56 = vpop.permute.xlu0 %3047 }
 0x467   :  { %12521 = vst [vmem:[#allocation177_spill] sm:$0xff] %v10046_v56  ;;  %v10052_v43 = vpop.permute.xlu1 %3068 }
 0x468   :  { %12524 = vst [vmem:[#allocation180_spill] sm:$0xff] %v10052_v43  ;;  %v3214_v43 = vrot.slane %v12547_v39, %v10095_v23  ;;  %v12551_v39 = vld [vmem:[#allocation55_spill] sm:$0xff] }
 0x46a   :  { %v10050_v37 = vpop.permute.xlu0 %3062 }
 0x46b   :  { %12523 = vst [vmem:[#allocation179_spill] sm:$0xff] %v10050_v37  ;;  %v10056_v10 = vpop.permute.xlu1 %3077 }
 0x46c   :  { %12526 = vst [vmem:[#allocation182_spill] sm:$0xff] %v10056_v10  ;;  %v10076_v10 = vsub.s32 %v3203_v32, %v10071_v28  ;;  %v3231_v32 = vadd.s32 4294967256, %v10064_v26 }
 0x46e   :  { %v10054_v1 = vpop.permute.xlu0 %3065  ;;  %12534 = vst [vmem:[#allocation190_spill] sm:$0xff] %v10076_v10  ;;  %v10109_v62 = vsub.s32 %v3231_v32, %v10071_v28  ;;  %v12550_v32 = vld [vmem:[#allocation49_spill] sm:$0xff] }
 0x46f   :  { %12525 = vst [vmem:[#allocation181_spill] sm:$0xff] %v10054_v1  ;;  %v10060_v12 = vpop.permute.xlu1 %3071 }
 0x470   :  { %12527 = vst [vmem:[#allocation183_spill] sm:$0xff] %v10060_v12  ;;  %v12541_v12 = vld [vmem:[#allocation46_spill] sm:$0xff]  ;;  %12545 = vst [vmem:[#allocation197_spill] sm:$0xff] %v10109_v62  ;;  %v3235_v1 = vrot.slane %v12551_v39, %v10109_v62 }
 0x472   :  { %v10058_v29 = vpop.permute.xlu0 %3059 }
 0x473   :  { %v10066_v56 = vpop.permute.xlu1 %3086 }
 0x474   :  { %12530 = vst [vmem:[#allocation186_spill] sm:$0xff] %v10066_v56  ;;  %v3224_v56 = vadd.s32 4294967264, %v10064_v26 }
 0x476   :  { %v10062_v60 = vpop.permute.xlu0 %3098  ;;  %v10100_v21 = vsub.s32 %v3224_v56, %v10071_v28  ;;  %v3245_v56 = vadd.s32 4294967240, %v10064_v26 }
 0x477   :  { %12528 = vst [vmem:[#allocation184_spill] sm:$0xff] %v10062_v60  ;;  %v10073_v22 = vpop.permute.xlu1 %3080  ;;  %v10083_v60 = vsub.s32 %v10064_v26, %v10071_v28 }
 0x478   :  { %12533 = vst [vmem:[#allocation189_spill] sm:$0xff] %v10073_v22  ;;  %12542 = vst [vmem:[#allocation46_spill] sm:$0xff] %v10100_v21  ;;  %v3228_v34 = vrot.slane %v12548_v57, %v10100_v21 }
 0x479   :  { %12536 = vst [vmem:[#allocation192_spill] sm:$0xff] %v10083_v60 }
 0x47a   :  { %v10069_v45 = vpop.permute.xlu0 %3095 }
 0x47b   :  { %12531 = vst [vmem:[#allocation187_spill] sm:$0xff] %v10069_v45  ;;  %v10086_v11 = vpop.permute.xlu1 %3089  ;;  %v12538_v45 = vld [vmem:[#allocation50_spill] sm:$0xff] }
 0x47c   :  { %12537 = vst [vmem:[#allocation193_spill] sm:$0xff] %v10086_v11  ;;  %v3207_v22 = vrot.slane %v12538_v45, %v10076_v10 }
 0x47e   :  { %v10078_v30 = vpop.permute.xlu0 %3113 }
 0x47f   :  { %12535 = vst [vmem:[#allocation191_spill] sm:$0xff] %v10078_v30  ;;  %v3202_v30 = vrot.slane %v12541_v12, %v10083_v60  ;;  %v10102_v11 = vpop.permute.xlu1 %3083  ;;  %v3238_v12 = vadd.s32 4294967248, %v10064_v26 }
 0x480   :  { %12543 = vst [vmem:[#allocation195_spill] sm:$0xff] %v10102_v11 }
 0x481   :  { %v3209_v45 = vsel %vm3208_vm1, %v3207_v22, %v3202_v30  ;;  %v3252_v22 = vadd.s32 4294967232, %v10064_v26 }
 0x482   :  { %v10092_v61 = vpop.permute.xlu0 %3107  ;;  %v3216_v11 = vsel %vm3215_vm2, %v3214_v43, %v3209_v45  ;;  %v10133_v45 = vsub.s32 %v3238_v12, %v10071_v28 }
 0x483   :  { %12539 = vst [vmem:[#allocation50_spill] sm:$0xff] %v10092_v61  ;;  %v10121_v30 = vpop.permute.xlu1 %3092  ;;  %v3315_v61 = vrot.slane %v9476_v18, %v10076_v10  ;;  %v10143_v0 = vsub.s32 %v3252_v22, %v10071_v28  ;;  %v12560_v22 = vld [vmem:[#allocation66_spill] sm:$0xff] }
 0x484   :  { %12549 = vst [vmem:[#allocation47_spill] sm:$0xff] %v10121_v30  ;;  %12553 = vst [vmem:[#allocation49_spill] sm:$0xff] %v10133_v45  ;;  %v3311_v30 = vrot.slane %v9463_v52, %v10083_v60  ;;  %v3325_v52 = vrot.slane %v9514_v33, %v10105_v40  ;;  %v3335_v33 = vrot.slane %v9576_v58, %v10109_v62 }
 0x485   :  { %12555 = vst [vmem:[#allocation199_spill] sm:$0xff] %v10143_v0 }
 0x486   :  { %v10111_v47 = vpop.permute.xlu0 %3122 }
 0x487   :  { %12546 = vst [vmem:[#allocation198_spill] sm:$0xff] %v10111_v47  ;;  %v3221_v47 = vrot.slane %v12550_v32, %v10105_v40  ;;  %v10139_v32 = vsub.s32 %v3245_v56, %v10071_v28  ;;  %v10145_v18 = vpop.permute.xlu1 %3101 }
 0x488   :  { %12556 = vst [vmem:[#allocation200_spill] sm:$0xff] %v10145_v18  ;;  %v3266_v18 = vadd.s32 4294967216, %v10064_v26 }
 0x489   :  { %v3223_v57 = vsel %vm3222_vm3, %v3221_v47, %v3216_v11  ;;  %12554 = vst [vmem:[#allocation55_spill] sm:$0xff] %v10139_v32  ;;  %v3316_v11 = vsel %vm3208_vm1, %v3315_v61, %v3311_v30  ;;  %v12561_v30 = vld [vmem:[#allocation62_spill] sm:$0xff] }
 0x48a   :  { %v10130_v43 = vpop.permute.xlu0 %3116  ;;  %v3230_v39 = vsel %vm3229_vm4, %v3228_v34, %v3223_v57  ;;  %v12559_v34 = vld [vmem:[#allocation51_spill] sm:$0xff]  ;;  %v3320_v57 = vrot.slane %v12560_v22, %v10095_v23 }
 0x48b   :  { %12552 = vst [vmem:[#allocation53_spill] sm:$0xff] %v10130_v43  ;;  %v3237_v12 = vsel %vm3236_vm5, %v3235_v1, %v3230_v39  ;;  %v10149_v43 = vsub.s32 %v3259_v16, %v10071_v28  ;;  %v3242_v56 = vrot.slane %v12559_v34, %v10133_v45  ;;  %v3330_v1 = vrot.slane %v9557_v49, %v10100_v21  ;;  %v12562_v49 = vld [vmem:[#allocation54_spill] sm:$0xff] }
 0x48c   :  { %v3273_v16 = vadd.s32 4294967208, %v10064_v26  ;;  %v3256_v39 = vrot.slane %v12561_v30, %v10143_v0  ;;  %v3280_v34 = vadd.s32 4294967200, %v10064_v26  ;;  %v3321_v22 = vsel %vm3215_vm2, %v3320_v57, %v3316_v11 }
 0x48d   :  { %12557 = vst [vmem:[#allocation201_spill] sm:$0xff] %v10149_v43  ;;  %v3244_v61 = vsel %vm3243_vm6, %v3242_v56, %v3237_v12  ;;  %v3249_v7 = vrot.slane %v12562_v49, %v10139_v32  ;;  %v3263_v37 = vrot.slane %v12563_v54, %v10149_v43  ;;  %v3326_v58 = vsel %vm3222_vm3, %v3325_v52, %v3321_v22 }
 0x48e   :  { %v10154_v47 = vpop.permute.xlu0 %3125  ;;  %v10182_v56 = vsub.s32 %v3266_v18, %v10071_v28  ;;  %v3331_v11 = vsel %vm3229_vm4, %v3330_v1, %v3326_v58  ;;  %v3394_v57 = vrot.slane %v9838_v8, %v10076_v10  ;;  %v10189_v49 = vsub.s32 %v3273_v16, %v10071_v28 }
 0x48f   :  { %12558 = vst [vmem:[#allocation202_spill] sm:$0xff] %v10154_v47  ;;  %v10171_v47 = vpop.permute.xlu1 %3110  ;;  %v3251_v30 = vsel %vm12273_vm7, %v3249_v7, %v3244_v61  ;;  %v3336_v54 = vsel %vm3236_vm5, %v3335_v33, %v3331_v11  ;;  %v10194_v22 = vsub.s32 %v3280_v34, %v10071_v28  ;;  %v3340_v18 = vrot.slane %v9529_v15, %v10133_v45  ;;  %v12568_v61 = vld [vmem:[#allocation61_spill] sm:$0xff] }
 0x490   :  { %12564 = vst [vmem:[#allocation51_spill] sm:$0xff] %v10182_v56  ;;  %12565 = vst [vmem:[#allocation66_spill] sm:$0xff] %v10189_v49  ;;  %v3258_v52 = vsel %vm12272_vm8, %v3256_v39, %v3251_v30  ;;  %v3390_v1 = vrot.slane %v9815_v35, %v10083_v60  ;;  %v3294_v7 = vadd.s32 4294967184, %v10064_v26  ;;  %v10205_v16 = vsub.s32 %v3287_v36, %v10071_v28 }
 0x491   :  { %12566 = vst [vmem:[#allocation62_spill] sm:$0xff] %v10194_v22  ;;  %v3265_v8 = vsel %vm12271_vm9, %v3263_v37, %v3258_v52  ;;  %v3270_v39 = vrot.slane %v12568_v61, %v10182_v56  ;;  %v3341_v15 = vsel %vm3243_vm6, %v3340_v18, %v3336_v54  ;;  %v3350_v35 = vrot.slane %v9651_v5, %v10143_v0 }
 0x492   :  { %v10179_v12 = vpop.permute.xlu0 %3119  ;;  %12567 = vst [vmem:[#allocation54_spill] sm:$0xff] %v10205_v16  ;;  %v3395_v34 = vsel %vm3208_vm1, %v3394_v57, %v3390_v1  ;;  %v3301_v11 = vadd.s32 4294967176, %v10064_v26  ;;  %v3345_v37 = vrot.slane %v9550_v41, %v10139_v32  ;;  %v3355_v36 = vrot.slane %v9687_v2, %v10149_v43  ;;  %v12569_v57 = vld [vmem:[#allocation63_spill] sm:$0xff] }
 0x493   :  { %v10200_v58 = vpop.permute.xlu1 %3104  ;;  %v3399_v30 = vrot.slane %v9796_v25, %v10095_v23  ;;  %v3272_v52 = vsel %vm12270_vm10, %v3270_v39, %v3265_v8  ;;  %v3284_v5 = vrot.slane %v9465_v13, %v10194_v22  ;;  %v3277_v18 = vrot.slane %v12569_v57, %v10189_v49 }
 0x494   :  { %v3291_v41 = vrot.slane %v9496_v59, %v10205_v16  ;;  %v3346_v2 = vsel %vm12273_vm7, %v3345_v37, %v3341_v15  ;;  %v10236_v8 = vsub.s32 %v3294_v7, %v10071_v28  ;;  %v3404_v61 = vrot.slane %v9732_v51, %v10105_v40 }
 0x495   :  { %v3400_v1 = vsel %vm3215_vm2, %v3399_v30, %v3395_v34  ;;  %v3351_v13 = vsel %vm12272_vm8, %v3350_v35, %v3346_v2  ;;  %v3279_v39 = vsel %vm3278_vm11, %v3277_v18, %v3272_v52  ;;  %v10243_v57 = vsub.s32 %v3301_v11, %v10071_v28 }
 0x496   :  { %v10207_v33 = vpop.permute.xlu0 %3134  ;;  %12570 = vst [vmem:[#allocation65_spill] sm:$0xff] %v10236_v8  ;;  %v3356_v59 = vsel %vm12271_vm9, %v3355_v36, %v3351_v13  ;;  %v3286_v15 = vsel %vm3285_vm12, %v3284_v5, %v3279_v39  ;;  %v3360_v34 = vrot.slane %v9632_v17, %v10182_v56  ;;  %v3405_v7 = vsel %vm3222_vm3, %v3404_v61, %v3400_v1  ;;  %v12572_v17 = vld [vmem:[#allocation67_spill] sm:$0xff] }
 0x497   :  { %v10225_v54 = vpop.permute.xlu1 %3140  ;;  %12571 = vst [vmem:[#allocation61_spill] sm:$0xff] %v10243_v57  ;;  %v3414_v35 = vrot.slane %v9883_v6, %v10109_v62  ;;  %v3293_v51 = vsel %vm3292_vm13, %v3291_v41, %v3286_v15  ;;  %v3409_v11 = vrot.slane %v9801_v46, %v10100_v21  ;;  %v3469_v36 = vrot.slane %v9956_v31, %v10083_v60 }
 0x498   :  { %v3298_v52 = vrot.slane %v12572_v17, %v10236_v8  ;;  %v3361_v5 = vsel %vm12270_vm10, %v3360_v34, %v3356_v59  ;;  %v3370_v6 = vrot.slane %v9743_v24, %v10194_v22  ;;  %v3365_v18 = vrot.slane %v9668_v63, %v10189_v49 }
 0x499   :  { %v3375_v41 = vrot.slane %v9777_v14, %v10205_v16  ;;  %v3410_v46 = vsel %vm3229_vm4, %v3409_v11, %v3405_v7  ;;  %v3473_v31 = vrot.slane %v9943_v19, %v10076_v10  ;;  %v3305_v2 = vrot.slane %v9481_v4, %v10243_v57 }
 0x49a   :  { %v10233_v25 = vpop.permute.xlu0 %3128  ;;  %v3300_v1 = vsel %vm3299_vm14, %v3298_v52, %v3293_v51  ;;  %v3415_v13 = vsel %vm3236_vm5, %v3414_v35, %v3410_v46  ;;  %v3552_v24 = vrot.slane %v10028_v44, %v10076_v10  ;;  %v3366_v14 = vsel %vm3278_vm11, %v3365_v18, %v3361_v5  ;;  %v12575_v46 = vld [vmem:[#allocation145_spill] sm:$0xff] }
 0x49b   :  { %v10252_v37 = vpop.permute.xlu1 %3143  ;;  %v3419_v61 = vrot.slane %v9868_v20, %v10133_v45  ;;  %v3474_v19 = vsel %vm3208_vm1, %v3473_v31, %v3469_v36  ;;  %v3631_v4 = vrot.slane %v10058_v29, %v10076_v10  ;;  %v3380_v59 = vrot.slane %v9724_v53, %v10236_v8 }
 0x49c   :  { %v3371_v44 = vsel %vm3285_vm12, %v3370_v6, %v3366_v14  ;;  %v3478_v15 = vrot.slane %v9917_v55, %v10095_v23  ;;  %v3548_v34 = vrot.slane %v10001_v38, %v10083_v60  ;;  %v3429_v29 = vrot.slane %v9878_v48, %v10143_v0  ;;  %v12574_v6 = vld [vmem:[#allocation179_spill] sm:$0xff] }
 0x49d   :  { %v3376_v20 = vsel %vm3292_vm13, %v3375_v41, %v3371_v44  ;;  %v3420_v7 = vsel %vm3243_vm6, %v3419_v61, %v3415_v13  ;;  %v3627_v35 = vrot.slane %v10044_v3, %v10083_v60  ;;  %v3385_v53 = vrot.slane %v9762_v27, %v10243_v57  ;;  %v12573_v3 = vld [vmem:[#allocation156_spill] sm:$0xff] }
 0x49e   :  { %v10259_v30 = vpop.permute.xlu0 %3137  ;;  %v3424_v51 = vrot.slane %v9820_v42, %v10139_v32  ;;  %v3479_v55 = vsel %vm3215_vm2, %v3478_v15, %v3474_v19  ;;  %v3553_v38 = vsel %vm3208_vm1, %v3552_v24, %v3548_v34  ;;  %v3434_v36 = vrot.slane %v9899_v50, %v10149_v43  ;;  %v12576_v24 = vld [vmem:[#allocation149_spill] sm:$0xff]  ;;  %v12577_v61 = vld [vmem:[#allocation168_spill] sm:$0xff] }
 0x49f   :  { %v10279_v63 = vpop.permute.xlu1 %3158  ;;  %v3483_v48 = vrot.slane %v9931_v9, %v10105_v40  ;;  %v3557_v17 = vrot.slane %v12573_v3, %v10095_v23  ;;  %v3632_v27 = vsel %vm3208_vm1, %v3631_v4, %v3627_v35  ;;  %v3381_v42 = vsel %vm3299_vm14, %v3380_v59, %v3376_v20  ;;  %v12578_v59 = vld [vmem:[#allocation50_spill] sm:$0xff]  ;;  %v12579_v20 = vld [vmem:[#allocation171_spill] sm:$0xff] }
 0x4a0   :  { %v3425_v5 = vsel %vm12273_vm7, %v3424_v51, %v3420_v7  ;;  %v3636_v18 = vrot.slane %v12574_v6, %v10095_v23  ;;  %v3706_v50 = vrot.slane %v10200_v58, %v10083_v60  ;;  %v3488_v31 = vrot.slane %v12575_v46, %v10100_v21 }
 0x4a1   :  { %v3430_v41 = vsel %vm12272_vm8, %v3429_v29, %v3425_v5  ;;  %v3484_v9 = vsel %vm3222_vm3, %v3483_v48, %v3479_v55  ;;  %v3558_v13 = vsel %vm3215_vm2, %v3557_v17, %v3553_v38  ;;  %v3493_v14 = vrot.slane %v12576_v24, %v10109_v62  ;;  %v12580_v29 = vld [vmem:[#allocation181_spill] sm:$0xff]  ;;  %v12581_v55 = vld [vmem:[#allocation118_spill] sm:$0xff] }
 0x4a2   :  { %v10287_v39 = vpop.permute.xlu0 %3131  ;;  %v3562_v19 = vrot.slane %v12577_v61, %v10105_v40  ;;  %v3637_v4 = vsel %vm3215_vm2, %v3636_v18, %v3632_v27  ;;  %v3710_v58 = vrot.slane %v12578_v59, %v10076_v10  ;;  %v3386_v15 = vsel %vm3306_vm15, %v3385_v53, %v3381_v42  ;;  %v12582_v18 = vld [vmem:[#allocation180_spill] sm:$0xff]  ;;  %v12585_v24 = vld [vmem:[#allocation129_spill] sm:$0xff]  ;;  %v12587_v59 = vld [vmem:[#allocation191_spill] sm:$0xff] }
 0x4a3   :  { %v10308_v11 = vpop.permute.xlu1 %3161  ;;  %v3435_v34 = vsel %vm12271_vm9, %v3434_v36, %v3430_v41  ;;  %v3567_v7 = vrot.slane %v12579_v20, %v10100_v21  ;;  %v3641_v35 = vrot.slane %v12580_v29, %v10105_v40  ;;  %v3439_v38 = vrot.slane %v12581_v55, %v10182_v56  ;;  %v12588_v20 = vld [vmem:[#allocation183_spill] sm:$0xff] }
 0x4a4   :  { %v3563_v48 = vsel %vm3222_vm3, %v3562_v19, %v3558_v13  ;;  %v3711_v3 = vsel %vm3208_vm1, %v3710_v58, %v3706_v50  ;;  %v3307_v17 = vsel %vm3306_vm15, %v3305_v2, %v3300_v1  ;;  %v3489_v53 = vsel %vm3229_vm4, %v3488_v31, %v3484_v9  ;;  %v12583_v2 = vld [vmem:[#allocation124_spill] sm:$0xff] }
 0x4a5   :  { %v3642_v36 = vsel %vm3222_vm3, %v3641_v35, %v3637_v4  ;;  %v3715_v27 = vrot.slane %v10171_v47, %v10095_v23  ;;  %v10355_v42 = vsel %vm12269_vm0, %v3386_v15, %v3307_v17  ;;  %v3440_v5 = vsel %vm12270_vm10, %v3439_v38, %v3435_v34  ;;  %v12584_v9 = vld [vmem:[#allocation140_spill] sm:$0xff]  ;;  %v12590_v38 = vld [vmem:[#allocation143_spill] sm:$0xff] }
 0x4a6   :  { %v10317_v52 = vpop.permute.xlu0 %3146  ;;  %v3494_v6 = vsel %vm3236_vm5, %v3493_v14, %v3489_v53  ;;  %v3646_v41 = vrot.slane %v12582_v18, %v10100_v21  ;;  %v3444_v1 = vrot.slane %v12583_v2, %v10189_v49  ;;  %v3498_v46 = vrot.slane %v12584_v9, %v10133_v45  ;;  %v12586_v14 = vld [vmem:[#allocation167_spill] sm:$0xff]  ;;  %v12589_v35 = vld [vmem:[#allocation132_spill] sm:$0xff] }
 0x4a7   :  { %v3156_v44 = vpop.permute.xlu1 %3155  ;;  %v3568_v47 = vsel %vm3229_vm4, %v3567_v7, %v3563_v48  ;;  %v3716_v31 = vsel %vm3215_vm2, %v3715_v27, %v3711_v3  ;;  %v3459_v61 = vrot.slane %v12585_v24, %v10236_v8  ;;  %v3572_v19 = vrot.slane %v12586_v14, %v10109_v62  ;;  %v12593_v2 = vld [vmem:[#allocation139_spill] sm:$0xff]  ;;  %v12611_v24 = vld [vmem:[#allocation172_spill] sm:$0xff] }
 0x4a8   :  { %v3647_v4 = vsel %vm3229_vm4, %v3646_v41, %v3642_v36  ;;  %v3720_v58 = vrot.slane %v12587_v59, %v10105_v40  ;;  %v3445_v15 = vsel %vm3278_vm11, %v3444_v1, %v3440_v5  ;;  %v3499_v34 = vsel %vm3243_vm6, %v3498_v46, %v3494_v6  ;;  %v12591_v36 = vld [vmem:[#allocation161_spill] sm:$0xff]  ;;  %v12594_v46 = vld [vmem:[#allocation178_spill] sm:$0xff] }
 0x4a9   :  { %v3651_v7 = vrot.slane %v12588_v20, %v10109_v62  ;;  %v3449_v55 = vrot.slane %v12589_v35, %v10194_v22  ;;  %v3503_v48 = vrot.slane %v12590_v38, %v10139_v32  ;;  %v3573_v3 = vsel %vm3236_vm5, %v3572_v19, %v3568_v47  ;;  %v12592_v6 = vld [vmem:[#allocation53_spill] sm:$0xff]  ;;  %v12596_v59 = vld [vmem:[#allocation158_spill] sm:$0xff] }
 0x4aa   :  { %v10343_v51 = vpop.permute.xlu0 %3149  ;;  %v3721_v17 = vsel %vm3222_vm3, %v3720_v58, %v3716_v31  ;;  %v3577_v27 = vrot.slane %v12591_v36, %v10133_v45  ;;  %v3725_v18 = vrot.slane %v12592_v6, %v10100_v21  ;;  %v3789_v41 = vrot.slane %v3156_v44, %v10076_v10  ;;  %v12600_v6 = vld [vmem:[#allocation174_spill] sm:$0xff] }
 0x4ab   :  { %v10361_v50 = vpop.permute.xlu1 %3170  ;;  %v3652_v5 = vsel %vm3236_vm5, %v3651_v7, %v3647_v4  ;;  %v3454_v1 = vrot.slane %v12593_v2, %v10205_v16  ;;  %v3504_v9 = vsel %vm12273_vm7, %v3503_v48, %v3499_v34  ;;  %v3656_v47 = vrot.slane %v12594_v46, %v10133_v45  ;;  %v12597_v34 = vld [vmem:[#allocation164_spill] sm:$0xff]  ;;  %v12602_v2 = vld [vmem:[#allocation198_spill] sm:$0xff] }
 0x4ac   :  { %v3730_v31 = vrot.slane %v10179_v12, %v10109_v62  ;;  %v3578_v19 = vsel %vm3243_vm6, %v3577_v27, %v3573_v3  ;;  %v3726_v4 = vsel %vm3229_vm4, %v3725_v18, %v3721_v17  ;;  %v3513_v58 = vrot.slane %v12596_v59, %v10149_v43  ;;  %v12598_v3 = vld [vmem:[#allocation170_spill] sm:$0xff] }
 0x4ad   :  { %v3582_v20 = vrot.slane %v12597_v34, %v10139_v32  ;;  %v3657_v7 = vsel %vm3243_vm6, %v3656_v47, %v3652_v5  ;;  %v3794_v12 = vrot.slane %v10279_v63, %v10095_v23  ;;  %v3450_v38 = vsel %vm3285_vm12, %v3449_v55, %v3445_v15  ;;  %v12599_v17 = vld [vmem:[#allocation182_spill] sm:$0xff]  ;;  %v12601_v15 = vld [vmem:[#allocation195_spill] sm:$0xff]  ;;  %v12603_v47 = vld [vmem:[#allocation136_spill] sm:$0xff] }
 0x4ae   :  { %v3153_v13 = vpop.permute.xlu0 %3152  ;;  %v3661_v36 = vrot.slane %v12599_v17, %v10139_v32  ;;  %v3592_v5 = vrot.slane %v12600_v6, %v10149_v43  ;;  %v3731_v18 = vsel %vm3236_vm5, %v3730_v31, %v3726_v4  ;;  %v3671_v55 = vrot.slane %v12601_v15, %v10149_v43  ;;  %v12608_v6 = vld [vmem:[#allocation186_spill] sm:$0xff] }
 0x4af   :  { %v3785_v29 = vrot.slane %v3153_v13, %v10083_v60  ;;  %v3165_v53 = vpop.permute.xlu1 %3164  ;;  %v12595_v13 = vld [vmem:[#allocation151_spill] sm:$0xff]  ;;  %v3583_v27 = vsel %vm12273_vm7, %v3582_v20, %v3578_v19  ;;  %v3799_v46 = vrot.slane %v10308_v11, %v10105_v40  ;;  %v12604_v19 = vld [vmem:[#allocation189_spill] sm:$0xff]  ;;  %v3745_v20 = vrot.slane %v10233_v25, %v10143_v0 }
 0x4b0   :  { %v3508_v14 = vrot.slane %v12595_v13, %v10143_v0  ;;  %v3464_v13 = vrot.slane %v12603_v47, %v10243_v57  ;;  %v3666_v4 = vrot.slane %v12604_v19, %v10143_v0  ;;  %vm12274_vm0 = vcmask 1042434  }
 0x4b1   :  { %v3790_v44 = vsel %vm3208_vm1, %v3789_v41, %v3785_v29  ;;  %v3587_v29 = vrot.slane %v12598_v3, %v10143_v0  ;;  %v3662_v41 = vsel %vm12273_vm7, %v3661_v36, %v3657_v7  ;;  %v12607_v36 = vld [vmem:[#allocation169_spill] sm:$0xff] }
 0x4b2   :  { %v3509_v48 = vsel %vm12272_vm8, %v3508_v14, %v3504_v9  ;;  %v3795_v63 = vsel %vm3215_vm2, %v3794_v12, %v3790_v44  ;;  %v3735_v9 = vrot.slane %v12602_v2, %v10133_v45  ;;  %v3455_v14 = vsel %vm3292_vm13, %v3454_v1, %v3450_v38  ;;  %v12605_v12 = vld [vmem:[#allocation202_spill] sm:$0xff] }
 0x4b3   :  { %v10412_v35 = vpop.permute.xlu1 %3173  ;;  %v3514_v31 = vsel %vm12271_vm9, %v3513_v58, %v3509_v48  ;;  %v3588_v59 = vsel %vm12272_vm8, %v3587_v29, %v3583_v27  ;;  %v3800_v11 = vsel %vm3222_vm3, %v3799_v46, %v3795_v63  ;;  %v3667_v7 = vsel %vm12272_vm8, %v3666_v4, %v3662_v41  ;;  %v12606_v48 = vld [vmem:[#allocation147_spill] sm:$0xff] }
 0x4b4   :  { %v3736_v34 = vsel %vm3243_vm6, %v3735_v9, %v3731_v18  ;;  %v3740_v1 = vrot.slane %v12605_v12, %v10139_v32  ;;  %v3750_v58 = vrot.slane %v10287_v39, %v10149_v43  ;;  %v3804_v38 = vrot.slane %v3165_v53, %v10100_v21  ;;  %v12609_v41 = vld [vmem:[#allocation155_spill] sm:$0xff] }
 0x4b5   :  { %v3518_v3 = vrot.slane %v12606_v48, %v10182_v56  ;;  %v3593_v29 = vsel %vm12271_vm9, %v3592_v5, %v3588_v59  ;;  %v3672_v17 = vsel %vm12271_vm9, %v3671_v55, %v3667_v7  ;;  %v3597_v27 = vrot.slane %v12607_v36, %v10182_v56  ;;  %v12610_v9 = vld [vmem:[#allocation163_spill] sm:$0xff] }
 0x4b6   :  { %v3676_v18 = vrot.slane %v12608_v6, %v10182_v56  ;;  %v3741_v63 = vsel %vm12273_vm7, %v3740_v1, %v3736_v34  ;;  %v3805_v39 = vsel %vm3229_vm4, %v3804_v38, %v3800_v11  ;;  %v3460_v5 = vsel %vm3299_vm14, %v3459_v61, %v3455_v14  ;;  %v12612_v61 = vld [vmem:[#allocation193_spill] sm:$0xff]  ;;  %v12613_v34 = vld [vmem:[#allocation166_spill] sm:$0xff]  ;;  %v12614_v11 = vld [vmem:[#allocation176_spill] sm:$0xff]  ;;  %v3186_v38 = vpop.permute.xlu0 %3185 }
 0x4b7   :  { %v3168_v44 = vpop.permute.xlu1 %3167  ;;  %v3523_v15 = vrot.slane %v12609_v41, %v10189_v49  ;;  %v3519_v55 = vsel %vm12270_vm10, %v3518_v3, %v3514_v31  ;;  %v3746_v2 = vsel %vm12272_vm8, %v3745_v20, %v3741_v63  ;;  %v3528_v46 = vrot.slane %v12610_v9, %v10194_v22  ;;  %v12615_v12 = vld [vmem:[#allocation47_spill] sm:$0xff]  ;;  %v12617_v63 = vld [vmem:[#allocation153_spill] sm:$0xff] }
 0x4b8   :  { %v3809_v25 = vrot.slane %v3168_v44, %v10109_v62  ;;  %v3598_v47 = vsel %vm12270_vm10, %v3597_v27, %v3593_v29  ;;  %v3677_v19 = vsel %vm12270_vm10, %v3676_v18, %v3672_v17  ;;  %v3751_v4 = vsel %vm12271_vm9, %v3750_v58, %v3746_v2 }
 0x4b9   :  { %v3602_v44 = vrot.slane %v12611_v24, %v10189_v49  ;;  %v3681_v14 = vrot.slane %v12612_v61, %v10189_v49  ;;  %v3755_v31 = vrot.slane %v10207_v33, %v10182_v56  ;;  %v3533_v20 = vrot.slane %v12613_v34, %v10205_v16 }
 0x4ba   :  { %v3810_v59 = vsel %vm3236_vm5, %v3809_v25, %v3805_v39  ;;  %v3607_v7 = vrot.slane %v12614_v11, %v10194_v22  ;;  %v3686_v1 = vrot.slane %v12615_v12, %v10194_v22  ;;  %v3814_v58 = vrot.slane %v10361_v50, %v10133_v45  ;;  %v12616_v25 = vld [vmem:[#allocation177_spill] sm:$0xff]  ;;  %v12621_v12 = vld [vmem:[#allocation184_spill] sm:$0xff] }
 0x4bb   :  { %v3183_v53 = vpop.permute.xlu1 %3182  ;;  %v3524_v3 = vsel %vm3278_vm11, %v3523_v15, %v3519_v55  ;;  %v3603_v33 = vsel %vm3278_vm11, %v3602_v44, %v3598_v47  ;;  %v3682_v29 = vsel %vm3278_vm11, %v3681_v14, %v3677_v19  ;;  %v3756_v17 = vsel %vm12270_vm10, %v3755_v31, %v3751_v4  ;;  %v12618_v19 = vld [vmem:[#allocation187_spill] sm:$0xff]  ;;  %v3189_v14 = vpop.permute.xlu0 %3188 }
 0x4bc   :  { %v3612_v36 = vrot.slane %v12616_v25, %v10205_v16  ;;  %v3760_v27 = vrot.slane %v10259_v30, %v10189_v49  ;;  %v3815_v6 = vsel %vm3243_vm6, %v3814_v58, %v3810_v59  ;;  %v3465_v18 = vsel %vm3306_vm15, %v3464_v13, %v3460_v5  ;;  %v12620_v59 = vld [vmem:[#allocation173_spill] sm:$0xff] }
 0x4bd   :  { %v3543_v39 = vrot.slane %v12617_v63, %v10243_v57  ;;  %v3529_v41 = vsel %vm3285_vm12, %v3528_v46, %v3524_v3  ;;  %v3819_v15 = vrot.slane %v10412_v35, %v10139_v32  ;;  %v3608_v2 = vsel %vm3285_vm12, %v3607_v7, %v3603_v33  ;;  %v12619_v35 = vld [vmem:[#allocation160_spill] sm:$0xff] }
 0x4be   :  { %v3534_v55 = vsel %vm3292_vm13, %v3533_v20, %v3529_v41  ;;  %v3687_v30 = vsel %vm3285_vm12, %v3686_v1, %v3682_v29  ;;  %v3761_v9 = vsel %vm3278_vm11, %v3760_v27, %v3756_v17  ;;  %v3691_v13 = vrot.slane %v12618_v19, %v10205_v16  ;;  %v12622_v33 = vld [vmem:[#allocation200_spill] sm:$0xff] }
 0x4bf   :  { %v3177_v48 = vpop.permute.xlu1 %3176  ;;  %v3765_v5 = vrot.slane %v10225_v54, %v10194_v22  ;;  %v3820_v46 = vsel %vm12273_vm7, %v3819_v15, %v3815_v6  ;;  %v3538_v24 = vrot.slane %v12619_v35, %v10236_v8  ;;  %v3613_v44 = vsel %vm3292_vm13, %v3612_v36, %v3608_v2  ;;  %v12623_v36 = vld [vmem:[#allocation175_spill] sm:$0xff] }
 0x4c0   :  { %v3824_v50 = vrot.slane %v3177_v48, %v10143_v0  ;;  %v3834_v61 = vrot.slane %v3183_v53, %v10182_v56  ;;  %v3617_v34 = vrot.slane %v12620_v59, %v10236_v8  ;;  %v3692_v20 = vsel %vm3292_vm13, %v3691_v13, %v3687_v30 }
 0x4c1   :  { %v3766_v54 = vsel %vm3285_vm12, %v3765_v5, %v3761_v9  ;;  %v3539_v7 = vsel %vm3299_vm14, %v3538_v24, %v3534_v55  ;;  %v3696_v1 = vrot.slane %v12621_v12, %v10236_v8  ;;  %v3770_v53 = vrot.slane %v10252_v37, %v10205_v16  ;;  %v3198_v55 = vpop.permute.xlu0 %3197 }
 0x4c2   :  { %v3825_v31 = vsel %vm12272_vm8, %v3824_v50, %v3820_v46  ;;  %v3618_v3 = vsel %vm3299_vm14, %v3617_v34, %v3613_v44  ;;  %v3701_v29 = vrot.slane %v12622_v33, %v10243_v57  ;;  %v3775_v17 = vrot.slane %v10317_v52, %v10236_v8 }
 0x4c3   :  { %v3180_v47 = vpop.permute.xlu1 %3179  ;;  %v3839_v25 = vrot.slane %v3186_v38, %v10189_v49  ;;  %v3622_v27 = vrot.slane %v12623_v36, %v10243_v57  ;;  %v3697_v6 = vsel %vm3299_vm14, %v3696_v1, %v3692_v20  ;;  %v3771_v37 = vsel %vm3292_vm13, %v3770_v53, %v3766_v54 }
 0x4c4   :  { %v3829_v4 = vrot.slane %v3180_v47, %v10149_v43  ;;  %v3780_v50 = vrot.slane %v10343_v51, %v10243_v57  ;;  %v3544_v63 = vsel %vm3306_vm15, %v3543_v39, %v3539_v7  ;;  %v3864_v52 = vsel %vm12274_vm0, %v3465_v18, %v10355_v42 }
 0x4c5   :  { %v3623_v38 = vsel %vm3306_vm15, %v3622_v27, %v3618_v3  ;;  %v3844_v15 = vrot.slane %v3189_v14, %v10194_v22  ;;  %vm3869_vm8 = vcmask 1045509   ;;  %v3702_v30 = vsel %vm3306_vm15, %v3701_v29, %v3697_v6 }
 0x4c6   :  { %v3830_v11 = vsel %vm12271_vm9, %v3829_v4, %v3825_v31  ;;  %vm3867_vm9 = vcmask 1044484   ;;  %v3776_v51 = vsel %vm3299_vm14, %v3775_v17, %v3771_v37  ;;  %vm3871_vm7 = vcmask 1046534  }
 0x4c7   :  { %v3835_v58 = vsel %vm12270_vm10, %v3834_v61, %v3830_v11  ;;  %v3195_v48 = vpop.permute.xlu1 %3194  ;;  %vm12275_vm10 = vcmask 1043459   ;;  %v3781_v9 = vsel %vm3306_vm15, %v3780_v50, %v3776_v51  ;;  %v3859_v19 = vrot.slane %v3198_v55, %v10243_v57 }
 0x4c8   :  { %v3840_v41 = vsel %vm3278_vm11, %v3839_v25, %v3835_v58  ;;  %v3854_v47 = vrot.slane %v3195_v48, %v10236_v8  ;;  %v3866_v18 = vsel %vm12275_vm10, %v3544_v63, %v3864_v52  ;;  %vm12328_vm0 = vcmask 1047559  }
 0x4c9   :  { %v3845_v42 = vsel %vm3285_vm12, %v3844_v15, %v3840_v41  ;;  %v3868_v5 = vsel %vm3867_vm9, %v3623_v38, %v3866_v18  ;;  %vm12329_vm10 = vcmp.lt.s32.totalorder %v10064_v26, 127  ;;  %v10569_v61 = vsub.s32 0, %v10071_v28 }
 0x4ca   :  { %v3870_v4 = vsel %vm3869_vm8, %v3702_v30, %v3868_v5  ;;  %v10574_v59 = vsub.s32 1, %v10071_v28  ;;  %v10587_v54 = vsub.s32 2, %v10071_v28  ;;  %v4087_v7 = vsub.s32 3, %v10071_v28 }
 0x4cb   :  { %v3192_v2 = vpop.permute.xlu1 %3191  ;;  %v3872_v24 = vsel %vm3871_vm7, %v3781_v9, %v3870_v4  ;;  %12625 = vst [vmem:[#allocation67_spill] sm:$0xff] %v10569_v61  ;;  %v4154_v1 = vsub.s32 4, %v10071_v28  ;;  %v4221_v58 = vsub.s32 5, %v10071_v28  ;;  %v4288_v3 = vsub.s32 6, %v10071_v28 }
 0x4cc   :  { %v3849_v39 = vrot.slane %v3192_v2, %v10205_v16  ;;  %12626 = vst [vmem:[#allocation156_spill] sm:$0xff] %v10574_v59  ;;  %12627 = vst [vmem:[#allocation179_spill] sm:$0xff] %v10587_v54  ;;  %v4355_v29 = vsub.s32 7, %v10071_v28 }
 0x4ce   :  { %v3850_v13 = vsel %vm3292_vm13, %v3849_v39, %v3845_v42 }
 0x4cf   :  { %v3855_v46 = vsel %vm3299_vm14, %v3854_v47, %v3850_v13 }
 0x4d0   :  { %v3860_v35 = vsel %vm3306_vm15, %v3859_v19, %v3855_v46 }
 0x4d1   :  { %v10563_v44 = vsel %vm12328_vm0, %v3860_v35, %v3872_v24  ;;  %vm12833_vm0 = vcmask 523712  }
 0x4d2   :  { %12624 = vst [vmem:[#allocation63_spill] sm:$0xff] %v10563_v44  ;;  %3876 = vrot.lane.b32.xlu1 %v10563_v44, %s8269_s5 }
 0x544   :  { %v3877_v14 = vpop.permute.xlu1 %3876 }
 0x545   :  { %v3878_v31 = vsel %vm12329_vm10, %v3877_v14, 0.0  ;;  %vm12834_vm10 = vcmask 589312  }
 0x546   :  { %v10577_v34 = vrot.slane %v3878_v31, %v10569_v61  ;;  %v10582_v20 = vrot.slane %v3878_v31, %v10574_v59  ;;  %v10592_v11 = vrot.slane %v3878_v31, %v10587_v54  ;;  %v10599_v12 = vrot.slane %v3878_v31, %v4087_v7 }
 0x547   :  { %v10608_v53 = vrot.slane %v3878_v31, %v4154_v1  ;;  %v10619_v48 = vrot.slane %v3878_v31, %v4221_v58  ;;  %v10630_v33 = vrot.slane %v3878_v31, %v4288_v3  ;;  %v10641_v17 = vrot.slane %v3878_v31, %v4355_v29 }
 0x548   :  { %3893 = vbcast.lane.b32.xlu1 %v10577_v34, 264  ;;  %3889 = vbcast.lane.b32.xlu0 %v10577_v34, 256 }
 0x54c   :  { %3960 = vbcast.lane.b32.xlu1 %v10582_v20, 264  ;;  %3956 = vbcast.lane.b32.xlu0 %v10582_v20, 256 }
 0x550   :  { %3964 = vbcast.lane.b32.xlu1 %v10582_v20, 272  ;;  %3897 = vbcast.lane.b32.xlu0 %v10577_v34, 272 }
 0x554   :  { %4027 = vbcast.lane.b32.xlu1 %v10592_v11, 264  ;;  %4023 = vbcast.lane.b32.xlu0 %v10592_v11, 256 }
 0x558   :  { %3968 = vbcast.lane.b32.xlu1 %v10582_v20, 280  ;;  %3901 = vbcast.lane.b32.xlu0 %v10577_v34, 280 }
 0x55c   :  { %4090 = vbcast.lane.b32.xlu1 %v10599_v12, 256  ;;  %4031 = vbcast.lane.b32.xlu0 %v10592_v11, 272 }
 0x560   :  { %3905 = vbcast.lane.b32.xlu1 %v10577_v34, 288  ;;  %4094 = vbcast.lane.b32.xlu0 %v10599_v12, 264 }
 0x564   :  { %4035 = vbcast.lane.b32.xlu1 %v10592_v11, 280  ;;  %3972 = vbcast.lane.b32.xlu0 %v10582_v20, 288 }
 0x568   :  { %4157 = vbcast.lane.b32.xlu1 %v10608_v53, 256  ;;  %4098 = vbcast.lane.b32.xlu0 %v10599_v12, 272 }
 0x56c   :  { %3909 = vbcast.lane.b32.xlu1 %v10577_v34, 296  ;;  %4161 = vbcast.lane.b32.xlu0 %v10608_v53, 264 }
 0x570   :  { %4039 = vbcast.lane.b32.xlu1 %v10592_v11, 288  ;;  %3976 = vbcast.lane.b32.xlu0 %v10582_v20, 296 }
 0x574   :  { %4165 = vbcast.lane.b32.xlu1 %v10608_v53, 272  ;;  %4102 = vbcast.lane.b32.xlu0 %v10599_v12, 280 }
 0x578   :  { %4228 = vbcast.lane.b32.xlu1 %v10619_v48, 264  ;;  %4224 = vbcast.lane.b32.xlu0 %v10619_v48, 256 }
 0x57c   :  { %3980 = vbcast.lane.b32.xlu1 %v10582_v20, 304  ;;  %3913 = vbcast.lane.b32.xlu0 %v10577_v34, 304 }
 0x580   :  { %4106 = vbcast.lane.b32.xlu1 %v10599_v12, 288  ;;  %4043 = vbcast.lane.b32.xlu0 %v10592_v11, 296 }
 0x584   :  { %4232 = vbcast.lane.b32.xlu1 %v10619_v48, 272  ;;  %4169 = vbcast.lane.b32.xlu0 %v10608_v53, 280 }
 0x588   :  { %4295 = vbcast.lane.b32.xlu1 %v10630_v33, 264  ;;  %4291 = vbcast.lane.b32.xlu0 %v10630_v33, 256 }
 0x58c   :  { %3984 = vbcast.lane.b32.xlu1 %v10582_v20, 312  ;;  %3917 = vbcast.lane.b32.xlu0 %v10577_v34, 312 }
 0x590   :  { %4110 = vbcast.lane.b32.xlu1 %v10599_v12, 296  ;;  %4047 = vbcast.lane.b32.xlu0 %v10592_v11, 304 }
 0x594   :  { %4236 = vbcast.lane.b32.xlu1 %v10619_v48, 280  ;;  %4173 = vbcast.lane.b32.xlu0 %v10608_v53, 288 }
 0x598   :  { %4358 = vbcast.lane.b32.xlu1 %v10641_v17, 256  ;;  %4299 = vbcast.lane.b32.xlu0 %v10630_v33, 272 }
 0x59c   :  { %3921 = vbcast.lane.b32.xlu1 %v10577_v34, 320  ;;  %4362 = vbcast.lane.b32.xlu0 %v10641_v17, 264 }
 0x5a0   :  { %4051 = vbcast.lane.b32.xlu1 %v10592_v11, 312  ;;  %3988 = vbcast.lane.b32.xlu0 %v10582_v20, 320 }
 0x5a4   :  { %4177 = vbcast.lane.b32.xlu1 %v10608_v53, 296  ;;  %4114 = vbcast.lane.b32.xlu0 %v10599_v12, 304 }
 0x5a8   :  { %4303 = vbcast.lane.b32.xlu1 %v10630_v33, 280  ;;  %4240 = vbcast.lane.b32.xlu0 %v10619_v48, 288 }
 0x5ac   :  { %3925 = vbcast.lane.b32.xlu1 %v10577_v34, 328  ;;  %4366 = vbcast.lane.b32.xlu0 %v10641_v17, 272 }
 0x5b0   :  { %4055 = vbcast.lane.b32.xlu1 %v10592_v11, 320  ;;  %3992 = vbcast.lane.b32.xlu0 %v10582_v20, 328 }
 0x5b4   :  { %4181 = vbcast.lane.b32.xlu1 %v10608_v53, 304  ;;  %4118 = vbcast.lane.b32.xlu0 %v10599_v12, 312 }
 0x5b8   :  { %4307 = vbcast.lane.b32.xlu1 %v10630_v33, 288  ;;  %4244 = vbcast.lane.b32.xlu0 %v10619_v48, 296 }
 0x5ba   :  { %v10661_v25 = vpop.permute.xlu1 %3893  ;;  %v10663_v36 = vpop.permute.xlu0 %3889 }
 0x5bc   :  { %3929 = vbcast.lane.b32.xlu1 %v10577_v34, 336  ;;  %4370 = vbcast.lane.b32.xlu0 %v10641_v17, 280 }
 0x5be   :  { %v10667_v27 = vpop.permute.xlu1 %3960  ;;  %v10669_v6 = vpop.permute.xlu0 %3956 }
 0x5c0   :  { %4059 = vbcast.lane.b32.xlu1 %v10592_v11, 328  ;;  %3996 = vbcast.lane.b32.xlu0 %v10582_v20, 336 }
 0x5c2   :  { %v10673_v37 = vpop.permute.xlu1 %3964  ;;  %v10675_v50 = vpop.permute.xlu0 %3897 }
 0x5c4   :  { %4185 = vbcast.lane.b32.xlu1 %v10608_v53, 312  ;;  %4122 = vbcast.lane.b32.xlu0 %v10599_v12, 320 }
 0x5c6   :  { %v10679_v63 = vpop.permute.xlu1 %4027  ;;  %v10681_v41 = vpop.permute.xlu0 %4023 }
 0x5c8   :  { %4311 = vbcast.lane.b32.xlu1 %v10630_v33, 296  ;;  %4248 = vbcast.lane.b32.xlu0 %v10619_v48, 304 }
 0x5ca   :  { %v10685_v52 = vpop.permute.xlu1 %3968  ;;  %v10687_v38 = vpop.permute.xlu0 %3901 }
 0x5cc   :  { %3933 = vbcast.lane.b32.xlu1 %v10577_v34, 344  ;;  %4374 = vbcast.lane.b32.xlu0 %v10641_v17, 288 }
 0x5ce   :  { %v10691_v15 = vpop.permute.xlu1 %4090  ;;  %v10693_v55 = vpop.permute.xlu0 %4031 }
 0x5d0   :  { %4063 = vbcast.lane.b32.xlu1 %v10592_v11, 336  ;;  %4000 = vbcast.lane.b32.xlu0 %v10582_v20, 344 }
 0x5d2   :  { %v10697_v2 = vpop.permute.xlu1 %3905  ;;  %v10699_v30 = vpop.permute.xlu0 %4094 }
 0x5d4   :  { %4189 = vbcast.lane.b32.xlu1 %v10608_v53, 320  ;;  %4126 = vbcast.lane.b32.xlu0 %v10599_v12, 328 }
 0x5d6   :  { %v10703_v51 = vpop.permute.xlu1 %4035  ;;  %v10705_v39 = vpop.permute.xlu0 %3972 }
 0x5d8   :  { %4315 = vbcast.lane.b32.xlu1 %v10630_v33, 304  ;;  %4252 = vbcast.lane.b32.xlu0 %v10619_v48, 312 }
 0x5da   :  { %v10709_v9 = vpop.permute.xlu1 %4157  ;;  %v10711_v47 = vpop.permute.xlu0 %4098 }
 0x5dc   :  { %3937 = vbcast.lane.b32.xlu1 %v10577_v34, 352  ;;  %4378 = vbcast.lane.b32.xlu0 %v10641_v17, 296 }
 0x5de   :  { %v10715_v42 = vpop.permute.xlu1 %3909  ;;  %v10717_v18 = vpop.permute.xlu0 %4161 }
 0x5e0   :  { %4067 = vbcast.lane.b32.xlu1 %v10592_v11, 344  ;;  %4004 = vbcast.lane.b32.xlu0 %v10582_v20, 352 }
 0x5e2   :  { %v10721_v19 = vpop.permute.xlu1 %4039  ;;  %v10723_v13 = vpop.permute.xlu0 %3976 }
 0x5e4   :  { %4193 = vbcast.lane.b32.xlu1 %v10608_v53, 328  ;;  %4130 = vbcast.lane.b32.xlu0 %v10599_v12, 336 }
 0x5e6   :  { %v10727_v5 = vpop.permute.xlu1 %4165  ;;  %v10729_v46 = vpop.permute.xlu0 %4102 }
 0x5e8   :  { %4319 = vbcast.lane.b32.xlu1 %v10630_v33, 312  ;;  %4256 = vbcast.lane.b32.xlu0 %v10619_v48, 320 }
 0x5ea   :  { %v10733_v4 = vpop.permute.xlu1 %4228  ;;  %v10735_v35 = vpop.permute.xlu0 %4224 }
 0x5ec   :  { %3941 = vbcast.lane.b32.xlu1 %v10577_v34, 360  ;;  %4382 = vbcast.lane.b32.xlu0 %v10641_v17, 304 }
 0x5ee   :  { %v10739_v24 = vpop.permute.xlu1 %3980  ;;  %v10741_v14 = vpop.permute.xlu0 %3913 }
 0x5f0   :  { %4071 = vbcast.lane.b32.xlu1 %v10592_v11, 352  ;;  %4008 = vbcast.lane.b32.xlu0 %v10582_v20, 360 }
 0x5f2   :  { %v10745_v31 = vpop.permute.xlu1 %4106  ;;  %v10747_v7 = vpop.permute.xlu0 %4043 }
 0x5f4   :  { %4197 = vbcast.lane.b32.xlu1 %v10608_v53, 336  ;;  %4134 = vbcast.lane.b32.xlu0 %v10599_v12, 344 }
 0x5f6   :  { %v10751_v1 = vpop.permute.xlu1 %4232  ;;  %v10753_v58 = vpop.permute.xlu0 %4169 }
 0x5f8   :  { %4323 = vbcast.lane.b32.xlu1 %v10630_v33, 320  ;;  %4260 = vbcast.lane.b32.xlu0 %v10619_v48, 328 }
 0x5fa   :  { %v10757_v3 = vpop.permute.xlu1 %4295  ;;  %v10759_v29 = vpop.permute.xlu0 %4291 }
 0x5fc   :  { %3945 = vbcast.lane.b32.xlu1 %v10577_v34, 368  ;;  %4386 = vbcast.lane.b32.xlu0 %v10641_v17, 312 }
 0x5fe   :  { %v10763_v59 = vpop.permute.xlu1 %3984  ;;  %v10765_v54 = vpop.permute.xlu0 %3917 }
 0x600   :  { %4075 = vbcast.lane.b32.xlu1 %v10592_v11, 360  ;;  %4012 = vbcast.lane.b32.xlu0 %v10582_v20, 368 }
 0x602   :  { %v10769_v61 = vpop.permute.xlu1 %4110  ;;  %v10771_v28 = vpop.permute.xlu0 %4047 }
 0x604   :  { %4201 = vbcast.lane.b32.xlu1 %v10608_v53, 344  ;;  %4138 = vbcast.lane.b32.xlu0 %v10599_v12, 352 }
 0x606   :  { %v10775_v44 = vpop.permute.xlu1 %4236  ;;  %v10777_v26 = vpop.permute.xlu0 %4173 }
 0x608   :  { %4327 = vbcast.lane.b32.xlu1 %v10630_v33, 328  ;;  %4264 = vbcast.lane.b32.xlu0 %v10619_v48, 336 }
 0x60a   :  { %v10781_v57 = vpop.permute.xlu1 %4358  ;;  %v10783_v8 = vpop.permute.xlu0 %4299 }
 0x60c   :  { %3949 = vbcast.lane.b32.xlu1 %v10577_v34, 376  ;;  %4390 = vbcast.lane.b32.xlu0 %v10641_v17, 320 }
 0x60e   :  { %v10787_v16 = vpop.permute.xlu1 %3921  ;;  %v10789_v22 = vpop.permute.xlu0 %4362 }
 0x610   :  { %4079 = vbcast.lane.b32.xlu1 %v10592_v11, 368  ;;  %4016 = vbcast.lane.b32.xlu0 %v10582_v20, 376 }
 0x612   :  { %v10793_v49 = vpop.permute.xlu1 %4051  ;;  %v10795_v56 = vpop.permute.xlu0 %3988 }
 0x614   :  { %4205 = vbcast.lane.b32.xlu1 %v10608_v53, 352  ;;  %4142 = vbcast.lane.b32.xlu0 %v10599_v12, 360 }
 0x616   :  { %v10799_v43 = vpop.permute.xlu1 %4177  ;;  %v10801_v34 = vpop.permute.xlu0 %4114 }
 0x618   :  { %4331 = vbcast.lane.b32.xlu1 %v10630_v33, 336  ;;  %4268 = vbcast.lane.b32.xlu0 %v10619_v48, 344 }
 0x61a   :  { %v10805_v0 = vpop.permute.xlu1 %4303  ;;  %v10807_v32 = vpop.permute.xlu0 %4240 }
 0x61c   :  { %4083 = vbcast.lane.b32.xlu1 %v10592_v11, 376  ;;  %4394 = vbcast.lane.b32.xlu0 %v10641_v17, 328 }
 0x61e   :  { %v10811_v20 = vpop.permute.xlu1 %3925  ;;  %v10813_v45 = vpop.permute.xlu0 %4366 }
 0x620   :  { %4209 = vbcast.lane.b32.xlu1 %v10608_v53, 360  ;;  %4146 = vbcast.lane.b32.xlu0 %v10599_v12, 368 }
 0x622   :  { %v10817_v62 = vpop.permute.xlu1 %4055  ;;  %v10819_v21 = vpop.permute.xlu0 %3992 }
 0x623   :  { %12628 = vst [vmem:[#allocation145_spill] sm:$0xff] %v10817_v62  ;;  %12629 = vst [vmem:[#allocation149_spill] sm:$0xff] %v10819_v21 }
 0x624   :  { %4335 = vbcast.lane.b32.xlu1 %v10630_v33, 344  ;;  %4272 = vbcast.lane.b32.xlu0 %v10619_v48, 352 }
 0x626   :  { %v10823_v40 = vpop.permute.xlu1 %4181  ;;  %v10825_v11 = vpop.permute.xlu0 %4118 }
 0x627   :  { %12630 = vst [vmem:[#allocation168_spill] sm:$0xff] %v10823_v40  ;;  %12631 = vst [vmem:[#allocation50_spill] sm:$0xff] %v10825_v11 }
 0x628   :  { %4150 = vbcast.lane.b32.xlu1 %v10599_v12, 376  ;;  %4398 = vbcast.lane.b32.xlu0 %v10641_v17, 336 }
 0x62a   :  { %v10829_v23 = vpop.permute.xlu1 %4307  ;;  %v10831_v60 = vpop.permute.xlu0 %4244 }
 0x62b   :  { %12632 = vst [vmem:[#allocation171_spill] sm:$0xff] %v10829_v23  ;;  %12633 = vst [vmem:[#allocation181_spill] sm:$0xff] %v10831_v60 }
 0x62c   :  { %4276 = vbcast.lane.b32.xlu1 %v10619_v48, 360  ;;  %4213 = vbcast.lane.b32.xlu0 %v10608_v53, 368 }
 0x62e   :  { %v10835_v10 = vpop.permute.xlu1 %3929  ;;  %v10837_v21 = vpop.permute.xlu0 %4370 }
 0x62f   :  { %12634 = vst [vmem:[#allocation118_spill] sm:$0xff] %v10835_v10  ;;  %12635 = vst [vmem:[#allocation180_spill] sm:$0xff] %v10837_v21 }
 0x630   :  { %4402 = vbcast.lane.b32.xlu1 %v10641_v17, 344  ;;  %4339 = vbcast.lane.b32.xlu0 %v10630_v33, 352 }
 0x632   :  { %v10841_v11 = vpop.permute.xlu1 %4059  ;;  %v10843_v12 = vpop.permute.xlu0 %3996 }
 0x633   :  { %12636 = vst [vmem:[#allocation124_spill] sm:$0xff] %v10841_v11  ;;  %12637 = vst [vmem:[#allocation140_spill] sm:$0xff] %v10843_v12 }
 0x634   :  { %4280 = vbcast.lane.b32.xlu1 %v10619_v48, 368  ;;  %4217 = vbcast.lane.b32.xlu0 %v10608_v53, 376 }
 0x636   :  { %v10847_v60 = vpop.permute.xlu1 %4185  ;;  %v10849_v23 = vpop.permute.xlu0 %4122 }
 0x637   :  { %12638 = vst [vmem:[#allocation129_spill] sm:$0xff] %v10847_v60  ;;  %12639 = vst [vmem:[#allocation167_spill] sm:$0xff] %v10849_v23 }
 0x638   :  { %4406 = vbcast.lane.b32.xlu1 %v10641_v17, 352  ;;  %4343 = vbcast.lane.b32.xlu0 %v10630_v33, 360 }
 0x63a   :  { %v10853_v21 = vpop.permute.xlu1 %4311  ;;  %v10855_v10 = vpop.permute.xlu0 %4248 }
 0x63b   :  { %12640 = vst [vmem:[#allocation191_spill] sm:$0xff] %v10853_v21  ;;  %12641 = vst [vmem:[#allocation183_spill] sm:$0xff] %v10855_v10  ;;  %v12646_v10 = vld [vmem:[#allocation7_spill] sm:$0xff] }
 0x63c   :  { %4347 = vbcast.lane.b32.xlu1 %v10630_v33, 368  ;;  %4284 = vbcast.lane.b32.xlu0 %v10619_v48, 376  ;;  %v4549_v21 = vmax.f32 %v12646_v10, %v10661_v25  ;;  %v12647_v48 = vld [vmem:[#allocation4_spill] sm:$0xff] }
 0x63d   :  { %v12650_v10 = vld [vmem:[#allocation12_spill] sm:$0xff] }
 0x63e   :  { %v10859_v12 = vpop.permute.xlu1 %3933  ;;  %v10861_v11 = vpop.permute.xlu0 %4374  ;;  %v4566_v25 = vmax.f32 %v12650_v10, %v10673_v37  ;;  %v12654_v37 = vld [vmem:[#allocation23_spill] sm:$0xff]  ;;  %v12655_v10 = vld [vmem:[#allocation6_spill] sm:$0xff] }
 0x63f   :  { %12642 = vst [vmem:[#allocation132_spill] sm:$0xff] %v10859_v12  ;;  %12643 = vst [vmem:[#allocation143_spill] sm:$0xff] %v10861_v11  ;;  %v4548_v12 = vmax.f32 %v12647_v48, %v10663_v36  ;;  %v12651_v36 = vld [vmem:[#allocation5_spill] sm:$0xff] }
 0x640   :  { %4351 = vbcast.lane.b32.xlu1 %v10630_v33, 376  ;;  %4410 = vbcast.lane.b32.xlu0 %v10641_v17, 360  ;;  %v12648_v33 = vld [vmem:[#allocation18_spill] sm:$0xff]  ;;  %v4550_v48 = vmax.f32 %v12651_v36, %v10675_v50  ;;  %v4567_v50 = vmax.f32 %v12654_v37, %v10685_v52  ;;  %v4551_v36 = vmax.f32 %v12655_v10, %v10687_v38  ;;  %v12659_v37 = vld [vmem:[#allocation76_spill] sm:$0xff] }
 0x641   :  { %v12658_v52 = vld [vmem:[#allocation10_spill] sm:$0xff]  ;;  %v4597_v10 = vmax.f32 %v12659_v37, %v10699_v30 }
 0x642   :  { %v10865_v53 = vpop.permute.xlu1 %4063  ;;  %v10867_v23 = vpop.permute.xlu0 %4000  ;;  %v4552_v38 = vmax.f32 %v12658_v52, %v10697_v2  ;;  %v12662_v2 = vld [vmem:[#allocation89_spill] sm:$0xff]  ;;  %v12663_v52 = vld [vmem:[#allocation71_spill] sm:$0xff] }
 0x643   :  { %12644 = vst [vmem:[#allocation161_spill] sm:$0xff] %v10865_v53  ;;  %12645 = vst [vmem:[#allocation53_spill] sm:$0xff] %v10867_v23  ;;  %v4565_v53 = vmax.f32 %v12648_v33, %v10667_v27  ;;  %v12649_v23 = vld [vmem:[#allocation17_spill] sm:$0xff]  ;;  %v4612_v30 = vmax.f32 %v12662_v2, %v10709_v9  ;;  %v4598_v37 = vmax.f32 %v12663_v52, %v10711_v47  ;;  %v12667_v2 = vld [vmem:[#allocation27_spill] sm:$0xff] }
 0x644   :  { %4418 = vbcast.lane.b32.xlu1 %v10641_v17, 376  ;;  %4414 = vbcast.lane.b32.xlu0 %v10641_v17, 368  ;;  %v4564_v40 = vmax.f32 %v12649_v23, %v10669_v6  ;;  %v12652_v23 = vld [vmem:[#allocation41_spill] sm:$0xff]  ;;  %v12653_v6 = vld [vmem:[#allocation40_spill] sm:$0xff]  ;;  %v4569_v52 = vmax.f32 %v12667_v2, %v10723_v13 }
 0x645   :  { %v4581_v27 = vmax.f32 %v12652_v23, %v10679_v63  ;;  %v4580_v33 = vmax.f32 %v12653_v6, %v10681_v41  ;;  %v12656_v63 = vld [vmem:[#allocation79_spill] sm:$0xff]  ;;  %v12657_v23 = vld [vmem:[#allocation38_spill] sm:$0xff]  ;;  %v12666_v9 = vld [vmem:[#allocation37_spill] sm:$0xff] }
 0x646   :  { %v10875_v60 = vpop.permute.xlu1 %4189  ;;  %v10877_v11 = vpop.permute.xlu0 %4126  ;;  %v4596_v41 = vmax.f32 %v12656_v63, %v10691_v15  ;;  %v4582_v6 = vmax.f32 %v12657_v23, %v10693_v55  ;;  %v12660_v15 = vld [vmem:[#allocation32_spill] sm:$0xff]  ;;  %v12661_v63 = vld [vmem:[#allocation26_spill] sm:$0xff]  ;;  %v4584_v47 = vmax.f32 %v12666_v9, %v10721_v19 }
 0x647   :  { %v4583_v55 = vmax.f32 %v12660_v15, %v10703_v51  ;;  %v4568_v23 = vmax.f32 %v12661_v63, %v10705_v39  ;;  %v12664_v51 = vld [vmem:[#allocation11_spill] sm:$0xff]  ;;  %v12665_v15 = vld [vmem:[#allocation94_spill] sm:$0xff]  ;;  %v12670_v19 = vld [vmem:[#allocation104_spill] sm:$0xff] }
 0x648   :  { %4808 = vperm.xlu1 %7342, %v4549_v21   ;;  %4805 = vperm.xlu0 %7343, %v4548_v12   ;;  %v4553_v39 = vmax.f32 %v12664_v51, %v10715_v42  ;;  %v4613_v63 = vmax.f32 %v12665_v15, %v10717_v18  ;;  %v12668_v42 = vld [vmem:[#allocation87_spill] sm:$0xff]  ;;  %v12669_v51 = vld [vmem:[#allocation73_spill] sm:$0xff]  ;;  %v4629_v13 = vmax.f32 %v12670_v19, %v10733_v4  ;;  %v12671_v9 = vld [vmem:[#allocation52_spill] sm:$0xff] }
 0x649   :  { %v4614_v18 = vmax.f32 %v12668_v42, %v10727_v5  ;;  %v4599_v15 = vmax.f32 %v12669_v51, %v10729_v46  ;;  %v4628_v2 = vmax.f32 %v12671_v9, %v10735_v35  ;;  %v12672_v5 = vld [vmem:[#allocation24_spill] sm:$0xff]  ;;  %v12674_v4 = vld [vmem:[#allocation81_spill] sm:$0xff] }
 0x64a   :  { %v10883_v62 = vpop.permute.xlu1 %4315  ;;  %v10885_v17 = vpop.permute.xlu0 %4252  ;;  %v4570_v46 = vmax.f32 %v12672_v5, %v10739_v24  ;;  %v12673_v42 = vld [vmem:[#allocation8_spill] sm:$0xff]  ;;  %v4600_v35 = vmax.f32 %v12674_v4, %v10745_v31  ;;  %v12676_v24 = vld [vmem:[#allocation59_spill] sm:$0xff]  ;;  %v12677_v5 = vld [vmem:[#allocation45_spill] sm:$0xff] }
 0x64b   :  { %v4554_v51 = vmax.f32 %v12673_v42, %v10741_v14  ;;  %v12675_v19 = vld [vmem:[#allocation60_spill] sm:$0xff]  ;;  %v4630_v14 = vmax.f32 %v12676_v24, %v10751_v1  ;;  %v4615_v42 = vmax.f32 %v12677_v5, %v10753_v58  ;;  %v12679_v4 = vld [vmem:[#allocation122_spill] sm:$0xff]  ;;  %v12680_v1 = vld [vmem:[#allocation25_spill] sm:$0xff] }
 0x64c   :  { %4856 = vperm.xlu1 %7342, %v4565_v53   ;;  %4853 = vperm.xlu0 %7343, %v4564_v40   ;;  %v4585_v9 = vmax.f32 %v12675_v19, %v10747_v7  ;;  %v12678_v31 = vld [vmem:[#allocation112_spill] sm:$0xff]  ;;  %v4644_v19 = vmax.f32 %v12679_v4, %v10759_v29  ;;  %v4571_v58 = vmax.f32 %v12680_v1, %v10763_v59  ;;  %v12681_v24 = vld [vmem:[#allocation9_spill] sm:$0xff]  ;;  %v12684_v59 = vld [vmem:[#allocation103_spill] sm:$0xff] }
 0x64d   :  { %v4645_v7 = vmax.f32 %v12678_v31, %v10757_v3  ;;  %v4555_v5 = vmax.f32 %v12681_v24, %v10765_v54  ;;  %v12682_v3 = vld [vmem:[#allocation83_spill] sm:$0xff]  ;;  %v12683_v31 = vld [vmem:[#allocation58_spill] sm:$0xff]  ;;  %v4631_v54 = vmax.f32 %v12684_v59, %v10775_v44 }
 0x64e   :  { %v10891_v21 = vpop.permute.xlu1 %3937  ;;  %v10893_v12 = vpop.permute.xlu0 %4378  ;;  %v4601_v29 = vmax.f32 %v12682_v3, %v10769_v61  ;;  %v4586_v4 = vmax.f32 %v12683_v31, %v10771_v28  ;;  %v12685_v1 = vld [vmem:[#allocation95_spill] sm:$0xff]  ;;  %v12686_v28 = vld [vmem:[#allocation141_spill] sm:$0xff] }
 0x64f   :  { %v4616_v24 = vmax.f32 %v12685_v1, %v10777_v26  ;;  %v4660_v61 = vmax.f32 %v12686_v28, %v10781_v57  ;;  %v12687_v3 = vld [vmem:[#allocation121_spill] sm:$0xff]  ;;  %v12688_v26 = vld [vmem:[#allocation14_spill] sm:$0xff]  ;;  %v12689_v59 = vld [vmem:[#allocation135_spill] sm:$0xff] }
 0x650   :  { %4859 = vperm.xlu1 %7342, %v4566_v25   ;;  %4811 = vperm.xlu0 %7343, %v4550_v48   ;;  %v4646_v31 = vmax.f32 %v12687_v3, %v10783_v8  ;;  %v4556_v44 = vmax.f32 %v12688_v26, %v10787_v16  ;;  %v4661_v1 = vmax.f32 %v12689_v59, %v10789_v22  ;;  %v12690_v8 = vld [vmem:[#allocation39_spill] sm:$0xff]  ;;  %v12691_v28 = vld [vmem:[#allocation29_spill] sm:$0xff]  ;;  %v12693_v26 = vld [vmem:[#allocation78_spill] sm:$0xff] }
 0x651   :  { %v4587_v57 = vmax.f32 %v12690_v8, %v10793_v49  ;;  %v4572_v3 = vmax.f32 %v12691_v28, %v10795_v56  ;;  %v12692_v22 = vld [vmem:[#allocation43_spill] sm:$0xff]  ;;  %v4602_v59 = vmax.f32 %v12693_v26, %v10801_v34  ;;  %v12695_v56 = vld [vmem:[#allocation110_spill] sm:$0xff]  ;;  %v12696_v8 = vld [vmem:[#allocation101_spill] sm:$0xff] }
 0x652   :  { %v10899_v53 = vpop.permute.xlu1 %4067  ;;  %v10901_v40 = vpop.permute.xlu0 %4004  ;;  %v4617_v16 = vmax.f32 %v12692_v22, %v10799_v43  ;;  %v4632_v28 = vmax.f32 %v12696_v8, %v10807_v32  ;;  %v12701_v26 = vld [vmem:[#allocation145_spill] sm:$0xff]  ;;  %v12707_v8 = vld [vmem:[#allocation168_spill] sm:$0xff] }
 0x654   :  { %4904 = vperm.xlu1 %7342, %v4581_v27   ;;  %4901 = vperm.xlu0 %7343, %v4580_v33  }
 0x656   :  { %v10907_v25 = vpop.permute.xlu1 %4193  ;;  %v10909_v48 = vpop.permute.xlu0 %4130 }
 0x658   :  { %4862 = vperm.xlu1 %7342, %v4567_v50   ;;  %4814 = vperm.xlu0 %7343, %v4551_v36  }
 0x65a   :  { %v10915_v27 = vpop.permute.xlu1 %4319  ;;  %v10917_v33 = vpop.permute.xlu0 %4256 }
 0x65c   :  { %4949 = vperm.xlu1 %7342, %v4596_v41   ;;  %4907 = vperm.xlu0 %7343, %v4582_v6  }
 0x65e   :  { %v10923_v50 = vpop.permute.xlu1 %3941  ;;  %v10925_v36 = vpop.permute.xlu0 %4382 }
 0x660   :  { %4817 = vperm.xlu1 %7342, %v4552_v38   ;;  %4952 = vperm.xlu0 %7343, %v4597_v10  }
 0x662   :  { %v10931_v41 = vpop.permute.xlu1 %4071  ;;  %v10933_v6 = vpop.permute.xlu0 %4008 }
 0x664   :  { %4910 = vperm.xlu1 %7342, %v4583_v55   ;;  %4865 = vperm.xlu0 %7343, %v4568_v23  }
 0x666   :  { %v10939_v38 = vpop.permute.xlu1 %4197  ;;  %v10941_v10 = vpop.permute.xlu0 %4134 }
 0x668   :  { %4997 = vperm.xlu1 %7342, %v4612_v30   ;;  %4955 = vperm.xlu0 %7343, %v4598_v37  }
 0x66a   :  { %v10947_v55 = vpop.permute.xlu1 %4323  ;;  %v10949_v23 = vpop.permute.xlu0 %4260 }
 0x66c   :  { %4820 = vperm.xlu1 %7342, %v4553_v39   ;;  %5000 = vperm.xlu0 %7343, %v4613_v63  }
 0x66e   :  { %v10955_v30 = vpop.permute.xlu1 %3945  ;;  %v10957_v37 = vpop.permute.xlu0 %4386 }
 0x670   :  { %4913 = vperm.xlu1 %7342, %v4584_v47   ;;  %4868 = vperm.xlu0 %7343, %v4569_v52  }
 0x672   :  { %v10963_v39 = vpop.permute.xlu1 %4075  ;;  %v10965_v63 = vpop.permute.xlu0 %4012 }
 0x674   :  { %5003 = vperm.xlu1 %7342, %v4614_v18   ;;  %4958 = vperm.xlu0 %7343, %v4599_v15  }
 0x676   :  { %v10971_v47 = vpop.permute.xlu1 %4201  ;;  %v10973_v52 = vpop.permute.xlu0 %4138 }
 0x678   :  { %5048 = vperm.xlu1 %7342, %v4629_v13   ;;  %5045 = vperm.xlu0 %7343, %v4628_v2  }
 0x67a   :  { %v10979_v18 = vpop.permute.xlu1 %4327  ;;  %v10981_v15 = vpop.permute.xlu0 %4264 }
 0x67c   :  { %4871 = vperm.xlu1 %7342, %v4570_v46   ;;  %4823 = vperm.xlu0 %7343, %v4554_v51  }
 0x67e   :  { %v10987_v13 = vpop.permute.xlu1 %3949  ;;  %v10989_v2 = vpop.permute.xlu0 %4390 }
 0x680   :  { %4961 = vperm.xlu1 %7342, %v4600_v35   ;;  %4916 = vperm.xlu0 %7343, %v4585_v9  }
 0x682   :  { %v10995_v46 = vpop.permute.xlu1 %4079  ;;  %v10997_v51 = vpop.permute.xlu0 %4016 }
 0x684   :  { %5051 = vperm.xlu1 %7342, %v4630_v14   ;;  %5006 = vperm.xlu0 %7343, %v4615_v42  }
 0x686   :  { %v11003_v35 = vpop.permute.xlu1 %4205  ;;  %v11005_v9 = vpop.permute.xlu0 %4142 }
 0x688   :  { %5096 = vperm.xlu1 %7342, %v4645_v7   ;;  %5093 = vperm.xlu0 %7343, %v4644_v19  }
 0x68a   :  { %v11011_v14 = vpop.permute.xlu1 %4331  ;;  %v11013_v42 = vpop.permute.xlu0 %4268 }
 0x68c   :  { %4874 = vperm.xlu1 %7342, %v4571_v58   ;;  %4826 = vperm.xlu0 %7343, %v4555_v5  }
 0x68e   :  { %v11019_v7 = vpop.permute.xlu1 %4083  ;;  %v11021_v19 = vpop.permute.xlu0 %4394 }
 0x690   :  { %4964 = vperm.xlu1 %7342, %v4601_v29   ;;  %4919 = vperm.xlu0 %7343, %v4586_v4  }
 0x692   :  { %v11027_v58 = vpop.permute.xlu1 %4209  ;;  %v11029_v5 = vpop.permute.xlu0 %4146 }
 0x694   :  { %5054 = vperm.xlu1 %7342, %v4631_v54   ;;  %5009 = vperm.xlu0 %7343, %v4616_v24  }
 0x696   :  { %v11035_v29 = vpop.permute.xlu1 %4335  ;;  %v11037_v4 = vpop.permute.xlu0 %4272 }
 0x698   :  { %5141 = vperm.xlu1 %7342, %v4660_v61   ;;  %5099 = vperm.xlu0 %7343, %v4646_v31  }
 0x69a   :  { %v11043_v54 = vpop.permute.xlu1 %4150  ;;  %v11045_v24 = vpop.permute.xlu0 %4398 }
 0x69c   :  { %4829 = vperm.xlu1 %7342, %v4556_v44   ;;  %5144 = vperm.xlu0 %7343, %v4661_v1   ;;  %v4647_v1 = vmax.f32 %v12695_v56, %v10805_v0  ;;  %v12703_v56 = vld [vmem:[#allocation149_spill] sm:$0xff] }
 0x69e   :  { %v11051_v61 = vpop.permute.xlu1 %4276  ;;  %v11053_v31 = vpop.permute.xlu0 %4213 }
 0x6a0   :  { %4922 = vperm.xlu1 %7342, %v4587_v57   ;;  %4877 = vperm.xlu0 %7343, %v4572_v3   ;;  %v12697_v57 = vld [vmem:[#allocation16_spill] sm:$0xff]  ;;  %v12698_v3 = vld [vmem:[#allocation130_spill] sm:$0xff] }
 0x6a1   :  { %v4557_v43 = vmax.f32 %v12697_v57, %v10811_v20  ;;  %v4662_v34 = vmax.f32 %v12698_v3, %v10813_v45  ;;  %v12708_v45 = vld [vmem:[#allocation92_spill] sm:$0xff]  ;;  %v12709_v57 = vld [vmem:[#allocation50_spill] sm:$0xff] }
 0x6a2   :  { %v11059_v44 = vpop.permute.xlu1 %4402  ;;  %v11061_v49 = vpop.permute.xlu0 %4339  ;;  %v12710_v3 = vld [vmem:[#allocation80_spill] sm:$0xff] }
 0x6a3   :  { %12694 = vst [vmem:[#allocation139_spill] sm:$0xff] %v11061_v49  ;;  %v12704_v49 = vld [vmem:[#allocation31_spill] sm:$0xff] }
 0x6a4   :  { %5012 = vperm.xlu1 %7342, %v4617_v16   ;;  %4967 = vperm.xlu0 %7343, %v4602_v59   ;;  %v12702_v59 = vld [vmem:[#allocation68_spill] sm:$0xff]  ;;  %v4573_v32 = vmax.f32 %v12704_v49, %v12703_v56 }
 0x6a5   :  { %v4588_v0 = vmax.f32 %v12702_v59, %v12701_v26  ;;  %v12713_v59 = vld [vmem:[#allocation181_spill] sm:$0xff] }
 0x6a6   :  { %v11071_v22 = vpop.permute.xlu1 %4280  ;;  %v11073_v16 = vpop.permute.xlu0 %4217 }
 0x6a7   :  { %12699 = vst [vmem:[#allocation178_spill] sm:$0xff] %v11071_v22  ;;  %12700 = vst [vmem:[#allocation151_spill] sm:$0xff] %v11073_v16  ;;  %v4603_v16 = vmax.f32 %v12710_v3, %v12709_v57  ;;  %v12714_v22 = vld [vmem:[#allocation105_spill] sm:$0xff]  ;;  %v12723_v3 = vld [vmem:[#allocation124_spill] sm:$0xff] }
 0x6a8   :  { %5102 = vperm.xlu1 %7342, %v4647_v1   ;;  %5057 = vperm.xlu0 %7343, %v4632_v28   ;;  %v4618_v28 = vmax.f32 %v12708_v45, %v12707_v8  ;;  %v4633_v49 = vmax.f32 %v12714_v22, %v12713_v59  ;;  %v12719_v45 = vld [vmem:[#allocation180_spill] sm:$0xff]  ;;  %v12724_v22 = vld [vmem:[#allocation70_spill] sm:$0xff] }
 0x6a9   :  { %v12726_v59 = vld [vmem:[#allocation28_spill] sm:$0xff] }
 0x6aa   :  { %v11079_v1 = vpop.permute.xlu1 %4406  ;;  %v11081_v20 = vpop.permute.xlu0 %4343 }
 0x6ab   :  { %12705 = vst [vmem:[#allocation158_spill] sm:$0xff] %v11079_v1  ;;  %12706 = vst [vmem:[#allocation164_spill] sm:$0xff] %v11081_v20  ;;  %v12718_v20 = vld [vmem:[#allocation13_spill] sm:$0xff] }
 0x6ac   :  { %4832 = vperm.xlu1 %7342, %v4557_v43   ;;  %5147 = vperm.xlu0 %7343, %v4662_v34   ;;  %v12711_v43 = vld [vmem:[#allocation171_spill] sm:$0xff]  ;;  %v12720_v1 = vld [vmem:[#allocation133_spill] sm:$0xff] }
 0x6ad   :  { %v12712_v34 = vld [vmem:[#allocation115_spill] sm:$0xff]  ;;  %v4663_v57 = vmax.f32 %v12720_v1, %v12719_v45 }
 0x6ae   :  { %v4648_v26 = vmax.f32 %v12712_v34, %v12711_v43  ;;  %v11093_v56 = vpop.permute.xlu0 %4284  ;;  %v4589_v43 = vmax.f32 %v12724_v22, %v12723_v3  ;;  %v12725_v34 = vld [vmem:[#allocation140_spill] sm:$0xff]  ;;  %v12735_v22 = vld [vmem:[#allocation183_spill] sm:$0xff] }
 0x6af   :  { %12716 = vst [vmem:[#allocation182_spill] sm:$0xff] %v11093_v56  ;;  %v4574_v56 = vmax.f32 %v12726_v59, %v12725_v34  ;;  %v12738_v59 = vld [vmem:[#allocation132_spill] sm:$0xff] }
 0x6b0   :  { %4925 = vperm.xlu1 %7342, %v4588_v0   ;;  %4880 = vperm.xlu0 %7343, %v4573_v32   ;;  %v11091_v0 = vpop.permute.xlu1 %4347  ;;  %v12717_v32 = vld [vmem:[#allocation118_spill] sm:$0xff] }
 0x6b1   :  { %12715 = vst [vmem:[#allocation170_spill] sm:$0xff] %v11091_v0  ;;  %v4558_v8 = vmax.f32 %v12718_v20, %v12717_v32  ;;  %v12729_v32 = vld [vmem:[#allocation167_spill] sm:$0xff]  ;;  %v12730_v0 = vld [vmem:[#allocation84_spill] sm:$0xff] }
 0x6b2   :  { %v4604_v1 = vmax.f32 %v12730_v0, %v12729_v32  ;;  %v12739_v0 = vld [vmem:[#allocation15_spill] sm:$0xff]  ;;  %v12741_v32 = vld [vmem:[#allocation142_spill] sm:$0xff] }
 0x6b4   :  { %5015 = vperm.xlu1 %7342, %v4618_v28   ;;  %4970 = vperm.xlu0 %7343, %v4603_v16   ;;  %v11099_v16 = vpop.permute.xlu1 %4351  ;;  %v11101_v28 = vpop.permute.xlu0 %4410 }
 0x6b5   :  { %12721 = vst [vmem:[#allocation174_spill] sm:$0xff] %v11099_v16  ;;  %12722 = vst [vmem:[#allocation195_spill] sm:$0xff] %v11101_v28  ;;  %v12734_v28 = vld [vmem:[#allocation120_spill] sm:$0xff] }
 0x6b6   :  { %v12736_v16 = vld [vmem:[#allocation64_spill] sm:$0xff] }
 0x6b7   :  { %v4634_v34 = vmax.f32 %v12736_v16, %v12735_v22  ;;  %v12743_v16 = vld [vmem:[#allocation56_spill] sm:$0xff]  ;;  %v12744_v22 = vld [vmem:[#allocation53_spill] sm:$0xff] }
 0x6b8   :  { %5105 = vperm.xlu1 %7342, %v4648_v26   ;;  %5060 = vperm.xlu0 %7343, %v4633_v49   ;;  %v12727_v26 = vld [vmem:[#allocation129_spill] sm:$0xff]  ;;  %v12728_v49 = vld [vmem:[#allocation42_spill] sm:$0xff]  ;;  %v11113_v45 = vpop.permute.xlu0 %4414 }
 0x6b9   :  { %v4619_v20 = vmax.f32 %v12728_v49, %v12727_v26  ;;  %12732 = vst [vmem:[#allocation136_spill] sm:$0xff] %v11113_v45  ;;  %v4559_v26 = vmax.f32 %v12739_v0, %v12738_v59  ;;  %v12740_v49 = vld [vmem:[#allocation143_spill] sm:$0xff]  ;;  %v12746_v59 = vld [vmem:[#allocation48_spill] sm:$0xff] }
 0x6ba   :  { %v4664_v45 = vmax.f32 %v12741_v32, %v12740_v49  ;;  %v4620_v0 = vmax.f32 %v12746_v59, %v10875_v60  ;;  %v12747_v49 = vld [vmem:[#allocation88_spill] sm:$0xff]  ;;  %v12751_v59 = vld [vmem:[#allocation150_spill] sm:$0xff] }
 0x6bb   :  { %v4605_v32 = vmax.f32 %v12747_v49, %v10877_v11  ;;  %v12750_v60 = vld [vmem:[#allocation20_spill] sm:$0xff]  ;;  %v4665_v49 = vmax.f32 %v12751_v59, %v10893_v12 }
 0x6bc   :  { %4835 = vperm.xlu1 %7342, %v4558_v8   ;;  %5150 = vperm.xlu0 %7343, %v4663_v57   ;;  %v11111_v8 = vpop.permute.xlu1 %4418  ;;  %v12733_v57 = vld [vmem:[#allocation191_spill] sm:$0xff]  ;;  %v4560_v11 = vmax.f32 %v12750_v60, %v10891_v21  ;;  %v12754_v21 = vld [vmem:[#allocation98_spill] sm:$0xff] }
 0x6bd   :  { %12731 = vst [vmem:[#allocation198_spill] sm:$0xff] %v11111_v8  ;;  %v4649_v3 = vmax.f32 %v12734_v28, %v12733_v57  ;;  %v12742_v28 = vld [vmem:[#allocation161_spill] sm:$0xff]  ;;  %v12745_v8 = vld [vmem:[#allocation30_spill] sm:$0xff]  ;;  %v4621_v12 = vmax.f32 %v12754_v21, %v10907_v25 }
 0x6be   :  { %v4590_v57 = vmax.f32 %v12743_v16, %v12742_v28  ;;  %v12749_v16 = vld [vmem:[#allocation102_spill] sm:$0xff] }
 0x6bf   :  { %v12755_v60 = vld [vmem:[#allocation82_spill] sm:$0xff] }
 0x6c0   :  { %4928 = vperm.xlu1 %7342, %v4589_v43   ;;  %4883 = vperm.xlu0 %7343, %v4574_v56   ;;  %v4606_v59 = vmax.f32 %v12755_v60, %v10909_v48  ;;  %v12758_v25 = vld [vmem:[#allocation22_spill] sm:$0xff] }
 0x6c1   :  { %v4561_v48 = vmax.f32 %v12758_v25, %v10923_v50  ;;  %v12759_v21 = vld [vmem:[#allocation138_spill] sm:$0xff]  ;;  %v12762_v50 = vld [vmem:[#allocation44_spill] sm:$0xff] }
 0x6c2   :  { %v4666_v60 = vmax.f32 %v12759_v21, %v10925_v36  ;;  %v4622_v36 = vmax.f32 %v12762_v50, %v10939_v38  ;;  %v12763_v25 = vld [vmem:[#allocation86_spill] sm:$0xff]  ;;  %v12767_v38 = vld [vmem:[#allocation19_spill] sm:$0xff] }
 0x6c3   :  { %v4607_v21 = vmax.f32 %v12763_v25, %v10941_v10  ;;  %v4562_v10 = vmax.f32 %v12767_v38, %v10955_v30  ;;  %v12768_v50 = vld [vmem:[#allocation146_spill] sm:$0xff]  ;;  %v12772_v30 = vld [vmem:[#allocation96_spill] sm:$0xff]  ;;  %v12773_v38 = vld [vmem:[#allocation91_spill] sm:$0xff] }
 0x6c4   :  { %5018 = vperm.xlu1 %7342, %v4619_v20   ;;  %4973 = vperm.xlu0 %7343, %v4604_v1   ;;  %v4667_v25 = vmax.f32 %v12768_v50, %v10957_v37  ;;  %v4623_v37 = vmax.f32 %v12772_v30, %v10971_v47  ;;  %v4608_v50 = vmax.f32 %v12773_v38, %v10973_v52  ;;  %v12776_v47 = vld [vmem:[#allocation21_spill] sm:$0xff] }
 0x6c5   :  { %v4563_v52 = vmax.f32 %v12776_v47, %v10987_v13  ;;  %v12777_v30 = vld [vmem:[#allocation157_spill] sm:$0xff]  ;;  %v12783_v13 = vld [vmem:[#allocation100_spill] sm:$0xff] }
 0x6c6   :  { %v4668_v38 = vmax.f32 %v12777_v30, %v10989_v2  ;;  %v4624_v2 = vmax.f32 %v12783_v13, %v11003_v35  ;;  %v12784_v47 = vld [vmem:[#allocation93_spill] sm:$0xff]  ;;  %v12788_v35 = vld [vmem:[#allocation75_spill] sm:$0xff] }
 0x6c7   :  { %v11119_v43 = vpop.permute.xlu1 %4808  ;;  %v11121_v56 = vpop.permute.xlu0 %4805  ;;  %v4609_v30 = vmax.f32 %v12784_v47, %v11005_v9  ;;  %v4595_v9 = vmax.f32 %v12788_v35, %v11019_v7  ;;  %v12789_v13 = vld [vmem:[#allocation159_spill] sm:$0xff] }
 0x6c8   :  { %12737 = vst [vmem:[#allocation189_spill] sm:$0xff] %v11121_v56  ;;  %5108 = vperm.xlu1 %7342, %v4649_v3   ;;  %5063 = vperm.xlu0 %7343, %v4634_v34   ;;  %v4575_v56 = vmax.f32 %v12745_v8, %v12744_v22  ;;  %v12748_v8 = vld [vmem:[#allocation114_spill] sm:$0xff]  ;;  %v4635_v22 = vmax.f32 %v12749_v16, %v10885_v17 }
 0x6c9   :  { %v4650_v28 = vmax.f32 %v12748_v8, %v10883_v62  ;;  %v12752_v62 = vld [vmem:[#allocation69_spill] sm:$0xff]  ;;  %v12753_v8 = vld [vmem:[#allocation34_spill] sm:$0xff]  ;;  %v4669_v47 = vmax.f32 %v12789_v13, %v11021_v19  ;;  %v12796_v19 = vld [vmem:[#allocation116_spill] sm:$0xff] }
 0x6ca   :  { %v4591_v17 = vmax.f32 %v12752_v62, %v10899_v53  ;;  %v4576_v16 = vmax.f32 %v12753_v8, %v10901_v40  ;;  %v12756_v53 = vld [vmem:[#allocation117_spill] sm:$0xff]  ;;  %v4640_v35 = vmax.f32 %v12796_v19, %v11037_v4 }
 0x6cb   :  { %v11127_v20 = vpop.permute.xlu1 %4856  ;;  %v11129_v1 = vpop.permute.xlu0 %4853  ;;  %v4651_v40 = vmax.f32 %v12756_v53, %v10915_v27  ;;  %v12757_v62 = vld [vmem:[#allocation109_spill] sm:$0xff]  ;;  %v12760_v27 = vld [vmem:[#allocation74_spill] sm:$0xff]  ;;  %v12761_v53 = vld [vmem:[#allocation36_spill] sm:$0xff] }
 0x6cc   :  { %4838 = vperm.xlu1 %7342, %v4559_v26   ;;  %5153 = vperm.xlu0 %7343, %v4664_v45   ;;  %v4636_v8 = vmax.f32 %v12757_v62, %v10917_v33  ;;  %v4592_v33 = vmax.f32 %v12760_v27, %v10931_v41  ;;  %v4577_v62 = vmax.f32 %v12761_v53, %v10933_v6  ;;  %v12765_v41 = vld [vmem:[#allocation126_spill] sm:$0xff]  ;;  %v12766_v27 = vld [vmem:[#allocation113_spill] sm:$0xff] }
 0x6cd   :  { %v4652_v6 = vmax.f32 %v12765_v41, %v10947_v55  ;;  %v4637_v53 = vmax.f32 %v12766_v27, %v10949_v23  ;;  %v12769_v55 = vld [vmem:[#allocation77_spill] sm:$0xff] }
 0x6ce   :  { %v4593_v23 = vmax.f32 %v12769_v55, %v10963_v39  ;;  %v12770_v41 = vld [vmem:[#allocation33_spill] sm:$0xff]  ;;  %v12774_v39 = vld [vmem:[#allocation131_spill] sm:$0xff] }
 0x6cf   :  { %v11135_v3 = vpop.permute.xlu1 %4859  ;;  %v11137_v34 = vpop.permute.xlu0 %4811  ;;  %v4578_v27 = vmax.f32 %v12770_v41, %v10965_v63  ;;  %v4653_v63 = vmax.f32 %v12774_v39, %v10979_v18  ;;  %v12775_v55 = vld [vmem:[#allocation107_spill] sm:$0xff]  ;;  %v12780_v18 = vld [vmem:[#allocation72_spill] sm:$0xff]  ;;  %v12797_v13 = vld [vmem:[#allocation85_spill] sm:$0xff] }
 0x6d0   :  { %4931 = vperm.xlu1 %7342, %v4590_v57   ;;  %4886 = vperm.xlu0 %7343, %v4575_v56   ;;  %v4638_v41 = vmax.f32 %v12775_v55, %v10981_v15  ;;  %v4594_v15 = vmax.f32 %v12780_v18, %v10995_v46  ;;  %v12781_v39 = vld [vmem:[#allocation35_spill] sm:$0xff] }
 0x6d1   :  { %v4579_v55 = vmax.f32 %v12781_v39, %v10997_v51  ;;  %v12785_v46 = vld [vmem:[#allocation123_spill] sm:$0xff] }
 0x6d2   :  { %v4654_v51 = vmax.f32 %v12785_v46, %v11011_v14  ;;  %v12786_v18 = vld [vmem:[#allocation111_spill] sm:$0xff]  ;;  %v12792_v14 = vld [vmem:[#allocation57_spill] sm:$0xff]  ;;  %v12793_v46 = vld [vmem:[#allocation90_spill] sm:$0xff] }
 0x6d3   :  { %v11143_v26 = vpop.permute.xlu1 %4904  ;;  %v11145_v45 = vpop.permute.xlu0 %4901  ;;  %v4639_v39 = vmax.f32 %v12786_v18, %v11013_v42  ;;  %v4625_v42 = vmax.f32 %v12792_v14, %v11027_v58  ;;  %v4610_v18 = vmax.f32 %v12793_v46, %v11029_v5  ;;  %v12799_v58 = vld [vmem:[#allocation108_spill] sm:$0xff] }
 0x6d4   :  { %5021 = vperm.xlu1 %7342, %v4620_v0   ;;  %4976 = vperm.xlu0 %7343, %v4605_v32   ;;  %v4641_v5 = vmax.f32 %v12799_v58, %v11051_v61  ;;  %v12801_v46 = vld [vmem:[#allocation144_spill] sm:$0xff]  ;;  %v12810_v61 = vld [vmem:[#allocation189_spill] sm:$0xff] }
 0x6d7   :  { %v11151_v57 = vpop.permute.xlu1 %4862  ;;  %v11153_v56 = vpop.permute.xlu0 %4814 }
 0x6d8   :  { %5111 = vperm.xlu1 %7342, %v4650_v28   ;;  %5066 = vperm.xlu0 %7343, %v4635_v22  }
 0x6db   :  { %v11159_v0 = vpop.permute.xlu1 %4949  ;;  %v11161_v32 = vpop.permute.xlu0 %4907 }
 0x6dc   :  { %4841 = vperm.xlu1 %7342, %v4560_v11   ;;  %5156 = vperm.xlu0 %7343, %v4665_v49  }
 0x6df   :  { %v11167_v28 = vpop.permute.xlu1 %4817  ;;  %v11169_v22 = vpop.permute.xlu0 %4952 }
 0x6e0   :  { %4934 = vperm.xlu1 %7342, %v4591_v17   ;;  %4889 = vperm.xlu0 %7343, %v4576_v16  }
 0x6e3   :  { %v11175_v11 = vpop.permute.xlu1 %4910  ;;  %v11177_v49 = vpop.permute.xlu0 %4865 }
 0x6e4   :  { %5024 = vperm.xlu1 %7342, %v4621_v12   ;;  %4979 = vperm.xlu0 %7343, %v4606_v59  }
 0x6e7   :  { %v11183_v17 = vpop.permute.xlu1 %4997  ;;  %v11185_v16 = vpop.permute.xlu0 %4955 }
 0x6e8   :  { %5114 = vperm.xlu1 %7342, %v4651_v40   ;;  %5069 = vperm.xlu0 %7343, %v4636_v8  }
 0x6eb   :  { %v11191_v12 = vpop.permute.xlu1 %4820  ;;  %v11193_v59 = vpop.permute.xlu0 %5000 }
 0x6ec   :  { %4844 = vperm.xlu1 %7342, %v4561_v48   ;;  %5159 = vperm.xlu0 %7343, %v4666_v60  }
 0x6ef   :  { %v11199_v40 = vpop.permute.xlu1 %4913  ;;  %v11201_v8 = vpop.permute.xlu0 %4868 }
 0x6f0   :  { %4937 = vperm.xlu1 %7342, %v4592_v33   ;;  %4892 = vperm.xlu0 %7343, %v4577_v62  }
 0x6f3   :  { %v11207_v48 = vpop.permute.xlu1 %5003  ;;  %v11209_v60 = vpop.permute.xlu0 %4958 }
 0x6f4   :  { %12764 = vst [vmem:[#allocation202_spill] sm:$0xff] %v11209_v60  ;;  %5027 = vperm.xlu1 %7342, %v4622_v36   ;;  %4982 = vperm.xlu0 %7343, %v4607_v21   ;;  %v12803_v60 = vld [vmem:[#allocation125_spill] sm:$0xff] }
 0x6f7   :  { %v11215_v33 = vpop.permute.xlu1 %5048  ;;  %v11217_v62 = vpop.permute.xlu0 %5045 }
 0x6f8   :  { %5117 = vperm.xlu1 %7342, %v4652_v6   ;;  %5072 = vperm.xlu0 %7343, %v4637_v53  }
 0x6fb   :  { %v11223_v36 = vpop.permute.xlu1 %4871  ;;  %v11225_v21 = vpop.permute.xlu0 %4823 }
 0x6fc   :  { %4847 = vperm.xlu1 %7342, %v4562_v10   ;;  %5162 = vperm.xlu0 %7343, %v4667_v25  }
 0x6ff   :  { %v11231_v6 = vpop.permute.xlu1 %4961  ;;  %v11233_v53 = vpop.permute.xlu0 %4916 }
 0x700   :  { %12771 = vst [vmem:[#allocation147_spill] sm:$0xff] %v11231_v6  ;;  %4940 = vperm.xlu1 %7342, %v4593_v23   ;;  %4895 = vperm.xlu0 %7343, %v4578_v27  }
 0x703   :  { %v11239_v10 = vpop.permute.xlu1 %5051  ;;  %v11241_v25 = vpop.permute.xlu0 %5006 }
 0x704   :  { %5030 = vperm.xlu1 %7342, %v4623_v37   ;;  %4985 = vperm.xlu0 %7343, %v4608_v50  }
 0x707   :  { %v11247_v23 = vpop.permute.xlu1 %5096  ;;  %v11249_v27 = vpop.permute.xlu0 %5093 }
 0x708   :  { %5120 = vperm.xlu1 %7342, %v4653_v63   ;;  %5075 = vperm.xlu0 %7343, %v4638_v41  }
 0x70b   :  { %v11255_v37 = vpop.permute.xlu1 %4874  ;;  %v11257_v50 = vpop.permute.xlu0 %4826 }
 0x70c   :  { %12778 = vst [vmem:[#allocation169_spill] sm:$0xff] %v11255_v37  ;;  %12779 = vst [vmem:[#allocation186_spill] sm:$0xff] %v11257_v50  ;;  %4850 = vperm.xlu1 %7342, %v4563_v52   ;;  %5165 = vperm.xlu0 %7343, %v4668_v38  }
 0x70f   :  { %v11263_v63 = vpop.permute.xlu1 %4964  ;;  %v11265_v41 = vpop.permute.xlu0 %4919 }
 0x710   :  { %12782 = vst [vmem:[#allocation155_spill] sm:$0xff] %v11263_v63  ;;  %4943 = vperm.xlu1 %7342, %v4594_v15   ;;  %4898 = vperm.xlu0 %7343, %v4579_v55  }
 0x713   :  { %v11271_v52 = vpop.permute.xlu1 %5054  ;;  %v11273_v38 = vpop.permute.xlu0 %5009 }
 0x714   :  { %5033 = vperm.xlu1 %7342, %v4624_v2   ;;  %4988 = vperm.xlu0 %7343, %v4609_v30  }
 0x717   :  { %v11279_v15 = vpop.permute.xlu1 %5141  ;;  %v11281_v55 = vpop.permute.xlu0 %5099 }
 0x718   :  { %12787 = vst [vmem:[#allocation163_spill] sm:$0xff] %v11279_v15  ;;  %5123 = vperm.xlu1 %7342, %v4654_v51   ;;  %5078 = vperm.xlu0 %7343, %v4639_v39   ;;  %v12794_v51 = vld [vmem:[#allocation128_spill] sm:$0xff] }
 0x719   :  { %v4655_v39 = vmax.f32 %v12794_v51, %v11035_v29  ;;  %v12800_v29 = vld [vmem:[#allocation97_spill] sm:$0xff]  ;;  %v12821_v51 = vld [vmem:[#allocation196_spill] sm:$0xff] }
 0x71a   :  { %v4626_v14 = vmax.f32 %v12800_v29, %v11053_v31  ;;  %v12825_v31 = vld [vmem:[#allocation165_spill] sm:$0xff] }
 0x71b   :  { %v11287_v2 = vpop.permute.xlu1 %4829  ;;  %v11289_v30 = vpop.permute.xlu0 %5144 }
 0x71c   :  { %12790 = vst [vmem:[#allocation172_spill] sm:$0xff] %v11287_v2  ;;  %12791 = vst [vmem:[#allocation193_spill] sm:$0xff] %v11289_v30  ;;  %4946 = vperm.xlu1 %7342, %v4595_v9   ;;  %5168 = vperm.xlu0 %7343, %v4669_v47   ;;  %v4611_v9 = vmax.f32 %v12797_v13, %v11043_v54  ;;  %v12798_v47 = vld [vmem:[#allocation154_spill] sm:$0xff]  ;;  %v5284_v30 = vrot.slane %v11151_v57, %v12821_v51  ;;  %v12823_v13 = vld [vmem:[#allocation137_spill] sm:$0xff] }
 0x71d   :  { %v4670_v6 = vmax.f32 %v12798_v47, %v11045_v24  ;;  %v12809_v47 = vld [vmem:[#allocation192_spill] sm:$0xff]  ;;  %v12824_v2 = vld [vmem:[#allocation195_spill] sm:$0xff] }
 0x71e   :  { %v5191_v58 = vrot.slane %v12810_v61, %v12809_v47  ;;  %v5270_v54 = vrot.slane %v11129_v1, %v12809_v47  ;;  %v12818_v61 = vld [vmem:[#allocation194_spill] sm:$0xff] }
 0x71f   :  { %v11297_v63 = vpop.permute.xlu1 %4922  ;;  %v11299_v7 = vpop.permute.xlu0 %4877  ;;  %v5279_v15 = vrot.slane %v11135_v3, %v12818_v61  ;;  %v5200_v29 = vrot.slane %v11137_v34, %v12818_v61  ;;  %v4673_v34 = vmax.f32 %v12825_v31, %v12824_v2 }
 0x720   :  { %12795 = vst [vmem:[#allocation166_spill] sm:$0xff] %v11299_v7  ;;  %5036 = vperm.xlu1 %7342, %v4625_v42   ;;  %4991 = vperm.xlu0 %7343, %v4610_v18   ;;  %v12802_v7 = vld [vmem:[#allocation139_spill] sm:$0xff]  ;;  %v12808_v42 = vld [vmem:[#allocation190_spill] sm:$0xff] }
 0x721   :  { %v5195_v18 = vrot.slane %v11119_v43, %v12808_v42  ;;  %v5274_v4 = vrot.slane %v11127_v20, %v12808_v42  ;;  %v12820_v20 = vld [vmem:[#allocation119_spill] sm:$0xff]  ;;  %v5353_v1 = vrot.slane %v11143_v26, %v12808_v42  ;;  %v5358_v26 = vrot.slane %v11161_v32, %v12818_v61 }
 0x722   :  { %v5432_v57 = vrot.slane %v11169_v22, %v12808_v42  ;;  %v5428_v22 = vrot.slane %v11159_v0, %v12809_v47 }
 0x723   :  { %v11331_v19 = vpop.permute.xlu1 %5012  ;;  %v11333_v24 = vpop.permute.xlu0 %4967  ;;  %v5275_v37 = vsel %vm3208_vm1, %v5274_v4, %v5270_v54 }
 0x724   :  { %12815 = vst [vmem:[#allocation176_spill] sm:$0xff] %v11333_v24  ;;  %5126 = vperm.xlu1 %7342, %v4655_v39   ;;  %5081 = vperm.xlu0 %7343, %v4640_v35   ;;  %v5349_v24 = vrot.slane %v11145_v45, %v12809_v47  ;;  %v5196_v39 = vsel %vm3208_vm1, %v5195_v18, %v5191_v58  ;;  %v12826_v45 = vld [vmem:[#allocation46_spill] sm:$0xff] }
 0x725   :  { %v5205_v35 = vrot.slane %v11153_v56, %v12821_v51  ;;  %v5210_v50 = vrot.slane %v11167_v28, %v12826_v45  ;;  %v5280_v18 = vsel %vm3215_vm2, %v5279_v15, %v5275_v37  ;;  %v5201_v58 = vsel %vm3215_vm2, %v5200_v29, %v5196_v39  ;;  %v12827_v37 = vld [vmem:[#allocation197_spill] sm:$0xff] }
 0x726   :  { %v5363_v56 = vrot.slane %v11175_v11, %v12821_v51  ;;  %v5354_v32 = vsel %vm3208_vm1, %v5353_v1, %v5349_v24  ;;  %v5285_v28 = vsel %vm3222_vm3, %v5284_v30, %v5280_v18  ;;  %v5289_v4 = vrot.slane %v11177_v49, %v12826_v45 }
 0x727   :  { %v11363_v3 = vpop.permute.xlu1 %5102  ;;  %v11365_v43 = vpop.permute.xlu0 %5057  ;;  %v5206_v54 = vsel %vm3222_vm3, %v5205_v35, %v5201_v58  ;;  %v5215_v15 = vrot.slane %v11191_v12, %v12827_v37  ;;  %v5511_v11 = vrot.slane %v11193_v59, %v12808_v42  ;;  %v11387_v0 = vsel %vm3208_vm1, %v5432_v57, %v5428_v22  ;;  %v12829_v35 = vld [vmem:[#allocation55_spill] sm:$0xff] }
 0x728   :  { %4994 = vperm.xlu1 %7342, %v4611_v9   ;;  %5171 = vperm.xlu0 %7343, %v4670_v6   ;;  %v5368_v6 = vrot.slane %v11199_v40, %v12826_v45  ;;  %v5359_v9 = vsel %vm3215_vm2, %v5358_v26, %v5354_v32  ;;  %v5211_v30 = vsel %vm3229_vm4, %v5210_v50, %v5206_v54  ;;  %v12828_v40 = vld [vmem:[#allocation49_spill] sm:$0xff] }
 0x729   :  { %v5373_v49 = vrot.slane %v11233_v53, %v12827_v37  ;;  %v5364_v12 = vsel %vm3222_vm3, %v5363_v56, %v5359_v9  ;;  %v5507_v59 = vrot.slane %v11183_v17, %v12809_v47  ;;  %v5378_v1 = vrot.slane %v11265_v41, %v12828_v40 }
 0x72a   :  { %v11401_v50 = vsel %vm3229_vm4, %v5289_v4, %v5285_v28  ;;  %v5437_v53 = vrot.slane %v11185_v16, %v12818_v61  ;;  %v5516_v39 = vrot.slane %v11207_v48, %v12818_v61  ;;  %v5383_v26 = vrot.slane %v11297_v63, %v12829_v35  ;;  %v12870_v16 = vld [vmem:[#allocation198_spill] sm:$0xff] }
 0x72b   :  { %v11391_v24 = vpop.permute.xlu1 %4832  ;;  %v11393_v29 = vpop.permute.xlu0 %5147  ;;  %v5216_v57 = vsel %vm3236_vm5, %v5215_v15, %v5211_v30  ;;  %v5512_v17 = vsel %vm3208_vm1, %v5511_v11, %v5507_v59  ;;  %v5369_v41 = vsel %vm3229_vm4, %v5368_v6, %v5364_v12  ;;  %v5586_v18 = vrot.slane %v11217_v62, %v12809_v47  ;;  %v12835_v30 = vld [vmem:[#allocation106_spill] sm:$0xff]  ;;  %v12838_v59 = vld [vmem:[#allocation99_spill] sm:$0xff] }
 0x72c   :  { %5084 = vperm.xlu1 %7342, %v4641_v5   ;;  %5039 = vperm.xlu0 %7343, %v4626_v14   ;;  %v5294_v5 = vrot.slane %v11201_v8, %v12827_v37  ;;  %v5590_v14 = vrot.slane %v11215_v33, %v12808_v42  ;;  %v5374_v48 = vsel %vm3236_vm5, %v5373_v49, %v5369_v41  ;;  %v12830_v8 = vld [vmem:[#allocation199_spill] sm:$0xff]  ;;  %v12836_v49 = vld [vmem:[#allocation178_spill] sm:$0xff] }
 0x72d   :  { %v5521_v63 = vrot.slane %v11241_v25, %v12821_v51  ;;  %v5379_v32 = vsel %vm3243_vm6, %v5378_v1, %v5374_v48  ;;  %v5526_v28 = vrot.slane %v11273_v38, %v12826_v45  ;;  %v12831_v33 = vmax.f32 %v12801_v46, %v11059_v44  ;;  %v12839_v1 = vld [vmem:[#allocation151_spill] sm:$0xff] }
 0x72e   :  { %v12832_v62 = vmax.f32 %v12803_v60, %v12802_v7  ;;  %v5517_v25 = vsel %vm3215_vm2, %v5516_v39, %v5512_v17  ;;  %v5220_v4 = vrot.slane %v11225_v21, %v12828_v40  ;;  %v5384_v54 = vsel %vm12833_vm0, %v5383_v26, %v5379_v32  ;;  %v12843_v32 = vld [vmem:[#allocation172_spill] sm:$0xff] }
 0x72f   :  { %v4926_v58 = vpop.permute.xlu1 %4925  ;;  %v11421_v56 = vpop.permute.xlu0 %4880  ;;  %v5531_v38 = vrot.slane %v11331_v19, %v12827_v37  ;;  %v5595_v15 = vrot.slane %v11239_v10, %v12818_v61  ;;  %v5669_v44 = vrot.slane %v11247_v23, %v12808_v42  ;;  %v5665_v60 = vrot.slane %v11249_v27, %v12809_v47 }
 0x730   :  { %v5388_v22 = vrot.slane %v4926_v58, %v12830_v8  ;;  %5174 = vperm.xlu1 %7342, %v12831_v33   ;;  %5129 = vperm.xlu0 %7343, %v12832_v62   ;;  %v5591_v46 = vsel %vm3208_vm1, %v5590_v14, %v5586_v18  ;;  %v5522_v21 = vsel %vm3222_vm3, %v5521_v63, %v5517_v25  ;;  %v12841_v14 = vld [vmem:[#allocation186_spill] sm:$0xff]  ;;  %v12844_v33 = vld [vmem:[#allocation193_spill] sm:$0xff] }
 0x731   :  { %v5600_v11 = vrot.slane %v11271_v52, %v12821_v51  ;;  %v5674_v19 = vrot.slane %v11281_v55, %v12818_v61  ;;  %v5299_v23 = vrot.slane %v11223_v36, %v12828_v40  ;;  %v5527_v27 = vsel %vm3229_vm4, %v5526_v28, %v5522_v21 }
 0x732   :  { %v11446_v7 = vsel %vm12834_vm10, %v5388_v22, %v5384_v54  ;;  %v12837_v12 = vmax.f32 %v12835_v30, %v12836_v49  ;;  %v12840_v52 = vmax.f32 %v12838_v59, %v12839_v1  ;;  %v5221_v55 = vsel %vm3243_vm6, %v5220_v4, %v5216_v57  ;;  %v12842_v57 = vld [vmem:[#allocation169_spill] sm:$0xff]  ;;  %v12845_v54 = vld [vmem:[#allocation148_spill] sm:$0xff]  ;;  %v12853_v1 = vld [vmem:[#allocation202_spill] sm:$0xff] }
 0x733   :  { %v5016_v10 = vpop.permute.xlu1 %5015  ;;  %v11454_v6 = vpop.permute.xlu0 %4970  ;;  %v5532_v39 = vsel %vm3236_vm5, %v5531_v38, %v5527_v27  ;;  %v5679_v26 = vrot.slane %v11363_v3, %v12821_v51  ;;  %v5605_v36 = vrot.slane %v11365_v43, %v12826_v45  ;;  %v5596_v17 = vsel %vm3215_vm2, %v5595_v15, %v5591_v46  ;;  %v12846_v38 = vld [vmem:[#allocation158_spill] sm:$0xff] }
 0x734   :  { %v5536_v9 = vrot.slane %v5016_v10, %v12828_v40  ;;  %5087 = vperm.xlu1 %7342, %v12837_v12   ;;  %5042 = vperm.xlu0 %7343, %v12840_v52   ;;  %v5670_v41 = vsel %vm3208_vm1, %v5669_v44, %v5665_v60  ;;  %v5225_v18 = vrot.slane %v12841_v14, %v12829_v35  ;;  %v12848_v44 = vld [vmem:[#allocation127_spill] sm:$0xff]  ;;  %v12849_v60 = vld [vmem:[#allocation164_spill] sm:$0xff]  ;;  %v12856_v14 = vld [vmem:[#allocation134_spill] sm:$0xff] }
 0x735   :  { %v5304_v63 = vrot.slane %v12842_v57, %v12829_v35  ;;  %v5601_v58 = vsel %vm3222_vm3, %v5600_v11, %v5596_v17  ;;  %v5675_v3 = vsel %vm3215_vm2, %v5674_v19, %v5670_v41  ;;  %v5230_v43 = vrot.slane %v12843_v32, %v12830_v8  ;;  %v12851_v19 = vld [vmem:[#allocation201_spill] sm:$0xff] }
 0x736   :  { %v11477_v48 = vsel %vm3243_vm6, %v5536_v9, %v5532_v39  ;;  %v5748_v62 = vrot.slane %v12844_v33, %v12808_v42  ;;  %v12847_v15 = vmax.f32 %v12845_v54, %v12846_v38  ;;  %v12850_v46 = vmax.f32 %v12848_v44, %v12849_v60  ;;  %v12852_v9 = vld [vmem:[#allocation163_spill] sm:$0xff]  ;;  %v12854_v39 = vld [vmem:[#allocation166_spill] sm:$0xff]  ;;  %v12867_v38 = vld [vmem:[#allocation176_spill] sm:$0xff] }
 0x737   :  { %v5106_v28 = vpop.permute.xlu1 %5105  ;;  %v5061_v22 = vpop.permute.xlu0 %5060  ;;  %v5680_v21 = vsel %vm3222_vm3, %v5679_v26, %v5675_v3  ;;  %v5606_v11 = vsel %vm3229_vm4, %v5605_v36, %v5601_v58  ;;  %v5235_v10 = vrot.slane %v11391_v24, %v12851_v19  ;;  %v5753_v42 = vrot.slane %v11393_v29, %v12818_v61  ;;  %v12868_v60 = vld [vmem:[#allocation174_spill] sm:$0xff]  ;;  %v12871_v61 = vld [vmem:[#allocation152_spill] sm:$0xff] }
 0x738   :  { %v5684_v25 = vrot.slane %v5106_v28, %v12826_v45  ;;  %v5610_v4 = vrot.slane %v5061_v22, %v12827_v37  ;;  %5177 = vperm.xlu1 %7342, %v12847_v15   ;;  %5132 = vperm.xlu0 %7343, %v12850_v46   ;;  %v5226_v27 = vsel %vm12833_vm0, %v5225_v18, %v5221_v55  ;;  %v12857_v18 = vld [vmem:[#allocation170_spill] sm:$0xff]  ;;  %vm12861_vm0 = vcmask 654912   ;;  %v12862_v28 = vld [vmem:[#allocation147_spill] sm:$0xff] }
 0x739   :  { %v5744_v30 = vrot.slane %v12852_v9, %v12809_v47  ;;  %v5295_v59 = vsel %vm3236_vm5, %v5294_v5, %v11401_v50  ;;  %v5442_v52 = vrot.slane %v12853_v1, %v12821_v51  ;;  %v5231_v24 = vsel %vm12834_vm10, %v5230_v43, %v5226_v27  ;;  %v12855_v47 = vld [vmem:[#allocation51_spill] sm:$0xff]  ;;  %v12859_v50 = vld [vmem:[#allocation182_spill] sm:$0xff] }
 0x73a   :  { %v5685_v49 = vsel %vm3229_vm4, %v5684_v25, %v5680_v21  ;;  %v5611_v12 = vsel %vm3236_vm5, %v5610_v4, %v5606_v11  ;;  %v5309_v29 = vrot.slane %v12854_v39, %v12830_v8  ;;  %v12858_v57 = vmax.f32 %v12856_v14, %v12857_v18 }
 0x73b   :  { %v4836_v26 = vpop.permute.xlu1 %4835  ;;  %v5151_v55 = vpop.permute.xlu0 %5150  ;;  %v5749_v36 = vsel %vm3208_vm1, %v5748_v62, %v5744_v30  ;;  %v12860_v5 = vmax.f32 %v12820_v20, %v12859_v50  ;;  %v5300_v58 = vsel %vm3243_vm6, %v5299_v23, %v5295_v59  ;;  %v5236_v3 = vsel %vm12861_vm0, %v5235_v10, %v5231_v24  ;;  %v12865_v23 = vld [vmem:[#allocation155_spill] sm:$0xff]  ;;  %v12873_v10 = vld [vmem:[#allocation136_spill] sm:$0xff] }
 0x73c   :  { %v5240_v17 = vrot.slane %v4836_v26, %v12855_v47  ;;  %v5758_v41 = vrot.slane %v5151_v55, %v12821_v51  ;;  %5135 = vperm.xlu1 %7342, %v12858_v57   ;;  %v5754_v32 = vsel %vm3215_vm2, %v5753_v42, %v5749_v36  ;;  %v5314_v43 = vrot.slane %v11421_v56, %v12851_v19  ;;  %v12874_v42 = vld [vmem:[#allocation162_spill] sm:$0xff] }
 0x73d   :  { %5090 = vperm.xlu0 %7343, %v12860_v5   ;;  %v5447_v51 = vrot.slane %v12862_v28, %v12826_v45  ;;  %vm12863_vm1 = vcmask 523712   ;;  %vm12864_vm10 = vcmask 720512   ;;  %v5438_v20 = vsel %vm3215_vm2, %v5437_v53, %v11387_v0  ;;  %v12879_v57 = vld [vmem:[#allocation66_spill] sm:$0xff] }
 0x73e   :  { %v5305_v22 = vsel %vm12863_vm1, %v5304_v63, %v5300_v58  ;;  %v5241_v33 = vsel %vm12864_vm10, %v5240_v17, %v5236_v3  ;;  %v5759_v62 = vsel %vm3222_vm3, %v5758_v41, %v5754_v32  ;;  %v5452_v25 = vrot.slane %v12865_v23, %v12827_v37 }
 0x73f   :  { %vm12866_vm0 = vcmask 589312   ;;  %v4929_v4 = vpop.permute.xlu1 %4928  ;;  %v4884_v54 = vpop.permute.xlu0 %4883  ;;  %v5457_v63 = vrot.slane %v12867_v38, %v12828_v40  ;;  %v12869_v46 = vmax.f32 %v12823_v13, %v12868_v60  ;;  %v4675_v0 = vmax.f32 %v12871_v61, %v12870_v16 }
 0x740   :  { %v5310_v56 = vsel %vm12866_vm0, %v5309_v29, %v5305_v22  ;;  %v5393_v15 = vrot.slane %v4929_v4, %v12851_v19  ;;  %v5319_v44 = vrot.slane %v4884_v54, %v12855_v47  ;;  %v5443_v53 = vsel %vm3222_vm3, %v5442_v52, %v5438_v20 }
 0x741   :  { %5138 = vperm.xlu1 %7342, %v12869_v46   ;;  %5180 = vperm.xlu0 %7343, %v4673_v34   ;;  %vm12872_vm2 = vcmask 654912   ;;  %v5462_v11 = vrot.slane %v11454_v6, %v12829_v35  ;;  %v4674_v27 = vmax.f32 %v12874_v42, %v12873_v10  ;;  %v5448_v13 = vsel %vm3229_vm4, %v5447_v51, %v5443_v53 }
 0x742   :  { %v5315_v21 = vsel %vm12872_vm2, %v5314_v43, %v5310_v56  ;;  %vm12875_vm1 = vmmov %vm12872_vm2  ;;  %v5453_v31 = vsel %vm3236_vm5, %v5452_v25, %v5448_v13  ;;  %vm12876_vm3 = vcmask 523712   ;;  %vm12878_vm2 = vcmask 589312  }
 0x743   :  { %v5394_v9 = vsel %vm12875_vm1, %v5393_v15, %v11446_v7  ;;  %v5320_v2 = vsel %vm12864_vm10, %v5319_v44, %v5315_v21  ;;  %v5019_v34 = vpop.permute.xlu1 %5018  ;;  %v4974_v30 = vpop.permute.xlu0 %4973  ;;  %v5458_v59 = vsel %vm3243_vm6, %v5457_v63, %v5453_v31  ;;  %v11570_v7 = vld [vmem:[%s12120_s1] sm:$0xff]  ;;  %vm12877_vm0 = vmmov %vm12876_vm3  ;;  %v12884_v44 = vld [vmem:[#allocation62_spill] sm:$0xff]  ;;  %s8270_s1 = smov 126  }
 0x744   :  { %v5541_v1 = vrot.slane %v5019_v34, %v12829_v35  ;;  %v5467_v6 = vrot.slane %v4974_v30, %v12830_v8  ;;  %v5463_v52 = vsel %vm12876_vm3, %v5462_v11, %v5458_v59  ;;  %vm12880_vm1 = vmmov %vm12864_vm10  ;;  %vm12882_vm3 = vcmask 654912  }
 0x745   :  { %5186 = vperm.xlu1 %7342, %v4675_v0   ;;  %5183 = vperm.xlu0 %7343, %v4674_v27   ;;  %vm12881_vm10 = vmmov %vm12878_vm2 }
 0x746   :  { %v5542_v24 = vsel %vm12877_vm0, %v5541_v1, %v11477_v48  ;;  %v5468_v39 = vsel %vm12878_vm2, %v5467_v6, %v5463_v52  ;;  %vm12886_vm2 = vmmov %vm12880_vm1 }
 0x747   :  { %v5109_v29 = vpop.permute.xlu1 %5108  ;;  %v5064_v26 = vpop.permute.xlu0 %5063 }
 0x748   :  { %v5689_v55 = vrot.slane %v5109_v29, %v12827_v37  ;;  %v5615_v36 = vrot.slane %v5064_v26, %v12828_v40  ;;  %v12889_v29 = vld [vmem:[#allocation54_spill] sm:$0xff] }
 0x749   :  { %2682 = vrot.lane.b32.xlu0 %v11570_v7, %s8269_s5 }
 0x74a   :  { %v5690_v17 = vsel %vm3236_vm5, %v5689_v55, %v5685_v49  ;;  %v5616_v41 = vsel %vm3243_vm6, %v5615_v36, %v5611_v12 }
 0x74b   :  { %v4839_v14 = vpop.permute.xlu1 %4838  ;;  %v5154_v18 = vpop.permute.xlu0 %5153 }
 0x74c   :  { %v5245_v50 = vrot.slane %v4839_v14, %v12879_v57  ;;  %v5763_v48 = vrot.slane %v5154_v18, %v12826_v45 }
 0x74e   :  { %v5246_v5 = vsel %vm3278_vm11, %v5245_v50, %v5241_v33  ;;  %v5764_v58 = vsel %vm3229_vm4, %v5763_v48, %v5759_v62  ;;  %vm12883_vm4 = vmmov %vm12877_vm0 }
 0x74f   :  { %v4932_v3 = vpop.permute.xlu1 %4931  ;;  %v4887_v32 = vpop.permute.xlu0 %4886  ;;  %vm12885_vm0 = vmmov %vm12882_vm3 }
 0x750   :  { %v5398_v43 = vrot.slane %v4932_v3, %v12855_v47  ;;  %v5324_v28 = vrot.slane %v4887_v32, %v12879_v57 }
 0x752   :  { %v5399_v49 = vsel %vm12880_vm1, %v5398_v43, %v5394_v9  ;;  %v5325_v12 = vsel %vm3278_vm11, %v5324_v28, %v5320_v2  ;;  %vm12888_vm1 = vmmov %vm12881_vm10 }
 0x753   :  { %v5022_v51 = vpop.permute.xlu1 %5021  ;;  %v4977_v22 = vpop.permute.xlu0 %4976 }
 0x754   :  { %v5546_v20 = vrot.slane %v5022_v51, %v12830_v8  ;;  %v5472_v45 = vrot.slane %v4977_v22, %v12851_v19 }
 0x756   :  { %v5547_v33 = vsel %vm12881_vm10, %v5546_v20, %v5542_v24  ;;  %v5473_v62 = vsel %vm12882_vm3, %v5472_v45, %v5468_v39  ;;  %vm12890_vm10 = vmmov %vm12886_vm2 }
 0x757   :  { %v5112_v23 = vpop.permute.xlu1 %5111  ;;  %v5067_v25 = vpop.permute.xlu0 %5066  ;;  %vm12892_vm3 = vmmov %vm12885_vm0 }
 0x758   :  { %v5694_v56 = vrot.slane %v5112_v23, %v12828_v40  ;;  %v5620_v4 = vrot.slane %v5067_v25, %v12829_v35  ;;  %v12893_v23 = vld [vmem:[#allocation65_spill] sm:$0xff] }
 0x75a   :  { %v5695_v54 = vsel %vm3243_vm6, %v5694_v56, %v5690_v17  ;;  %v5621_v38 = vsel %vm12883_vm4, %v5620_v4, %v5616_v41 }
 0x75b   :  { %v4842_v63 = vpop.permute.xlu1 %4841  ;;  %v5157_v15 = vpop.permute.xlu0 %5156 }
 0x75c   :  { %v5250_v60 = vrot.slane %v4842_v63, %v12884_v44  ;;  %v5768_v46 = vrot.slane %v5157_v15, %v12827_v37 }
 0x75e   :  { %v5251_v16 = vsel %vm3285_vm12, %v5250_v60, %v5246_v5  ;;  %v5769_v61 = vsel %vm3236_vm5, %v5768_v46, %v5764_v58  ;;  %vm12887_vm5 = vmmov %vm12883_vm4 }
 0x75f   :  { %v4935_v0 = vpop.permute.xlu1 %4934  ;;  %v4890_v53 = vpop.permute.xlu0 %4889 }
 0x760   :  { %v5403_v21 = vrot.slane %v4935_v0, %v12879_v57  ;;  %v5329_v11 = vrot.slane %v4890_v53, %v12884_v44 }
 0x762   :  { %v5404_v10 = vsel %vm3278_vm11, %v5403_v21, %v5399_v49  ;;  %v5330_v42 = vsel %vm3285_vm12, %v5329_v11, %v5325_v12 }
 0x763   :  { %v5025_v27 = vpop.permute.xlu1 %5024  ;;  %v4980_v13 = vpop.permute.xlu0 %4979 }
 0x764   :  { %v5551_v9 = vrot.slane %v5025_v27, %v12851_v19  ;;  %v5477_v37 = vrot.slane %v4980_v13, %v12855_v47 }
 0x766   :  { %v5552_v2 = vsel %vm12885_vm0, %v5551_v9, %v5547_v33  ;;  %v5478_v31 = vsel %vm12886_vm2, %v5477_v37, %v5473_v62  ;;  %vm12895_vm0 = vcmask 1041409   ;;  %vm12896_vm2 = vcmask 1042434  }
 0x767   :  { %v5115_v34 = vpop.permute.xlu1 %5114  ;;  %v5070_v30 = vpop.permute.xlu0 %5069 }
 0x768   :  { %v5699_v59 = vrot.slane %v5115_v34, %v12829_v35  ;;  %v5625_v1 = vrot.slane %v5070_v30, %v12830_v8 }
 0x76a   :  { %v5700_v6 = vsel %vm12887_vm5, %v5699_v59, %v5695_v54  ;;  %v5626_v52 = vsel %vm12888_vm1, %v5625_v1, %v5621_v38  ;;  %vm12897_vm5 = vcmask 1043459  }
 0x76b   :  { %v4845_v24 = vpop.permute.xlu1 %4844  ;;  %v5160_v39 = vpop.permute.xlu0 %5159 }
 0x76c   :  { %v5255_v26 = vrot.slane %v4845_v24, %v12889_v29  ;;  %v5773_v55 = vrot.slane %v5160_v39, %v12828_v40 }
 0x76e   :  { %v5256_v36 = vsel %vm3292_vm13, %v5255_v26, %v5251_v16  ;;  %v5774_v17 = vsel %vm3243_vm6, %v5773_v55, %v5769_v61  ;;  %vm12891_vm6 = vmmov %vm12888_vm1 }
 0x76f   :  { %v4938_v41 = vpop.permute.xlu1 %4937  ;;  %v4893_v14 = vpop.permute.xlu0 %4892  ;;  %vm12898_vm1 = vmmov %vm12890_vm10 }
 0x770   :  { %v5408_v18 = vrot.slane %v4938_v41, %v12884_v44  ;;  %v5334_v50 = vrot.slane %v4893_v14, %v12889_v29 }
 0x772   :  { %v5409_v48 = vsel %vm3285_vm12, %v5408_v18, %v5404_v10  ;;  %v5335_v5 = vsel %vm3292_vm13, %v5334_v50, %v5330_v42 }
 0x773   :  { %v5028_v58 = vpop.permute.xlu1 %5027  ;;  %v4983_v3 = vpop.permute.xlu0 %4982 }
 0x774   :  { %v5556_v32 = vrot.slane %v5028_v58, %v12855_v47  ;;  %v5482_v40 = vrot.slane %v4983_v3, %v12879_v57 }
 0x776   :  { %v11624_v43 = vsel %vm12890_vm10, %v5556_v32, %v5552_v2  ;;  %v5483_v28 = vsel %vm3278_vm11, %v5482_v40, %v5478_v31  ;;  %vm12899_vm10 = vmmov %vm12892_vm3 }
 0x777   :  { %v5118_v49 = vpop.permute.xlu1 %5117  ;;  %v5073_v12 = vpop.permute.xlu0 %5072 }
 0x778   :  { %v5704_v51 = vrot.slane %v5118_v49, %v12830_v8  ;;  %v5630_v22 = vrot.slane %v5073_v12, %v12851_v19 }
 0x77a   :  { %v11630_v20 = vsel %vm12891_vm6, %v5704_v51, %v5700_v6  ;;  %v11633_v45 = vsel %vm12892_vm3, %v5630_v22, %v5626_v52  ;;  %vm12900_vm6 = vmmov %vm12898_vm1  ;;  %vm12901_vm3 = vcmask 589312  }
 0x77b   :  { %v4848_v33 = vpop.permute.xlu1 %4847  ;;  %v5163_v62 = vpop.permute.xlu0 %5162 }
 0x77c   :  { %v5260_v25 = vrot.slane %v4848_v33, %v12893_v23  ;;  %v5778_v56 = vrot.slane %v5163_v62, %v12829_v35  ;;  %v12894_v35 = vld [vmem:[#allocation61_spill] sm:$0xff] }
 0x77e   :  { %v5261_v4 = vsel %vm3299_vm14, %v5260_v25, %v5256_v36  ;;  %v11639_v54 = vsel %vm12883_vm4, %v5778_v56, %v5774_v17  ;;  %vm12902_vm4 = vmmov %vm12899_vm10 }
 0x77f   :  { %v4941_v38 = vpop.permute.xlu1 %4940  ;;  %v4896_v63 = vpop.permute.xlu0 %4895 }
 0x780   :  { %v5339_v15 = vrot.slane %v4896_v63, %v12893_v23  ;;  %v5413_v59 = vrot.slane %v4941_v38, %v12889_v29 }
 0x782   :  { %v5340_v60 = vsel %vm3299_vm14, %v5339_v15, %v5335_v5  ;;  %v5414_v24 = vsel %vm3292_vm13, %v5413_v59, %v5409_v48 }
 0x783   :  { %v5031_v46 = vpop.permute.xlu1 %5030  ;;  %v4986_v16 = vpop.permute.xlu0 %4985 }
 0x784   :  { %v5487_v14 = vrot.slane %v4986_v16, %v12884_v44  ;;  %v5561_v25 = vrot.slane %v5031_v46, %v12879_v57 }
 0x786   :  { %v5488_v48 = vsel %vm3285_vm12, %v5487_v14, %v5483_v28  ;;  %v5562_v15 = vsel %vm3278_vm11, %v5561_v25, %v11624_v43 }
 0x787   :  { %v11643_v61 = vpop.permute.xlu1 %5120  ;;  %v11645_v0 = vpop.permute.xlu0 %5075 }
 0x788   :  { %v5635_v46 = vrot.slane %v11645_v0, %v12855_v47  ;;  %v5709_v43 = vrot.slane %v11643_v61, %v12851_v19 }
 0x78a   :  { %v5636_v0 = vsel %vm12898_vm1, %v5635_v46, %v11633_v45 }
 0x78b   :  { %v4851_v53 = vpop.permute.xlu1 %4850  ;;  %v11647_v21 = vpop.permute.xlu0 %5165 }
 0x78c   :  { %v5265_v11 = vrot.slane %v4851_v53, %v12894_v35  ;;  %v5783_v45 = vrot.slane %v11647_v21, %v12830_v8 }
 0x78e   :  { %v5266_v13 = vsel %vm3306_vm15, %v5265_v11, %v5261_v4 }
 0x78f   :  { %v4944_v10 = vpop.permute.xlu1 %4943  ;;  %v4899_v42 = vpop.permute.xlu0 %4898 }
 0x790   :  { %v5344_v27 = vrot.slane %v4899_v42, %v12894_v35  ;;  %v5418_v1 = vrot.slane %v4944_v10, %v12893_v23 }
 0x792   :  { %v5345_v9 = vsel %vm3306_vm15, %v5344_v27, %v5340_v60  ;;  %v5419_v26 = vsel %vm3299_vm14, %v5418_v1, %v5414_v24  ;;  %v5710_v24 = vsel %vm12899_vm10, %v5709_v43, %v11630_v20 }
 0x793   :  { %v5820_v37 = vsel %vm12895_vm0, %v5345_v9, %v5266_v13  ;;  %v5034_v2 = vpop.permute.xlu1 %5033  ;;  %v4989_v31 = vpop.permute.xlu0 %4988  ;;  %vm12903_vm0 = vmmov %vm12898_vm1 }
 0x794   :  { %v5492_v5 = vrot.slane %v4989_v31, %v12889_v29  ;;  %v5566_v56 = vrot.slane %v5034_v2, %v12884_v44 }
 0x796   :  { %v5493_v40 = vsel %vm3292_vm13, %v5492_v5, %v5488_v48  ;;  %v5567_v60 = vsel %vm3285_vm12, %v5566_v56, %v5562_v15 }
 0x797   :  { %v11654_v34 = vpop.permute.xlu1 %5123  ;;  %v5079_v30 = vpop.permute.xlu0 %5078 }
 0x798   :  { %v5640_v27 = vrot.slane %v5079_v30, %v12879_v57  ;;  %v5714_v1 = vrot.slane %v11654_v34, %v12855_v47 }
 0x79a   :  { %v5715_v14 = vsel %vm12900_vm6, %v5714_v1, %v5710_v24 }
 0x79b   :  { %v4947_v6 = vpop.permute.xlu1 %4946  ;;  %v11658_v52 = vpop.permute.xlu0 %5168 }
 0x79c   :  { %v5423_v39 = vrot.slane %v4947_v6, %v12894_v35  ;;  %v5641_v6 = vsel %vm3278_vm11, %v5640_v27, %v5636_v0  ;;  %v5788_v20 = vrot.slane %v11658_v52, %v12851_v19  ;;  %v5784_v19 = vsel %vm12901_vm3, %v5783_v45, %v11639_v54 }
 0x79e   :  { %v5424_v55 = vsel %vm3306_vm15, %v5423_v39, %v5419_v26 }
 0x79f   :  { %v5821_v36 = vsel %vm12896_vm2, %v5424_v55, %v5820_v37  ;;  %v5037_v17 = vpop.permute.xlu1 %5036  ;;  %v4992_v41 = vpop.permute.xlu0 %4991 }
 0x7a0   :  { %v5497_v58 = vrot.slane %v4992_v41, %v12893_v23  ;;  %v5571_v38 = vrot.slane %v5037_v17, %v12889_v29 }
 0x7a2   :  { %v5498_v12 = vsel %vm3299_vm14, %v5497_v58, %v5493_v40  ;;  %v5572_v11 = vsel %vm3292_vm13, %v5571_v38, %v5567_v60  ;;  %v12904_v60 = vld [vmem:[#allocation185_spill] sm:$0xff] }
 0x7a3   :  { %v5127_v18 = vpop.permute.xlu1 %5126  ;;  %v5082_v50 = vpop.permute.xlu0 %5081  ;;  %vm12905_vm2 = vcmp.lt.s32.totalorder %v12904_v60, 127  ;;  %vm5854_vm10 = vcmp.lt.s32.totalorder %v12904_v60, 120  ;;  %vm5865_vm3 = vcmp.lt.s32.totalorder %v12904_v60, 112 }
 0x7a4   :  { %v5645_v9 = vrot.slane %v5082_v50, %v12884_v44  ;;  %v5719_v61 = vrot.slane %v5127_v18, %v12879_v57 }
 0x7a6   :  { %v5646_v39 = vsel %vm3285_vm12, %v5645_v9, %v5641_v6  ;;  %v5720_v5 = vsel %vm3278_vm11, %v5719_v61, %v5715_v14 }
 0x7a7   :  { %v4995_v3 = vpop.permute.xlu1 %4994  ;;  %v11669_v32 = vpop.permute.xlu0 %5171 }
 0x7a8   :  { %v5502_v49 = vrot.slane %v4995_v3, %v12894_v35  ;;  %v5793_v8 = vrot.slane %v11669_v32, %v12855_v47  ;;  %v5789_v47 = vsel %vm12902_vm4, %v5788_v20, %v5784_v19 }
 0x7aa   :  { %v5503_v51 = vsel %vm3306_vm15, %v5502_v49, %v5498_v12 }
 0x7ab   :  { %v5822_v22 = vsel %vm12897_vm5, %v5503_v51, %v5821_v36  ;;  %v5085_v33 = vpop.permute.xlu1 %5084  ;;  %v5040_v62 = vpop.permute.xlu0 %5039 }
 0x7ac   :  { %v5576_v63 = vrot.slane %v5040_v62, %v12893_v23  ;;  %v5650_v59 = vrot.slane %v5085_v33, %v12889_v29 }
 0x7ae   :  { %v5577_v42 = vsel %vm3299_vm14, %v5576_v63, %v5572_v11  ;;  %v5651_v34 = vsel %vm3292_vm13, %v5650_v59, %v5646_v39 }
 0x7af   :  { %v5175_v28 = vpop.permute.xlu1 %5174  ;;  %v5130_v4 = vpop.permute.xlu0 %5129 }
 0x7b0   :  { %v5724_v26 = vrot.slane %v5130_v4, %v12884_v44  ;;  %v5798_v58 = vrot.slane %v5175_v28, %v12879_v57 }
 0x7b2   :  { %v5725_v48 = vsel %vm3285_vm12, %v5724_v26, %v5720_v5 }
 0x7b3   :  { %v5088_v16 = vpop.permute.xlu1 %5087  ;;  %v5043_v53 = vpop.permute.xlu0 %5042 }
 0x7b4   :  { %v5581_v10 = vrot.slane %v5043_v53, %v12894_v35  ;;  %v5655_v30 = vrot.slane %v5088_v16, %v12893_v23 }
 0x7b6   :  { %v5582_v13 = vsel %vm3306_vm15, %v5581_v10, %v5577_v42  ;;  %v5656_v18 = vsel %vm3299_vm14, %v5655_v30, %v5651_v34  ;;  %v12907_v10 = vld [vmem:[#allocation63_spill] sm:$0xff] }
 0x7b7   :  { %v5823_v37 = vsel %vm3867_vm9, %v5582_v13, %v5822_v22  ;;  %v5178_v2 = vpop.permute.xlu1 %5177  ;;  %v5133_v31 = vpop.permute.xlu0 %5132  ;;  %v5794_v22 = vsel %vm12903_vm0, %v5793_v8, %v5789_v47  ;;  %vm5876_vm0 = vcmp.lt.s32.totalorder %v12904_v60, 96  ;;  %v8209_v47 = vld [vmem:[%s12116_s0 + $0x28] sm:$0xff]  }
 0x7b8   :  { %v5729_v17 = vrot.slane %v5133_v31, %v12889_v29  ;;  %v5803_v52 = vrot.slane %v5178_v2, %v12884_v44  ;;  %v5799_v62 = vsel %vm3278_vm11, %v5798_v58, %v5794_v22  ;;  %vm12906_vm11 = vcmask 1047559   ;;  %v8204_v58 = vld [vmem:[%s12116_s0] sm:$0xff]  }
 0x7b9   :  { %v174_v22 = vld [vmem:[%s12121_s2] sm:$0xff] }
 0x7ba   :  { %v5730_v12 = vsel %vm3292_vm13, %v5729_v17, %v5725_v48  ;;  %v5804_v56 = vsel %vm3285_vm12, %v5803_v52, %v5799_v62  ;;  %vm5832_vm12 = vcmp.lt.s32.totalorder %v12904_v60, 126  ;;  %v8206_v52 = vld [vmem:[%s12116_s0 + $0x10] sm:$0xff]  }
 0x7bb   :  { %v5136_v55 = vpop.permute.xlu1 %5135 }
 0x7bc   :  { %v5091_v36 = vpop.permute.xlu0 %5090  ;;  %v5734_v50 = vrot.slane %v5136_v55, %v12893_v23 }
 0x7bd   :  { %v5660_v41 = vrot.slane %v5091_v36, %v12894_v35 }
 0x7be   :  { %v5735_v32 = vsel %vm3299_vm14, %v5734_v50, %v5730_v12  ;;  %v8207_v12 = vld [vmem:[%s12116_s0 + $0x18] sm:$0xff]  }
 0x7bf   :  { %v5661_v21 = vsel %vm3306_vm15, %v5660_v41, %v5656_v18 }
 0x7c0   :  { %v5824_v3 = vsel %vm3869_vm8, %v5661_v21, %v5823_v37  ;;  %v5139_v40 = vpop.permute.xlu1 %5138  ;;  %v5181_v49 = vpop.permute.xlu0 %5180  ;;  %v8275_v21 = vmov 0.0  }
 0x7c1   :  { %v5739_v51 = vrot.slane %v5139_v40, %v12894_v35  ;;  %v5808_v57 = vrot.slane %v5181_v49, %v12889_v29  ;;  %7163 = vmatprep.subr.bf16.mxu1 %v8275_v21  ;;  %v8205_v49 = vld [vmem:[%s12116_s0 + $0x8] sm:$0xff]  }
 0x7c2   :  { %7164 = vmatpush3.bf16.msra.mxu1 %v8204_v58  ;;  %v8227_v58 = vld [vmem:[%s12116_s0 + $0xb8] sm:$0xff]  }
 0x7c3   :  { %v5740_v33 = vsel %vm3306_vm15, %v5739_v51, %v5735_v32  ;;  %v5809_v38 = vsel %vm3292_vm13, %v5808_v57, %v5804_v56  ;;  %vm12908_vm13 = vmmov %vm12905_vm2  ;;  %7165 = vmatprep.subr.bf16.mxu1 %v8275_v21  ;;  %v8208_v51 = vld [vmem:[%s12116_s0 + $0x20] sm:$0xff]   ;;  %v8210_v32 = vld [vmem:[%s12116_s0 + $0x30] sm:$0xff]  }
 0x7c4   :  { %v5825_v54 = vsel %vm3871_vm7, %v5740_v33, %v5824_v3  ;;  %v5187_v25 = vpop.permute.xlu1 %5186  ;;  %v5184_v44 = vpop.permute.xlu0 %5183  ;;  %v8211_v57 = vld [vmem:[%s12116_s0 + $0x38] sm:$0xff]  }
 0x7c5   :  { %v5818_v28 = vrot.slane %v5187_v25, %v12894_v35  ;;  %v5813_v4 = vrot.slane %v5184_v44, %v12893_v23 }
 0x7c6   :  { %7166 = vmatpush3.bf16.msra.mxu1 %v8205_v49  ;;  %v8230_v49 = vld [vmem:[%s12116_s0 + $0xd0] sm:$0xff]  }
 0x7c7   :  { %v5814_v29 = vsel %vm3299_vm14, %v5813_v4, %v5809_v38  ;;  %7167 = vmatprep.subr.bf16.mxu1 %v8275_v21 }
 0x7c8   :  { %v5819_v63 = vsel %vm3306_vm15, %v5818_v28, %v5814_v29  ;;  %v2683_v15 = vpop.permute.xlu0 %2682  ;;  %vm5843_vm15 = vcmp.lt.s32.totalorder %v12904_v60, 124 }
 0x7c9   :  { %v2685_v16 = vsel %vm12905_vm2, %v2683_v15, 0.0  ;;  %v5826_v53 = vsel %vm12906_vm11, %v5819_v63, %v5825_v54  ;;  %vm5893_vm11 = vcmp.eq.f32.partialorder %v174_v22, 0.0 }
 0x7ca   :  { %v2686_v11 = vsub.f32 1.0, %v2685_v16  ;;  %7168 = vmatpush3.bf16.msra.mxu1 %v8206_v52  ;;  %v8278_v16 = vmov 1966171168   ;;  %v8232_v52 = vld [vmem:[%s12116_s0 + $0xe0] sm:$0xff]  }
 0x7cb   :  { %7169 = vmatprep.subr.bf16.mxu1 %v8275_v21 }
 0x7cc   :  { %vm3882_vm5 = vcmp.gt.f32.partialorder %v2686_v11, 0.5  ;;  %3879 = vrot.lane.b32.xlu1 %v2686_v11, %s8269_s5 }
 0x7cd   :  { %v5828_v35 = vsel %vm3882_vm5, %v12907_v10, %v5826_v53  ;;  %vm5894_vm5 = vcmp.eq.f32.partialorder %v174_v22, 1.0  ;;  %v5911_v53 = vunpack.c.l.s4 %v8278_v16  ;;  %v8247_v16 = vld [vmem:[%s12116_s0 + $0x158] sm:$0xff]  }
 0x7ce   :  { %5830 = vrot.lane.b32.xlu0 %v5828_v35, %s8270_s1  ;;  %7170 = vmatpush3.bf16.msra.mxu1 %v8207_v12  ;;  %v8233_v12 = vld [vmem:[%s12116_s0 + $0xe8] sm:$0xff]  }
 0x7cf   :  { %7171 = vmatprep.subr.bf16.mxu1 %v8275_v21 }
 0x7d2   :  { %7172 = vmatpush3.bf16.msra.mxu1 %v8208_v51 }
 0x7d3   :  { %7173 = vmatprep.subr.bf16.mxu1 %v8275_v21 }
 0x7d6   :  { %7174 = vmatpush3.bf16.msra.mxu1 %v8209_v47  ;;  %v8234_v47 = vld [vmem:[%s12116_s0 + $0xf0] sm:$0xff]  }
 0x7d7   :  { %7175 = vmatprep.subr.bf16.mxu1 %v8275_v21 }
 0x7da   :  { %7176 = vmatpush3.bf16.msra.mxu1 %v8210_v32 }
 0x7db   :  { %7177 = vmatprep.subr.bf16.mxu1 %v8275_v21 }
 0x7de   :  { %7178 = vmatpush3.bf16.msra.mxu1 %v8211_v57  ;;  %v8235_v57 = vld [vmem:[%s12116_s0 + $0xf8] sm:$0xff]  }
 0x7df   :  { %7183 = vmatprep.subr.bf16.mxu1 %v8275_v21 }
 0x83e   :  { %v3880_v23 = vpop.permute.xlu1 %3879 }
 0x83f   :  { %v3881_v46 = vsel %vm12908_vm13, %v3880_v23, 0.0  ;;  %vm5898_vm13 = vcmp.eq.f32.partialorder %v174_v22, -2.0  ;;  %v12909_v23 = vld [vmem:[#allocation188_spill] sm:$0xff] }
 0x840   :  { %v5829_v42 = vmax.f32 %v2686_v11, %v3881_v46  ;;  %v5831_v27 = vpop.permute.xlu0 %5830  ;;  %v5912_v11 = vunpack.c.0.s8 %v5911_v53  ;;  %v8248_v53 = vld [vmem:[%s12116_s0 + $0x160] sm:$0xff]  }
 0x841   :  { %v5833_v13 = vsel %vm5832_vm12, %v5831_v27, 0.0 }
 0x842   :  { %v5838_v43 = vmax.f32 %v5828_v35, %v5833_v13  ;;  %5834 = vrot.lane.b32.xlu1 %v5829_v42, %s8270_s1  ;;  %vm5837_vm14 = vcmp.gt.f32.partialorder %v5829_v42, 0.5  ;;  %v5915_v46 = vsub.s32 %v5912_v11, %v12909_v23  ;;  %v8249_v11 = vld [vmem:[%s12116_s0 + $0x168] sm:$0xff]  }
 0x844   :  { %v5839_v9 = vsel %vm5837_vm14, %v5828_v35, %v5838_v43  ;;  %vm5887_vm14 = vcmp.lt.s32.totalorder %v12904_v60, 64 }
 0x845   :  { %5841 = vrot.lane.b32.xlu0 %v5839_v9, %s8271_s26 }
 0x8b4   :  { %v5835_v37 = vpop.permute.xlu1 %5834 }
 0x8b5   :  { %v5836_v2 = vsel %vm5832_vm12, %v5835_v37, 0.0  ;;  %vm5895_vm12 = vmor %vm5893_vm11, %vm5894_vm5 }
 0x8b6   :  { %v5840_v31 = vmax.f32 %v5829_v42, %v5836_v2  ;;  %v5896_v28 = vsel %vm5895_vm12, 1.0, %v8275_v21  ;;  %v8212_v2 = vld [vmem:[%s12116_s0 + $0x40] sm:$0xff]  }
 0x8b7   :  { %v5842_v59 = vpop.permute.xlu0 %5841 }
 0x8b8   :  { %v5844_v0 = vsel %vm5843_vm15, %v5842_v59, 0.0  ;;  %5845 = vrot.lane.b32.xlu1 %v5840_v31, %s8271_s26  ;;  %vm5848_vm1 = vcmp.gt.f32.partialorder %v5840_v31, 0.5  ;;  %v8214_v59 = vld [vmem:[%s12116_s0 + $0x50] sm:$0xff]  }
 0x8b9   :  { %v5849_v1 = vmax.f32 %v5839_v9, %v5844_v0  ;;  %v8215_v0 = vld [vmem:[%s12116_s0 + $0x58] sm:$0xff]  }
 0x8bb   :  { %v5850_v30 = vsel %vm5848_vm1, %v5839_v9, %v5849_v1  ;;  %vm176_vm1 = vcmp.gt.f32.partialorder %v11570_v7, 0.5  ;;  %v12910_v9 = vld [vmem:[#allocation67_spill] sm:$0xff] }
 0x8bc   :  { %5852 = vrot.lane.b32.xlu0 %v5850_v30, %s8272_s27  ;;  %v8216_v1 = vld [vmem:[%s12116_s0 + $0x60] sm:$0xff]  }
 0x92a   :  { %v5846_v6 = vpop.permute.xlu1 %5845 }
 0x92b   :  { %v5847_v61 = vsel %vm5843_vm15, %v5846_v6, 0.0  ;;  %vm5899_vm15 = vmor %vm5895_vm12, %vm5898_vm13 }
 0x92c   :  { %v5851_v24 = vmax.f32 %v5840_v31, %v5847_v61  ;;  %v5900_v4 = vsel %vm5899_vm15, 1.0, %v8275_v21  ;;  %v8213_v31 = vld [vmem:[%s12116_s0 + $0x48] sm:$0xff]   ;;  %v8218_v61 = vld [vmem:[%s12116_s0 + $0x70] sm:$0xff]  }
 0x92e   :  { %5856 = vrot.lane.b32.xlu1 %v5851_v24, %s8272_s27  ;;  %v5853_v39 = vpop.permute.xlu0 %5852  ;;  %vm5859_vm6 = vcmp.gt.f32.partialorder %v5851_v24, 0.5 }
 0x92f   :  { %v5855_v26 = vsel %vm5854_vm10, %v5853_v39, 0.0  ;;  %v8219_v39 = vld [vmem:[%s12116_s0 + $0x78] sm:$0xff]  }
 0x930   :  { %v5860_v55 = vmax.f32 %v5850_v30, %v5855_v26 }
 0x932   :  { %v5861_v36 = vsel %vm5859_vm6, %v5850_v30, %v5860_v55  ;;  %vm8277_vm6 = vmmov 0   ;;  %v8217_v30 = vld [vmem:[%s12116_s0 + $0x68] sm:$0xff]   ;;  %v8220_v55 = vld [vmem:[%s12116_s0 + $0x80] sm:$0xff]  }
 0x933   :  { %5863 = vrot.lane.b32.xlu0 %v5861_v36, %s8273_s28  ;;  %7179 = vmatprep.mubr.msk.bf16.mxu1 %vm8277_vm6, %v8275_v21 }
 0x9a0   :  { %v5857_v45 = vpop.permute.xlu1 %5856 }
 0x9a1   :  { %v5858_v34 = vsel %vm5854_vm10, %v5857_v45, 0.0  ;;  %v8222_v45 = vld [vmem:[%s12116_s0 + $0x90] sm:$0xff]  }
 0x9a2   :  { %v5862_v17 = vmax.f32 %v5851_v24, %v5858_v34  ;;  %v8223_v34 = vld [vmem:[%s12116_s0 + $0x98] sm:$0xff]  }
 0x9a4   :  { %5867 = vrot.lane.b32.xlu1 %v5862_v17, %s8273_s28  ;;  %vm5870_vm4 = vcmp.gt.f32.partialorder %v5862_v17, 0.5 }
 0x9a5   :  { %v5864_v41 = vpop.permute.xlu0 %5863 }
 0x9a6   :  { %v5866_v14 = vsel %vm5865_vm3, %v5864_v41, 0.0 }
 0x9a7   :  { %v5871_v20 = vmax.f32 %v5861_v36, %v5866_v14  ;;  %v8225_v14 = vld [vmem:[%s12116_s0 + $0xa8] sm:$0xff]  }
 0x9a9   :  { %v5872_v18 = vsel %vm5870_vm4, %v5861_v36, %v5871_v20  ;;  %v8221_v36 = vld [vmem:[%s12116_s0 + $0x88] sm:$0xff]   ;;  %vm12912_vm4 = vcmask 1042434  }
 0x9aa   :  { %5874 = vrot.lane.b32.xlu0 %v5872_v18, %s8274_s29 }
 0xa16   :  { %v5868_v50 = vpop.permute.xlu1 %5867 }
 0xa17   :  { %v5869_v5 = vsel %vm5865_vm3, %v5868_v50, 0.0  ;;  %vm12911_vm3 = vcmask 1041409  }
 0xa18   :  { %v5873_v8 = vmax.f32 %v5862_v17, %v5869_v5  ;;  %v8224_v17 = vld [vmem:[%s12116_s0 + $0xa0] sm:$0xff]  }
 0xa19   :  { %v7410_v5 = vld [vmem:[%s12124_s7] ss:$12 sps:$4 sm:$0xff]  }
 0xa1a   :  { %5878 = vrot.lane.b32.xlu1 %v5873_v8, %s8274_s29  ;;  %vm5881_vm2 = vcmp.gt.f32.partialorder %v5873_v8, 0.5 }
 0xa1c   :  { %v5875_v48 = vpop.permute.xlu0 %5874 }
 0xa1d   :  { %v5877_v3 = vsel %vm5876_vm0, %v5875_v48, 0.0 }
 0xa1e   :  { %v5882_v40 = vmax.f32 %v5872_v18, %v5877_v3  ;;  %v8228_v3 = vld [vmem:[%s12116_s0 + $0xc0] sm:$0xff]  }
 0xa20   :  { %v5883_v19 = vsel %vm5881_vm2, %v5872_v18, %v5882_v40  ;;  %v8226_v18 = vld [vmem:[%s12116_s0 + $0xb0] sm:$0xff]   ;;  %v8229_v40 = vld [vmem:[%s12116_s0 + $0xc8] sm:$0xff]  }
 0xa21   :  { %5885 = vrot.lane.b32.xlu0 %v5883_v19, %s8276_s16 }
 0xa8c   :  { %v5879_v33 = vpop.permute.xlu1 %5878 }
 0xa8d   :  { %v5880_v62 = vsel %vm5876_vm0, %v5879_v33, 0.0  ;;  %v8236_v33 = vld [vmem:[%s12116_s0 + $0x100] sm:$0xff]   ;;  %vm12913_vm0 = vcmask 1043459  }
 0xa8e   :  { %v5884_v54 = vmax.f32 %v5873_v8, %v5880_v62  ;;  %v7412_v8 = vld [vmem:[%s12124_s7 + $0x4] ss:$12 sps:$4 sm:$0xff]   ;;  %v8237_v62 = vld [vmem:[%s12116_s0 + $0x108] sm:$0xff]  }
 0xa8f   :  { %6473 = vmatprep.subr.bf16.mxu0 %v7412_v8  ;;  %v8267_v8 = vld [vmem:[%s12116_s0 + $0x1f8] sm:$0xff]  }
 0xa90   :  { %vm5889_vm10 = vcmp.gt.f32.partialorder %v5884_v54, 0.5  ;;  %6474 = vmatpush1.bf16.msra.mxu0 %v7410_v5  ;;  %v8238_v54 = vld [vmem:[%s12116_s0 + $0x110] sm:$0xff]  }
 0xa93   :  { %v5886_v25 = vpop.permute.xlu0 %5885 }
 0xa94   :  { %v5888_v44 = vsel %vm5887_vm14, %v5886_v25, 0.0  ;;  %v8239_v25 = vld [vmem:[%s12116_s0 + $0x118] sm:$0xff]  }
 0xa95   :  { %v5890_v56 = vmax.f32 %v5883_v19, %v5888_v44  ;;  %v8240_v44 = vld [vmem:[%s12116_s0 + $0x120] sm:$0xff]  }
 0xa97   :  { %v5891_v38 = vsel %vm5889_vm10, %v5883_v19, %v5890_v56  ;;  %v8231_v19 = vld [vmem:[%s12116_s0 + $0xd8] sm:$0xff]   ;;  %v8241_v56 = vld [vmem:[%s12116_s0 + $0x128] sm:$0xff]  }
 0xa98   :  { %v5892_v29 = vsel %vm176_vm1, %v12907_v10, %v5891_v38 }
 0xa99   :  { %v5901_v63 = vmul.f32 %v5900_v4, %v5892_v29  ;;  %v5897_v15 = vmul.f32 %v5896_v28, %v5892_v29  ;;  %v8242_v4 = vld [vmem:[%s12116_s0 + $0x130] sm:$0xff]   ;;  %v8243_v29 = vld [vmem:[%s12116_s0 + $0x138] sm:$0xff]  }
 0xa9b   :  { %5902 = vadd.xlane.f32.xlu1 %v5901_v63  ;;  %6595 = vst [vmem:[%s12122_s11] sm:$0xff] %v5897_v15  ;;  %6596 = vst [vmem:[%s12123_s12] sm:$0xff] %v5901_v63  ;;  %v8244_v15 = vld [vmem:[%s12116_s0 + $0x140] sm:$0xff]  }
 0xb28   :  { %v5903_v7 = vpop.xlane.xlu1 %5902 }
 0xb29   :  { %v5904_v60 = vadd.f32 1e-10, %v5903_v7  ;;  %v8245_v7 = vld [vmem:[%s12116_s0 + $0x148] sm:$0xff]  }
 0xb2b   :  { %8186 = vrcp.f32 %v5904_v60  ;;  %v8246_v60 = vld [vmem:[%s12116_s0 + $0x150] sm:$0xff]  }
 0xb35   :  { %v8187_v10 = vpop.eup %8186 }
 0xb36   :  { %v5907_v35 = vmul.f32 %v8187_v10, %v5901_v63 }
 0xb38   :  { %v5908_v42 = vpack.c.bf16 %v5907_v35, %v5907_v35  ;;  %v8250_v35 = vld [vmem:[%s12116_s0 + $0x170] sm:$0xff]  }
 0xb3a   :  { %v5916_v27 = vrot.slane %v5908_v42, %v5915_v46 }
 0xb3c   :  { %v11807_v13 = vrot.slane %v5916_v27, %v5915_v46  ;;  %v5917_v41 = vcombine.high %v5916_v27, %v5916_v27  ;;  %v8252_v27 = vld [vmem:[%s12116_s0 + $0x180] sm:$0xff]  }
 0xb3e   :  { %v6876_v43 = vpack.i.b16 %v11807_v13, %v11807_v13  ;;  %v5935_v6 = vunpack.i.h.s16 %v11807_v13  ;;  %v11874_v20 = vrot.slane %v5917_v41, %v5915_v46  ;;  %v5932_v28 = vcombine.high %v11807_v13, %v11807_v13  ;;  %v8251_v46 = vld [vmem:[%s12116_s0 + $0x178] sm:$0xff]   ;;  %v8253_v13 = vld [vmem:[%s12116_s0 + $0x188] sm:$0xff]  }
 0xb3f   :  { %v8265_v41 = vld [vmem:[%s12116_s0 + $0x1e8] sm:$0xff]  }
 0xb40   :  { %v5946_v37 = vrot.slane %v6876_v43, %v12910_v9  ;;  %v5996_v24 = vpack.i.b16 %v5935_v6, %v5935_v6  ;;  %v6877_v50 = vpack.i.b16 %v11874_v20, %v11874_v20  ;;  %v5937_v51 = vunpack.i.h.s16 %v11874_v20  ;;  %v8254_v43 = vld [vmem:[%s12116_s0 + $0x190] sm:$0xff]   ;;  %v7415_v6 = vld [vmem:[%s12124_s7 + $0x1c] ss:$12 sps:$4 sm:$0xff]  }
 0xb41   :  { %v6878_v38 = vpack.i.b16 %v5932_v28, %v5932_v28  ;;  %v5939_v10 = vunpack.i.h.s16 %v5932_v28  ;;  %6475 = vmatprep.subr.bf16.mxu0 %v7415_v6 }
 0xb42   :  { %7180 = vmatmul.mubr.bf16.vlgmr.msra.gmra.mrb[0].mxu1 %v5946_v37  ;;  %v6000_v26 = vrot.slane %v5996_v24, %v12910_v9  ;;  %v6054_v48 = vrot.slane %v6877_v50, %v12910_v9  ;;  %v6104_v32 = vpack.i.b16 %v5937_v51, %v5937_v51  ;;  %v8255_v37 = vld [vmem:[%s12116_s0 + $0x198] sm:$0xff]   ;;  %v8266_v50 = vld [vmem:[%s12116_s0 + $0x1f0] sm:$0xff]  }
 0xb43   :  { %7184 = vmatpush3.bf16.msra.mxu1 %v8212_v2  ;;  %7199 = vmatprep.mubr.msk.bf16.mxu1 %vm8277_vm6, %v8275_v21  ;;  %v6162_v63 = vrot.slane %v6878_v38, %v12910_v9  ;;  %v6212_v23 = vpack.i.b16 %v5939_v10, %v5939_v10  ;;  %v8256_v2 = vld [vmem:[%s12116_s0 + $0x1a0] sm:$0xff]  }
 0xb44   :  { %7185 = vmatprep.subr.bf16.mxu1 %v8275_v21  ;;  %v6108_v22 = vrot.slane %v6104_v32, %v12910_v9 }
 0xb45   :  { %v6216_v42 = vrot.slane %v6212_v23, %v12910_v9 }
 0xb47   :  { %7186 = vmatpush3.bf16.msra.mxu1 %v8213_v31  ;;  %v8257_v31 = vld [vmem:[%s12116_s0 + $0x1a8] sm:$0xff]  }
 0xb48   :  { %7187 = vmatprep.subr.bf16.mxu1 %v8275_v21 }
 0xb4b   :  { %7188 = vmatpush3.bf16.msra.mxu1 %v8214_v59  ;;  %v5933_v59 = vcombine.high %v11874_v20, %v11874_v20 }
 0xb4c   :  { %7189 = vmatprep.subr.bf16.mxu1 %v8275_v21 }
 0xb4f   :  { %7190 = vmatpush3.bf16.msra.mxu1 %v8215_v0  ;;  %v8258_v0 = vld [vmem:[%s12116_s0 + $0x1b0] sm:$0xff]  }
 0xb50   :  { %7191 = vmatprep.subr.bf16.mxu1 %v8275_v21 }
 0xb53   :  { %7192 = vmatpush3.bf16.msra.mxu1 %v8216_v1  ;;  %v6879_v1 = vpack.i.b16 %v5933_v59, %v5933_v59 }
 0xb54   :  { %7193 = vmatprep.subr.bf16.mxu1 %v8275_v21 }
 0xb55   :  { %v6270_v24 = vrot.slane %v6879_v1, %v12910_v9 }
 0xb57   :  { %7194 = vmatpush3.bf16.msra.mxu1 %v8217_v30  ;;  %v7413_v30 = vld [vmem:[%s12124_s7 + $0x18] ss:$12 sps:$4 sm:$0xff]  }
 0xb58   :  { %7195 = vmatprep.subr.bf16.mxu1 %v8275_v21  ;;  %6476 = vmatpush1.bf16.msra.mxu0 %v7413_v30 }
 0xb5b   :  { %7196 = vmatpush3.bf16.msra.mxu1 %v8218_v61  ;;  %v8259_v61 = vld [vmem:[%s12116_s0 + $0x1b8] sm:$0xff]  }
 0xb5c   :  { %7197 = vmatprep.subr.bf16.mxu1 %v8275_v21 }
 0xb5f   :  { %7198 = vmatpush3.bf16.msra.mxu1 %v8219_v39  ;;  %v8260_v39 = vld [vmem:[%s12116_s0 + $0x1c0] sm:$0xff]  }
 0xb60   :  { %7203 = vmatprep.subr.bf16.mxu1 %v8275_v21 }
 0xb62   :  { %7200 = vmatmul.mubr.bf16.vlgmr.msra.gmra.mrb[4].mxu1 %v6000_v26  ;;  %v8261_v26 = vld [vmem:[%s12116_s0 + $0x1c8] sm:$0xff]  }
 0xb63   :  { %7204 = vmatpush3.bf16.msra.mxu1 %v8220_v55  ;;  %7219 = vmatprep.mubr.msk.bf16.mxu1 %vm8277_vm6, %v8275_v21  ;;  %v8262_v55 = vld [vmem:[%s12116_s0 + $0x1d0] sm:$0xff]  }
 0xb64   :  { %7205 = vmatprep.subr.bf16.mxu1 %v8275_v21 }
 0xb67   :  { %7206 = vmatpush3.bf16.msra.mxu1 %v8221_v36  ;;  %v8263_v36 = vld [vmem:[%s12116_s0 + $0x1d8] sm:$0xff]  }
 0xb68   :  { %7207 = vmatprep.subr.bf16.mxu1 %v8275_v21 }
 0xb6b   :  { %7208 = vmatpush3.bf16.msra.mxu1 %v8222_v45  ;;  %v8264_v45 = vld [vmem:[%s12116_s0 + $0x1e0] sm:$0xff]  }
 0xb6c   :  { %7209 = vmatprep.subr.bf16.mxu1 %v8275_v21 }
 0xb6f   :  { %7210 = vmatpush3.bf16.msra.mxu1 %v8223_v34 }
 0xb70   :  { %7211 = vmatprep.subr.bf16.mxu1 %v8275_v21 }
 0xb73   :  { %7212 = vmatpush3.bf16.msra.mxu1 %v8224_v17 }
 0xb74   :  { %7213 = vmatprep.subr.bf16.mxu1 %v8275_v21 }
 0xb77   :  { %7214 = vmatpush3.bf16.msra.mxu1 %v8225_v14 }
 0xb78   :  { %7215 = vmatprep.subr.bf16.mxu1 %v8275_v21 }
 0xb7b   :  { %7216 = vmatpush3.bf16.msra.mxu1 %v8226_v18  ;;  %v5941_v18 = vunpack.i.h.s16 %v5933_v59 }
 0xb7c   :  { %7217 = vmatprep.subr.bf16.mxu1 %v8275_v21 }
 0xb7d   :  { %v6320_v5 = vpack.i.b16 %v5941_v18, %v5941_v18 }
 0xb7f   :  { %7218 = vmatpush3.bf16.msra.mxu1 %v8227_v58  ;;  %v6324_v58 = vrot.slane %v6320_v5, %v12910_v9 }
 0xb80   :  { %7223 = vmatprep.subr.bf16.mxu1 %v8275_v21 }
 0xb82   :  { %7220 = vmatmul.mubr.bf16.vlgmr.msra.gmra.mrb[8].mxu1 %v6054_v48 }
 0xb83   :  { %7224 = vmatpush3.bf16.msra.mxu1 %v8228_v3  ;;  %7239 = vmatprep.mubr.msk.bf16.mxu1 %vm8277_vm6, %v8275_v21 }
 0xb84   :  { %7225 = vmatprep.subr.bf16.mxu1 %v8275_v21 }
 0xb87   :  { %7226 = vmatpush3.bf16.msra.mxu1 %v8229_v40 }
 0xb88   :  { %7227 = vmatprep.subr.bf16.mxu1 %v8275_v21 }
 0xb8b   :  { %7228 = vmatpush3.bf16.msra.mxu1 %v8230_v49 }
 0xb8c   :  { %7229 = vmatprep.subr.bf16.mxu1 %v8275_v21 }
 0xb8f   :  { %7230 = vmatpush3.bf16.msra.mxu1 %v8231_v19 }
 0xb90   :  { %7231 = vmatprep.subr.bf16.mxu1 %v8275_v21 }
 0xb93   :  { %7232 = vmatpush3.bf16.msra.mxu1 %v8232_v52 }
 0xb94   :  { %7233 = vmatprep.subr.bf16.mxu1 %v8275_v21 }
 0xb97   :  { %7234 = vmatpush3.bf16.msra.mxu1 %v8233_v12 }
 0xb98   :  { %7235 = vmatprep.subr.bf16.mxu1 %v8275_v21 }
 0xb9b   :  { %7236 = vmatpush3.bf16.msra.mxu1 %v8234_v47 }
 0xb9c   :  { %7237 = vmatprep.subr.bf16.mxu1 %v8275_v21 }
 0xb9f   :  { %7238 = vmatpush3.bf16.msra.mxu1 %v8235_v57 }
 0xba0   :  { %7243 = vmatprep.subr.bf16.mxu1 %v8275_v21 }
 0xba2   :  { %7240 = vmatmul.mubr.bf16.vlgmr.msra.gmra.mrb[12].mxu1 %v6108_v22 }
 0xba3   :  { %7244 = vmatpush3.bf16.msra.mxu1 %v8236_v33  ;;  %7259 = vmatprep.mubr.msk.bf16.mxu1 %vm8277_vm6, %v8275_v21 }
 0xba4   :  { %7245 = vmatprep.subr.bf16.mxu1 %v8275_v21 }
 0xba7   :  { %7246 = vmatpush3.bf16.msra.mxu1 %v8237_v62 }
 0xba8   :  { %7247 = vmatprep.subr.bf16.mxu1 %v8275_v21 }
 0xbab   :  { %7248 = vmatpush3.bf16.msra.mxu1 %v8238_v54 }
 0xbac   :  { %7249 = vmatprep.subr.bf16.mxu1 %v8275_v21 }
 0xbaf   :  { %7250 = vmatpush3.bf16.msra.mxu1 %v8239_v25 }
 0xbb0   :  { %7251 = vmatprep.subr.bf16.mxu1 %v8275_v21 }
 0xbb3   :  { %7252 = vmatpush3.bf16.msra.mxu1 %v8240_v44 }
 0xbb4   :  { %7253 = vmatprep.subr.bf16.mxu1 %v8275_v21 }
 0xbb7   :  { %7254 = vmatpush3.bf16.msra.mxu1 %v8241_v56 }
 0xbb8   :  { %7255 = vmatprep.subr.bf16.mxu1 %v8275_v21 }
 0xbbb   :  { %7256 = vmatpush3.bf16.msra.mxu1 %v8242_v4 }
 0xbbc   :  { %7257 = vmatprep.subr.bf16.mxu1 %v8275_v21 }
 0xbbf   :  { %7258 = vmatpush3.bf16.msra.mxu1 %v8243_v29 }
 0xbc0   :  { %7263 = vmatprep.subr.bf16.mxu1 %v8275_v21 }
 0xbc2   :  { %7260 = vmatmul.mubr.bf16.vlgmr.msra.gmra.mrb[16].mxu1 %v6162_v63 }
 0xbc3   :  { %7264 = vmatpush3.bf16.msra.mxu1 %v8244_v15  ;;  %7279 = vmatprep.mubr.msk.bf16.mxu1 %vm8277_vm6, %v8275_v21 }
 0xbc4   :  { %7265 = vmatprep.subr.bf16.mxu1 %v8275_v21 }
 0xbc7   :  { %7266 = vmatpush3.bf16.msra.mxu1 %v8245_v7 }
 0xbc8   :  { %7267 = vmatprep.subr.bf16.mxu1 %v8275_v21 }
 0xbcb   :  { %7268 = vmatpush3.bf16.msra.mxu1 %v8246_v60  ;;  %v7416_v60 = vld [vmem:[%s12124_s7 + $0x8] ss:$12 sps:$4 sm:$0xff]  }
 0xbcc   :  { %7269 = vmatprep.subr.bf16.mxu1 %v8275_v21 }
 0xbcf   :  { %7270 = vmatpush3.bf16.msra.mxu1 %v8247_v16 }
 0xbd0   :  { %7271 = vmatprep.subr.bf16.mxu1 %v8275_v21 }
 0xbd3   :  { %7272 = vmatpush3.bf16.msra.mxu1 %v8248_v53  ;;  %v7417_v53 = vld [vmem:[%s12124_s7 + $0x20] ss:$12 sps:$4 sm:$0xff]  }
 0xbd4   :  { %7273 = vmatprep.subr.bf16.mxu1 %v8275_v21 }
 0xbd7   :  { %7274 = vmatpush3.bf16.msra.mxu1 %v8249_v11 }
 0xbd8   :  { %7275 = vmatprep.subr.bf16.mxu1 %v8275_v21 }
 0xbdb   :  { %7276 = vmatpush3.bf16.msra.mxu1 %v8250_v35 }
 0xbdc   :  { %7277 = vmatprep.subr.bf16.mxu1 %v8275_v21 }
 0xbdf   :  { %7278 = vmatpush3.bf16.msra.mxu1 %v8251_v46 }
 0xbe0   :  { %7283 = vmatprep.subr.bf16.mxu1 %v8275_v21 }
 0xbe2   :  { %7280 = vmatmul.mubr.bf16.vlgmr.msra.gmra.mrb[20].mxu1 %v6216_v42 }
 0xbe3   :  { %7284 = vmatpush3.bf16.msra.mxu1 %v8252_v27  ;;  %7299 = vmatprep.mubr.msk.bf16.mxu1 %vm8277_vm6, %v8275_v21 }
 0xbe4   :  { %7285 = vmatprep.subr.bf16.mxu1 %v8275_v21 }
 0xbe7   :  { %7286 = vmatpush3.bf16.msra.mxu1 %v8253_v13 }
 0xbe8   :  { %7287 = vmatprep.subr.bf16.mxu1 %v8275_v21 }
 0xbeb   :  { %7288 = vmatpush3.bf16.msra.mxu1 %v8254_v43 }
 0xbec   :  { %7289 = vmatprep.subr.bf16.mxu1 %v8275_v21 }
 0xbef   :  { %7290 = vmatpush3.bf16.msra.mxu1 %v8255_v37 }
 0xbf0   :  { %7291 = vmatprep.subr.bf16.mxu1 %v8275_v21 }
 0xbf3   :  { %7292 = vmatpush3.bf16.msra.mxu1 %v8256_v2 }
 0xbf4   :  { %7293 = vmatprep.subr.bf16.mxu1 %v8275_v21 }
 0xbf7   :  { %7294 = vmatpush3.bf16.msra.mxu1 %v8257_v31 }
 0xbf8   :  { %7295 = vmatprep.subr.bf16.mxu1 %v8275_v21 }
 0xbfb   :  { %7296 = vmatpush3.bf16.msra.mxu1 %v8258_v0 }
 0xbfc   :  { %7297 = vmatprep.subr.bf16.mxu1 %v8275_v21 }
 0xbff   :  { %7298 = vmatpush3.bf16.msra.mxu1 %v8259_v61 }
 0xc00   :  { %7303 = vmatprep.subr.bf16.mxu1 %v8275_v21 }
 0xc02   :  { %7300 = vmatmul.mubr.bf16.vlgmr.msra.gmra.mrb[24].mxu1 %v6270_v24 }
 0xc03   :  { %7304 = vmatpush3.bf16.msra.mxu1 %v8260_v39  ;;  %7319 = vmatprep.mubr.msk.bf16.mxu1 %vm8277_vm6, %v8275_v21 }
 0xc04   :  { %7305 = vmatprep.subr.bf16.mxu1 %v8275_v21 }
 0xc07   :  { %7306 = vmatpush3.bf16.msra.mxu1 %v8261_v26 }
 0xc08   :  { %7307 = vmatprep.subr.bf16.mxu1 %v8275_v21 }
 0xc0b   :  { %7308 = vmatpush3.bf16.msra.mxu1 %v8262_v55 }
 0xc0c   :  { %7309 = vmatprep.subr.bf16.mxu1 %v8275_v21 }
 0xc0f   :  { %7310 = vmatpush3.bf16.msra.mxu1 %v8263_v36 }
 0xc10   :  { %7311 = vmatprep.subr.bf16.mxu1 %v8275_v21 }
 0xc13   :  { %7312 = vmatpush3.bf16.msra.mxu1 %v8264_v45 }
 0xc14   :  { %7313 = vmatprep.subr.bf16.mxu1 %v8275_v21 }
 0xc15   :  { %v5990_v34 = vpop.f32.mrb[0].mxu1 }
 0xc16   :  { %v7181_v17 = vpop.f32.mrb[1].mxu1  ;;  %v6374_v3 = vpack.c.bf16 %v5990_v34, %v5990_v34 }
 0xc17   :  { %7314 = vmatpush3.bf16.msra.mxu1 %v8265_v41  ;;  %v5993_v14 = vpop.f32.mrb[2].mxu1 }
 0xc18   :  { %v7182_v20 = vpop.f32.mrb[3].mxu1  ;;  %7315 = vmatprep.subr.bf16.mxu1 %v8275_v21  ;;  %v6415_v51 = vunpack.c.l.b16 %v6374_v3  ;;  %v12917_v3 = vld [vmem:[#allocation179_spill] sm:$0xff] }
 0xc1b   :  { %7316 = vmatpush3.bf16.msra.mxu1 %v8266_v50 }
 0xc1c   :  { %7317 = vmatprep.subr.bf16.mxu1 %v8275_v21 }
 0xc1f   :  { %7318 = vmatpush3.bf16.msra.mxu1 %v8267_v8  ;;  %v21_v8 = vstv %s12125_s10 }
 0xc20   :  { %7323 = vmatprep.subr.bf16.mxu1 %v8275_v21  ;;  %22 = vst [vmem:[#allocation3] sm:$0x1] %v21_v8 }
 0xc22   :  { %7320 = vmatmul.mubr.bf16.vlgmr.msra.gmra.mrb[28].mxu1 %v6324_v58  ;;  %v6390_v58 = vld [vmem:[%s12126_s8] sm:$0x7] }
 0xc23   :  { %7327 = vmatprep.mubr.msk.bf16.mxu1 %vm8277_vm6, %v8275_v21  ;;  %7324 = vmatpush3.bf16.msra.mxu1 %v7416_v60 }
 0xc24   :  { %7325 = vmatprep.subr.bf16.mxu1 %v8275_v21 }
 0xc27   :  { %7326 = vmatpush3.bf16.msra.mxu1 %v7417_v53 }
 0xc35   :  { %v6044_v48 = vpop.f32.mrb[4].mxu1 }
 0xc36   :  { %v6375_v40 = vpack.c.bf16 %v6044_v48, %v6044_v48  ;;  %v7201_v49 = vpop.f32.mrb[5].mxu1  ;;  %v6395_v48 = vrot.slane %v6390_v58, %v12910_v9 }
 0xc37   :  { %v6047_v19 = vpop.f32.mrb[6].mxu1  ;;  %v12918_v49 = vld [vmem:[#allocation156_spill] sm:$0xff] }
 0xc38   :  { %v6416_v52 = vunpack.c.l.b16 %v6375_v40  ;;  %v7202_v12 = vpop.f32.mrb[7].mxu1  ;;  %v6403_v40 = vrot.slane %v6390_v58, %v12917_v3  ;;  %v6399_v19 = vrot.slane %v6390_v58, %v12918_v49 }
 0xc3a   :  { %v6423_v47 = vrot.slane %v6416_v52, 7 }
 0xc3c   :  { %v6424_v32 = vsel %vm12911_vm3, %v6423_v47, %v6415_v51 }
 0xc55   :  { %v6098_v57 = vpop.f32.mrb[8].mxu1 }
 0xc56   :  { %v6376_v22 = vpack.c.bf16 %v6098_v57, %v6098_v57  ;;  %v7221_v33 = vpop.f32.mrb[9].mxu1 }
 0xc57   :  { %v6101_v62 = vpop.f32.mrb[10].mxu1 }
 0xc58   :  { %v6417_v54 = vunpack.c.l.b16 %v6376_v22  ;;  %v7222_v25 = vpop.f32.mrb[11].mxu1 }
 0xc5a   :  { %v6425_v44 = vrot.slane %v6417_v54, 6 }
 0xc5c   :  { %v6426_v56 = vsel %vm12912_vm4, %v6425_v44, %v6424_v32  ;;  %v6557_v44 = vld [vmem:[%s12127_s9] sm:$0x7] }
 0xc75   :  { %v6152_v28 = vpop.f32.mrb[12].mxu1 }
 0xc76   :  { %v6377_v4 = vpack.c.bf16 %v6152_v28, %v6152_v28  ;;  %v7241_v38 = vpop.f32.mrb[13].mxu1  ;;  %v6566_v28 = vrot.slane %v6557_v44, %v12918_v49 }
 0xc77   :  { %v6155_v29 = vpop.f32.mrb[14].mxu1 }
 0xc78   :  { %v6418_v63 = vunpack.c.l.b16 %v6377_v4  ;;  %v7242_v15 = vpop.f32.mrb[15].mxu1  ;;  %v6570_v29 = vrot.slane %v6557_v44, %v12917_v3 }
 0xc7a   :  { %v6427_v7 = vrot.slane %v6418_v63, 5 }
 0xc7c   :  { %v6428_v16 = vsel %vm12913_vm0, %v6427_v7, %v6426_v56  ;;  %v6562_v56 = vrot.slane %v6557_v44, %v12910_v9 }
 0xc95   :  { %v6206_v11 = vpop.f32.mrb[16].mxu1 }
 0xc96   :  { %v6378_v10 = vpack.c.bf16 %v6206_v11, %v6206_v11  ;;  %v7261_v35 = vpop.f32.mrb[17].mxu1  ;;  %v6888_v11 = vld [vmem:[#allocation3] ss:$0 sm:$0xff] }
 0xc97   :  { %v6209_v23 = vpop.f32.mrb[18].mxu1 }
 0xc98   :  { %v6419_v46 = vunpack.c.l.b16 %v6378_v10  ;;  %v7262_v42 = vpop.f32.mrb[19].mxu1 }
 0xc9a   :  { %v6429_v27 = vrot.slane %v6419_v46, 4 }
 0xc9c   :  { %v6430_v13 = vsel %vm3867_vm9, %v6429_v27, %v6428_v16  ;;  %vm12914_vm9 = vcmask 1047559  }
 0xcb5   :  { %v6260_v43 = vpop.f32.mrb[20].mxu1 }
 0xcb6   :  { %v6379_v37 = vpack.c.bf16 %v6260_v43, %v6260_v43  ;;  %v7281_v2 = vpop.f32.mrb[21].mxu1 }
 0xcb7   :  { %v6263_v31 = vpop.f32.mrb[22].mxu1 }
 0xcb8   :  { %v6420_v59 = vunpack.c.l.b16 %v6379_v37  ;;  %v7282_v21 = vpop.f32.mrb[23].mxu1 }
 0xcba   :  { %v6431_v0 = vrot.slane %v6420_v59, 3 }
 0xcbc   :  { %v6432_v1 = vsel %vm3869_vm8, %v6431_v0, %v6430_v13  ;;  %vm12915_vm8 = vcmask 261120  }
 0xcbd   :  { %vm12916_vm2 = vmmov %vm12915_vm8 }
 0xcd5   :  { %v6314_v30 = vpop.f32.mrb[24].mxu1 }
 0xcd6   :  { %v6380_v6 = vpack.c.bf16 %v6314_v30, %v6314_v30  ;;  %v7301_v61 = vpop.f32.mrb[25].mxu1 }
 0xcd7   :  { %v6317_v24 = vpop.f32.mrb[26].mxu1 }
 0xcd8   :  { %v6421_v39 = vunpack.c.l.b16 %v6380_v6  ;;  %v7302_v26 = vpop.f32.mrb[27].mxu1 }
 0xcda   :  { %v6433_v55 = vrot.slane %v6421_v39, 2 }
 0xcdc   :  { %v6434_v36 = vsel %vm3871_vm7, %v6433_v55, %v6432_v1 }
 0xcf5   :  { %v6368_v45 = vpop.f32.mrb[28].mxu1 }
 0xcf6   :  { %v6381_v34 = vpack.c.bf16 %v6368_v45, %v6368_v45  ;;  %v7321_v17 = vpop.f32.mrb[29].mxu1 }
 0xcf7   :  { %v6371_v41 = vpop.f32.mrb[30].mxu1 }
 0xcf8   :  { %v6422_v14 = vunpack.c.l.b16 %v6381_v34  ;;  %v7322_v20 = vpop.f32.mrb[31].mxu1 }
 0xcfa   :  { %v6435_v18 = vrot.slane %v6422_v14, 1 }
 0xcfc   :  { %v6436_v50 = vsel %vm12914_vm9, %v6435_v18, %v6434_v36 }
 0xcfd   :  { %v6437_v5 = vpack.c.b16 %v6436_v50, %v6436_v50 }
 0xcff   :  { %6886 = vmatmul.mubr.msk.bf16.vlgmr.msra.gmra.mrb[128].mxu0 %vm12915_vm8, %v6437_v5  ;;  %7328 = vmatmul.mubr.msk.bf16.vlgmr.msra.gmra.mrb[32].mxu1 %vm12916_vm2, %v6437_v5 }
 0xdd2   :  { %v6507_v52 = vpop.f32.mrb[128].mxu0  ;;  %v6548_v12 = vpop.f32.mrb[32].mxu1 }
 0xdd3   :  { %v6508_v51 = vadd.f32 %v6507_v52, %v6395_v48  ;;  %v6549_v47 = vadd.f32 %v6548_v12, %v6403_v40  ;;  %v6509_v32 = vpop.f32.mrb[129].mxu0  ;;  %v7329_v57 = vpop.f32.mrb[33].mxu1 }
 0xdd4   :  { %v6510_v22 = vadd.f32 %v6509_v32, %v6399_v19  ;;  %v6511_v33 = vpop.f32.mrb[130].mxu0  ;;  %v6551_v62 = vpop.f32.mrb[34].mxu1 }
 0xdd5   :  { %8188 = vtanh.f32 %v6508_v51  ;;  %v6512_v54 = vpop.f32.mrb[131].mxu0  ;;  %v7330_v25 = vpop.f32.mrb[35].mxu1 }
 0xdd6   :  { %8190 = vtanh.f32 %v6549_v47 }
 0xdd7   :  { %8192 = vtanh.f32 %v6510_v22 }
 0xddf   :  { %v8189_v4 = vpop.eup %8188 }
 0xde0   :  { %v8191_v38 = vpop.eup %8190  ;;  %v6574_v63 = vmul.f32 %v8189_v4, %v6562_v56 }
 0xde1   :  { %v8193_v15 = vpop.eup %8192  ;;  %v6576_v60 = vmul.f32 %v8191_v38, %v6570_v29 }
 0xde2   :  { %v6575_v7 = vmul.f32 %v8193_v15, %v6566_v28 }
 0xde4   :  { %v6577_v16 = vadd.f32 %v6575_v7, %v6574_v63 }
 0xde6   :  { %v6578_v53 = vadd.f32 %v6577_v16, %v6576_v60 }
 0xde8   :  { %6579 = vadd.xlane.f32.xlu0 %v6578_v53 }
 0xe75   :  { %v6580_v10 = vpop.xlane.xlu0 %6579 }
 0xe76   :  { %v6588_v35 = vadd.f32 %v6888_v11, %v6580_v10 }
 0xe78   :  { %v6889_v23 = vmul.f32 -1.442695, %v6588_v35 }
 0xe7a   :  { %8194 = vpow2.f32 %v6889_v23 }
 0xe84   :  { %v8195_v46 = vpop.eup %8194 }
 0xe85   :  { %v6592_v9 = vadd.f32 1.0, %v8195_v46 }
 0xe87   :  { %8196 = vrcp.f32 %v6592_v9 }
 0xe91   :  { %v8197_v42 = vpop.eup %8196 }
 0xe92   :  { %6599 = vperm.xlu0 %7343, %v8197_v42  }
 0xf11   :  { %v6600_v27 = vpop.permute.xlu0 %6599 }
 0xf12   :  { %6602 = vst [vmem:[%s12128_s13] sm:$0xff] %v6600_v27 }

</bundles_post_ra>
